<compile_context>
chip_gen: v7x
topology: tpu7x:2x2x1
jax: 0.10.0
libtpu: 0.0.40
codegen_flags: <defaults>
</compile_context>

<pallas_src>
import math
import functools

import jax
import jax.numpy as jnp
from jax import lax
from jax.experimental import pallas as pl
from jax.experimental.pallas import tpu as pltpu


def _layernorm(x, gamma, beta, eps=1e-5):
    """LayerNorm over the last axis; gamma/beta are (1, E) and broadcast."""
    mean = jnp.mean(x, axis=-1, keepdims=True)
    xc = x - mean
    var = jnp.mean(xc * xc, axis=-1, keepdims=True)
    return xc * lax.rsqrt(var + eps) * gamma + beta


def _aggregator_kernel(x_ref, wqkv_ref, bqkv_ref,
                       w1_ref, b1_ref, w2_ref, b2_ref,
                       g1_ref, be1_ref, g2_ref, be2_ref,
                       o_ref, attn_ref, *, nhead, group, compute_dtype):
    S, Tt, E = x_ref.shape[1], x_ref.shape[2], x_ref.shape[3]
    hd = E // nhead
    scale = 1.0 / math.sqrt(hd)
    M = S * Tt                 # rows per grid step, (stock, time) order: r = s*Tt + t
    G = group                  # time steps per attention matmul group
    NG = Tt // G               # groups per block
    GS = G * S                 # rows per attention matmul (target 128)

    # (1, S, Tt, E) -> (S*Tt, E): leading-dim merge, layout no-op.  No transpose —
    # rows stay in the module's native (stock, time) order throughout.
    x = x_ref[0].reshape(M, E)

    # --- fused QKV projection: one MXU matmul with M rows. ---
    qkv = jnp.dot(x.astype(compute_dtype), wqkv_ref[...],
                  preferred_element_type=jnp.float32) + bqkv_ref[...]
    qkv3 = qkv.reshape(S, Tt, 3 * E)

    # Within a group of GS = G*S rows (all S stocks x G consecutive time steps,
    # (s, u)-ordered so row r = s*G + u), a query may only attend to keys with the
    # same time index u.  Static mask built from 2-D iota.
    u_i = lax.broadcasted_iota(jnp.int32, (GS, GS), 0) % G
    u_j = lax.broadcasted_iota(jnp.int32, (GS, GS), 1) % G
    neg = jnp.where(u_i == u_j, 0.0, -1e30).astype(jnp.float32)

    # --- grouped multi-head attention over the stocks axis. ---
    for g in range(NG):                      # static unroll; NG is small
        qkv_g = qkv3[:, g * G:(g + 1) * G, :].reshape(GS, 3 * E)
        for h in range(nhead):               # head slices are lane aligned (hd=128)
            lo = h * hd
            # Attention stays in f32: S=8-tall bf16 tiles would only half-fill a
            # packed sublane tile, and attention is <1% of the total FLOPs.
            q = qkv_g[:, 0 * E + lo:0 * E + lo + hd]
            k = qkv_g[:, 1 * E + lo:1 * E + lo + hd]
            v = qkv_g[:, 2 * E + lo:2 * E + lo + hd]

            # One (GS x hd)@(hd x GS) MXU matmul instead of G tiny (S x S) ones;
            # cross-time entries are masked out before the softmax.
            logits = lax.dot_general(q, k, (((1,), (1,)), ((), ())),
                                     preferred_element_type=jnp.float32)
            logits = logits * scale + neg
            logits = logits - jnp.max(logits, axis=-1, keepdims=True)
            p = jnp.exp(logits)
            p = p * pl.reciprocal(jnp.sum(p, axis=-1, keepdims=True), approx=True)

            o_g = jnp.dot(p, v, preferred_element_type=jnp.float32)   # (GS, hd)
            # Write straight into the (stock, time, lane) slab of the scratch —
            # no concatenate, and per-head live ranges end here.
            attn_ref[:, g * G:(g + 1) * G, lo:lo + hd] = o_g.reshape(S, G, hd)

    attn = attn_ref[...].reshape(M, E)

    # --- residual + LayerNorm 1 (f32). ---
    x_attn = _layernorm(attn + x.astype(jnp.float32), g1_ref[...], be1_ref[...])

    # --- FFN: E -> 4E -> E with ReLU (two big MXU matmuls). ---
    h1 = jnp.maximum(jnp.dot(x_attn.astype(compute_dtype), w1_ref[...],
                             preferred_element_type=jnp.float32) + b1_ref[...], 0.0)
    ffn = jnp.dot(h1.astype(compute_dtype), w2_ref[...],
                  preferred_element_type=jnp.float32) + b2_ref[...]

    # --- residual + LayerNorm 2 (f32); full-lane-width store in original layout. ---
    out = _layernorm(ffn + x_attn, g2_ref[...], be2_ref[...])
    o_ref[0] = out.reshape(S, Tt, E).astype(o_ref.dtype)


def _tpu_vmem_bytes():
    try:
        return int(pltpu.get_tpu_info().vmem_capacity_bytes)
    except Exception:
        return 128 * 1024 * 1024       # v5e/v6e default if the query is unavailable


def _choose_time_block(T, S, B, target_rows):
    """Pick Tt (time steps per block) such that:
       * M = Tt*S is a multiple of 256 (MXU tile height; 128 suffices on v5e),
       * the attention group G = 128//S divides Tt,
       * Tt divides T (no padded tail block -> no NaN-producing garbage rows),
       * the (B, T/Tt) grid has >= 2 steps (v7x has 2 TensorCores)."""
    g = max(1, 128 // S)
    unit = math.lcm(g, max(1, 256 // math.gcd(S, 256)), 8)
    cands = [tt for tt in range(unit, T + 1, unit)
             if T % tt == 0 and tt * S <= target_rows]
    if not cands:                       # small / awkward T: any sublane-aligned divisor
        cands = [tt for tt in range(8, T + 1, 8)
                 if T % tt == 0 and tt * S <= target_rows]
    if not cands:
        return T
    tt = max(cands)
    if B * (T // tt) < 2:               # keep both v7x TensorCores busy
        smaller = [c for c in cands if c < tt]
        if smaller:
            tt = max(smaller)
    return tt


def inter_stock_aggregator(x, params, *, embed_dim, nhead, block_t=None,
                           target_rows=None, compute_dtype=jnp.float32):
    """x: (batch, stocks, time, embed_dim) -> (batch, stocks, time, embed_dim)."""
    B, S, T, E = x.shape
    assert E == embed_dim and E % nhead == 0
    (wqkv, bqkv, w1, b1, w2, b2, g1, be1, g2, be2) = params

    # Per-generation tuning: ~48 MiB scoped VMEM / M<=512 on v7x (64 MiB per TC),
    # 64 MiB / M up to ~1024 on v5e & v6e (128 MiB VMEM).
    vmem_cap = _tpu_vmem_bytes()
    vmem_limit = min(64 * 1024 * 1024, (vmem_cap * 3) // 4)
    if target_rows is None:
        target_rows = 512 if vmem_cap <= 64 * 1024 * 1024 else 1024

    Tt = block_t if block_t is not None else _choose_time_block(T, S, B, target_rows)
    Tt = min(Tt, T)
    if T % Tt != 0:          # never run padded tail blocks through exp/rsqrt/LayerNorm
        Tt = T
    G = math.gcd(Tt, max(1, 128 // S))          # time steps per attention matmul group
    grid = (B, T // Tt)

    # Matmul weights in the (possibly bf16) compute dtype; biases / LN params stay f32.
    wqkv_c, w1_c, w2_c = (w.astype(compute_dtype) for w in (wqkv, w1, w2))

    kernel = functools.partial(_aggregator_kernel, nhead=nhead, group=G,
                               compute_dtype=compute_dtype)

    def resident(arr):      # all params are 2-D; constant block index (grid-invariant)
        return pl.BlockSpec(arr.shape, lambda b, t: (0, 0))

    rows = B * T * S
    GS = G * S
    hd = E // nhead
    flops = int(rows * E * E * (6 + 8 + 8) + rows * nhead * 4 * GS * hd)
    transcendentals = int(rows * nhead * GS)
    weight_bytes = sum(int(a.size) * int(a.dtype.itemsize)
                       for a in (wqkv_c, bqkv, w1_c, b1, w2_c, b2, g1, be1, g2, be2))
    bytes_accessed = int(2 * rows * E * x.dtype.itemsize + weight_bytes)

    return pl.pallas_call(
        kernel,
        out_shape=jax.ShapeDtypeStruct((B, S, T, E), x.dtype),
        grid=grid,
        in_specs=[
            pl.BlockSpec((1, S, Tt, E), lambda b, t: (b, 0, t, 0)),
            resident(wqkv_c), resident(bqkv),
            resident(w1_c), resident(b1),
            resident(w2_c), resident(b2),
            resident(g1), resident(be1),
            resident(g2), resident(be2),
        ],
        out_specs=pl.BlockSpec((1, S, Tt, E), lambda b, t: (b, 0, t, 0)),
        scratch_shapes=[pltpu.VMEM((S, Tt, E), jnp.float32)],   # attention buffer
        compiler_params=pltpu.CompilerParams(
            dimension_semantics=("parallel", "parallel"),
            vmem_limit_bytes=int(vmem_limit)),
        cost_estimate=pl.CostEstimate(flops=flops,
                                      transcendentals=transcendentals,
                                      bytes_accessed=bytes_accessed),
    )(x, wqkv_c, bqkv, w1_c, b1, w2_c, b2, g1, be1, g2, be2)


def _reference(x, params, *, embed_dim, nhead):
    """Pure-JAX reference (mirrors the PyTorch module; exact softmax attention)."""
    (wqkv, bqkv, w1, b1, w2, b2, g1, be1, g2, be2) = params
    B, S, T, E = x.shape
    hd = E // nhead
    with jax.default_matmul_precision("highest"):
        xr = jnp.transpose(x, (0, 2, 1, 3)).reshape(B * T, S, E)
        qkv = xr @ wqkv + bqkv
        qkv = qkv.reshape(B * T, S, 3, nhead, hd)
        q, k, v = qkv[:, :, 0], qkv[:, :, 1], qkv[:, :, 2]
        s = jnp.einsum('bqhd,bkhd->bhqk', q, k) / math.sqrt(hd)
        p = jax.nn.softmax(s, axis=-1)
        attn = jnp.einsum('bhqk,bkhd->bqhd', p, v).reshape(B * T, S, E)
        x_attn = _layernorm(attn + xr, g1, be1)
        ffn = jnp.maximum(x_attn @ w1 + b1, 0.0) @ w2 + b2
        out = _layernorm(ffn + x_attn, g2, be2)
    return jnp.transpose(out.reshape(B, T, S, E), (0, 2, 1, 3))


def make_params(key, embed_dim):
    """Deterministic init.  PyTorch Linear weights stored pre-transposed as (in, out);
    biases / LayerNorm params kept 2-D (1, N) for clean TPU broadcasts."""
    E = embed_dim
    ks = jax.random.split(key, 6)

    def lin(kw, kb, fan_in, fan_out):
        bound = 1.0 / math.sqrt(fan_in)
        w = jax.random.uniform(kw, (fan_in, fan_out), jnp.float32, -bound, bound)
        b = jax.random.uniform(kb, (1, fan_out), jnp.float32, -bound, bound)
        return w, b

    wqkv, bqkv = lin(ks[0], ks[1], E, 3 * E)
    w1, b1 = lin(ks[2], ks[3], E, 4 * E)
    w2, b2 = lin(ks[4], ks[5], 4 * E, E)
    g1 = jnp.ones((1, E), jnp.float32)
    be1 = jnp.zeros((1, E), jnp.float32)
    g2 = jnp.ones((1, E), jnp.float32)
    be2 = jnp.zeros((1, E), jnp.float32)
    return (wqkv, bqkv, w1, b1, w2, b2, g1, be1, g2, be2)


if __name__ == "__main__":
    # Module defaults: embed_dim=256, nhead=2 (head_dim = 128, fully lane-aligned).
    batch, stocks, time_ = 2, 8, 16
    embed_dim, nhead = 256, 2

    key = jax.random.PRNGKey(0)
    kx, kp = jax.random.split(key)
    x = jax.random.normal(kx, (batch, stocks, time_, embed_dim), jnp.float32)
    params = make_params(kp, embed_dim)

    # f32 run.  Tolerance covers the approx softmax reciprocal (~1e-3 relative).
    run_f32 = jax.jit(functools.partial(
        inter_stock_aggregator, embed_dim=embed_dim, nhead=nhead,
        compute_dtype=jnp.float32))
    out = jax.block_until_ready(run_f32(x, params))

    ref = _reference(x, params, embed_dim=embed_dim, nhead=nhead)
    assert out.shape == (batch, stocks, time_, embed_dim)
    assert bool(jnp.allclose(out, ref, atol=1e-2, rtol=1e-2)), "f32 kernel mismatch vs reference"

    # bf16 MXU-operand fast path (all gens): bf16 only for the 3 big GEMMs,
    # f32 accumulation, f32 attention / softmax / LayerNorm.
    run_bf16 = jax.jit(functools.partial(
        inter_stock_aggregator, embed_dim=embed_dim, nhead=nhead,
        compute_dtype=jnp.bfloat16))
    out_bf16 = jax.block_until_ready(run_bf16(x, params))
    assert bool(jnp.all(jnp.isfinite(out_bf16)))
    assert float(jnp.max(jnp.abs(out_bf16 - out))) < 0.5, "bf16 deviation too large"

    print("KERNEL_OK")
</pallas_src>

<mosaic_0001>
module attributes {stable_mosaic.version = 11 : i64} {
  func.func @_aggregator_kernel(%arg0: i32, %arg1: i32, %arg2: memref<1x8x16x256xf32, #tpu.memory_space<vmem>>, %arg3: memref<256x768xf32, #tpu.memory_space<vmem>>, %arg4: memref<1x768xf32, #tpu.memory_space<vmem>>, %arg5: memref<256x1024xf32, #tpu.memory_space<vmem>>, %arg6: memref<1x1024xf32, #tpu.memory_space<vmem>>, %arg7: memref<1024x256xf32, #tpu.memory_space<vmem>>, %arg8: memref<1x256xf32, #tpu.memory_space<vmem>>, %arg9: memref<1x256xf32, #tpu.memory_space<vmem>>, %arg10: memref<1x256xf32, #tpu.memory_space<vmem>>, %arg11: memref<1x256xf32, #tpu.memory_space<vmem>>, %arg12: memref<1x256xf32, #tpu.memory_space<vmem>>, %arg13: memref<1x8x16x256xf32, #tpu.memory_space<vmem>>, %arg14: memref<8x16x256xf32, #tpu.memory_space<vmem>>) attributes {dimension_semantics = [#tpu.dimension_semantics<parallel>, #tpu.dimension_semantics<parallel>], iteration_bounds = array<i64: 2, 1>, scalar_prefetch = 0 : i64, scratch_operands = 1 : i64, tpu.core_type = #tpu.core_type<tc>, window_params = [{transform_indices = @transform_0, window_bounds = array<i64: 1, 8, 16, 256>}, {pipeline_mode = #tpu.pipeline_mode<synchronous>, transform_indices = @transform_1, window_bounds = array<i64: 256, 768>}, {pipeline_mode = #tpu.pipeline_mode<synchronous>, transform_indices = @transform_2, window_bounds = array<i64: 1, 768>}, {pipeline_mode = #tpu.pipeline_mode<synchronous>, transform_indices = @transform_3, window_bounds = array<i64: 256, 1024>}, {pipeline_mode = #tpu.pipeline_mode<synchronous>, transform_indices = @transform_4, window_bounds = array<i64: 1, 1024>}, {pipeline_mode = #tpu.pipeline_mode<synchronous>, transform_indices = @transform_5, window_bounds = array<i64: 1024, 256>}, {pipeline_mode = #tpu.pipeline_mode<synchronous>, transform_indices = @transform_6, window_bounds = array<i64: 1, 256>}, {pipeline_mode = #tpu.pipeline_mode<synchronous>, transform_indices = @transform_7, window_bounds = array<i64: 1, 256>}, {pipeline_mode = #tpu.pipeline_mode<synchronous>, transform_indices = @transform_8, window_bounds = array<i64: 1, 256>}, {pipeline_mode = #tpu.pipeline_mode<synchronous>, transform_indices = @transform_9, window_bounds = array<i64: 1, 256>}, {pipeline_mode = #tpu.pipeline_mode<synchronous>, transform_indices = @transform_10, window_bounds = array<i64: 1, 256>}, {transform_indices = @transform_11, window_bounds = array<i64: 1, 8, 16, 256>}]} {
    %c0 = arith.constant 0 : index
    %c0_0 = arith.constant 0 : index
    %c0_1 = arith.constant 0 : index
    %c0_2 = arith.constant 0 : index
    %0 = vector.load %arg2[%c0, %c0_0, %c0_1, %c0_2] : memref<1x8x16x256xf32, #tpu.memory_space<vmem>>, vector<1x8x16x256xf32>
    %1 = vector.shape_cast %0 : vector<1x8x16x256xf32> to vector<8x16x256xf32>
    %2 = vector.shape_cast %1 : vector<8x16x256xf32> to vector<128x256xf32>
    %c0_3 = arith.constant 0 : index
    %c0_4 = arith.constant 0 : index
    %3 = vector.load %arg3[%c0_3, %c0_4] : memref<256x768xf32, #tpu.memory_space<vmem>>, vector<256x768xf32>
    %cst = arith.constant dense<0.000000e+00> : vector<128x768xf32>
    %4 = tpu.matmul %2, %3, %cst {dimension_numbers = #tpu.dot_dimension_numbers<[1], [0], [0], [1], [0, 0, 1, 1], [], []>} : vector<128x256xf32>, vector<256x768xf32>, vector<128x768xf32> -> vector<128x768xf32>
    %c0_5 = arith.constant 0 : index
    %c0_6 = arith.constant 0 : index
    %5 = vector.load %arg4[%c0_5, %c0_6] : memref<1x768xf32, #tpu.memory_space<vmem>>, vector<1x768xf32>
    %6 = vector.broadcast %5 : vector<1x768xf32> to vector<128x768xf32>
    %7 = arith.addf %4, %6 : vector<128x768xf32>
    %8 = vector.shape_cast %7 : vector<128x768xf32> to vector<8x16x768xf32>
    %9 = tpu.iota {dimensions = array<i32: 0>} : vector<128x128xi32>
    %c16_i32 = arith.constant 16 : i32
    %c0_i32 = arith.constant 0 : i32
    %10 = arith.cmpi eq, %c16_i32, %c0_i32 : i32
    %c1_i32 = arith.constant 1 : i32
    %11 = arith.select %10, %c1_i32, %c16_i32 : i32
    %12 = vector.broadcast %11 : i32 to vector<128x128xi32>
    %13 = arith.remsi %9, %12 : vector<128x128xi32>
    %c0_i32_7 = arith.constant 0 : i32
    %14 = vector.broadcast %c0_i32_7 : i32 to vector<128x128xi32>
    %15 = arith.cmpi ne, %13, %14 : vector<128x128xi32>
    %c0_i32_8 = arith.constant 0 : i32
    %16 = vector.broadcast %c0_i32_8 : i32 to vector<128x128xi32>
    %17 = arith.cmpi slt, %13, %16 : vector<128x128xi32>
    %c0_i32_9 = arith.constant 0 : i32
    %18 = arith.cmpi slt, %11, %c0_i32_9 : i32
    %19 = vector.broadcast %18 : i1 to vector<128x128xi1>
    %20 = vector.broadcast %19 : vector<128x128xi1> to vector<128x128xi1>
    %21 = arith.xori %17, %20 : vector<128x128xi1>
    %22 = arith.andi %21, %15 : vector<128x128xi1>
    %23 = vector.broadcast %11 : i32 to vector<128x128xi32>
    %24 = arith.addi %13, %23 : vector<128x128xi32>
    %25 = arith.select %22, %24, %13 : vector<128x128xi1>, vector<128x128xi32>
    %26 = tpu.iota {dimensions = array<i32: 1>} : vector<128x128xi32>
    %c16_i32_10 = arith.constant 16 : i32
    %c0_i32_11 = arith.constant 0 : i32
    %27 = arith.cmpi eq, %c16_i32_10, %c0_i32_11 : i32
    %c1_i32_12 = arith.constant 1 : i32
    %28 = arith.select %27, %c1_i32_12, %c16_i32_10 : i32
    %29 = vector.broadcast %28 : i32 to vector<128x128xi32>
    %30 = arith.remsi %26, %29 : vector<128x128xi32>
    %c0_i32_13 = arith.constant 0 : i32
    %31 = vector.broadcast %c0_i32_13 : i32 to vector<128x128xi32>
    %32 = arith.cmpi ne, %30, %31 : vector<128x128xi32>
    %c0_i32_14 = arith.constant 0 : i32
    %33 = vector.broadcast %c0_i32_14 : i32 to vector<128x128xi32>
    %34 = arith.cmpi slt, %30, %33 : vector<128x128xi32>
    %c0_i32_15 = arith.constant 0 : i32
    %35 = arith.cmpi slt, %28, %c0_i32_15 : i32
    %36 = vector.broadcast %35 : i1 to vector<128x128xi1>
    %37 = vector.broadcast %36 : vector<128x128xi1> to vector<128x128xi1>
    %38 = arith.xori %34, %37 : vector<128x128xi1>
    %39 = arith.andi %38, %32 : vector<128x128xi1>
    %40 = vector.broadcast %28 : i32 to vector<128x128xi32>
    %41 = arith.addi %30, %40 : vector<128x128xi32>
    %42 = arith.select %39, %41, %30 : vector<128x128xi1>, vector<128x128xi32>
    %43 = arith.cmpi eq, %25, %42 : vector<128x128xi32>
    %cst_16 = arith.constant 0.000000e+00 : f32
    %cst_17 = arith.constant -1.000000e+30 : f32
    %44 = vector.broadcast %cst_16 : f32 to vector<128x128xf32>
    %45 = vector.broadcast %cst_17 : f32 to vector<128x128xf32>
    %46 = arith.select %43, %44, %45 : vector<128x128xi1>, vector<128x128xf32>
    %47 = vector.shape_cast %8 : vector<8x16x768xf32> to vector<128x768xf32>
    %48 = vector.extract_strided_slice %47 {offsets = [0, 0], sizes = [128, 128], strides = [1, 1]} : vector<128x768xf32> to vector<128x128xf32>
    %49 = vector.extract_strided_slice %47 {offsets = [0, 256], sizes = [128, 128], strides = [1, 1]} : vector<128x768xf32> to vector<128x128xf32>
    %50 = vector.extract_strided_slice %47 {offsets = [0, 512], sizes = [128, 128], strides = [1, 1]} : vector<128x768xf32> to vector<128x128xf32>
    %cst_18 = arith.constant dense<0.000000e+00> : vector<128x128xf32>
    %51 = tpu.matmul %48, %49, %cst_18 {dimension_numbers = #tpu.dot_dimension_numbers<[1], [1], [0], [0], [0, 0, 1, 0], [], []>} : vector<128x128xf32>, vector<128x128xf32>, vector<128x128xf32> -> vector<128x128xf32>
    %cst_19 = arith.constant 0.0883883461 : f32
    %52 = vector.broadcast %cst_19 : f32 to vector<128x128xf32>
    %53 = arith.mulf %51, %52 : vector<128x128xf32>
    %54 = arith.addf %53, %46 : vector<128x128xf32>
    %cst_20 = arith.constant dense<0xFF800000> : vector<128xf32>
    %55 = vector.multi_reduction <maximumf>, %54, %cst_20 [1] : vector<128x128xf32> to vector<128xf32>
    %56 = vector.shape_cast %55 : vector<128xf32> to vector<128x1xf32>
    %57 = vector.broadcast %56 : vector<128x1xf32> to vector<128x128xf32>
    %58 = arith.subf %54, %57 : vector<128x128xf32>
    %59 = math.exp %58 : vector<128x128xf32>
    %cst_21 = arith.constant dense<0.000000e+00> : vector<128xf32>
    %60 = vector.multi_reduction <add>, %59, %cst_21 [1] : vector<128x128xf32> to vector<128xf32>
    %61 = vector.shape_cast %60 : vector<128xf32> to vector<128x1xf32>
    %62 = tpu.reciprocal %61 {approx = true} : vector<128x1xf32> -> vector<128x1xf32>
    %63 = vector.broadcast %62 : vector<128x1xf32> to vector<128x128xf32>
    %64 = arith.mulf %59, %63 : vector<128x128xf32>
    %cst_22 = arith.constant dense<0.000000e+00> : vector<128x128xf32>
    %65 = tpu.matmul %64, %50, %cst_22 {dimension_numbers = #tpu.dot_dimension_numbers<[1], [0], [0], [1], [0, 0, 1, 1], [], []>} : vector<128x128xf32>, vector<128x128xf32>, vector<128x128xf32> -> vector<128x128xf32>
    %66 = vector.shape_cast %65 : vector<128x128xf32> to vector<8x16x128xf32>
    %c0_23 = arith.constant 0 : index
    %c0_24 = arith.constant 0 : index
    %c0_25 = arith.constant 0 : index
    %67 = vector.load %arg14[%c0_23, %c0_24, %c0_25] : memref<8x16x256xf32, #tpu.memory_space<vmem>>, vector<8x16x128xf32>
    tpu.vector_store %arg14[%c0_23, %c0_24, %c0_25], %66 {strides = array<i32>} : memref<8x16x256xf32, #tpu.memory_space<vmem>>, vector<8x16x128xf32>,
    %68 = vector.extract_strided_slice %47 {offsets = [0, 128], sizes = [128, 128], strides = [1, 1]} : vector<128x768xf32> to vector<128x128xf32>
    %69 = vector.extract_strided_slice %47 {offsets = [0, 384], sizes = [128, 128], strides = [1, 1]} : vector<128x768xf32> to vector<128x128xf32>
    %70 = vector.extract_strided_slice %47 {offsets = [0, 640], sizes = [128, 128], strides = [1, 1]} : vector<128x768xf32> to vector<128x128xf32>
    %cst_26 = arith.constant dense<0.000000e+00> : vector<128x128xf32>
    %71 = tpu.matmul %68, %69, %cst_26 {dimension_numbers = #tpu.dot_dimension_numbers<[1], [1], [0], [0], [0, 0, 1, 0], [], []>} : vector<128x128xf32>, vector<128x128xf32>, vector<128x128xf32> -> vector<128x128xf32>
    %cst_27 = arith.constant 0.0883883461 : f32
    %72 = vector.broadcast %cst_27 : f32 to vector<128x128xf32>
    %73 = arith.mulf %71, %72 : vector<128x128xf32>
    %74 = arith.addf %73, %46 : vector<128x128xf32>
    %cst_28 = arith.constant dense<0xFF800000> : vector<128xf32>
    %75 = vector.multi_reduction <maximumf>, %74, %cst_28 [1] : vector<128x128xf32> to vector<128xf32>
    %76 = vector.shape_cast %75 : vector<128xf32> to vector<128x1xf32>
    %77 = vector.broadcast %76 : vector<128x1xf32> to vector<128x128xf32>
    %78 = arith.subf %74, %77 : vector<128x128xf32>
    %79 = math.exp %78 : vector<128x128xf32>
    %cst_29 = arith.constant dense<0.000000e+00> : vector<128xf32>
    %80 = vector.multi_reduction <add>, %79, %cst_29 [1] : vector<128x128xf32> to vector<128xf32>
    %81 = vector.shape_cast %80 : vector<128xf32> to vector<128x1xf32>
    %82 = tpu.reciprocal %81 {approx = true} : vector<128x1xf32> -> vector<128x1xf32>
    %83 = vector.broadcast %82 : vector<128x1xf32> to vector<128x128xf32>
    %84 = arith.mulf %79, %83 : vector<128x128xf32>
    %cst_30 = arith.constant dense<0.000000e+00> : vector<128x128xf32>
    %85 = tpu.matmul %84, %70, %cst_30 {dimension_numbers = #tpu.dot_dimension_numbers<[1], [0], [0], [1], [0, 0, 1, 1], [], []>} : vector<128x128xf32>, vector<128x128xf32>, vector<128x128xf32> -> vector<128x128xf32>
    %86 = vector.shape_cast %85 : vector<128x128xf32> to vector<8x16x128xf32>
    %c0_31 = arith.constant 0 : index
    %c0_32 = arith.constant 0 : index
    %c128 = arith.constant 128 : index
    %87 = vector.load %arg14[%c0_31, %c0_32, %c128] : memref<8x16x256xf32, #tpu.memory_space<vmem>>, vector<8x16x128xf32>
    tpu.vector_store %arg14[%c0_31, %c0_32, %c128], %86 {strides = array<i32>} : memref<8x16x256xf32, #tpu.memory_space<vmem>>, vector<8x16x128xf32>,
    %c0_33 = arith.constant 0 : index
    %c0_34 = arith.constant 0 : index
    %c0_35 = arith.constant 0 : index
    %88 = vector.load %arg14[%c0_33, %c0_34, %c0_35] : memref<8x16x256xf32, #tpu.memory_space<vmem>>, vector<8x16x256xf32>
    %89 = vector.shape_cast %88 : vector<8x16x256xf32> to vector<128x256xf32>
    %90 = arith.addf %89, %2 : vector<128x256xf32>
    %c0_36 = arith.constant 0 : index
    %c0_37 = arith.constant 0 : index
    %91 = vector.load %arg9[%c0_36, %c0_37] : memref<1x256xf32, #tpu.memory_space<vmem>>, vector<1x256xf32>
    %c0_38 = arith.constant 0 : index
    %c0_39 = arith.constant 0 : index
    %92 = vector.load %arg10[%c0_38, %c0_39] : memref<1x256xf32, #tpu.memory_space<vmem>>, vector<1x256xf32>
    %cst_40 = arith.constant dense<0.000000e+00> : vector<128xf32>
    %93 = vector.multi_reduction <add>, %90, %cst_40 [1] : vector<128x256xf32> to vector<128xf32>
    %94 = vector.shape_cast %93 : vector<128xf32> to vector<128x1xf32>
    %cst_41 = arith.constant 2.560000e+02 : f32
    %95 = vector.broadcast %cst_41 : f32 to vector<128x1xf32>
    %96 = arith.divf %94, %95 : vector<128x1xf32>
    %97 = vector.broadcast %96 : vector<128x1xf32> to vector<128x256xf32>
    %98 = arith.subf %90, %97 : vector<128x256xf32>
    %99 = arith.mulf %98, %98 : vector<128x256xf32>
    %cst_42 = arith.constant dense<0.000000e+00> : vector<128xf32>
    %100 = vector.multi_reduction <add>, %99, %cst_42 [1] : vector<128x256xf32> to vector<128xf32>
    %101 = vector.shape_cast %100 : vector<128xf32> to vector<128x1xf32>
    %cst_43 = arith.constant 2.560000e+02 : f32
    %102 = vector.broadcast %cst_43 : f32 to vector<128x1xf32>
    %103 = arith.divf %101, %102 : vector<128x1xf32>
    %cst_44 = arith.constant 9.99999974E-6 : f32
    %104 = vector.broadcast %cst_44 : f32 to vector<128x1xf32>
    %105 = arith.addf %103, %104 : vector<128x1xf32>
    %106 = math.rsqrt %105 : vector<128x1xf32>
    %107 = vector.broadcast %106 : vector<128x1xf32> to vector<128x256xf32>
    %108 = arith.mulf %98, %107 : vector<128x256xf32>
    %109 = vector.broadcast %91 : vector<1x256xf32> to vector<128x256xf32>
    %110 = arith.mulf %108, %109 : vector<128x256xf32>
    %111 = vector.broadcast %92 : vector<1x256xf32> to vector<128x256xf32>
    %112 = arith.addf %110, %111 : vector<128x256xf32>
    %c0_45 = arith.constant 0 : index
    %c0_46 = arith.constant 0 : index
    %113 = vector.load %arg5[%c0_45, %c0_46] : memref<256x1024xf32, #tpu.memory_space<vmem>>, vector<256x1024xf32>
    %cst_47 = arith.constant dense<0.000000e+00> : vector<128x1024xf32>
    %114 = tpu.matmul %112, %113, %cst_47 {dimension_numbers = #tpu.dot_dimension_numbers<[1], [0], [0], [1], [0, 0, 1, 1], [], []>} : vector<128x256xf32>, vector<256x1024xf32>, vector<128x1024xf32> -> vector<128x1024xf32>
    %c0_48 = arith.constant 0 : index
    %c0_49 = arith.constant 0 : index
    %115 = vector.load %arg6[%c0_48, %c0_49] : memref<1x1024xf32, #tpu.memory_space<vmem>>, vector<1x1024xf32>
    %116 = vector.broadcast %115 : vector<1x1024xf32> to vector<128x1024xf32>
    %117 = arith.addf %114, %116 : vector<128x1024xf32>
    %cst_50 = arith.constant 0.000000e+00 : f32
    %118 = vector.broadcast %cst_50 : f32 to vector<128x1024xf32>
    %119 = arith.maximumf %117, %118 : vector<128x1024xf32>
    %c0_51 = arith.constant 0 : index
    %c0_52 = arith.constant 0 : index
    %120 = vector.load %arg7[%c0_51, %c0_52] : memref<1024x256xf32, #tpu.memory_space<vmem>>, vector<1024x256xf32>
    %cst_53 = arith.constant dense<0.000000e+00> : vector<128x256xf32>
    %121 = tpu.matmul %119, %120, %cst_53 {dimension_numbers = #tpu.dot_dimension_numbers<[1], [0], [0], [1], [0, 0, 1, 1], [], []>} : vector<128x1024xf32>, vector<1024x256xf32>, vector<128x256xf32> -> vector<128x256xf32>
    %c0_54 = arith.constant 0 : index
    %c0_55 = arith.constant 0 : index
    %122 = vector.load %arg8[%c0_54, %c0_55] : memref<1x256xf32, #tpu.memory_space<vmem>>, vector<1x256xf32>
    %123 = vector.broadcast %122 : vector<1x256xf32> to vector<128x256xf32>
    %124 = arith.addf %121, %123 : vector<128x256xf32>
    %125 = arith.addf %124, %112 : vector<128x256xf32>
    %c0_56 = arith.constant 0 : index
    %c0_57 = arith.constant 0 : index
    %126 = vector.load %arg11[%c0_56, %c0_57] : memref<1x256xf32, #tpu.memory_space<vmem>>, vector<1x256xf32>
    %c0_58 = arith.constant 0 : index
    %c0_59 = arith.constant 0 : index
    %127 = vector.load %arg12[%c0_58, %c0_59] : memref<1x256xf32, #tpu.memory_space<vmem>>, vector<1x256xf32>
    %cst_60 = arith.constant dense<0.000000e+00> : vector<128xf32>
    %128 = vector.multi_reduction <add>, %125, %cst_60 [1] : vector<128x256xf32> to vector<128xf32>
    %129 = vector.shape_cast %128 : vector<128xf32> to vector<128x1xf32>
    %cst_61 = arith.constant 2.560000e+02 : f32
    %130 = vector.broadcast %cst_61 : f32 to vector<128x1xf32>
    %131 = arith.divf %129, %130 : vector<128x1xf32>
    %132 = vector.broadcast %131 : vector<128x1xf32> to vector<128x256xf32>
    %133 = arith.subf %125, %132 : vector<128x256xf32>
    %134 = arith.mulf %133, %133 : vector<128x256xf32>
    %cst_62 = arith.constant dense<0.000000e+00> : vector<128xf32>
    %135 = vector.multi_reduction <add>, %134, %cst_62 [1] : vector<128x256xf32> to vector<128xf32>
    %136 = vector.shape_cast %135 : vector<128xf32> to vector<128x1xf32>
    %cst_63 = arith.constant 2.560000e+02 : f32
    %137 = vector.broadcast %cst_63 : f32 to vector<128x1xf32>
    %138 = arith.divf %136, %137 : vector<128x1xf32>
    %cst_64 = arith.constant 9.99999974E-6 : f32
    %139 = vector.broadcast %cst_64 : f32 to vector<128x1xf32>
    %140 = arith.addf %138, %139 : vector<128x1xf32>
    %141 = math.rsqrt %140 : vector<128x1xf32>
    %142 = vector.broadcast %141 : vector<128x1xf32> to vector<128x256xf32>
    %143 = arith.mulf %133, %142 : vector<128x256xf32>
    %144 = vector.broadcast %126 : vector<1x256xf32> to vector<128x256xf32>
    %145 = arith.mulf %143, %144 : vector<128x256xf32>
    %146 = vector.broadcast %127 : vector<1x256xf32> to vector<128x256xf32>
    %147 = arith.addf %145, %146 : vector<128x256xf32>
    %148 = vector.shape_cast %147 : vector<128x256xf32> to vector<8x16x256xf32>
    %c0_65 = arith.constant 0 : index
    %c0_66 = arith.constant 0 : index
    %c0_67 = arith.constant 0 : index
    %c0_68 = arith.constant 0 : index
    %149 = vector.load %arg13[%c0_65, %c0_66, %c0_67, %c0_68] : memref<1x8x16x256xf32, #tpu.memory_space<vmem>>, vector<1x8x16x256xf32>
    %150 = vector.shape_cast %149 : vector<1x8x16x256xf32> to vector<8x16x256xf32>
    %151 = vector.shape_cast %148 : vector<8x16x256xf32> to vector<1x8x16x256xf32>
    tpu.vector_store %arg13[%c0_65, %c0_66, %c0_67, %c0_68], %151 {strides = array<i32>} : memref<1x8x16x256xf32, #tpu.memory_space<vmem>>, vector<1x8x16x256xf32>,
    return
  }
  func.func @transform_0(%arg0: i32, %arg1: i32) -> (i32, i32, i32, i32) {
    %c0_i32 = arith.constant 0 : i32
    %c0_i32_0 = arith.constant 0 : i32
    %c0_i32_1 = arith.constant 0 : i32
    return %arg0, %c0_i32, %arg1, %c0_i32_0 : i32, i32, i32, i32
  }
  func.func @transform_1(%arg0: i32, %arg1: i32) -> (i32, i32) {
    %c0_i32 = arith.constant 0 : i32
    %c0_i32_0 = arith.constant 0 : i32
    %c0_i32_1 = arith.constant 0 : i32
    return %c0_i32, %c0_i32_0 : i32, i32
  }
  func.func @transform_2(%arg0: i32, %arg1: i32) -> (i32, i32) {
    %c0_i32 = arith.constant 0 : i32
    %c0_i32_0 = arith.constant 0 : i32
    %c0_i32_1 = arith.constant 0 : i32
    return %c0_i32, %c0_i32_0 : i32, i32
  }
  func.func @transform_3(%arg0: i32, %arg1: i32) -> (i32, i32) {
    %c0_i32 = arith.constant 0 : i32
    %c0_i32_0 = arith.constant 0 : i32
    %c0_i32_1 = arith.constant 0 : i32
    return %c0_i32, %c0_i32_0 : i32, i32
  }
  func.func @transform_4(%arg0: i32, %arg1: i32) -> (i32, i32) {
    %c0_i32 = arith.constant 0 : i32
    %c0_i32_0 = arith.constant 0 : i32
    %c0_i32_1 = arith.constant 0 : i32
    return %c0_i32, %c0_i32_0 : i32, i32
  }
  func.func @transform_5(%arg0: i32, %arg1: i32) -> (i32, i32) {
    %c0_i32 = arith.constant 0 : i32
    %c0_i32_0 = arith.constant 0 : i32
    %c0_i32_1 = arith.constant 0 : i32
    return %c0_i32, %c0_i32_0 : i32, i32
  }
  func.func @transform_6(%arg0: i32, %arg1: i32) -> (i32, i32) {
    %c0_i32 = arith.constant 0 : i32
    %c0_i32_0 = arith.constant 0 : i32
    %c0_i32_1 = arith.constant 0 : i32
    return %c0_i32, %c0_i32_0 : i32, i32
  }
  func.func @transform_7(%arg0: i32, %arg1: i32) -> (i32, i32) {
    %c0_i32 = arith.constant 0 : i32
    %c0_i32_0 = arith.constant 0 : i32
    %c0_i32_1 = arith.constant 0 : i32
    return %c0_i32, %c0_i32_0 : i32, i32
  }
  func.func @transform_8(%arg0: i32, %arg1: i32) -> (i32, i32) {
    %c0_i32 = arith.constant 0 : i32
    %c0_i32_0 = arith.constant 0 : i32
    %c0_i32_1 = arith.constant 0 : i32
    return %c0_i32, %c0_i32_0 : i32, i32
  }
  func.func @transform_9(%arg0: i32, %arg1: i32) -> (i32, i32) {
    %c0_i32 = arith.constant 0 : i32
    %c0_i32_0 = arith.constant 0 : i32
    %c0_i32_1 = arith.constant 0 : i32
    return %c0_i32, %c0_i32_0 : i32, i32
  }
  func.func @transform_10(%arg0: i32, %arg1: i32) -> (i32, i32) {
    %c0_i32 = arith.constant 0 : i32
    %c0_i32_0 = arith.constant 0 : i32
    %c0_i32_1 = arith.constant 0 : i32
    return %c0_i32, %c0_i32_0 : i32, i32
  }
  func.func @transform_11(%arg0: i32, %arg1: i32) -> (i32, i32, i32, i32) {
    %c0_i32 = arith.constant 0 : i32
    %c0_i32_0 = arith.constant 0 : i32
    %c0_i32_1 = arith.constant 0 : i32
    return %arg0, %c0_i32, %arg1, %c0_i32_0 : i32, i32, i32, i32
  }
}

</mosaic_0001>

<bundles_post_ra>
// kernel: inter_stock_aggregator.1
= control target key start
LH: loop header
LB: loop body
LE: loop exit
PB: predicated region body
PF: predicated region fallthrough
CT: control target
= control target key end

     0   :  { %s10793_s0 = inlined_call_operand.hbm [shape: f32[2,8,16,256], index: 0, kind: input, shape index: {}]   ;;  %s10794_s1 = inlined_call_operand.hbm [shape: f32[256,768], index: 1, kind: input, shape index: {}]   ;;  %s10795_s2 = inlined_call_operand.hbm [shape: f32[1,768], index: 2, kind: input, shape index: {}]   ;;  %s10796_s3 = inlined_call_operand.hbm [shape: f32[256,1024], index: 3, kind: input, shape index: {}]   ;;  %s10797_s4 = inlined_call_operand.hbm [shape: f32[1,1024], index: 4, kind: input, shape index: {}]   ;;  %s10798_s5 = inlined_call_operand.hbm [shape: f32[1024,256], index: 5, kind: input, shape index: {}]   ;;  %s10799_s6 = inlined_call_operand.hbm [shape: f32[1,256], index: 6, kind: input, shape index: {}]   ;;  %s10800_s7 = inlined_call_operand.hbm [shape: f32[1,256], index: 7, kind: input, shape index: {}]   ;;  %s10801_s8 = inlined_call_operand.hbm [shape: f32[1,256], index: 8, kind: input, shape index: {}]   ;;  %s10802_s9 = inlined_call_operand.hbm [shape: f32[1,256], index: 9, kind: input, shape index: {}]   ;;  %s10803_s10 = inlined_call_operand.hbm [shape: f32[1,256], index: 10, kind: input, shape index: {}]   ;;  %s10804_s11 = inlined_call_operand.hbm [shape: f32[2,8,16,256], index: 11, kind: output, shape index: {}]  }
   0x1   :  { %10862 = sst [smem:[#allocation89_spill]] %s10793_s0 }
   0x2   :  { %10863 = sst [smem:[#allocation90_spill]] %s10794_s1 }
   0x3   :  { %10864 = sst [smem:[#allocation91_spill]] %s10796_s3 }
   0x4   :  { %10865 = sst [smem:[#allocation92_spill]] %s10804_s11 }
   0x5   :  { %16 = vsyncpa [#allocation4], 0 }
   0x6   :  { %18 = vsyncpa [#allocation4 + $0x1], 0 }
   0x7   :  { %19 = vsyncpa [#allocation7], 0 }
   0x8   :  { %20 = vsyncpa [#allocation10], 0 }
   0x9   :  { %21 = vsyncpa [#allocation13], 0 }
   0xa   :  { %22 = vsyncpa [#allocation16], 0 }
   0xb   :  { %23 = vsyncpa [#allocation19], 0 }
   0xc   :  { %24 = vsyncpa [#allocation5], 0 }
   0xd   :  { %26 = vsyncpa [#allocation5 + $0x1], 0  ;;  %s7754_s17 = smov 0   ;;  %s7756_s18 = smov 0  }
   0xe   :  { %s7758_s19 = smov 0   ;;  %s7760_s20 = smov 0  }
   0xf   :  { %s7762_s21 = smov 0   ;;  %s7764_s22 = smov 0  }
  0x10 LB: > { %10866 = sst [smem:[#allocation29_spill]] %s7663_s20  ;;  %s10805_s23 = sadd.s32 4294967295, %s7671_s22   ;;  %s7671_s22 = sphi %s7764_s22, %s32_s22   ;;  %s7667_s21 = sphi %s7762_s21, %s11028_s21   ;;  %s7663_s20 = sphi %s7760_s20, %s11027_s20   ;;  %s7659_s19 = sphi %s7758_s19, %s11026_s19   ;;  %s7655_s18 = sphi %s7756_s18, %s11025_s18   ;;  %s7651_s17 = sphi %s7754_s17, %s11024_s17  }
  0x11   : > { %p5515_p0 = scmp.ge.s32.totalorder %s7671_s22, 1  ;;  %p7788_p1 = scmp.eq.s32.totalorder %s10805_s23, 0 }
  0x12   : > { %p315_p2 = scmp.lt.s32.totalorder %s7671_s22, 3  ;;  %s7673_s26 = smov [#allocation6]  }
  0x13   : > { %s10867_s24 = scalar_select %p7788_p1, 1, 0 }
  0x14   : > { %p7793_p3 = pnand %p5515_p0, %p315_p2  ;;  %s327_s27 = sshll.u32 %s7673_s26, 4  ;;  %s7797_s27 = int_to_ptr.vmem [resolvable:$true] %s327_s27 }
  0x15   : > { %10868 = sst [smem:[#allocation30_spill]] %s10867_s24  ;;  %s7674_s29 = smov [#allocation9]  }
  0x16   : > { %s10869_s25 = scalar_select %p7793_p3, 1, 0 }
  0x17   : > { %p6906_p4 = pneg %p7793_p3  ;;  %s351_s30 = sshll.u32 %s7674_s29, 4  ;;  %s7808_s30 = int_to_ptr.vmem [resolvable:$true] %s351_s30 }
  0x18   : > { %10870 = sst [smem:[#allocation31_spill]] %s10869_s25  ;;  %s10872_s1 = sld [smem:[#allocation90_spill]] }
  0x19   : > { %p7804_p6 = pnand %p6906_p4, %p7788_p1 }
  0x1b   : > { %p7818_p8 = pneg %p7804_p6 }
  0x1e   : > { %s7259_s14 = scalar_lea.hbm %s10872_s1, 24576 }
  0x1f   : > { %p7260_p7 = scmp.ne.s32.totalorder %s10872_s1, %s7259_s14  ;;  %p7266_p11 = scmp.lt.u32.totalorder %s7259_s14, %s10872_s1 }
  0x21   : > { %p7262_p9 = pnand %p7818_p8, %p7260_p7 }
  0x23   : > { %p7263_p10 = pneg %p7262_p9 }
  0x25   : > { %p7268_p12 = pnand %p7266_p11, %p7263_p10 }
  0x27   : > { %7271 = shalt.err (!%p7268_p12)
}
  0x28   : > { %s7272_s12 = scalar_lea.vmem %s7797_s27, 24576  ;;  %p7280_p4 = scmp.lt.s32.totalorder %s7797_s27, %s7797_s27 }
  0x29   : > { %p7273_p13 = scmp.ne.s32.totalorder %s7797_s27, %s7272_s12  ;;  %p7281_p5 = scmp.lt.s32.totalorder %s7272_s12, %s7272_s12 }
  0x2b   : > { %p7275_p0 = pnand %p7273_p13, %p7818_p8  ;;  %p7282_p7 = por %p7281_p5, %p7280_p4 }
  0x2d   : > { %p7276_p2 = pneg %p7275_p0 }
  0x2f   : > { %p7283_p9 = pnand %p7282_p7, %p7276_p2 }
  0x31   : > { %7286 = shalt.err (!%p7283_p9)
}
  0x32   : > { %s7675_s13 = smov 768   ;;  %s7676_s23 = smov 48  }
  0x33   : > { %6909 = dma.hbm_to_vmem [thread:$0]  (!%p7804_p6), %s10872_s1, 24576, %s7797_s27, [#allocation7], %s7675_s13, %s7675_s13, %s7676_s23  }
  0x34   : > { %s10874_s3 = sld [smem:[#allocation91_spill]] }
  0x3a   : > { %s7287_s11 = scalar_lea.hbm %s10874_s3, 32768 }
  0x3b   : > { %p7288_p5 = scmp.ne.s32.totalorder %s10874_s3, %s7287_s11  ;;  %p7294_p12 = scmp.lt.u32.totalorder %s7287_s11, %s10874_s3 }
  0x3d   : > { %p7290_p10 = pnand %p7288_p5, %p7818_p8 }
  0x3f   : > { %p7291_p11 = pneg %p7290_p10 }
  0x41   : > { %p7296_p13 = pnand %p7294_p12, %p7291_p11 }
  0x43   : > { %7299 = shalt.err (!%p7296_p13)
}
  0x44   : > { %s7300_s27 = scalar_lea.vmem %s7808_s30, 32768  ;;  %p7308_p7 = scmp.lt.s32.totalorder %s7808_s30, %s7808_s30 }
  0x45   : > { %p7301_p0 = scmp.ne.s32.totalorder %s7808_s30, %s7300_s27  ;;  %p7309_p9 = scmp.lt.s32.totalorder %s7300_s27, %s7300_s27 }
  0x47   : > { %p7303_p2 = pnand %p7301_p0, %p7818_p8  ;;  %p7310_p5 = por %p7309_p9, %p7308_p7 }
  0x49   : > { %p7304_p4 = pneg %p7303_p2 }
  0x4b   : > { %p7311_p10 = pnand %p7310_p5, %p7304_p4 }
  0x4d   : > { %7314 = shalt.err (!%p7311_p10)
}
  0x4e   : > { %s7677_s20 = smov 1024   ;;  %s7678_s0 = smov 64  }
  0x4f   : > { %6915 = dma.hbm_to_vmem [thread:$0]  (!%p7804_p6), %s10874_s3, 32768, %s7808_s30, [#allocation10], %s7677_s20, %s7677_s20, %s7678_s0  }
  0x50   : > { %s7679_s13 = smov [#allocation12]   ;;  %s7315_s16 = scalar_lea.hbm %s10798_s5, 32768 }
  0x51   : > { %s375_s23 = sshll.u32 %s7679_s13, 4  ;;  %p7316_p11 = scmp.ne.s32.totalorder %s10798_s5, %s7315_s16  ;;  %s376_s23 = int_to_ptr.vmem [resolvable:$true] %s375_s23 }
  0x52   : > { %p7322_p0 = scmp.lt.u32.totalorder %s7315_s16, %s10798_s5 }
  0x53   : > { %p7318_p12 = pnand %p7316_p11, %p7818_p8 }
  0x55   : > { %p7319_p13 = pneg %p7318_p12 }
  0x57   : > { %p7324_p2 = pnand %p7322_p0, %p7319_p13 }
  0x59   : > { %7327 = shalt.err (!%p7324_p2)
}
  0x5a   : > { %s7328_s30 = scalar_lea.vmem %s376_s23, 32768  ;;  %p7336_p5 = scmp.lt.s32.totalorder %s376_s23, %s376_s23 }
  0x5b   : > { %p7329_p4 = scmp.ne.s32.totalorder %s376_s23, %s7328_s30  ;;  %p7337_p10 = scmp.lt.s32.totalorder %s7328_s30, %s7328_s30 }
  0x5d   : > { %p7331_p7 = pnand %p7329_p4, %p7818_p8  ;;  %p7338_p3 = por %p7337_p10, %p7336_p5 }
  0x5f   : > { %p7332_p9 = pneg %p7331_p7 }
  0x61   : > { %p7339_p1 = pnand %p7338_p3, %p7332_p9 }
  0x63   : > { %7342 = shalt.err (!%p7339_p1)
}
  0x64   : > { %s10814_s20 = smov 256   ;;  %s7681_s0 = smov 16  }
  0x65   : > { %6921 = dma.hbm_to_vmem [thread:$0]  (!%p7804_p6), %s10798_s5, 32768, %s376_s23, [#allocation13], %s10814_s20, %s10814_s20, %s7681_s0  }
  0x66   : > { %s7682_s25 = smov [#allocation15]   ;;  %s7683_s14 = smov [#allocation18]  }
  0x67   : > { %s400_s13 = sshll.u32 %s7682_s25, 4  ;;  %s422_s15 = sshll.u32 %s7683_s14, 4  ;;  %s401_s13 = int_to_ptr.vmem [resolvable:$true] %s400_s13  ;;  %s423_s15 = int_to_ptr.vmem [resolvable:$true] %s422_s15 }
  0x68   : > { %s7343_s12 = scalar_lea.hbm %s10800_s7, 32 }
  0x69   : > { %p7344_p1 = scmp.ne.s32.totalorder %s10800_s7, %s7343_s12  ;;  %p7350_p12 = scmp.lt.u32.totalorder %s7343_s12, %s10800_s7 }
  0x6b   : > { %p7346_p3 = pnand %p7344_p1, %p7818_p8 }
  0x6d   : > { %p7347_p11 = pneg %p7346_p3 }
  0x6f   : > { %p7352_p13 = pnand %p7350_p12, %p7347_p11 }
  0x71   : > { %7355 = shalt.err (!%p7352_p13)
}
  0x72   : > { %s7356_s23 = scalar_lea.vmem %s401_s13, 32  ;;  %p7364_p7 = scmp.lt.s32.totalorder %s401_s13, %s401_s13 }
  0x73   : > { %p7357_p0 = scmp.ne.s32.totalorder %s401_s13, %s7356_s23  ;;  %p7365_p9 = scmp.lt.s32.totalorder %s7356_s23, %s7356_s23 }
  0x75   : > { %p7359_p2 = pnand %p7357_p0, %p7818_p8  ;;  %p7366_p5 = por %p7365_p9, %p7364_p7 }
  0x77   : > { %p7360_p4 = pneg %p7359_p2 }
  0x79   : > { %p7367_p10 = pnand %p7366_p5, %p7360_p4 }
  0x7b   : > { %7370 = shalt.err (!%p7367_p10)
}
  0x7c   : > { %6927 = dma.hbm_to_vmem [thread:$0]  (!%p7804_p6), %s10800_s7, 32, %s401_s13, [#allocation16]  }
  0x7d   : > { %s7371_s25 = scalar_lea.hbm %s10802_s9, 32 }
  0x7e   : > { %p7372_p1 = scmp.ne.s32.totalorder %s10802_s9, %s7371_s25  ;;  %p7378_p12 = scmp.lt.u32.totalorder %s7371_s25, %s10802_s9 }
  0x80   : > { %p7374_p3 = pnand %p7372_p1, %p7818_p8 }
  0x82   : > { %p7375_p11 = pneg %p7374_p3 }
  0x84   : > { %p7380_p13 = pnand %p7378_p12, %p7375_p11 }
  0x86   : > { %7383 = shalt.err (!%p7380_p13)
}
  0x87   : > { %s7384_s27 = scalar_lea.vmem %s423_s15, 32  ;;  %p7392_p7 = scmp.lt.s32.totalorder %s423_s15, %s423_s15 }
  0x88   : > { %p7385_p0 = scmp.ne.s32.totalorder %s423_s15, %s7384_s27  ;;  %p7393_p9 = scmp.lt.s32.totalorder %s7384_s27, %s7384_s27 }
  0x8a   : > { %p7387_p2 = pnand %p7385_p0, %p7818_p8  ;;  %p7394_p5 = por %p7393_p9, %p7392_p7 }
  0x8c   : > { %p7388_p4 = pneg %p7387_p2 }
  0x8e   : > { %p7395_p10 = pnand %p7394_p5, %p7388_p4 }
  0x90   : > { %7398 = shalt.err (!%p7395_p10)
}
  0x91   : > { %6933 = dma.hbm_to_vmem [thread:$0]  (!%p7804_p6), %s10802_s9, 32, %s423_s15, [#allocation19]  }
  0x92   : > { %s7684_s23 = smov [#allocation8]   ;;  %s7685_s11 = smov [#allocation11]  }
  0x93   : > { %s341_s1 = sshll.u32 %s7684_s23, 4  ;;  %s365_s3 = sshll.u32 %s7685_s11, 4  ;;  %s342_s1 = int_to_ptr.vmem [resolvable:$true] %s341_s1  ;;  %s366_s3 = int_to_ptr.vmem [resolvable:$true] %s365_s3 }
  0x94   : > { %s7399_s14 = scalar_lea.hbm %s10795_s2, 96 }
  0x95   : > { %p7400_p1 = scmp.ne.s32.totalorder %s10795_s2, %s7399_s14  ;;  %p7406_p12 = scmp.lt.u32.totalorder %s7399_s14, %s10795_s2 }
  0x97   : > { %p7402_p3 = pnand %p7400_p1, %p7818_p8 }
  0x99   : > { %p7403_p11 = pneg %p7402_p3 }
  0x9b   : > { %p7408_p13 = pnand %p7406_p12, %p7403_p11 }
  0x9d   : > { %7411 = shalt.err (!%p7408_p13)
}
  0x9e   : > { %s7412_s15 = scalar_lea.vmem %s342_s1, 96  ;;  %p7420_p7 = scmp.lt.s32.totalorder %s342_s1, %s342_s1 }
  0x9f   : > { %p7413_p0 = scmp.ne.s32.totalorder %s342_s1, %s7412_s15  ;;  %p7421_p9 = scmp.lt.s32.totalorder %s7412_s15, %s7412_s15 }
  0xa1   : > { %p7415_p2 = pnand %p7413_p0, %p7818_p8  ;;  %p7422_p5 = por %p7421_p9, %p7420_p7 }
  0xa3   : > { %p7416_p4 = pneg %p7415_p2 }
  0xa5   : > { %p7423_p10 = pnand %p7422_p5, %p7416_p4 }
  0xa7   : > { %7426 = shalt.err (!%p7423_p10)
}
  0xa8   : > { %6912 = dma.hbm_to_vmem [thread:$0]  (!%p7804_p6), %s10795_s2, 96, %s342_s1, [#allocation7]  }
  0xa9   : > { %s7427_s24 = scalar_lea.hbm %s10797_s4, 128 }
  0xaa   : > { %p7428_p1 = scmp.ne.s32.totalorder %s10797_s4, %s7427_s24  ;;  %p7434_p12 = scmp.lt.u32.totalorder %s7427_s24, %s10797_s4 }
  0xac   : > { %p7430_p3 = pnand %p7428_p1, %p7818_p8 }
  0xae   : > { %p7431_p11 = pneg %p7430_p3 }
  0xb0   : > { %p7436_p13 = pnand %p7434_p12, %p7431_p11 }
  0xb2   : > { %7439 = shalt.err (!%p7436_p13)
}
  0xb3   : > { %s7440_s12 = scalar_lea.vmem %s366_s3, 128  ;;  %p7448_p7 = scmp.lt.s32.totalorder %s366_s3, %s366_s3 }
  0xb4   : > { %p7441_p0 = scmp.ne.s32.totalorder %s366_s3, %s7440_s12  ;;  %p7449_p9 = scmp.lt.s32.totalorder %s7440_s12, %s7440_s12 }
  0xb6   : > { %p7443_p2 = pnand %p7441_p0, %p7818_p8  ;;  %p7450_p5 = por %p7449_p9, %p7448_p7 }
  0xb8   : > { %p7444_p4 = pneg %p7443_p2 }
  0xba   : > { %p7451_p10 = pnand %p7450_p5, %p7444_p4 }
  0xbc   : > { %7454 = shalt.err (!%p7451_p10)
}
  0xbd   : > { %6918 = dma.hbm_to_vmem [thread:$0]  (!%p7804_p6), %s10797_s4, 128, %s366_s3, [#allocation10]  }
  0xbe   : > { %s7686_s15 = smov [#allocation14]   ;;  %s7687_s30 = smov [#allocation17]  }
  0xbf   : > { %s389_s13 = sshll.u32 %s7686_s15, 4  ;;  %s411_s23 = sshll.u32 %s7687_s30, 4  ;;  %s390_s13 = int_to_ptr.vmem [resolvable:$true] %s389_s13  ;;  %s412_s23 = int_to_ptr.vmem [resolvable:$true] %s411_s23 }
  0xc0   : > { %s7455_s25 = scalar_lea.hbm %s10799_s6, 32 }
  0xc1   : > { %p7456_p1 = scmp.ne.s32.totalorder %s10799_s6, %s7455_s25  ;;  %p7462_p12 = scmp.lt.u32.totalorder %s7455_s25, %s10799_s6 }
  0xc3   : > { %p7458_p3 = pnand %p7456_p1, %p7818_p8 }
  0xc5   : > { %p7459_p11 = pneg %p7458_p3 }
  0xc7   : > { %p7464_p13 = pnand %p7462_p12, %p7459_p11 }
  0xc9   : > { %7467 = shalt.err (!%p7464_p13)
}
  0xca   : > { %s7468_s3 = scalar_lea.vmem %s390_s13, 32  ;;  %p7476_p7 = scmp.lt.s32.totalorder %s390_s13, %s390_s13 }
  0xcb   : > { %p7469_p0 = scmp.ne.s32.totalorder %s390_s13, %s7468_s3  ;;  %p7477_p9 = scmp.lt.s32.totalorder %s7468_s3, %s7468_s3 }
  0xcd   : > { %p7471_p2 = pnand %p7469_p0, %p7818_p8  ;;  %p7478_p5 = por %p7477_p9, %p7476_p7 }
  0xcf   : > { %p7472_p4 = pneg %p7471_p2 }
  0xd1   : > { %p7479_p10 = pnand %p7478_p5, %p7472_p4 }
  0xd3   : > { %7482 = shalt.err (!%p7479_p10)
}
  0xd4   : > { %6924 = dma.hbm_to_vmem [thread:$0]  (!%p7804_p6), %s10799_s6, 32, %s390_s13, [#allocation13]  }
  0xd5   : > { %s7483_s11 = scalar_lea.hbm %s10801_s8, 32 }
  0xd6   : > { %p7484_p1 = scmp.ne.s32.totalorder %s10801_s8, %s7483_s11  ;;  %p7490_p12 = scmp.lt.u32.totalorder %s7483_s11, %s10801_s8 }
  0xd8   : > { %p7486_p3 = pnand %p7484_p1, %p7818_p8 }
  0xda   : > { %p7487_p11 = pneg %p7486_p3 }
  0xdc   : > { %p7492_p13 = pnand %p7490_p12, %p7487_p11 }
  0xde   : > { %7495 = shalt.err (!%p7492_p13)
}
  0xdf   : > { %s7496_s29 = scalar_lea.vmem %s412_s23, 32  ;;  %p7504_p7 = scmp.lt.s32.totalorder %s412_s23, %s412_s23 }
  0xe0   : > { %p7497_p0 = scmp.ne.s32.totalorder %s412_s23, %s7496_s29  ;;  %p7505_p9 = scmp.lt.s32.totalorder %s7496_s29, %s7496_s29 }
  0xe2   : > { %p7499_p2 = pnand %p7497_p0, %p7818_p8  ;;  %p7506_p5 = por %p7505_p9, %p7504_p7 }
  0xe4   : > { %p7500_p4 = pneg %p7499_p2 }
  0xe6   : > { %p7507_p10 = pnand %p7506_p5, %p7500_p4 }
  0xe8   : > { %7510 = shalt.err (!%p7507_p10)
}
  0xe9   : > { %6930 = dma.hbm_to_vmem [thread:$0]  (!%p7804_p6), %s10801_s8, 32, %s412_s23, [#allocation16]  }
  0xea   : > { %s7688_s3 = smov [#allocation20]   ;;  %s7511_s30 = scalar_lea.hbm %s10803_s10, 32 }
  0xeb   : > { %s433_s1 = sshll.u32 %s7688_s3, 4  ;;  %p7512_p1 = scmp.ne.s32.totalorder %s10803_s10, %s7511_s30  ;;  %s434_s1 = int_to_ptr.vmem [resolvable:$true] %s433_s1 }
  0xec   : > { %p7518_p12 = scmp.lt.u32.totalorder %s7511_s30, %s10803_s10 }
  0xed   : > { %p7514_p3 = pnand %p7512_p1, %p7818_p8 }
  0xef   : > { %p7515_p11 = pneg %p7514_p3 }
  0xf1   : > { %p7520_p13 = pnand %p7518_p12, %p7515_p11 }
  0xf3   : > { %7523 = shalt.err (!%p7520_p13)
}
  0xf4   : > { %s7524_s23 = scalar_lea.vmem %s434_s1, 32  ;;  %p7532_p7 = scmp.lt.s32.totalorder %s434_s1, %s434_s1 }
  0xf5   : > { %p7525_p0 = scmp.ne.s32.totalorder %s434_s1, %s7524_s23  ;;  %p7533_p9 = scmp.lt.s32.totalorder %s7524_s23, %s7524_s23 }
  0xf7   : > { %p7527_p2 = pnand %p7525_p0, %p7818_p8  ;;  %p7534_p5 = por %p7533_p9, %p7532_p7 }
  0xf9   : > { %p7528_p4 = pneg %p7527_p2 }
  0xfb   : > { %p7535_p10 = pnand %p7534_p5, %p7528_p4 }
  0xfd   : > { %7538 = shalt.err (!%p7535_p10)
}
  0xfe   : > { %s10875_s26 = sld [smem:[#allocation30_spill]]  ;;  %s5514_s13 = sadd.s32 4294967294, %s7671_s22  }
  0xff   : > { %6936 = dma.hbm_to_vmem [thread:$0]  (!%p7804_p6), %s10803_s10, 32, %s434_s1, [#allocation19]  }
 0x100   : > { %s44_s12 = sadd.s32 1, %s7667_s21  ;;  %s53_s28 = sadd.s32 1, %s7659_s19 }
 0x101   : > { %p46_p8 = scmp.ge.s32.totalorder %s44_s12, 2  ;;  %p60_p1 = scmp.ne.s32.totalorder %s7659_s19, %s7655_s18 }
 0x102   : > { %p61_p3 = scmp.eq.s32.totalorder %s7671_s22, 0  ;;  %p66_p12 = scmp.ne.s32.totalorder %s7655_s18, %s7651_s17 }
 0x103   : > { %s11030_s12 = smov (%p46_p8, %s44_s12), 0  ;;  %s10877_s27 = sadd.s32 4294967295, %s7671_s22  }
 0x104   : > { %p8017_p11 = por %p61_p3, %p60_p1  ;;  %s48_s1 = ssub.s32 %s7667_s21, %s11030_s12 }
 0x105   : > { %p302_p6 = scmp.eq.s32.totalorder %s10877_s27, 1  ;;  %p51_p13 = scmp.eq.s32.totalorder %s48_s1, 0 }
 0x106   : > { %p10878_p0 = scmp.ne.s32.totalorder %s10875_s26, 0  ;;  %p308_p7 = scmp.eq.s32.totalorder %s5514_s13, 1 }
 0x107   : > { %p8033_p4 = por %p302_p6, %p60_p1  ;;  %p6955_p5 = scmp.lt.s32.totalorder %s7671_s22, 2 }
 0x108   : > { %p8029_p2 = por %p10878_p0, %p66_p12  ;;  %p8040_p9 = por %p308_p7, %p66_p12 }
 0x109   : > { %s10880_s30 = scalar_select %p8033_p4, 1, 0 }
 0x10a   : > { %s8038_s11 = scalar_select %p51_p13, %s7659_s19, %s53_s28  }
 0x10b   : > { %s10881_s24 = scalar_select %p8040_p9, 1, 0 }
 0x10c   : > { %s444_s25 = sand.u32 1, %s7659_s19   ;;  %s5548_s14 = sshll.u32 %s7667_s21, 12 }
 0x10d   : > { %s5527_s23 = sshll.u32 %s444_s25, 8  ;;  %s10882_s26 = sld [smem:[#allocation89_spill]] }
 0x10e   : > { %s448_s13 = scalar_lea.vmem [#allocation3], %s5527_s23  ;;  %p8054_p10 = pnand %p6955_p5, %p8017_p11 }
 0x10f   : > { %s458_s28 = sshll.u32 %s448_s13, 4  ;;  %s8060_s20 = scalar_lea.sflag [#allocation4], %s444_s25  ;;  %s8058_s28 = int_to_ptr.vmem [resolvable:$true] %s458_s28 }
 0x110   : > { %p7541_p1 = pneg %p8054_p10 }
 0x113   : > { %s8050_s1 = scalar_lea.hbm %s10882_s26, %s5548_s14  ;;  %s7544_s23 = scalar_lea.hbm %s10882_s26, 8192 }
 0x114   : > { %s7539_s16 = scalar_lea.hbm %s8050_s1, 4096  ;;  %p7545_p11 = scmp.lt.u32.totalorder %s8050_s1, %s10882_s26 }
 0x115   : > { %p7540_p8 = scmp.ne.s32.totalorder %s8050_s1, %s7539_s16  ;;  %p7546_p6 = scmp.lt.u32.totalorder %s7544_s23, %s7539_s16 }
 0x116   : > { %p7548_p0 = scmp.lt.u32.totalorder %s7539_s16, %s8050_s1 }
 0x117   : > { %p7542_p3 = pnand %p7541_p1, %p7540_p8  ;;  %p7547_p13 = por %p7546_p6, %p7545_p11 }
 0x119   : > { %p7543_p12 = pneg %p7542_p3  ;;  %p7549_p7 = por %p7548_p0, %p7547_p13 }
 0x11b   : > { %p7550_p5 = pnand %p7549_p7, %p7543_p12 }
 0x11d   : > { %7553 = shalt.err (!%p7550_p5)
}
 0x11e   : > { %s7554_s25 = scalar_lea.vmem %s8058_s28, 4096  ;;  %s7689_s14 = smov [#allocation3]  }
 0x11f   : > { %p7555_p8 = scmp.ne.s32.totalorder %s8058_s28, %s7554_s25  ;;  %s7559_s3 = sshll.u32 %s7689_s14, 4  ;;  %s7560_s3 = int_to_ptr.vmem [resolvable:$false] %s7559_s3 }
 0x120   : > { %s7561_s29 = scalar_lea.vmem %s7560_s3, 8192  ;;  %p7562_p4 = scmp.lt.s32.totalorder %s8058_s28, %s7560_s3 }
 0x121   : > { %p7557_p3 = pnand %p7555_p8, %p7541_p1  ;;  %p7563_p11 = scmp.lt.s32.totalorder %s7561_s29, %s7554_s25 }
 0x123   : > { %p7558_p9 = pneg %p7557_p3  ;;  %p7564_p6 = por %p7563_p11, %p7562_p4 }
 0x125   : > { %p7565_p13 = pnand %p7564_p6, %p7558_p9 }
 0x127   : > { %7568 = shalt.err (!%p7565_p13)
}
 0x128   : > { %s10884_s16 = smov 256   ;;  %s10885_s23 = sld [smem:[#allocation31_spill]] }
 0x129   : > { %6940 = dma.hbm_to_vmem [thread:$0]  (!%p8054_p10), %s8050_s1, 4096, %s8058_s28, %s8060_s20, %s10884_s16, %s10884_s16, %s7681_s0  }
 0x12e   : > { %p10886_p1 = scmp.ne.s32.totalorder %s10885_s23, 0 }
 0x130   : > { %470 = sbr.rel (%p10886_p1) target bundleno = 2860 (0xb2c), region = 64 }
 0x137   : > { %s8094_s13 = sand.u32 1, %s7655_s18  }
 0x138   : > { %s5531_s25 = sshll.u32 %s8094_s13, 8  ;;  %s473_s14 = scalar_lea.sflag [#allocation4], %s8094_s13 }
 0x139   : > { %s8100_s27 = scalar_lea.vmem [#allocation3], %s5531_s25 }
 0x13a   : > { %7622 = dma.done.wait (%p8029_p2), %s473_s14, 4096  }
 0x13b   : > { %7624 = vsyncadd (%p8029_p2), %s473_s14, 4294963200  ;;  %s10887_s20 = sld [smem:[#allocation30_spill]] }
 0x141   : > { %p10888_p4 = scmp.ne.s32.totalorder %s10887_s20, 0 }
 0x143   : > { %7626 = dma.done.wait (%p10888_p4), [#allocation7], 24672  }
 0x144   : > { %7628 = vsyncadd (%p10888_p4), [#allocation7], 4294942624 }
 0x145   : > { %7630 = dma.done.wait (%p10888_p4), [#allocation10], 32896  }
 0x146   : > { %7632 = vsyncadd (%p10888_p4), [#allocation10], 4294934400 }
 0x147   : > { %7634 = dma.done.wait (%p10888_p4), [#allocation13], 32800  }
 0x148   : > { %7636 = vsyncadd (%p10888_p4), [#allocation13], 4294934496 }
 0x149   : > { %7638 = dma.done.wait (%p10888_p4), [#allocation16], 64  }
 0x14a   : > { %7640 = vsyncadd (%p10888_p4), [#allocation16], 4294967232 }
 0x14b   : > { %7642 = dma.done.wait (%p10888_p4), [#allocation19], 64  }
 0x14c   : > { %7644 = vsyncadd (%p10888_p4), [#allocation19], 4294967232  ;;  %v590_v0 = vld [vmem:[#allocation6 + $0x8] sm:$0xff]  ;;  %v596_v1 = vld [vmem:[#allocation6 + $0x38] sm:$0xff]  ;;  %s10615_s0 = scalar_lea.vmem [#allocation21], %s5531_s25  ;;  %s11019_s15 = sld [smem:[#allocation29_spill]] }
 0x14d   : > { %v589_v2 = vld [vmem:[#allocation6] sm:$0xff]  ;;  %v5902_v3 = vpack.c.bf16 %v596_v1, %v590_v0  ;;  %v595_v4 = vld [vmem:[#allocation6 + $0x30] sm:$0xff]  ;;  %v602_v5 = vld [vmem:[#allocation6 + $0x68] sm:$0xff]  ;;  %s5331_s28 = sshll.u32 %s10615_s0, 4  ;;  %s11020_s16 = sld [smem:[#allocation92_spill]]  ;;  %s10740_s28 = int_to_ptr.vmem [resolvable:$true] %s5331_s28 }
 0x14e   : > { %v608_v6 = vld [vmem:[#allocation6 + $0x98] sm:$0xff]  ;;  %v5904_v7 = vpack.c.bf16 %v595_v4, %v589_v2  ;;  %v601_v9 = vld [vmem:[#allocation6 + $0x60] sm:$0xff]  ;;  %v607_v10 = vld [vmem:[#allocation6 + $0x90] sm:$0xff]  ;;  %s5315_s25 = scalar_lea.sflag [#allocation5], %s8094_s13  ;;  %s7569_s14 = scalar_lea.vmem %s10740_s28, 4096 }
 0x14f   : > { %v5906_v8 = vpack.c.bf16 %v608_v6, %v602_v5  ;;  %v614_v11 = vld [vmem:[#allocation6 + $0xc8] sm:$0xff]  ;;  %5903 = vmatprep.subr.bf16.mxu1 %v5902_v3  ;;  %v620_v12 = vld [vmem:[#allocation6 + $0xf8] sm:$0xff]  ;;  %v5908_v13 = vpack.c.bf16 %v607_v10, %v601_v9  ;;  %v613_v15 = vld [vmem:[#allocation6 + $0xc0] sm:$0xff]  ;;  %p7570_p2 = scmp.ne.s32.totalorder %s10740_s28, %s7569_s14  ;;  %p11021_p9 = scmp.ne.s32.totalorder %s10880_s30, 0 }
 0x150   : > { %5905 = vmatpush1.bf16.msra.mxu1 %v5904_v7  ;;  %v5910_v14 = vpack.c.bf16 %v620_v12, %v614_v11  ;;  %v619_v16 = vld [vmem:[#allocation6 + $0xf0] sm:$0xff]  ;;  %v626_v17 = vld [vmem:[#allocation6 + $0x128] sm:$0xff]  ;;  %v632_v18 = vld [vmem:[#allocation6 + $0x158] sm:$0xff] }
 0x151   : > { %5907 = vmatprep.subr.bf16.mxu1 %v5906_v8  ;;  %v5912_v19 = vpack.c.bf16 %v619_v16, %v613_v15  ;;  %v5914_v20 = vpack.c.bf16 %v632_v18, %v626_v17  ;;  %v625_v21 = vld [vmem:[#allocation6 + $0x120] sm:$0xff]  ;;  %v631_v22 = vld [vmem:[#allocation6 + $0x150] sm:$0xff]  ;;  %v638_v23 = vld [vmem:[#allocation6 + $0x188] sm:$0xff]  ;;  %p7571_p10 = pnand %p7570_p2, %p11021_p9 }
 0x152   : > { %v644_v24 = vld [vmem:[#allocation6 + $0x1b8] sm:$0xff]  ;;  %v5916_v25 = vpack.c.bf16 %v631_v22, %v625_v21  ;;  %v637_v27 = vld [vmem:[#allocation6 + $0x180] sm:$0xff]  ;;  %v643_v28 = vld [vmem:[#allocation6 + $0x1b0] sm:$0xff]  ;;  %s5549_s1 = sshll.u32 %s11019_s15, 12 }
 0x153   : > { %v5918_v26 = vpack.c.bf16 %v644_v24, %v638_v23  ;;  %v650_v29 = vld [vmem:[#allocation6 + $0x1e8] sm:$0xff]  ;;  %v656_v30 = vld [vmem:[#allocation6 + $0x218] sm:$0xff]  ;;  %v5920_v31 = vpack.c.bf16 %v643_v28, %v637_v27  ;;  %v649_v33 = vld [vmem:[#allocation6 + $0x1e0] sm:$0xff]  ;;  %s10738_s23 = scalar_lea.hbm %s11020_s16, %s5549_s1  ;;  %p7572_p12 = pneg %p7571_p10 }
 0x154   : > { %5909 = vmatpush1.bf16.msra.mxu1 %v5908_v13  ;;  %v5922_v32 = vpack.c.bf16 %v656_v30, %v650_v29  ;;  %v655_v34 = vld [vmem:[#allocation6 + $0x210] sm:$0xff]  ;;  %v662_v35 = vld [vmem:[#allocation6 + $0x248] sm:$0xff]  ;;  %v668_v36 = vld [vmem:[#allocation6 + $0x278] sm:$0xff] }
 0x155   : > { %5911 = vmatprep.subr.bf16.mxu1 %v5910_v14  ;;  %v5924_v37 = vpack.c.bf16 %v655_v34, %v649_v33  ;;  %v5926_v38 = vpack.c.bf16 %v668_v36, %v662_v35  ;;  %v661_v39 = vld [vmem:[#allocation6 + $0x240] sm:$0xff]  ;;  %v667_v40 = vld [vmem:[#allocation6 + $0x270] sm:$0xff]  ;;  %v8127_v41 = vld [vmem:[%s8100_s27 + $0x8] sm:$0xff] }
 0x156   : > { %v674_v42 = vld [vmem:[#allocation6 + $0x2a8] sm:$0xff]  ;;  %v680_v43 = vld [vmem:[#allocation6 + $0x2d8] sm:$0xff]  ;;  %877 = vmatprep.mubr.f32.mxu1 %v8127_v41  ;;  %v5928_v44 = vpack.c.bf16 %v667_v40, %v661_v39  ;;  %v673_v46 = vld [vmem:[#allocation6 + $0x2a0] sm:$0xff] }
 0x157   : > { %v5930_v45 = vpack.c.bf16 %v680_v43, %v674_v42  ;;  %v679_v47 = vld [vmem:[#allocation6 + $0x2d0] sm:$0xff]  ;;  %v686_v48 = vld [vmem:[#allocation6 + $0x308] sm:$0xff]  ;;  %v692_v49 = vld [vmem:[#allocation6 + $0x338] sm:$0xff] }
 0x158   : > { %5913 = vmatpush1.bf16.msra.mxu1 %v5912_v19  ;;  %v5932_v50 = vpack.c.bf16 %v679_v47, %v673_v46  ;;  %v5934_v51 = vpack.c.bf16 %v692_v49, %v686_v48  ;;  %v685_v52 = vld [vmem:[#allocation6 + $0x300] sm:$0xff]  ;;  %v691_v53 = vld [vmem:[#allocation6 + $0x330] sm:$0xff]  ;;  %v698_v54 = vld [vmem:[#allocation6 + $0x368] sm:$0xff] }
 0x159   : > { %5915 = vmatprep.subr.bf16.mxu1 %v5914_v20  ;;  %v704_v55 = vld [vmem:[#allocation6 + $0x398] sm:$0xff]  ;;  %v5936_v56 = vpack.c.bf16 %v691_v53, %v685_v52  ;;  %v697_v58 = vld [vmem:[#allocation6 + $0x360] sm:$0xff]  ;;  %v703_v59 = vld [vmem:[#allocation6 + $0x390] sm:$0xff] }
 0x15a   : > { %v5938_v57 = vpack.c.bf16 %v704_v55, %v698_v54  ;;  %v710_v60 = vld [vmem:[#allocation6 + $0x3c8] sm:$0xff]  ;;  %v716_v61 = vld [vmem:[#allocation6 + $0x3f8] sm:$0xff]  ;;  %v5940_v62 = vpack.c.bf16 %v703_v59, %v697_v58  ;;  %v709_v0 = vld [vmem:[#allocation6 + $0x3c0] sm:$0xff] }
 0x15b   : > { %v5942_v63 = vpack.c.bf16 %v716_v61, %v710_v60  ;;  %v715_v1 = vld [vmem:[#allocation6 + $0x3f0] sm:$0xff]  ;;  %v722_v2 = vld [vmem:[#allocation6 + $0x428] sm:$0xff]  ;;  %v728_v3 = vld [vmem:[#allocation6 + $0x458] sm:$0xff] }
 0x15c   : > { %5917 = vmatpush1.bf16.msra.mxu1 %v5916_v25  ;;  %v5944_v4 = vpack.c.bf16 %v715_v1, %v709_v0  ;;  %v5946_v5 = vpack.c.bf16 %v728_v3, %v722_v2  ;;  %v721_v6 = vld [vmem:[#allocation6 + $0x420] sm:$0xff]  ;;  %v727_v7 = vld [vmem:[#allocation6 + $0x450] sm:$0xff]  ;;  %v734_v8 = vld [vmem:[#allocation6 + $0x488] sm:$0xff] }
 0x15d   : > { %5919 = vmatprep.subr.bf16.mxu1 %v5918_v26  ;;  %v740_v9 = vld [vmem:[#allocation6 + $0x4b8] sm:$0xff]  ;;  %v5948_v10 = vpack.c.bf16 %v727_v7, %v721_v6  ;;  %v733_v12 = vld [vmem:[#allocation6 + $0x480] sm:$0xff]  ;;  %v739_v13 = vld [vmem:[#allocation6 + $0x4b0] sm:$0xff] }
 0x15e   : > { %v5950_v11 = vpack.c.bf16 %v740_v9, %v734_v8  ;;  %v746_v14 = vld [vmem:[#allocation6 + $0x4e8] sm:$0xff]  ;;  %v752_v15 = vld [vmem:[#allocation6 + $0x518] sm:$0xff]  ;;  %v5952_v16 = vpack.c.bf16 %v739_v13, %v733_v12  ;;  %v745_v18 = vld [vmem:[#allocation6 + $0x4e0] sm:$0xff] }
 0x15f   : > { %v5954_v17 = vpack.c.bf16 %v752_v15, %v746_v14  ;;  %v751_v19 = vld [vmem:[#allocation6 + $0x510] sm:$0xff]  ;;  %v758_v20 = vld [vmem:[#allocation6 + $0x548] sm:$0xff]  ;;  %v764_v21 = vld [vmem:[#allocation6 + $0x578] sm:$0xff] }
 0x160   : > { %5921 = vmatpush1.bf16.msra.mxu1 %v5920_v31  ;;  %v5956_v22 = vpack.c.bf16 %v751_v19, %v745_v18  ;;  %v5958_v23 = vpack.c.bf16 %v764_v21, %v758_v20  ;;  %v757_v24 = vld [vmem:[#allocation6 + $0x540] sm:$0xff]  ;;  %v763_v25 = vld [vmem:[#allocation6 + $0x570] sm:$0xff]  ;;  %v770_v26 = vld [vmem:[#allocation6 + $0x5a8] sm:$0xff] }
 0x161   : > { %5923 = vmatprep.subr.bf16.mxu1 %v5922_v32  ;;  %v776_v27 = vld [vmem:[#allocation6 + $0x5d8] sm:$0xff]  ;;  %v5960_v28 = vpack.c.bf16 %v763_v25, %v757_v24  ;;  %v769_v30 = vld [vmem:[#allocation6 + $0x5a0] sm:$0xff]  ;;  %v775_v31 = vld [vmem:[#allocation6 + $0x5d0] sm:$0xff] }
 0x162   : > { %v5962_v29 = vpack.c.bf16 %v776_v27, %v770_v26  ;;  %v592_v32 = vld [vmem:[#allocation6 + $0x18] sm:$0xff]  ;;  %v598_v33 = vld [vmem:[#allocation6 + $0x48] sm:$0xff]  ;;  %v5964_v34 = vpack.c.bf16 %v775_v31, %v769_v30  ;;  %v591_v36 = vld [vmem:[#allocation6 + $0x10] sm:$0xff] }
 0x163   : > { %v5966_v35 = vpack.c.bf16 %v598_v33, %v592_v32  ;;  %v610_v39 = vld [vmem:[#allocation6 + $0xa8] sm:$0xff]  ;;  %v8131_v40 = vld [vmem:[%s8100_s27] sm:$0xff]  ;;  %v8134_v43 = vld [vmem:[%s8100_s27 + $0x18] sm:$0xff] }
 0x164   : > { %5925 = vmatpush1.bf16.msra.mxu1 %v5924_v37  ;;  %v597_v37 = vld [vmem:[#allocation6 + $0x40] sm:$0xff]  ;;  %v616_v47 = vld [vmem:[#allocation6 + $0xd8] sm:$0xff]  ;;  %v622_v48 = vld [vmem:[#allocation6 + $0x108] sm:$0xff] }
 0x165   : > { %5927 = vmatprep.subr.bf16.mxu1 %v5926_v38  ;;  %v604_v38 = vld [vmem:[#allocation6 + $0x78] sm:$0xff]  ;;  %v5968_v42 = vpack.c.bf16 %v597_v37, %v591_v36  ;;  %v609_v46 = vld [vmem:[#allocation6 + $0xa0] sm:$0xff]  ;;  %v8139_v49 = vld [vmem:[%s8100_s27 + $0x10] sm:$0xff]  ;;  %v5974_v52 = vpack.c.bf16 %v622_v48, %v616_v47 }
 0x166   : > { %v615_v53 = vld [vmem:[#allocation6 + $0xd0] sm:$0xff]  ;;  %v621_v54 = vld [vmem:[#allocation6 + $0x100] sm:$0xff]  ;;  %v628_v55 = vld [vmem:[#allocation6 + $0x138] sm:$0xff] }
 0x167   : > { %v5976_v58 = vpack.c.bf16 %v621_v54, %v615_v53  ;;  %v8150_v59 = vld [vmem:[%s8100_s27 + $0x38] sm:$0xff]  ;;  %v627_v61 = vld [vmem:[#allocation6 + $0x130] sm:$0xff]  ;;  %v646_v0 = vld [vmem:[#allocation6 + $0x1c8] sm:$0xff] }
 0x168   : > { %5929 = vmatpush1.bf16.msra.mxu1 %v5928_v44  ;;  %v5970_v44 = vpack.c.bf16 %v610_v39, %v604_v38  ;;  %v8155_v1 = vld [vmem:[%s8100_s27 + $0x30] sm:$0xff]  ;;  %v8158_v3 = vld [vmem:[%s8100_s27 + $0x48] sm:$0xff]  ;;  %v645_v6 = vld [vmem:[#allocation6 + $0x1c0] sm:$0xff] }
 0x169   : > { %5931 = vmatprep.subr.bf16.mxu1 %v5930_v45  ;;  %v603_v45 = vld [vmem:[#allocation6 + $0x70] sm:$0xff]  ;;  %v652_v7 = vld [vmem:[#allocation6 + $0x1f8] sm:$0xff]  ;;  %v658_v8 = vld [vmem:[#allocation6 + $0x228] sm:$0xff] }
 0x16a   : > { %v8163_v9 = vld [vmem:[%s8100_s27 + $0x40] sm:$0xff]  ;;  %v5986_v12 = vpack.c.bf16 %v658_v8, %v652_v7  ;;  %v651_v13 = vld [vmem:[#allocation6 + $0x1f0] sm:$0xff]  ;;  %v664_v15 = vld [vmem:[#allocation6 + $0x258] sm:$0xff] }
 0x16b   : > { %v657_v14 = vld [vmem:[#allocation6 + $0x220] sm:$0xff]  ;;  %v8174_v19 = vld [vmem:[%s8100_s27 + $0x68] sm:$0xff]  ;;  %v663_v21 = vld [vmem:[#allocation6 + $0x250] sm:$0xff] }
 0x16c   : > { %5933 = vmatpush1.bf16.msra.mxu1 %v5932_v50  ;;  %v5972_v50 = vpack.c.bf16 %v609_v46, %v603_v45  ;;  %v5988_v18 = vpack.c.bf16 %v657_v14, %v651_v13  ;;  %v682_v24 = vld [vmem:[#allocation6 + $0x2e8] sm:$0xff]  ;;  %v8179_v25 = vld [vmem:[%s8100_s27 + $0x60] sm:$0xff]  ;;  %v8182_v27 = vld [vmem:[%s8100_s27 + $0x78] sm:$0xff] }
 0x16d   : > { %5935 = vmatprep.subr.bf16.mxu1 %v5934_v51  ;;  %v8142_v51 = vld [vmem:[%s8100_s27 + $0x28] sm:$0xff]  ;;  %v681_v30 = vld [vmem:[#allocation6 + $0x2e0] sm:$0xff]  ;;  %v688_v31 = vld [vmem:[#allocation6 + $0x318] sm:$0xff] }
 0x16e   : > { %v694_v32 = vld [vmem:[#allocation6 + $0x348] sm:$0xff]  ;;  %v8187_v33 = vld [vmem:[%s8100_s27 + $0x70] sm:$0xff]  ;;  %v693_v38 = vld [vmem:[#allocation6 + $0x340] sm:$0xff] }
 0x16f   : > { %v5998_v36 = vpack.c.bf16 %v694_v32, %v688_v31  ;;  %v687_v37 = vld [vmem:[#allocation6 + $0x310] sm:$0xff]  ;;  %v700_v39 = vld [vmem:[#allocation6 + $0x378] sm:$0xff]  ;;  %v718_v53 = vld [vmem:[#allocation6 + $0x408] sm:$0xff] }
 0x170   : > { %5937 = vmatpush1.bf16.msra.mxu1 %v5936_v56  ;;  %v634_v56 = vld [vmem:[#allocation6 + $0x168] sm:$0xff]  ;;  %v6000_v45 = vpack.c.bf16 %v693_v38, %v687_v37  ;;  %v8198_v46 = vld [vmem:[%s8100_s27 + $0x98] sm:$0xff]  ;;  %v699_v48 = vld [vmem:[#allocation6 + $0x370] sm:$0xff] }
 0x171   : > { %5939 = vmatprep.subr.bf16.mxu1 %v5938_v57  ;;  %v8147_v57 = vld [vmem:[%s8100_s27 + $0x20] sm:$0xff]  ;;  %v5978_v60 = vpack.c.bf16 %v634_v56, %v628_v55  ;;  %v8203_v54 = vld [vmem:[%s8100_s27 + $0x90] sm:$0xff]  ;;  %v8206_v56 = vld [vmem:[%s8100_s27 + $0xa8] sm:$0xff] }
 0x172   : > { %v729_v7 = vld [vmem:[#allocation6 + $0x460] sm:$0xff]  ;;  %v736_v8 = vld [vmem:[#allocation6 + $0x498] sm:$0xff]  ;;  %v8222_v14 = vld [vmem:[%s8100_s27 + $0xc8] sm:$0xff] }
 0x173   : > { %v766_v31 = vld [vmem:[#allocation6 + $0x588] sm:$0xff]  ;;  %v8235_v32 = vld [vmem:[%s8100_s27 + $0xd0] sm:$0xff] }
 0x174   : > { %5941 = vmatpush1.bf16.msra.mxu1 %v5940_v62  ;;  %v633_v62 = vld [vmem:[#allocation6 + $0x160] sm:$0xff]  ;;  %v759_v38 = vld [vmem:[#allocation6 + $0x550] sm:$0xff] }
 0x175   : > { %5943 = vmatprep.subr.bf16.mxu1 %v5942_v63  ;;  %v640_v63 = vld [vmem:[#allocation6 + $0x198] sm:$0xff]  ;;  %v5980_v2 = vpack.c.bf16 %v633_v62, %v627_v61  ;;  %v717_v61 = vld [vmem:[#allocation6 + $0x400] sm:$0xff] }
 0x176   : > { %v724_v62 = vld [vmem:[#allocation6 + $0x438] sm:$0xff] }
 0x178   : > { %5945 = vmatpush1.bf16.msra.mxu1 %v5944_v4  ;;  %v5982_v4 = vpack.c.bf16 %v646_v0, %v640_v63  ;;  %v730_v63 = vld [vmem:[#allocation6 + $0x468] sm:$0xff]  ;;  %v8211_v0 = vld [vmem:[%s8100_s27 + $0xa0] sm:$0xff] }
 0x179   : > { %5947 = vmatprep.subr.bf16.mxu1 %v5946_v5  ;;  %v639_v5 = vld [vmem:[#allocation6 + $0x190] sm:$0xff] }
 0x17c   : > { %5949 = vmatpush1.bf16.msra.mxu1 %v5948_v10  ;;  %v5984_v10 = vpack.c.bf16 %v645_v6, %v639_v5  ;;  %v6010_v5 = vpack.c.bf16 %v730_v63, %v724_v62  ;;  %v723_v6 = vld [vmem:[#allocation6 + $0x430] sm:$0xff] }
 0x17d   : > { %5951 = vmatprep.subr.bf16.mxu1 %v5950_v11  ;;  %v8166_v11 = vld [vmem:[%s8100_s27 + $0x58] sm:$0xff]  ;;  %v6012_v13 = vpack.c.bf16 %v729_v7, %v723_v6  ;;  %v606_v6 = vld [vmem:[#allocation6 + $0x88] sm:$0xff] }
 0x17e   : > { %v612_v7 = vld [vmem:[#allocation6 + $0xb8] sm:$0xff] }
 0x180   : > { %5953 = vmatpush1.bf16.msra.mxu1 %v5952_v16  ;;  %v670_v16 = vld [vmem:[#allocation6 + $0x288] sm:$0xff] }
 0x181   : > { %5955 = vmatprep.subr.bf16.mxu1 %v5954_v17  ;;  %v8171_v17 = vld [vmem:[%s8100_s27 + $0x50] sm:$0xff]  ;;  %v5990_v20 = vpack.c.bf16 %v670_v16, %v664_v15 }
 0x182   : > { %v735_v16 = vld [vmem:[#allocation6 + $0x490] sm:$0xff] }
 0x184   : > { %5957 = vmatpush1.bf16.msra.mxu1 %v5956_v22  ;;  %v669_v22 = vld [vmem:[#allocation6 + $0x280] sm:$0xff] }
 0x185   : > { %5959 = vmatprep.subr.bf16.mxu1 %v5958_v23  ;;  %v676_v23 = vld [vmem:[#allocation6 + $0x2b8] sm:$0xff]  ;;  %v5992_v26 = vpack.c.bf16 %v669_v22, %v663_v21  ;;  %v754_v21 = vld [vmem:[#allocation6 + $0x528] sm:$0xff]  ;;  %v8227_v22 = vld [vmem:[%s8100_s27 + $0xc0] sm:$0xff] }
 0x188   : > { %5961 = vmatpush1.bf16.msra.mxu1 %v5960_v28  ;;  %v5994_v28 = vpack.c.bf16 %v682_v24, %v676_v23  ;;  %v8230_v24 = vld [vmem:[%s8100_s27 + $0xd8] sm:$0xff] }
 0x189   : > { %5963 = vmatprep.subr.bf16.mxu1 %v5962_v29  ;;  %v675_v29 = vld [vmem:[#allocation6 + $0x2b0] sm:$0xff] }
 0x18c   : > { %5965 = vmatpush1.bf16.msra.mxu1 %v5964_v34  ;;  %v5996_v34 = vpack.c.bf16 %v681_v30, %v675_v29  ;;  %v753_v29 = vld [vmem:[#allocation6 + $0x520] sm:$0xff]  ;;  %v760_v30 = vld [vmem:[#allocation6 + $0x558] sm:$0xff] }
 0x18d   : > { %5967 = vmatprep.subr.bf16.mxu1 %v5966_v35  ;;  %v8190_v35 = vld [vmem:[%s8100_s27 + $0x88] sm:$0xff]  ;;  %v6022_v37 = vpack.c.bf16 %v766_v31, %v760_v30 }
 0x18f   : > { %878 = vmatmul.mubr.f32.vlgmr.msra.gmra.mrb[0].mxu1 %v8131_v40 }
 0x190   : > { %5969 = vmatpush1.bf16.msra.mxu1 %v5968_v42  ;;  %883 = vmatprep.mubr.f32.mxu1 %v8134_v43  ;;  %v706_v42 = vld [vmem:[#allocation6 + $0x3a8] sm:$0xff] }
 0x191   : > { %5971 = vmatprep.subr.bf16.mxu1 %v5970_v44  ;;  %v8195_v44 = vld [vmem:[%s8100_s27 + $0x80] sm:$0xff]  ;;  %v6002_v47 = vpack.c.bf16 %v706_v42, %v700_v39  ;;  %v772_v42 = vld [vmem:[#allocation6 + $0x5b8] sm:$0xff] }
 0x192   : > { %v765_v39 = vld [vmem:[#allocation6 + $0x580] sm:$0xff] }
 0x193   : > { %884 = vmatmul.mubr.f32.gmra.mrb[2].mxu1 %v8139_v49 }
 0x194   : > { %5973 = vmatpush1.bf16.msra.mxu1 %v5972_v50  ;;  %889 = vmatprep.mubr.f32.mxu1 %v8142_v51  ;;  %v705_v50 = vld [vmem:[#allocation6 + $0x3a0] sm:$0xff] }
 0x195   : > { %5975 = vmatprep.subr.bf16.mxu1 %v5974_v52  ;;  %v712_v52 = vld [vmem:[#allocation6 + $0x3d8] sm:$0xff]  ;;  %v6004_v55 = vpack.c.bf16 %v705_v50, %v699_v48  ;;  %v6024_v48 = vpack.c.bf16 %v765_v39, %v759_v38  ;;  %v642_v38 = vld [vmem:[#allocation6 + $0x1a8] sm:$0xff] }
 0x196   : > { %v8246_v50 = vld [vmem:[%s8100_s27 + $0xf8] sm:$0xff] }
 0x197   : > { %890 = vmatmul.mubr.f32.gmra.mrb[4].mxu1 %v8147_v57  ;;  %v648_v39 = vld [vmem:[#allocation6 + $0x1d8] sm:$0xff] }
 0x198   : > { %5977 = vmatpush1.bf16.msra.mxu1 %v5976_v58  ;;  %895 = vmatprep.mubr.f32.mxu1 %v8150_v59  ;;  %v6006_v58 = vpack.c.bf16 %v718_v53, %v712_v52  ;;  %v771_v53 = vld [vmem:[#allocation6 + $0x5b0] sm:$0xff] }
 0x199   : > { %5979 = vmatprep.subr.bf16.mxu1 %v5978_v60  ;;  %v711_v60 = vld [vmem:[#allocation6 + $0x3d0] sm:$0xff] }
 0x19b   : > { %896 = vmatmul.mubr.f32.gmra.mrb[6].mxu1 %v8155_v1 }
 0x19c   : > { %5981 = vmatpush1.bf16.msra.mxu1 %v5980_v2  ;;  %901 = vmatprep.mubr.f32.mxu1 %v8158_v3  ;;  %v6008_v2 = vpack.c.bf16 %v717_v61, %v711_v60  ;;  %v600_v60 = vld [vmem:[#allocation6 + $0x58] sm:$0xff]  ;;  %v8251_v61 = vld [vmem:[%s8100_s27 + $0xf0] sm:$0xff] }
 0x19d   : > { %5983 = vmatprep.subr.bf16.mxu1 %v5982_v4  ;;  %v8214_v4 = vld [vmem:[%s8100_s27 + $0xb8] sm:$0xff] }
 0x19f   : > { %902 = vmatmul.mubr.f32.gmra.mrb[8].mxu1 %v8163_v9 }
 0x1a0   : > { %5985 = vmatpush1.bf16.msra.mxu1 %v5984_v10  ;;  %907 = vmatprep.mubr.f32.mxu1 %v8166_v11  ;;  %v742_v10 = vld [vmem:[#allocation6 + $0x4c8] sm:$0xff] }
 0x1a1   : > { %5987 = vmatprep.subr.bf16.mxu1 %v5986_v12  ;;  %v8219_v12 = vld [vmem:[%s8100_s27 + $0xb0] sm:$0xff]  ;;  %v6014_v15 = vpack.c.bf16 %v742_v10, %v736_v8  ;;  %v6034_v10 = vpack.c.bf16 %v612_v7, %v606_v6 }
 0x1a3   : > { %908 = vmatmul.mubr.f32.gmra.mrb[10].mxu1 %v8171_v17 }
 0x1a4   : > { %5989 = vmatpush1.bf16.msra.mxu1 %v5988_v18  ;;  %913 = vmatprep.mubr.f32.mxu1 %v8174_v19  ;;  %v741_v18 = vld [vmem:[#allocation6 + $0x4c0] sm:$0xff] }
 0x1a5   : > { %5991 = vmatprep.subr.bf16.mxu1 %v5990_v20  ;;  %v748_v20 = vld [vmem:[#allocation6 + $0x4f8] sm:$0xff]  ;;  %v6016_v23 = vpack.c.bf16 %v741_v18, %v735_v16  ;;  %v618_v16 = vld [vmem:[#allocation6 + $0xe8] sm:$0xff] }
 0x1a6   : > { %v624_v18 = vld [vmem:[#allocation6 + $0x118] sm:$0xff] }
 0x1a7   : > { %914 = vmatmul.mubr.f32.gmra.mrb[12].mxu1 %v8179_v25 }
 0x1a8   : > { %5993 = vmatpush1.bf16.msra.mxu1 %v5992_v26  ;;  %919 = vmatprep.mubr.f32.mxu1 %v8182_v27  ;;  %v6018_v26 = vpack.c.bf16 %v754_v21, %v748_v20  ;;  %v6038_v21 = vpack.c.bf16 %v624_v18, %v618_v16 }
 0x1a9   : > { %5995 = vmatprep.subr.bf16.mxu1 %v5994_v28  ;;  %v747_v28 = vld [vmem:[#allocation6 + $0x4f0] sm:$0xff] }
 0x1ab   : > { %920 = vmatmul.mubr.f32.gmra.mrb[14].mxu1 %v8187_v33 }
 0x1ac   : > { %5997 = vmatpush1.bf16.msra.mxu1 %v5996_v34  ;;  %925 = vmatprep.mubr.f32.mxu1 %v8190_v35  ;;  %v6020_v34 = vpack.c.bf16 %v753_v29, %v747_v28  ;;  %v630_v28 = vld [vmem:[#allocation6 + $0x148] sm:$0xff]  ;;  %v636_v29 = vld [vmem:[#allocation6 + $0x178] sm:$0xff] }
 0x1ad   : > { %5999 = vmatprep.subr.bf16.mxu1 %v5998_v36  ;;  %v8238_v36 = vld [vmem:[%s8100_s27 + $0xe8] sm:$0xff]  ;;  %v6042_v31 = vpack.c.bf16 %v636_v29, %v630_v28 }
 0x1af   : > { %926 = vmatmul.mubr.f32.gmra.mrb[16].mxu1 %v8195_v44 }
 0x1b0   : > { %6001 = vmatpush1.bf16.msra.mxu1 %v6000_v45  ;;  %931 = vmatprep.mubr.f32.mxu1 %v8198_v46  ;;  %v778_v45 = vld [vmem:[#allocation6 + $0x5e8] sm:$0xff] }
 0x1b1   : > { %6003 = vmatprep.subr.bf16.mxu1 %v6002_v47  ;;  %v8243_v47 = vld [vmem:[%s8100_s27 + $0xe0] sm:$0xff]  ;;  %v6026_v52 = vpack.c.bf16 %v778_v45, %v772_v42  ;;  %v6046_v45 = vpack.c.bf16 %v648_v39, %v642_v38 }
 0x1b3   : > { %932 = vmatmul.mubr.f32.gmra.mrb[18].mxu1 %v8203_v54 }
 0x1b4   : > { %6005 = vmatpush1.bf16.msra.mxu1 %v6004_v55  ;;  %937 = vmatprep.mubr.f32.mxu1 %v8206_v56  ;;  %v777_v55 = vld [vmem:[#allocation6 + $0x5e0] sm:$0xff] }
 0x1b5   : > { %6007 = vmatprep.subr.bf16.mxu1 %v6006_v58  ;;  %v594_v58 = vld [vmem:[#allocation6 + $0x28] sm:$0xff]  ;;  %v6028_v62 = vpack.c.bf16 %v777_v55, %v771_v53  ;;  %v660_v55 = vld [vmem:[#allocation6 + $0x238] sm:$0xff] }
 0x1b6   : > { %v6030_v63 = vpack.c.bf16 %v600_v60, %v594_v58  ;;  %v654_v53 = vld [vmem:[#allocation6 + $0x208] sm:$0xff] }
 0x1b7   : > { %938 = vmatmul.mubr.f32.gmra.mrb[20].mxu1 %v8211_v0  ;;  %v6050_v60 = vpack.c.bf16 %v660_v55, %v654_v53 }
 0x1b8   : > { %6009 = vmatpush1.bf16.msra.mxu1 %v6008_v2  ;;  %943 = vmatprep.mubr.f32.mxu1 %v8214_v4  ;;  %v593_v2 = vld [vmem:[#allocation6 + $0x20] sm:$0xff] }
 0x1b9   : > { %6011 = vmatprep.subr.bf16.mxu1 %v6010_v5  ;;  %v599_v5 = vld [vmem:[#allocation6 + $0x50] sm:$0xff] }
 0x1ba   : > { %v6032_v8 = vpack.c.bf16 %v599_v5, %v593_v2  ;;  %v666_v2 = vld [vmem:[#allocation6 + $0x268] sm:$0xff]  ;;  %v672_v5 = vld [vmem:[#allocation6 + $0x298] sm:$0xff] }
 0x1bb   : > { %944 = vmatmul.mubr.f32.gmra.mrb[22].mxu1 %v8219_v12  ;;  %v6054_v7 = vpack.c.bf16 %v672_v5, %v666_v2 }
 0x1bc   : > { %6013 = vmatpush1.bf16.msra.mxu1 %v6012_v13  ;;  %949 = vmatprep.mubr.f32.mxu1 %v8222_v14  ;;  %v605_v13 = vld [vmem:[#allocation6 + $0x80] sm:$0xff] }
 0x1bd   : > { %6015 = vmatprep.subr.bf16.mxu1 %v6014_v15  ;;  %v611_v15 = vld [vmem:[#allocation6 + $0xb0] sm:$0xff] }
 0x1be   : > { %v6036_v20 = vpack.c.bf16 %v611_v15, %v605_v13  ;;  %v678_v13 = vld [vmem:[#allocation6 + $0x2c8] sm:$0xff]  ;;  %v684_v15 = vld [vmem:[#allocation6 + $0x2f8] sm:$0xff] }
 0x1bf   : > { %950 = vmatmul.mubr.f32.gmra.mrb[24].mxu1 %v8227_v22  ;;  %v6058_v18 = vpack.c.bf16 %v684_v15, %v678_v13 }
 0x1c0   : > { %6017 = vmatpush1.bf16.msra.mxu1 %v6016_v23  ;;  %955 = vmatprep.mubr.f32.mxu1 %v8230_v24  ;;  %v617_v23 = vld [vmem:[#allocation6 + $0xe0] sm:$0xff] }
 0x1c1   : > { %6019 = vmatprep.subr.bf16.mxu1 %v6018_v26  ;;  %v623_v26 = vld [vmem:[#allocation6 + $0x110] sm:$0xff] }
 0x1c2   : > { %v6040_v30 = vpack.c.bf16 %v623_v26, %v617_v23  ;;  %v690_v23 = vld [vmem:[#allocation6 + $0x328] sm:$0xff]  ;;  %v696_v26 = vld [vmem:[#allocation6 + $0x358] sm:$0xff] }
 0x1c3   : > { %956 = vmatmul.mubr.f32.gmra.mrb[26].mxu1 %v8235_v32  ;;  %v6062_v29 = vpack.c.bf16 %v696_v26, %v690_v23 }
 0x1c4   : > { %6021 = vmatpush1.bf16.msra.mxu1 %v6020_v34  ;;  %961 = vmatprep.mubr.f32.mxu1 %v8238_v36  ;;  %v629_v34 = vld [vmem:[#allocation6 + $0x140] sm:$0xff] }
 0x1c5   : > { %6023 = vmatprep.subr.bf16.mxu1 %v6022_v37  ;;  %v635_v37 = vld [vmem:[#allocation6 + $0x170] sm:$0xff] }
 0x1c6   : > { %v6044_v42 = vpack.c.bf16 %v635_v37, %v629_v34  ;;  %v702_v34 = vld [vmem:[#allocation6 + $0x388] sm:$0xff]  ;;  %v708_v37 = vld [vmem:[#allocation6 + $0x3b8] sm:$0xff] }
 0x1c7   : > { %962 = vmatmul.mubr.f32.gmra.mrb[28].mxu1 %v8243_v47  ;;  %v6066_v39 = vpack.c.bf16 %v708_v37, %v702_v34 }
 0x1c8   : > { %6025 = vmatpush1.bf16.msra.mxu1 %v6024_v48  ;;  %967 = vmatprep.mubr.f32.mxu1 %v8246_v50  ;;  %v641_v48 = vld [vmem:[#allocation6 + $0x1a0] sm:$0xff] }
 0x1c9   : > { %6027 = vmatprep.subr.bf16.mxu1 %v6026_v52  ;;  %v647_v52 = vld [vmem:[#allocation6 + $0x1d0] sm:$0xff] }
 0x1ca   : > { %v6048_v58 = vpack.c.bf16 %v647_v52, %v641_v48  ;;  %v714_v48 = vld [vmem:[#allocation6 + $0x3e8] sm:$0xff]  ;;  %v720_v52 = vld [vmem:[#allocation6 + $0x418] sm:$0xff] }
 0x1cb   : > { %968 = vmatmul.mubr.f32.gmra.mrb[30].mxu1 %v8251_v61  ;;  %v6070_v55 = vpack.c.bf16 %v720_v52, %v714_v48 }
 0x1cc   : > { %6029 = vmatpush1.bf16.msra.mxu1 %v6028_v62  ;;  %1038 = vmatprep.mubr.f32.mxu1 %v8127_v41  ;;  %v653_v62 = vld [vmem:[#allocation6 + $0x200] sm:$0xff] }
 0x1cd   : > { %6031 = vmatprep.subr.bf16.mxu1 %v6030_v63  ;;  %v659_v63 = vld [vmem:[#allocation6 + $0x230] sm:$0xff] }
 0x1ce   : > { %v6052_v6 = vpack.c.bf16 %v659_v63, %v653_v62  ;;  %v726_v62 = vld [vmem:[#allocation6 + $0x448] sm:$0xff]  ;;  %v732_v63 = vld [vmem:[#allocation6 + $0x478] sm:$0xff] }
 0x1cf   : > { %1039 = vmatmul.mubr.f32.vlgmr.msra.gmra.mrb[32].mxu1 %v8131_v40  ;;  %v6074_v5 = vpack.c.bf16 %v732_v63, %v726_v62 }
 0x1d0   : > { %1044 = vmatprep.mubr.f32.mxu1 %v8134_v43  ;;  %6033 = vmatpush1.bf16.msra.mxu1 %v6032_v8  ;;  %v665_v8 = vld [vmem:[#allocation6 + $0x260] sm:$0xff] }
 0x1d1   : > { %6035 = vmatprep.subr.bf16.mxu1 %v6034_v10  ;;  %v671_v10 = vld [vmem:[#allocation6 + $0x290] sm:$0xff] }
 0x1d2   : > { %v6056_v16 = vpack.c.bf16 %v671_v10, %v665_v8  ;;  %v738_v8 = vld [vmem:[#allocation6 + $0x4a8] sm:$0xff]  ;;  %v744_v10 = vld [vmem:[#allocation6 + $0x4d8] sm:$0xff] }
 0x1d3   : > { %1045 = vmatmul.mubr.f32.gmra.mrb[34].mxu1 %v8139_v49  ;;  %v6078_v15 = vpack.c.bf16 %v744_v10, %v738_v8 }
 0x1d4   : > { %1050 = vmatprep.mubr.f32.mxu1 %v8142_v51  ;;  %6037 = vmatpush1.bf16.msra.mxu1 %v6036_v20  ;;  %v677_v20 = vld [vmem:[#allocation6 + $0x2c0] sm:$0xff] }
 0x1d5   : > { %6039 = vmatprep.subr.bf16.mxu1 %v6038_v21  ;;  %v683_v21 = vld [vmem:[#allocation6 + $0x2f0] sm:$0xff] }
 0x1d6   : > { %v6060_v28 = vpack.c.bf16 %v683_v21, %v677_v20  ;;  %v750_v20 = vld [vmem:[#allocation6 + $0x508] sm:$0xff]  ;;  %v756_v21 = vld [vmem:[#allocation6 + $0x538] sm:$0xff] }
 0x1d7   : > { %1051 = vmatmul.mubr.f32.gmra.mrb[36].mxu1 %v8147_v57  ;;  %v6082_v26 = vpack.c.bf16 %v756_v21, %v750_v20 }
 0x1d8   : > { %1056 = vmatprep.mubr.f32.mxu1 %v8150_v59  ;;  %6041 = vmatpush1.bf16.msra.mxu1 %v6040_v30  ;;  %v689_v30 = vld [vmem:[#allocation6 + $0x320] sm:$0xff] }
 0x1d9   : > { %6043 = vmatprep.subr.bf16.mxu1 %v6042_v31  ;;  %v695_v31 = vld [vmem:[#allocation6 + $0x350] sm:$0xff] }
 0x1da   : > { %v6064_v38 = vpack.c.bf16 %v695_v31, %v689_v30  ;;  %v762_v30 = vld [vmem:[#allocation6 + $0x568] sm:$0xff]  ;;  %v768_v31 = vld [vmem:[#allocation6 + $0x598] sm:$0xff] }
 0x1db   : > { %1057 = vmatmul.mubr.f32.gmra.mrb[38].mxu1 %v8155_v1  ;;  %v6086_v37 = vpack.c.bf16 %v768_v31, %v762_v30 }
 0x1dc   : > { %1062 = vmatprep.mubr.f32.mxu1 %v8158_v3  ;;  %6045 = vmatpush1.bf16.msra.mxu1 %v6044_v42  ;;  %v701_v42 = vld [vmem:[#allocation6 + $0x380] sm:$0xff] }
 0x1dd   : > { %6047 = vmatprep.subr.bf16.mxu1 %v6046_v45  ;;  %v707_v45 = vld [vmem:[#allocation6 + $0x3b0] sm:$0xff] }
 0x1de   : > { %v6068_v53 = vpack.c.bf16 %v707_v45, %v701_v42  ;;  %v774_v42 = vld [vmem:[#allocation6 + $0x5c8] sm:$0xff]  ;;  %v780_v45 = vld [vmem:[#allocation6 + $0x5f8] sm:$0xff] }
 0x1df   : > { %1063 = vmatmul.mubr.f32.gmra.mrb[40].mxu1 %v8163_v9  ;;  %v6090_v52 = vpack.c.bf16 %v780_v45, %v774_v42 }
 0x1e0   : > { %1068 = vmatprep.mubr.f32.mxu1 %v8166_v11  ;;  %6049 = vmatpush1.bf16.msra.mxu1 %v6048_v58  ;;  %v713_v58 = vld [vmem:[#allocation6 + $0x3e0] sm:$0xff] }
 0x1e1   : > { %6051 = vmatprep.subr.bf16.mxu1 %v6050_v60  ;;  %v719_v60 = vld [vmem:[#allocation6 + $0x410] sm:$0xff] }
 0x1e2   : > { %v6072_v2 = vpack.c.bf16 %v719_v60, %v713_v58 }
 0x1e3   : > { %1069 = vmatmul.mubr.f32.gmra.mrb[42].mxu1 %v8171_v17 }
 0x1e4   : > { %1074 = vmatprep.mubr.f32.mxu1 %v8174_v19  ;;  %6053 = vmatpush1.bf16.msra.mxu1 %v6052_v6  ;;  %v725_v6 = vld [vmem:[#allocation6 + $0x440] sm:$0xff] }
 0x1e5   : > { %6055 = vmatprep.subr.bf16.mxu1 %v6054_v7  ;;  %v731_v7 = vld [vmem:[#allocation6 + $0x470] sm:$0xff] }
 0x1e6   : > { %v6076_v13 = vpack.c.bf16 %v731_v7, %v725_v6 }
 0x1e7   : > { %1075 = vmatmul.mubr.f32.gmra.mrb[44].mxu1 %v8179_v25 }
 0x1e8   : > { %1080 = vmatprep.mubr.f32.mxu1 %v8182_v27  ;;  %6057 = vmatpush1.bf16.msra.mxu1 %v6056_v16  ;;  %v737_v16 = vld [vmem:[#allocation6 + $0x4a0] sm:$0xff] }
 0x1e9   : > { %6059 = vmatprep.subr.bf16.mxu1 %v6058_v18  ;;  %v743_v18 = vld [vmem:[#allocation6 + $0x4d0] sm:$0xff] }
 0x1ea   : > { %v6080_v23 = vpack.c.bf16 %v743_v18, %v737_v16 }
 0x1eb   : > { %1081 = vmatmul.mubr.f32.gmra.mrb[46].mxu1 %v8187_v33 }
 0x1ec   : > { %1086 = vmatprep.mubr.f32.mxu1 %v8190_v35  ;;  %6061 = vmatpush1.bf16.msra.mxu1 %v6060_v28  ;;  %v749_v28 = vld [vmem:[#allocation6 + $0x500] sm:$0xff] }
 0x1ed   : > { %6063 = vmatprep.subr.bf16.mxu1 %v6062_v29  ;;  %v755_v29 = vld [vmem:[#allocation6 + $0x530] sm:$0xff] }
 0x1ee   : > { %v6084_v34 = vpack.c.bf16 %v755_v29, %v749_v28 }
 0x1ef   : > { %1087 = vmatmul.mubr.f32.gmra.mrb[48].mxu1 %v8195_v44 }
 0x1f0   : > { %1092 = vmatprep.mubr.f32.mxu1 %v8198_v46  ;;  %6065 = vmatpush1.bf16.msra.mxu1 %v6064_v38  ;;  %v761_v38 = vld [vmem:[#allocation6 + $0x560] sm:$0xff] }
 0x1f1   : > { %6067 = vmatprep.subr.bf16.mxu1 %v6066_v39  ;;  %v767_v39 = vld [vmem:[#allocation6 + $0x590] sm:$0xff] }
 0x1f2   : > { %v6088_v48 = vpack.c.bf16 %v767_v39, %v761_v38 }
 0x1f3   : > { %1093 = vmatmul.mubr.f32.gmra.mrb[50].mxu1 %v8203_v54 }
 0x1f4   : > { %1098 = vmatprep.mubr.f32.mxu1 %v8206_v56  ;;  %6069 = vmatpush1.bf16.msra.mxu1 %v6068_v53  ;;  %v773_v53 = vld [vmem:[#allocation6 + $0x5c0] sm:$0xff] }
 0x1f5   : > { %6071 = vmatprep.subr.bf16.mxu1 %v6070_v55  ;;  %v779_v55 = vld [vmem:[#allocation6 + $0x5f0] sm:$0xff] }
 0x1f6   : > { %v6092_v58 = vpack.c.bf16 %v779_v55, %v773_v53 }
 0x1f7   : > { %1099 = vmatmul.mubr.f32.gmra.mrb[52].mxu1 %v8211_v0 }
 0x1f8   : > { %1104 = vmatprep.mubr.f32.mxu1 %v8214_v4  ;;  %6073 = vmatpush1.bf16.msra.mxu1 %v6072_v2 }
 0x1f9   : > { %6075 = vmatprep.subr.bf16.mxu1 %v6074_v5 }
 0x1fb   : > { %1105 = vmatmul.mubr.f32.gmra.mrb[54].mxu1 %v8219_v12 }
 0x1fc   : > { %1110 = vmatprep.mubr.f32.mxu1 %v8222_v14  ;;  %6077 = vmatpush1.bf16.msra.mxu1 %v6076_v13 }
 0x1fd   : > { %6079 = vmatprep.subr.bf16.mxu1 %v6078_v15 }
 0x1ff   : > { %1111 = vmatmul.mubr.f32.gmra.mrb[56].mxu1 %v8227_v22 }
 0x200   : > { %1116 = vmatprep.mubr.f32.mxu1 %v8230_v24  ;;  %6081 = vmatpush1.bf16.msra.mxu1 %v6080_v23 }
 0x201   : > { %6083 = vmatprep.subr.bf16.mxu1 %v6082_v26 }
 0x203   : > { %1117 = vmatmul.mubr.f32.gmra.mrb[58].mxu1 %v8235_v32 }
 0x204   : > { %1122 = vmatprep.mubr.f32.mxu1 %v8238_v36  ;;  %6085 = vmatpush1.bf16.msra.mxu1 %v6084_v34 }
 0x205   : > { %6087 = vmatprep.subr.bf16.mxu1 %v6086_v37 }
 0x207   : > { %1123 = vmatmul.mubr.f32.gmra.mrb[60].mxu1 %v8243_v47 }
 0x208   : > { %1128 = vmatprep.mubr.f32.mxu1 %v8246_v50  ;;  %6089 = vmatpush1.bf16.msra.mxu1 %v6088_v48 }
 0x209   : > { %6091 = vmatprep.subr.bf16.mxu1 %v6090_v52 }
 0x20b   : > { %1129 = vmatmul.mubr.f32.gmra.mrb[62].mxu1 %v8251_v61 }
 0x20c   : > { %6093 = vmatpush1.bf16.msra.mxu1 %v6092_v58  ;;  %1199 = vmatprep.mubr.f32.mxu1 %v8127_v41  ;;  %v783_v41 = vlaneseq }
 0x20f   : > { %1200 = vmatmul.mubr.f32.vlgmr.msra.gmra.mrb[64].mxu1 %v8131_v40  ;;  %v8319_v40 = vshrl.u32 %v783_v41, 7 }
 0x210   : > { %1205 = vmatprep.mubr.f32.mxu1 %v8134_v43 }
 0x211   : > { %10889 = vst [vmem:[#allocation32_spill] sm:$0xff] %v8319_v40  ;;  %v8322_v43 = vsub.s32 0, %v8319_v40 }
 0x213   : > { %1206 = vmatmul.mubr.f32.gmra.mrb[66].mxu1 %v8139_v49  ;;  %10890 = vst [vmem:[#allocation33_spill] sm:$0xff] %v8322_v43  ;;  %v8324_v49 = vld [vmem:[#allocation8] sm:$0x3f] }
 0x214   : > { %1211 = vmatprep.mubr.f32.mxu1 %v8142_v51  ;;  %v8327_v51 = vsub.s32 1, %v8319_v40 }
 0x216   : > { %10891 = vst [vmem:[#allocation34_spill] sm:$0xff] %v8327_v51 }
 0x217   : > { %1212 = vmatmul.mubr.f32.gmra.mrb[68].mxu1 %v8147_v57  ;;  %v8331_v57 = vrot.slane %v8324_v49, %v8322_v43 }
 0x218   : > { %1217 = vmatprep.mubr.f32.mxu1 %v8150_v59  ;;  %v8335_v59 = vrot.slane %v8324_v49, %v8327_v51 }
 0x21b   : > { %1218 = vmatmul.mubr.f32.gmra.mrb[70].mxu1 %v8155_v1 }
 0x21c   : > { %1223 = vmatprep.mubr.f32.mxu1 %v8158_v3 }
 0x21f   : > { %1224 = vmatmul.mubr.f32.gmra.mrb[72].mxu1 %v8163_v9 }
 0x220   : > { %1229 = vmatprep.mubr.f32.mxu1 %v8166_v11 }
 0x223   : > { %1230 = vmatmul.mubr.f32.gmra.mrb[74].mxu1 %v8171_v17 }
 0x224   : > { %1235 = vmatprep.mubr.f32.mxu1 %v8174_v19 }
 0x227   : > { %1236 = vmatmul.mubr.f32.gmra.mrb[76].mxu1 %v8179_v25 }
 0x228   : > { %1241 = vmatprep.mubr.f32.mxu1 %v8182_v27 }
 0x22b   : > { %1242 = vmatmul.mubr.f32.gmra.mrb[78].mxu1 %v8187_v33 }
 0x22c   : > { %1247 = vmatprep.mubr.f32.mxu1 %v8190_v35 }
 0x22f   : > { %1248 = vmatmul.mubr.f32.gmra.mrb[80].mxu1 %v8195_v44 }
 0x230   : > { %1253 = vmatprep.mubr.f32.mxu1 %v8198_v46 }
 0x233   : > { %1254 = vmatmul.mubr.f32.gmra.mrb[82].mxu1 %v8203_v54 }
 0x234   : > { %1259 = vmatprep.mubr.f32.mxu1 %v8206_v56 }
 0x237   : > { %1260 = vmatmul.mubr.f32.gmra.mrb[84].mxu1 %v8211_v0 }
 0x238   : > { %1265 = vmatprep.mubr.f32.mxu1 %v8214_v4 }
 0x23b   : > { %1266 = vmatmul.mubr.f32.gmra.mrb[86].mxu1 %v8219_v12 }
 0x23c   : > { %1271 = vmatprep.mubr.f32.mxu1 %v8222_v14 }
 0x23f   : > { %1272 = vmatmul.mubr.f32.gmra.mrb[88].mxu1 %v8227_v22 }
 0x240   : > { %1277 = vmatprep.mubr.f32.mxu1 %v8230_v24 }
 0x243   : > { %1278 = vmatmul.mubr.f32.gmra.mrb[90].mxu1 %v8235_v32 }
 0x244   : > { %1283 = vmatprep.mubr.f32.mxu1 %v8238_v36 }
 0x247   : > { %1284 = vmatmul.mubr.f32.gmra.mrb[92].mxu1 %v8243_v47 }
 0x248   : > { %1289 = vmatprep.mubr.f32.mxu1 %v8246_v50 }
 0x24b   : > { %1290 = vmatmul.mubr.f32.gmra.mrb[94].mxu1 %v8251_v61 }
 0x262   : > { %v879_v1 = vpop.f32.mrb[0].mxu1 }
 0x263   : > { %v880_v3 = vadd.f32 %v879_v1, %v8331_v57  ;;  %v881_v9 = vpop.f32.mrb[1].mxu1 }
 0x264   : > { %v882_v11 = vadd.f32 %v881_v9, %v8335_v59 }
 0x265   : > { %5710 = vmatprep.mubr.f32.mxu1 %v880_v3 }
 0x266   : > { %v885_v17 = vpop.f32.mrb[2].mxu1  ;;  %5822 = vmatprep.mubr.f32.mxu0 %v882_v11 }
 0x267   : > { %v8340_v19 = vadd.f32 %v885_v17, %v8331_v57  ;;  %v887_v25 = vpop.f32.mrb[3].mxu1 }
 0x268   : > { %v8343_v27 = vadd.f32 %v887_v25, %v8335_v59 }
 0x26a   : > { %v891_v33 = vpop.f32.mrb[4].mxu1 }
 0x26b   : > { %v8346_v35 = vadd.f32 %v891_v33, %v8331_v57  ;;  %v893_v44 = vpop.f32.mrb[5].mxu1  ;;  %v10818_v33 = vsub.s32 2, %v8319_v40 }
 0x26c   : > { %v8349_v46 = vadd.f32 %v893_v44, %v8335_v59 }
 0x26e   : > { %v897_v54 = vpop.f32.mrb[6].mxu1 }
 0x26f   : > { %v8352_v56 = vadd.f32 %v897_v54, %v8331_v57  ;;  %v899_v0 = vpop.f32.mrb[7].mxu1  ;;  %v10819_v54 = vsub.s32 3, %v8319_v40 }
 0x270   : > { %v8355_v4 = vadd.f32 %v899_v0, %v8335_v59 }
 0x272   : > { %v903_v12 = vpop.f32.mrb[8].mxu1 }
 0x273   : > { %v8358_v14 = vadd.f32 %v903_v12, %v8331_v57  ;;  %v905_v22 = vpop.f32.mrb[9].mxu1  ;;  %v8434_v12 = vrot.slane %v8324_v49, %v10818_v33 }
 0x274   : > { %v8361_v24 = vadd.f32 %v905_v22, %v8335_v59 }
 0x276   : > { %v909_v32 = vpop.f32.mrb[10].mxu1 }
 0x277   : > { %v8364_v36 = vadd.f32 %v909_v32, %v8331_v57  ;;  %v911_v47 = vpop.f32.mrb[11].mxu1 }
 0x278   : > { %v8367_v50 = vadd.f32 %v911_v47, %v8335_v59 }
 0x27a   : > { %v915_v61 = vpop.f32.mrb[12].mxu1 }
 0x27b   : > { %v8370_v60 = vadd.f32 %v915_v61, %v8331_v57  ;;  %v917_v62 = vpop.f32.mrb[13].mxu1 }
 0x27c   : > { %v8373_v63 = vadd.f32 %v917_v62, %v8335_v59 }
 0x27e   : > { %v921_v2 = vpop.f32.mrb[14].mxu1 }
 0x27f   : > { %v8376_v5 = vadd.f32 %v921_v2, %v8331_v57  ;;  %v923_v6 = vpop.f32.mrb[15].mxu1 }
 0x280   : > { %v8379_v7 = vadd.f32 %v923_v6, %v8335_v59 }
 0x282   : > { %v927_v8 = vpop.f32.mrb[16].mxu1 }
 0x283   : > { %v8382_v10 = vadd.f32 %v927_v8, %v8331_v57  ;;  %v929_v13 = vpop.f32.mrb[17].mxu1 }
 0x284   : > { %v8385_v15 = vadd.f32 %v929_v13, %v8335_v59 }
 0x286   : > { %v933_v16 = vpop.f32.mrb[18].mxu1 }
 0x287   : > { %v8388_v18 = vadd.f32 %v933_v16, %v8331_v57  ;;  %v935_v20 = vpop.f32.mrb[19].mxu1 }
 0x288   : > { %v8391_v21 = vadd.f32 %v935_v20, %v8335_v59 }
 0x28a   : > { %v939_v23 = vpop.f32.mrb[20].mxu1 }
 0x28b   : > { %v8394_v26 = vadd.f32 %v939_v23, %v8331_v57  ;;  %v941_v28 = vpop.f32.mrb[21].mxu1 }
 0x28c   : > { %v8397_v29 = vadd.f32 %v941_v28, %v8335_v59 }
 0x28e   : > { %v945_v30 = vpop.f32.mrb[22].mxu1 }
 0x28f   : > { %v8400_v31 = vadd.f32 %v945_v30, %v8331_v57  ;;  %v947_v34 = vpop.f32.mrb[23].mxu1 }
 0x290   : > { %v8403_v37 = vadd.f32 %v947_v34, %v8335_v59 }
 0x292   : > { %v951_v38 = vpop.f32.mrb[24].mxu1 }
 0x293   : > { %v8406_v39 = vadd.f32 %v951_v38, %v8331_v57  ;;  %v953_v42 = vpop.f32.mrb[25].mxu1 }
 0x294   : > { %v8409_v45 = vadd.f32 %v953_v42, %v8335_v59 }
 0x296   : > { %v957_v48 = vpop.f32.mrb[26].mxu1 }
 0x297   : > { %v8412_v52 = vadd.f32 %v957_v48, %v8331_v57  ;;  %v959_v53 = vpop.f32.mrb[27].mxu1 }
 0x298   : > { %v8415_v55 = vadd.f32 %v959_v53, %v8335_v59 }
 0x29a   : > { %v963_v58 = vpop.f32.mrb[28].mxu1 }
 0x29b   : > { %v8418_v1 = vadd.f32 %v963_v58, %v8331_v57  ;;  %v965_v3 = vpop.f32.mrb[29].mxu1 }
 0x29c   : > { %v8421_v9 = vadd.f32 %v965_v3, %v8335_v59 }
 0x29e   : > { %v969_v11 = vpop.f32.mrb[30].mxu1 }
 0x29f   : > { %v8424_v17 = vadd.f32 %v969_v11, %v8331_v57  ;;  %v971_v25 = vpop.f32.mrb[31].mxu1  ;;  %v8439_v57 = vrot.slane %v8324_v49, %v10819_v54 }
 0x2a0   : > { %v8428_v44 = vadd.f32 %v971_v25, %v8335_v59 }
 0x2a2   : > { %v1040_v0 = vpop.f32.mrb[32].mxu1 }
 0x2a3   : > { %v1042_v22 = vpop.f32.mrb[33].mxu1  ;;  %v1041_v47 = vadd.f32 %v1040_v0, %v8434_v12 }
 0x2a4   : > { %v1043_v62 = vadd.f32 %v1042_v22, %v8439_v57 }
 0x2a6   : > { %v1046_v32 = vpop.f32.mrb[34].mxu1 }
 0x2a7   : > { %v1047_v59 = vadd.f32 %v1046_v32, %v8434_v12  ;;  %v1048_v61 = vpop.f32.mrb[35].mxu1 }
 0x2a8   : > { %v1049_v2 = vadd.f32 %v1048_v61, %v8439_v57 }
 0x2a9   : > { %v6094_v6 = vpack.c.bf16 %v1047_v59, %v1041_v47 }
 0x2aa   : > { %v1052_v8 = vpop.f32.mrb[36].mxu1  ;;  %v6158_v13 = vpack.c.bf16 %v1049_v2, %v1043_v62 }
 0x2ab   : > { %v1054_v16 = vpop.f32.mrb[37].mxu1  ;;  %6095 = vmatprep.subr.bf16.mxu1 %v6094_v6  ;;  %v1053_v23 = vadd.f32 %v1052_v8, %v8434_v12 }
 0x2ac   : > { %6097 = vmatpush3.bf16.xpose.msra.mxu1 %v6094_v6  ;;  %6159 = vmatprep.subr.bf16.mxu0 %v6158_v13  ;;  %v1055_v34 = vadd.f32 %v1054_v16, %v8439_v57 }
 0x2ad   : > { %6161 = vmatpush3.bf16.xpose.msra.mxu0 %v6158_v13 }
 0x2ae   : > { %v1058_v20 = vpop.f32.mrb[38].mxu1 }
 0x2af   : > { %v1059_v28 = vadd.f32 %v1058_v20, %v8434_v12  ;;  %v1060_v30 = vpop.f32.mrb[39].mxu1 }
 0x2b0   : > { %v1061_v38 = vadd.f32 %v1060_v30, %v8439_v57 }
 0x2b1   : > { %v6098_v42 = vpack.c.bf16 %v1059_v28, %v1053_v23 }
 0x2b2   : > { %v6162_v48 = vpack.c.bf16 %v1061_v38, %v1055_v34  ;;  %v1064_v53 = vpop.f32.mrb[40].mxu1 }
 0x2b3   : > { %v1066_v58 = vpop.f32.mrb[41].mxu1  ;;  %6099 = vmatprep.subr.bf16.mxu1 %v6098_v42  ;;  %v1065_v11 = vadd.f32 %v1064_v53, %v8434_v12 }
 0x2b4   : > { %6101 = vmatpush3.bf16.xpose.msra.mxu1 %v6098_v42  ;;  %6163 = vmatprep.subr.bf16.mxu0 %v6162_v48  ;;  %v1067_v22 = vadd.f32 %v1066_v58, %v8439_v57 }
 0x2b5   : > { %6165 = vmatpush3.bf16.xpose.msra.mxu0 %v6162_v48 }
 0x2b6   : > { %v1070_v3 = vpop.f32.mrb[42].mxu1 }
 0x2b7   : > { %v1071_v25 = vadd.f32 %v1070_v3, %v8434_v12  ;;  %v1072_v0 = vpop.f32.mrb[43].mxu1 }
 0x2b8   : > { %v1073_v32 = vadd.f32 %v1072_v0, %v8439_v57 }
 0x2b9   : > { %v6102_v47 = vpack.c.bf16 %v1071_v25, %v1065_v11 }
 0x2ba   : > { %v6166_v59 = vpack.c.bf16 %v1073_v32, %v1067_v22  ;;  %v1076_v61 = vpop.f32.mrb[44].mxu1 }
 0x2bb   : > { %v1078_v62 = vpop.f32.mrb[45].mxu1  ;;  %6103 = vmatprep.subr.bf16.mxu1 %v6102_v47  ;;  %v1077_v6 = vadd.f32 %v1076_v61, %v8434_v12 }
 0x2bc   : > { %6105 = vmatpush3.bf16.xpose.msra.mxu1 %v6102_v47  ;;  %6167 = vmatprep.subr.bf16.mxu0 %v6166_v59  ;;  %v1079_v16 = vadd.f32 %v1078_v62, %v8439_v57 }
 0x2bd   : > { %6169 = vmatpush3.bf16.xpose.msra.mxu0 %v6166_v59 }
 0x2be   : > { %v1082_v2 = vpop.f32.mrb[46].mxu1 }
 0x2bf   : > { %v1083_v8 = vadd.f32 %v1082_v2, %v8434_v12  ;;  %v1084_v13 = vpop.f32.mrb[47].mxu1 }
 0x2c0   : > { %v1085_v20 = vadd.f32 %v1084_v13, %v8439_v57 }
 0x2c1   : > { %v6106_v23 = vpack.c.bf16 %v1083_v8, %v1077_v6 }
 0x2c2   : > { %v6170_v28 = vpack.c.bf16 %v1085_v20, %v1079_v16  ;;  %v1088_v30 = vpop.f32.mrb[48].mxu1 }
 0x2c3   : > { %v1090_v34 = vpop.f32.mrb[49].mxu1  ;;  %6107 = vmatprep.subr.bf16.mxu1 %v6106_v23  ;;  %v1089_v42 = vadd.f32 %v1088_v30, %v8434_v12 }
 0x2c4   : > { %6109 = vmatpush3.bf16.xpose.msra.mxu1 %v6106_v23  ;;  %6171 = vmatprep.subr.bf16.mxu0 %v6170_v28  ;;  %v1091_v58 = vadd.f32 %v1090_v34, %v8439_v57 }
 0x2c5   : > { %6173 = vmatpush3.bf16.xpose.msra.mxu0 %v6170_v28 }
 0x2c6   : > { %v1094_v38 = vpop.f32.mrb[50].mxu1 }
 0x2c7   : > { %v1095_v48 = vadd.f32 %v1094_v38, %v8434_v12  ;;  %v1096_v53 = vpop.f32.mrb[51].mxu1 }
 0x2c8   : > { %v1097_v3 = vadd.f32 %v1096_v53, %v8439_v57 }
 0x2c9   : > { %v6110_v11 = vpack.c.bf16 %v1095_v48, %v1089_v42 }
 0x2ca   : > { %v6174_v25 = vpack.c.bf16 %v1097_v3, %v1091_v58  ;;  %v1100_v0 = vpop.f32.mrb[52].mxu1  ;;  %v10816_v3 = vsub.s32 4, %v8319_v40 }
 0x2cb   : > { %v1102_v22 = vpop.f32.mrb[53].mxu1  ;;  %6111 = vmatprep.subr.bf16.mxu1 %v6110_v11  ;;  %v1101_v47 = vadd.f32 %v1100_v0, %v8434_v12 }
 0x2cc   : > { %6113 = vmatpush3.bf16.xpose.msra.mxu1 %v6110_v11  ;;  %6175 = vmatprep.subr.bf16.mxu0 %v6174_v25  ;;  %v1103_v62 = vadd.f32 %v1102_v22, %v8439_v57 }
 0x2cd   : > { %6177 = vmatpush3.bf16.xpose.msra.mxu0 %v6174_v25  ;;  %v10817_v25 = vsub.s32 5, %v8319_v40 }
 0x2ce   : > { %v1106_v32 = vpop.f32.mrb[54].mxu1 }
 0x2cf   : > { %v1107_v59 = vadd.f32 %v1106_v32, %v8434_v12  ;;  %v1108_v61 = vpop.f32.mrb[55].mxu1 }
 0x2d0   : > { %v1109_v2 = vadd.f32 %v1108_v61, %v8439_v57 }
 0x2d1   : > { %v6114_v6 = vpack.c.bf16 %v1107_v59, %v1101_v47 }
 0x2d2   : > { %v6178_v8 = vpack.c.bf16 %v1109_v2, %v1103_v62  ;;  %v1112_v13 = vpop.f32.mrb[56].mxu1  ;;  %v8478_v62 = vrot.slane %v8324_v49, %v10816_v3 }
 0x2d3   : > { %v1114_v16 = vpop.f32.mrb[57].mxu1  ;;  %6115 = vmatprep.subr.bf16.mxu1 %v6114_v6  ;;  %v1113_v23 = vadd.f32 %v1112_v13, %v8434_v12 }
 0x2d4   : > { %6117 = vmatpush3.bf16.xpose.msra.mxu1 %v6114_v6  ;;  %6179 = vmatprep.subr.bf16.mxu0 %v6178_v8  ;;  %v1115_v34 = vadd.f32 %v1114_v16, %v8439_v57 }
 0x2d5   : > { %6181 = vmatpush3.bf16.xpose.msra.mxu0 %v6178_v8  ;;  %v8483_v8 = vrot.slane %v8324_v49, %v10817_v25 }
 0x2d6   : > { %v1118_v20 = vpop.f32.mrb[58].mxu1 }
 0x2d7   : > { %v1119_v28 = vadd.f32 %v1118_v20, %v8434_v12  ;;  %v1120_v30 = vpop.f32.mrb[59].mxu1 }
 0x2d8   : > { %v1121_v38 = vadd.f32 %v1120_v30, %v8439_v57 }
 0x2d9   : > { %v6118_v42 = vpack.c.bf16 %v1119_v28, %v1113_v23 }
 0x2da   : > { %v6182_v48 = vpack.c.bf16 %v1121_v38, %v1115_v34  ;;  %v1124_v53 = vpop.f32.mrb[60].mxu1 }
 0x2db   : > { %v1126_v58 = vpop.f32.mrb[61].mxu1  ;;  %6119 = vmatprep.subr.bf16.mxu1 %v6118_v42  ;;  %v1125_v0 = vadd.f32 %v1124_v53, %v8434_v12 }
 0x2dc   : > { %6121 = vmatpush3.bf16.xpose.msra.mxu1 %v6118_v42  ;;  %6183 = vmatprep.subr.bf16.mxu0 %v6182_v48  ;;  %v1127_v47 = vadd.f32 %v1126_v58, %v8439_v57 }
 0x2dd   : > { %6185 = vmatpush3.bf16.xpose.msra.mxu0 %v6182_v48 }
 0x2de   : > { %v1130_v11 = vpop.f32.mrb[62].mxu1 }
 0x2df   : > { %v1131_v22 = vadd.f32 %v1130_v11, %v8434_v12  ;;  %v1132_v32 = vpop.f32.mrb[63].mxu1 }
 0x2e0   : > { %v1133_v59 = vadd.f32 %v1132_v32, %v8439_v57 }
 0x2e1   : > { %v6122_v61 = vpack.c.bf16 %v1131_v22, %v1125_v0 }
 0x2e2   : > { %v6186_v2 = vpack.c.bf16 %v1133_v59, %v1127_v47  ;;  %v1201_v6 = vpop.f32.mrb[64].mxu1 }
 0x2e3   : > { %6123 = vmatprep.subr.bf16.mxu1 %v6122_v61  ;;  %v1203_v12 = vpop.f32.mrb[65].mxu1  ;;  %v1202_v57 = vadd.f32 %v1201_v6, %v8478_v62 }
 0x2e4   : > { %6125 = vmatpush3.bf16.xpose.msra.mxu1 %v6122_v61  ;;  %6187 = vmatprep.subr.bf16.mxu0 %v6186_v2  ;;  %v1204_v13 = vadd.f32 %v1203_v12, %v8483_v8 }
 0x2e5   : > { %6189 = vmatpush3.bf16.xpose.msra.mxu0 %v6186_v2 }
 0x2e6   : > { %v1207_v16 = vpop.f32.mrb[66].mxu1 }
 0x2e7   : > { %v1208_v20 = vadd.f32 %v1207_v16, %v8478_v62  ;;  %v1209_v23 = vpop.f32.mrb[67].mxu1 }
 0x2e8   : > { %v1210_v28 = vadd.f32 %v1209_v23, %v8483_v8 }
 0x2e9   : > { %v6126_v30 = vpack.c.bf16 %v1208_v20, %v1202_v57 }
 0x2ea   : > { %v8489_v34 = vpack.c.bf16 %v1210_v28, %v1204_v13  ;;  %v1213_v49 = vpop.f32.mrb[68].mxu1 }
 0x2eb   : > { %5711 = vmatmul.mubr.f32.vlgmr.msra.gmra.mrb[96].mxu1 %v8340_v19  ;;  %v1215_v38 = vpop.f32.mrb[69].mxu1  ;;  %6127 = vmatprep.subr.bf16.mxu1 %v6126_v30  ;;  %v1214_v48 = vadd.f32 %v1213_v49, %v8478_v62 }
 0x2ec   : > { %5713 = vmatprep.mubr.f32.mxu1 %v8346_v35  ;;  %5823 = vmatmul.mubr.f32.vlgmr.msra.gmra.mrb[0].mxu0 %v8343_v27  ;;  %v1216_v42 = vadd.f32 %v1215_v38, %v8483_v8 }
 0x2ed   : > { %5825 = vmatprep.mubr.f32.mxu0 %v8349_v46  ;;  %6129 = vmatpush3.bf16.msra.mxu1 %v6126_v30 }
 0x2ee   : > { %v1219_v53 = vpop.f32.mrb[70].mxu1 }
 0x2ef   : > { %5714 = vmatmul.mubr.f32.gmra.mrb[98].mxu1 %v8352_v56  ;;  %v1220_v58 = vadd.f32 %v1219_v53, %v8478_v62  ;;  %v1221_v11 = vpop.f32.mrb[71].mxu1 }
 0x2f0   : > { %5716 = vmatprep.mubr.f32.mxu1 %v8358_v14  ;;  %5826 = vmatmul.mubr.f32.gmra.mrb[2].mxu0 %v8355_v4  ;;  %v1222_v19 = vadd.f32 %v1221_v11, %v8483_v8 }
 0x2f1   : > { %5828 = vmatprep.mubr.f32.mxu0 %v8361_v24  ;;  %v6130_v27 = vpack.c.bf16 %v1220_v58, %v1214_v48 }
 0x2f2   : > { %v8503_v35 = vpack.c.bf16 %v1222_v19, %v1216_v42  ;;  %v1225_v46 = vpop.f32.mrb[72].mxu1 }
 0x2f3   : > { %5717 = vmatmul.mubr.f32.gmra.mrb[100].mxu1 %v8364_v36  ;;  %v1227_v0 = vpop.f32.mrb[73].mxu1  ;;  %6131 = vmatprep.subr.bf16.mxu1 %v6130_v27  ;;  %v1226_v4 = vadd.f32 %v1225_v46, %v8478_v62 }
 0x2f4   : > { %5719 = vmatprep.mubr.f32.mxu1 %v8370_v60  ;;  %5829 = vmatmul.mubr.f32.gmra.mrb[4].mxu0 %v8367_v50  ;;  %v1228_v56 = vadd.f32 %v1227_v0, %v8483_v8 }
 0x2f5   : > { %5831 = vmatprep.mubr.f32.mxu0 %v8373_v63  ;;  %6133 = vmatpush3.bf16.msra.mxu1 %v6130_v27 }
 0x2f6   : > { %v1231_v14 = vpop.f32.mrb[74].mxu1 }
 0x2f7   : > { %5720 = vmatmul.mubr.f32.gmra.mrb[102].mxu1 %v8376_v5  ;;  %v1232_v24 = vadd.f32 %v1231_v14, %v8478_v62  ;;  %v1233_v22 = vpop.f32.mrb[75].mxu1 }
 0x2f8   : > { %5722 = vmatprep.mubr.f32.mxu1 %v8382_v10  ;;  %5832 = vmatmul.mubr.f32.gmra.mrb[6].mxu0 %v8379_v7  ;;  %v1234_v36 = vadd.f32 %v1233_v22, %v8483_v8 }
 0x2f9   : > { %5834 = vmatprep.mubr.f32.mxu0 %v8385_v15  ;;  %v6134_v50 = vpack.c.bf16 %v1232_v24, %v1226_v4 }
 0x2fa   : > { %v8517_v60 = vpack.c.bf16 %v1234_v36, %v1228_v56  ;;  %v1237_v63 = vpop.f32.mrb[76].mxu1 }
 0x2fb   : > { %5723 = vmatmul.mubr.f32.gmra.mrb[104].mxu1 %v8388_v18  ;;  %v1239_v32 = vpop.f32.mrb[77].mxu1  ;;  %6135 = vmatprep.subr.bf16.mxu1 %v6134_v50  ;;  %v1238_v7 = vadd.f32 %v1237_v63, %v8478_v62  ;;  %v1298_v63 = vadd.s32 8, %v8319_v40 }
 0x2fc   : > { %5725 = vmatprep.mubr.f32.mxu1 %v8394_v26  ;;  %5835 = vmatmul.mubr.f32.gmra.mrb[8].mxu0 %v8391_v21  ;;  %v1240_v5 = vadd.f32 %v1239_v32, %v8483_v8  ;;  %v1317_v32 = vand.u32 15, %v8319_v40 }
 0x2fd   : > { %5837 = vmatprep.mubr.f32.mxu0 %v8397_v29  ;;  %6137 = vmatpush3.bf16.msra.mxu1 %v6134_v50  ;;  %v1506_v50 = vand.u32 127, %v783_v41  ;;  %v7690_v41 = vmov -1e+30  }
 0x2fe   : > { %v1243_v10 = vpop.f32.mrb[78].mxu1 }
 0x2ff   : > { %5726 = vmatmul.mubr.f32.gmra.mrb[106].mxu1 %v8400_v31  ;;  %v1244_v15 = vadd.f32 %v1243_v10, %v8478_v62  ;;  %v1245_v47 = vpop.f32.mrb[79].mxu1 }
 0x300   : > { %5728 = vmatprep.mubr.f32.mxu1 %v8406_v39  ;;  %5838 = vmatmul.mubr.f32.gmra.mrb[10].mxu0 %v8403_v37  ;;  %v1246_v18 = vadd.f32 %v1245_v47, %v8483_v8 }
 0x301   : > { %5840 = vmatprep.mubr.f32.mxu0 %v8409_v45  ;;  %v6138_v21 = vpack.c.bf16 %v1244_v15, %v1238_v7  ;;  %v1324_v7 = vand.u32 15, %v1298_v63  ;;  %v1301_v15 = vadd.s32 32, %v8319_v40 }
 0x302   : > { %v8531_v26 = vpack.c.bf16 %v1246_v18, %v1240_v5  ;;  %v1249_v29 = vpop.f32.mrb[80].mxu1  ;;  %v8567_v5 = vand.u32 15, %v1506_v50 }
 0x303   : > { %5729 = vmatmul.mubr.f32.gmra.mrb[108].mxu1 %v8412_v52  ;;  %v1251_v59 = vpop.f32.mrb[81].mxu1  ;;  %6139 = vmatprep.subr.bf16.mxu1 %v6138_v21  ;;  %v1250_v37 = vadd.f32 %v1249_v29, %v8478_v62 }
 0x304   : > { %5731 = vmatprep.mubr.f32.mxu1 %v8418_v1  ;;  %5841 = vmatmul.mubr.f32.gmra.mrb[12].mxu0 %v8415_v55  ;;  %v1252_v31 = vadd.f32 %v1251_v59, %v8483_v8  ;;  %vm1519_vm0 = vcmp.eq.s32.totalorder %v1317_v32, %v8567_v5  ;;  %vm1520_vm1 = vcmp.eq.s32.totalorder %v1324_v7, %v8567_v5 }
 0x305   : > { %5843 = vmatprep.mubr.f32.mxu0 %v8421_v9  ;;  %6141 = vmatpush3.bf16.msra.mxu1 %v6138_v21  ;;  %v8576_v29 = vsel %vm1519_vm0, 0.0, %v7690_v41 }
 0x306   : > { %v1255_v39 = vpop.f32.mrb[82].mxu1 }
 0x307   : > { %5732 = vmatmul.mubr.f32.gmra.mrb[110].mxu1 %v8424_v17  ;;  %v1256_v45 = vadd.f32 %v1255_v39, %v8478_v62  ;;  %v1257_v61 = vpop.f32.mrb[83].mxu1 }
 0x308   : > { %5844 = vmatmul.mubr.f32.gmra.mrb[14].mxu0 %v8428_v44  ;;  %v1258_v52 = vadd.f32 %v1257_v61, %v8483_v8  ;;  %v1303_v61 = vadd.s32 48, %v8319_v40 }
 0x309   : > { %v6142_v1 = vpack.c.bf16 %v1256_v45, %v1250_v37  ;;  %v1345_v45 = vand.u32 15, %v1301_v15  ;;  %v1308_v15 = vadd.s32 88, %v8319_v40 }
 0x30a   : > { %v8543_v2 = vpack.c.bf16 %v1258_v52, %v1252_v31  ;;  %v1261_v55 = vpop.f32.mrb[84].mxu1  ;;  %v1302_v31 = vadd.s32 40, %v8319_v40 }
 0x30b   : > { %v1263_v6 = vpop.f32.mrb[85].mxu1  ;;  %6143 = vmatprep.subr.bf16.mxu1 %v6142_v1  ;;  %v1262_v12 = vadd.f32 %v1261_v55, %v8478_v62  ;;  %vm1523_vm4 = vcmp.eq.s32.totalorder %v1345_v45, %v8567_v5 }
 0x30c   : > { %v1264_v9 = vadd.f32 %v1263_v6, %v8483_v8  ;;  %6145 = vmatpush3.bf16.msra.mxu1 %v6142_v1  ;;  %v8588_v6 = vsel %vm1520_vm1, 0.0, %v7690_v41 }
 0x30e   : > { %v1267_v57 = vpop.f32.mrb[86].mxu1 }
 0x30f   : > { %v1268_v17 = vadd.f32 %v1267_v57, %v8478_v62  ;;  %v1269_v13 = vpop.f32.mrb[87].mxu1 }
 0x310   : > { %v1270_v16 = vadd.f32 %v1269_v13, %v8483_v8  ;;  %v1304_v13 = vadd.s32 56, %v8319_v40 }
 0x311   : > { %v6146_v44 = vpack.c.bf16 %v1268_v17, %v1262_v12  ;;  %v1352_v17 = vand.u32 15, %v1302_v31  ;;  %v1309_v31 = vadd.s32 96, %v8319_v40 }
 0x312   : > { %v8549_v20 = vpack.c.bf16 %v1270_v16, %v1264_v9  ;;  %v1273_v23 = vpop.f32.mrb[88].mxu1 }
 0x313   : > { %v1275_v28 = vpop.f32.mrb[89].mxu1  ;;  %6147 = vmatprep.subr.bf16.mxu1 %v6146_v44  ;;  %v1274_v49 = vadd.f32 %v1273_v23, %v8478_v62  ;;  %v1359_v23 = vand.u32 15, %v1303_v61  ;;  %vm1524_vm5 = vcmp.eq.s32.totalorder %v1352_v17, %v8567_v5 }
 0x314   : > { %v1276_v30 = vadd.f32 %v1275_v28, %v8483_v8  ;;  %6149 = vmatpush3.bf16.msra.mxu1 %v6146_v44  ;;  %v1305_v28 = vadd.s32 64, %v8319_v40  ;;  %v8631_v32 = vsel %vm1524_vm5, 0.0, %v7690_v41 }
 0x315   : > { %vm1525_vm6 = vcmp.eq.s32.totalorder %v1359_v23, %v8567_v5  ;;  %v1394_v23 = vand.u32 15, %v1308_v15 }
 0x316   : > { %v1279_v38 = vpop.f32.mrb[90].mxu1 }
 0x317   : > { %v1280_v42 = vadd.f32 %v1279_v38, %v8478_v62  ;;  %v1281_v48 = vpop.f32.mrb[91].mxu1  ;;  %vm1530_vm11 = vcmp.eq.s32.totalorder %v1394_v23, %v8567_v5 }
 0x318   : > { %v1282_v53 = vadd.f32 %v1281_v48, %v8483_v8 }
 0x319   : > { %v6150_v58 = vpack.c.bf16 %v1280_v42, %v1274_v49 }
 0x31a   : > { %v8555_v11 = vpack.c.bf16 %v1282_v53, %v1276_v30  ;;  %v1285_v19 = vpop.f32.mrb[92].mxu1 }
 0x31b   : > { %v1287_v27 = vpop.f32.mrb[93].mxu1  ;;  %6151 = vmatprep.subr.bf16.mxu1 %v6150_v58  ;;  %v1286_v0 = vadd.f32 %v1285_v19, %v8478_v62  ;;  %v8614_v19 = vsel %vm1523_vm4, 0.0, %v7690_v41 }
 0x31c   : > { %10892 = vst [vmem:[#allocation35_spill] sm:$0xff] %v8555_v11  ;;  %v1288_v46 = vadd.f32 %v1287_v27, %v8483_v8  ;;  %6153 = vmatpush3.bf16.msra.mxu1 %v6150_v58  ;;  %v1366_v27 = vand.u32 15, %v1304_v13 }
 0x31e   : > { %v1291_v56 = vpop.f32.mrb[94].mxu1  ;;  %vm1526_vm7 = vcmp.eq.s32.totalorder %v1366_v27, %v8567_v5  ;;  %v1311_v27 = vadd.s32 112, %v8319_v40 }
 0x31f   : > { %v1292_v4 = vadd.f32 %v1291_v56, %v8478_v62  ;;  %v1293_v14 = vpop.f32.mrb[95].mxu1  ;;  %v1299_v62 = vadd.s32 16, %v8319_v40 }
 0x320   : > { %v1294_v24 = vadd.f32 %v1293_v14, %v8483_v8  ;;  %v1300_v8 = vadd.s32 24, %v8319_v40  ;;  %v1307_v14 = vadd.s32 80, %v8319_v40 }
 0x321   : > { %v6154_v22 = vpack.c.bf16 %v1292_v4, %v1286_v0  ;;  %v1331_v10 = vand.u32 15, %v1299_v62  ;;  %v1373_v4 = vand.u32 15, %v1305_v28  ;;  %v1310_v28 = vadd.s32 104, %v8319_v40 }
 0x322   : > { %v8561_v36 = vpack.c.bf16 %v1294_v24, %v1288_v46  ;;  %v1338_v59 = vand.u32 15, %v1300_v8  ;;  %v1306_v46 = vadd.s32 72, %v8319_v40  ;;  %v8636_v8 = vsel %vm1525_vm6, 0.0, %v7690_v41 }
 0x323   : > { %6155 = vmatprep.subr.bf16.mxu1 %v6154_v22  ;;  %vm1521_vm2 = vcmp.eq.s32.totalorder %v1331_v10, %v8567_v5  ;;  %vm1527_vm8 = vcmp.eq.s32.totalorder %v1373_v4, %v8567_v5  ;;  %v1408_v15 = vand.u32 15, %v1310_v28 }
 0x324   : > { %10893 = vst [vmem:[#allocation36_spill] sm:$0xff] %v8561_v36  ;;  %6157 = vmatpush3.bf16.msra.mxu1 %v6154_v22  ;;  %v8593_v57 = vsel %vm1521_vm2, 0.0, %v7690_v41  ;;  %vm1522_vm3 = vcmp.eq.s32.totalorder %v1338_v59, %v8567_v5  ;;  %v1380_v10 = vand.u32 15, %v1306_v46  ;;  %v1387_v59 = vand.u32 15, %v1307_v14 }
 0x325   : > { %6191 = vmatprep.subr.bf16.mxu1 %v8489_v34  ;;  %v8609_v48 = vsel %vm1522_vm3, 0.0, %v7690_v41  ;;  %v8658_v13 = vsel %vm1527_vm8, 0.0, %v7690_v41  ;;  %vm1532_vm13 = vcmp.eq.s32.totalorder %v1408_v15, %v8567_v5 }
 0x326   : > { %vm8661_vm9 = vcmp.eq.s32.totalorder %v1380_v10, %v8567_v5  ;;  %vm1529_vm10 = vcmp.eq.s32.totalorder %v1387_v59, %v8567_v5 }
 0x327   : > { %v8686_v10 = vsel %vm1529_vm10, 0.0, %v7690_v41 }
 0x3be   : > { %v5712_v47 = vpop.f32.mrb[96].mxu1 }
 0x3bf   : > { %v1617_v18 = vpop.f32.mrb[97].mxu1  ;;  %v8573_v21 = vpop.f32.mrb[0].mxu0  ;;  %v1697_v52 = vmul.f32 0.088388346, %v5712_v47 }
 0x3c0   : > { %v1696_v37 = vmul.f32 0.088388346, %v1617_v18  ;;  %v8580_v39 = vpop.f32.mrb[1].mxu0 }
 0x3c1   : > { %v8603_v38 = vadd.f32 %v1697_v52, %v8588_v6  ;;  %v2178_v15 = vmul.f32 0.088388346, %v8580_v39 }
 0x3c2   : > { %v5715_v1 = vpop.f32.mrb[98].mxu1  ;;  %v8585_v55 = vadd.f32 %v1696_v37, %v8576_v29 }
 0x3c3   : > { %v1627_v9 = vpop.f32.mrb[99].mxu1  ;;  %v8590_v12 = vpop.f32.mrb[2].mxu0  ;;  %v1699_v30 = vmul.f32 0.088388346, %v5715_v1  ;;  %v8653_v1 = vsel %vm1526_vm7, 0.0, %v7690_v41 }
 0x3c4   : > { %v1698_v16 = vmul.f32 0.088388346, %v1627_v9  ;;  %v8597_v44 = vpop.f32.mrb[3].mxu0  ;;  %1728 = vmax.xlane.f32.xlu0 %v8585_v55 }
 0x3c5   : > { %v8625_v50 = vadd.f32 %v1699_v30, %v8609_v48 }
 0x3c6   : > { %v5718_v49 = vpop.f32.mrb[100].mxu1  ;;  %v8606_v42 = vadd.f32 %v1698_v16, %v8593_v57 }
 0x3c7   : > { %v1637_v53 = vpop.f32.mrb[101].mxu1  ;;  %v8611_v58 = vpop.f32.mrb[4].mxu0  ;;  %v1701_v24 = vmul.f32 0.088388346, %v5718_v49 }
 0x3c8   : > { %v1700_v0 = vmul.f32 0.088388346, %v1637_v53  ;;  %v8618_v56 = vpop.f32.mrb[5].mxu0  ;;  %1730 = vmax.xlane.f32.xlu0 %v8603_v38  ;;  %1732 = vmax.xlane.f32.xlu1 %v8606_v42  ;;  %v1401_v53 = vand.u32 15, %v1309_v31  ;;  %v1415_v31 = vand.u32 15, %v1311_v27 }
 0x3c9   : > { %v8647_v61 = vadd.f32 %v1701_v24, %v8631_v32 }
 0x3ca   : > { %v5721_v22 = vpop.f32.mrb[102].mxu1  ;;  %v8628_v63 = vadd.f32 %v1700_v0, %v8614_v19  ;;  %vm1531_vm12 = vcmp.eq.s32.totalorder %v1401_v53, %v8567_v5  ;;  %vm1533_vm14 = vcmp.eq.s32.totalorder %v1415_v31, %v8567_v5 }
 0x3cb   : > { %v1647_v62 = vpop.f32.mrb[103].mxu1  ;;  %v8633_v7 = vpop.f32.mrb[6].mxu0  ;;  %v1703_v37 = vmul.f32 0.088388346, %v5721_v22  ;;  %v8707_v3 = vsel %vm1531_vm12, 0.0, %v7690_v41  ;;  %v1549_v43 = vsel %vm1533_vm14, 0.0, %v7690_v41 }
 0x3cc   : > { %v1702_v47 = vmul.f32 0.088388346, %v1647_v62  ;;  %v8640_v18 = vpop.f32.mrb[7].mxu0  ;;  %1734 = vmax.xlane.f32.xlu1 %v8625_v50  ;;  %1736 = vmax.xlane.f32.xlu0 %v8628_v63  ;;  %v8683_v62 = vsel %vm8661_vm9, 0.0, %v7690_v41 }
 0x3cd   : > { %v8673_v4 = vadd.f32 %v1703_v37, %v8653_v1  ;;  %v1312_v37 = vadd.s32 120, %v8319_v40  ;;  %v1548_v40 = vsel %vm1532_vm13, 0.0, %v7690_v41 }
 0x3ce   : > { %v5724_v45 = vpop.f32.mrb[104].mxu1  ;;  %v8650_v52 = vadd.f32 %v1702_v47, %v8636_v8 }
 0x3cf   : > { %v1657_v9 = vpop.f32.mrb[105].mxu1  ;;  %v8655_v17 = vpop.f32.mrb[8].mxu0  ;;  %v1705_v46 = vmul.f32 0.088388346, %v5724_v45 }
 0x3d0   : > { %v1704_v30 = vmul.f32 0.088388346, %v1657_v9  ;;  %v8666_v49 = vpop.f32.mrb[9].mxu0  ;;  %1738 = vmax.xlane.f32.xlu1 %v8647_v61  ;;  %1740 = vmax.xlane.f32.xlu0 %v8650_v52 }
 0x3d1   : > { %v8696_v16 = vadd.f32 %v1705_v46, %v8683_v62  ;;  %v1422_v46 = vand.u32 15, %v1312_v37 }
 0x3d2   : > { %v5727_v0 = vpop.f32.mrb[106].mxu1  ;;  %v8676_v14 = vadd.f32 %v1704_v30, %v8658_v13 }
 0x3d3   : > { %v1667_v24 = vpop.f32.mrb[107].mxu1  ;;  %v8678_v22 = vpop.f32.mrb[10].mxu0  ;;  %v1707_v45 = vmul.f32 0.088388346, %v5727_v0  ;;  %vm1534_vm15 = vcmp.eq.s32.totalorder %v1422_v46, %v8567_v5  ;;  %v8737_v5 = vadd.f32 %v2178_v15, %v8576_v29  ;;  %v2183_v29 = vmul.f32 0.088388346, %v8611_v58 }
 0x3d4   : > { %v1706_v47 = vmul.f32 0.088388346, %v1667_v24  ;;  %v8689_v59 = vpop.f32.mrb[11].mxu0  ;;  %1742 = vmax.xlane.f32.xlu1 %v8673_v4  ;;  %1744 = vmax.xlane.f32.xlu0 %v8676_v14  ;;  %v8704_v24 = vsel %vm1530_vm11, 0.0, %v7690_v41 }
 0x3d5   : > { %v8714_v25 = vadd.f32 %v1707_v45, %v8704_v24 }
 0x3d6   : > { %v5730_v9 = vpop.f32.mrb[108].mxu1  ;;  %v8699_v23 = vadd.f32 %v1706_v47, %v8686_v10 }
 0x3d7   : > { %v1677_v28 = vpop.f32.mrb[109].mxu1  ;;  %v8701_v30 = vpop.f32.mrb[12].mxu0  ;;  %v1709_v0 = vmul.f32 0.088388346, %v5730_v9  ;;  %v1550_v9 = vsel %vm1534_vm15, 0.0, %v7690_v41 }
 0x3d8   : > { %v1708_v53 = vmul.f32 0.088388346, %v1677_v28  ;;  %v2159_v27 = vpop.f32.mrb[13].mxu0  ;;  %1746 = vmax.xlane.f32.xlu1 %v8696_v16  ;;  %1748 = vmax.xlane.f32.xlu0 %v8699_v23  ;;  %v2182_v41 = vmul.f32 0.088388346, %v8618_v56  ;;  %v8764_v56 = vadd.f32 %v2183_v29, %v8631_v32 }
 0x3d9   : > { %v8725_v37 = vadd.f32 %v1709_v0, %v1548_v40  ;;  %v2189_v32 = vmul.f32 0.088388346, %v8678_v22 }
 0x3da   : > { %v5733_v47 = vpop.f32.mrb[110].mxu1  ;;  %v8717_v33 = vadd.f32 %v1708_v53, %v8707_v3  ;;  %v2180_v53 = vmul.f32 0.088388346, %v8597_v44  ;;  %v2184_v44 = vmul.f32 0.088388346, %v8640_v18 }
 0x3db   : > { %v1687_v54 = vpop.f32.mrb[111].mxu1  ;;  %v5845_v28 = vpop.f32.mrb[14].mxu0  ;;  %v1711_v31 = vmul.f32 0.088388346, %v5733_v47 }
 0x3dc   : > { %v1710_v51 = vmul.f32 0.088388346, %v1687_v54  ;;  %v2169_v36 = vpop.f32.mrb[15].mxu0  ;;  %1750 = vmax.xlane.f32.xlu1 %v8714_v25  ;;  %1752 = vmax.xlane.f32.xlu0 %v8717_v33  ;;  %v2179_v54 = vmul.f32 0.088388346, %v8573_v21  ;;  %v8747_v21 = vadd.f32 %v2180_v53, %v8593_v57  ;;  %v8767_v58 = vadd.f32 %v2184_v44, %v8636_v8 }
 0x3dd   : > { %v8734_v11 = vadd.f32 %v1711_v31, %v1550_v9  ;;  %v2186_v57 = vmul.f32 0.088388346, %v8666_v49  ;;  %v2190_v8 = vmul.f32 0.088388346, %v2159_v27  ;;  %v2193_v22 = vmul.f32 0.088388346, %v5845_v28 }
 0x3de   : > { %v8727_v45 = vadd.f32 %v1710_v51, %v1549_v43  ;;  %v2181_v51 = vmul.f32 0.088388346, %v8590_v12  ;;  %v8744_v39 = vadd.f32 %v2179_v54, %v8588_v6  ;;  %v8757_v12 = vadd.f32 %v2182_v41, %v8614_v19 }
 0x3df   : > { %v2185_v6 = vmul.f32 0.088388346, %v8633_v7  ;;  %v2188_v19 = vmul.f32 0.088388346, %v8689_v59  ;;  %v8777_v7 = vadd.f32 %v2186_v57, %v8658_v13  ;;  %v2192_v13 = vmul.f32 0.088388346, %v2169_v36 }
 0x3e0   : > { %1754 = vmax.xlane.f32.xlu1 %v8725_v37  ;;  %1756 = vmax.xlane.f32.xlu0 %v8727_v45  ;;  %v8754_v46 = vadd.f32 %v2181_v51, %v8609_v48  ;;  %v2187_v48 = vmul.f32 0.088388346, %v8655_v17  ;;  %v8792_v59 = vadd.f32 %v2189_v32, %v8704_v24  ;;  %v8795_v0 = vadd.f32 %v2190_v8, %v8707_v3 }
 0x3e1   : > { %v8774_v18 = vadd.f32 %v2185_v6, %v8653_v1  ;;  %v8786_v17 = vadd.f32 %v2188_v19, %v8686_v10  ;;  %v2191_v1 = vmul.f32 0.088388346, %v8701_v30  ;;  %v8801_v10 = vadd.f32 %v2192_v13, %v1549_v43 }
 0x3e2   : > { %v8783_v49 = vadd.f32 %v2187_v48, %v8683_v62  ;;  %v8805_v36 = vadd.f32 %v2193_v22, %v1550_v9 }
 0x3e3   : > { %v8799_v62 = vadd.f32 %v2191_v1, %v1548_v40 }
 0x3e4   : > { %1758 = vmax.xlane.f32.xlu1 %v8734_v11  ;;  %2210 = vmax.xlane.f32.xlu0 %v8737_v5 }
 0x3e8   : > { %2212 = vmax.xlane.f32.xlu1 %v8744_v39  ;;  %2214 = vmax.xlane.f32.xlu0 %v8747_v21 }
 0x3ec   : > { %2216 = vmax.xlane.f32.xlu1 %v8754_v46  ;;  %2218 = vmax.xlane.f32.xlu0 %v8757_v12 }
 0x3f0   : > { %2220 = vmax.xlane.f32.xlu1 %v8764_v56  ;;  %2222 = vmax.xlane.f32.xlu0 %v8767_v58 }
 0x3f4   : > { %2224 = vmax.xlane.f32.xlu1 %v8774_v18  ;;  %2226 = vmax.xlane.f32.xlu0 %v8777_v7 }
 0x3f8   : > { %2228 = vmax.xlane.f32.xlu1 %v8783_v49  ;;  %2230 = vmax.xlane.f32.xlu0 %v8786_v17 }
 0x3fc   : > { %2232 = vmax.xlane.f32.xlu1 %v8792_v59  ;;  %2234 = vmax.xlane.f32.xlu0 %v8795_v0 }
 0x400   : > { %2236 = vmax.xlane.f32.xlu1 %v8799_v62  ;;  %2238 = vmax.xlane.f32.xlu0 %v8801_v10 }
 0x404   : > { %2240 = vmax.xlane.f32.xlu1 %v8805_v36 }
 0x451   : > { %v1729_v30 = vpop.xlane.xlu0 %1728 }
 0x452   : > { %v1760_v3 = vsub.f32 %v8585_v55, %v1729_v30 }
 0x454   : > { %v1776_v24 = vmul.f32 1.442695, %v1760_v3 }
 0x455   : > { %v1731_v27 = vpop.xlane.xlu0 %1730  ;;  %v1733_v47 = vpop.xlane.xlu1 %1732 }
 0x456   : > { %7034 = vpow2.f32 %v1776_v24  ;;  %v1761_v40 = vsub.f32 %v8603_v38, %v1731_v27  ;;  %v1762_v43 = vsub.f32 %v8606_v42, %v1733_v47 }
 0x458   : > { %v1778_v28 = vmul.f32 1.442695, %v1761_v40  ;;  %v1780_v15 = vmul.f32 1.442695, %v1762_v43 }
 0x459   : > { %v1735_v31 = vpop.xlane.xlu1 %1734  ;;  %v1737_v54 = vpop.xlane.xlu0 %1736 }
 0x45a   : > { %7036 = vpow2.f32 %v1778_v28  ;;  %v1763_v9 = vsub.f32 %v8625_v50, %v1735_v31  ;;  %v1764_v53 = vsub.f32 %v8628_v63, %v1737_v54 }
 0x45b   : > { %7038 = vpow2.f32 %v1780_v15 }
 0x45c   : > { %v1782_v51 = vmul.f32 1.442695, %v1763_v9  ;;  %v1784_v55 = vmul.f32 1.442695, %v1764_v53 }
 0x45d   : > { %v1739_v41 = vpop.xlane.xlu1 %1738  ;;  %v1741_v29 = vpop.xlane.xlu0 %1740 }
 0x45e   : > { %7040 = vpow2.f32 %v1782_v51  ;;  %v1765_v44 = vsub.f32 %v8647_v61, %v1739_v41  ;;  %v1766_v38 = vsub.f32 %v8650_v52, %v1741_v29 }
 0x45f   : > { %7042 = vpow2.f32 %v1784_v55 }
 0x460   : > { %v8815_v42 = vpop.eup %7034  ;;  %v1786_v6 = vmul.f32 1.442695, %v1765_v44  ;;  %v1788_v57 = vmul.f32 1.442695, %v1766_v38 }
 0x461   : > { %v1743_v48 = vpop.xlane.xlu1 %1742  ;;  %v1745_v19 = vpop.xlane.xlu0 %1744  ;;  %1808 = vadd.xlane.f32.xlu0 %v8815_v42 }
 0x462   : > { %7044 = vpow2.f32 %v1786_v6  ;;  %v1767_v50 = vsub.f32 %v8673_v4, %v1743_v48  ;;  %v1768_v63 = vsub.f32 %v8676_v14, %v1745_v19 }
 0x463   : > { %7046 = vpow2.f32 %v1788_v57 }
 0x464   : > { %v8820_v32 = vpop.eup %7036  ;;  %v1790_v61 = vmul.f32 1.442695, %v1767_v50  ;;  %v1792_v8 = vmul.f32 1.442695, %v1768_v63 }
 0x465   : > { %v8822_v52 = vpop.eup %7038  ;;  %v1747_v1 = vpop.xlane.xlu1 %1746  ;;  %1810 = vadd.xlane.f32.xlu1 %v8820_v32 }
 0x466   : > { %v1749_v13 = vpop.xlane.xlu0 %1748  ;;  %7048 = vpow2.f32 %v1790_v61  ;;  %v1769_v22 = vsub.f32 %v8696_v16, %v1747_v1  ;;  %1812 = vadd.xlane.f32.xlu0 %v8822_v52 }
 0x467   : > { %v1770_v30 = vsub.f32 %v8699_v23, %v1749_v13  ;;  %7050 = vpow2.f32 %v1792_v8 }
 0x468   : > { %v8828_v4 = vpop.eup %7040  ;;  %v1794_v14 = vmul.f32 1.442695, %v1769_v22 }
 0x469   : > { %v1796_v3 = vmul.f32 1.442695, %v1770_v30  ;;  %v8830_v24 = vpop.eup %7042  ;;  %v1751_v27 = vpop.xlane.xlu1 %1750  ;;  %1814 = vadd.xlane.f32.xlu1 %v8828_v4 }
 0x46a   : > { %v1753_v47 = vpop.xlane.xlu0 %1752  ;;  %7052 = vpow2.f32 %v1794_v14  ;;  %v1771_v40 = vsub.f32 %v8714_v25, %v1751_v27  ;;  %1816 = vadd.xlane.f32.xlu0 %v8830_v24 }
 0x46b   : > { %v1772_v16 = vsub.f32 %v8717_v33, %v1753_v47  ;;  %7054 = vpow2.f32 %v1796_v3 }
 0x46c   : > { %v8836_v23 = vpop.eup %7044  ;;  %v1798_v43 = vmul.f32 1.442695, %v1771_v40 }
 0x46d   : > { %v1800_v28 = vmul.f32 1.442695, %v1772_v16  ;;  %v8838_v15 = vpop.eup %7046  ;;  %v1755_v31 = vpop.xlane.xlu1 %1754  ;;  %1818 = vadd.xlane.f32.xlu1 %v8836_v23 }
 0x46e   : > { %v1757_v54 = vpop.xlane.xlu0 %1756  ;;  %7056 = vpow2.f32 %v1798_v43  ;;  %v1773_v9 = vsub.f32 %v8725_v37, %v1755_v31  ;;  %1820 = vadd.xlane.f32.xlu0 %v8838_v15 }
 0x46f   : > { %v1774_v33 = vsub.f32 %v8727_v45, %v1757_v54  ;;  %7058 = vpow2.f32 %v1800_v28 }
 0x470   : > { %v8844_v25 = vpop.eup %7048  ;;  %v1802_v53 = vmul.f32 1.442695, %v1773_v9 }
 0x471   : > { %v1804_v51 = vmul.f32 1.442695, %v1774_v33  ;;  %v8846_v55 = vpop.eup %7050  ;;  %1822 = vadd.xlane.f32.xlu1 %v8844_v25  ;;  %v1759_v41 = vpop.xlane.xlu1 %1758 }
 0x472   : > { %v2211_v29 = vpop.xlane.xlu0 %2210  ;;  %7060 = vpow2.f32 %v1802_v53  ;;  %v1775_v44 = vsub.f32 %v8734_v11, %v1759_v41  ;;  %1824 = vadd.xlane.f32.xlu0 %v8846_v55 }
 0x473   : > { %v2242_v37 = vsub.f32 %v8737_v5, %v2211_v29  ;;  %7062 = vpow2.f32 %v1804_v51 }
 0x474   : > { %v8852_v45 = vpop.eup %7052  ;;  %v1806_v38 = vmul.f32 1.442695, %v1775_v44 }
 0x475   : > { %v2258_v6 = vmul.f32 1.442695, %v2242_v37  ;;  %v8854_v57 = vpop.eup %7054  ;;  %1826 = vadd.xlane.f32.xlu1 %v8852_v45  ;;  %v2213_v48 = vpop.xlane.xlu1 %2212 }
 0x476   : > { %v2215_v19 = vpop.xlane.xlu0 %2214  ;;  %7064 = vpow2.f32 %v1806_v38  ;;  %v2243_v50 = vsub.f32 %v8744_v39, %v2213_v48  ;;  %1828 = vadd.xlane.f32.xlu0 %v8854_v57 }
 0x477   : > { %v2244_v11 = vsub.f32 %v8747_v21, %v2215_v19  ;;  %7066 = vpow2.f32 %v2258_v6 }
 0x478   : > { %v8860_v5 = vpop.eup %7056  ;;  %v2260_v63 = vmul.f32 1.442695, %v2243_v50 }
 0x479   : > { %v2262_v61 = vmul.f32 1.442695, %v2244_v11  ;;  %v8862_v8 = vpop.eup %7058  ;;  %1830 = vadd.xlane.f32.xlu1 %v8860_v5  ;;  %v2217_v1 = vpop.xlane.xlu1 %2216 }
 0x47a   : > { %v2219_v13 = vpop.xlane.xlu0 %2218  ;;  %7068 = vpow2.f32 %v2260_v63  ;;  %v2245_v22 = vsub.f32 %v8754_v46, %v2217_v1  ;;  %1832 = vadd.xlane.f32.xlu0 %v8862_v8 }
 0x47b   : > { %v2246_v39 = vsub.f32 %v8757_v12, %v2219_v13  ;;  %7070 = vpow2.f32 %v2262_v61 }
 0x47c   : > { %v8868_v21 = vpop.eup %7060  ;;  %v2264_v30 = vmul.f32 1.442695, %v2245_v22 }
 0x47d   : > { %v2266_v14 = vmul.f32 1.442695, %v2246_v39  ;;  %v8870_v3 = vpop.eup %7062  ;;  %1834 = vadd.xlane.f32.xlu1 %v8868_v21  ;;  %v2221_v27 = vpop.xlane.xlu1 %2220 }
 0x47e   : > { %v2223_v47 = vpop.xlane.xlu0 %2222  ;;  %7072 = vpow2.f32 %v2264_v30  ;;  %v2247_v40 = vsub.f32 %v8764_v56, %v2221_v27  ;;  %1836 = vadd.xlane.f32.xlu0 %v8870_v3 }
 0x47f   : > { %v2248_v46 = vsub.f32 %v8767_v58, %v2223_v47  ;;  %7074 = vpow2.f32 %v2266_v14 }
 0x480   : > { %v8876_v12 = vpop.eup %7064  ;;  %v2268_v16 = vmul.f32 1.442695, %v2247_v40 }
 0x481   : > { %v2270_v43 = vmul.f32 1.442695, %v2248_v46  ;;  %v8878_v28 = vpop.eup %7066  ;;  %1838 = vadd.xlane.f32.xlu1 %v8876_v12  ;;  %v2225_v31 = vpop.xlane.xlu1 %2224 }
 0x482   : > { %v2227_v54 = vpop.xlane.xlu0 %2226  ;;  %7076 = vpow2.f32 %v2268_v16  ;;  %v2249_v9 = vsub.f32 %v8774_v18, %v2225_v31  ;;  %2290 = vadd.xlane.f32.xlu0 %v8878_v28 }
 0x483   : > { %v2250_v56 = vsub.f32 %v8777_v7, %v2227_v54  ;;  %7078 = vpow2.f32 %v2270_v43 }
 0x484   : > { %v8884_v58 = vpop.eup %7068  ;;  %v2272_v33 = vmul.f32 1.442695, %v2249_v9 }
 0x485   : > { %v2274_v53 = vmul.f32 1.442695, %v2250_v56  ;;  %v8886_v51 = vpop.eup %7070  ;;  %2292 = vadd.xlane.f32.xlu1 %v8884_v58  ;;  %v2229_v41 = vpop.xlane.xlu1 %2228 }
 0x486   : > { %v2231_v29 = vpop.xlane.xlu0 %2230  ;;  %7080 = vpow2.f32 %v2272_v33  ;;  %v2251_v44 = vsub.f32 %v8783_v49, %v2229_v41  ;;  %2294 = vadd.xlane.f32.xlu0 %v8886_v51 }
 0x487   : > { %v2252_v18 = vsub.f32 %v8786_v17, %v2231_v29  ;;  %7082 = vpow2.f32 %v2274_v53 }
 0x488   : > { %v8892_v7 = vpop.eup %7072  ;;  %v2276_v37 = vmul.f32 1.442695, %v2251_v44 }
 0x489   : > { %v2278_v38 = vmul.f32 1.442695, %v2252_v18  ;;  %v8894_v6 = vpop.eup %7074  ;;  %2296 = vadd.xlane.f32.xlu1 %v8892_v7  ;;  %v2233_v48 = vpop.xlane.xlu1 %2232 }
 0x48a   : > { %v2235_v19 = vpop.xlane.xlu0 %2234  ;;  %7084 = vpow2.f32 %v2276_v37  ;;  %v2253_v50 = vsub.f32 %v8792_v59, %v2233_v48  ;;  %2298 = vadd.xlane.f32.xlu0 %v8894_v6 }
 0x48b   : > { %v2254_v49 = vsub.f32 %v8795_v0, %v2235_v19  ;;  %7086 = vpow2.f32 %v2278_v38 }
 0x48c   : > { %v8900_v17 = vpop.eup %7076  ;;  %v2280_v11 = vmul.f32 1.442695, %v2253_v50 }
 0x48d   : > { %v2282_v63 = vmul.f32 1.442695, %v2254_v49  ;;  %v8902_v61 = vpop.eup %7078  ;;  %2300 = vadd.xlane.f32.xlu1 %v8900_v17  ;;  %v2237_v1 = vpop.xlane.xlu1 %2236 }
 0x48e   : > { %v2239_v13 = vpop.xlane.xlu0 %2238  ;;  %7088 = vpow2.f32 %v2280_v11  ;;  %v2255_v22 = vsub.f32 %v8799_v62, %v2237_v1  ;;  %2302 = vadd.xlane.f32.xlu0 %v8902_v61 }
 0x48f   : > { %v2256_v59 = vsub.f32 %v8801_v10, %v2239_v13  ;;  %7090 = vpow2.f32 %v2282_v63 }
 0x490   : > { %v8908_v0 = vpop.eup %7080  ;;  %v2284_v39 = vmul.f32 1.442695, %v2255_v22 }
 0x491   : > { %v2286_v30 = vmul.f32 1.442695, %v2256_v59  ;;  %v8910_v14 = vpop.eup %7082  ;;  %2304 = vadd.xlane.f32.xlu1 %v8908_v0  ;;  %v2241_v27 = vpop.xlane.xlu1 %2240 }
 0x492   : > { %7092 = vpow2.f32 %v2284_v39  ;;  %v2257_v47 = vsub.f32 %v8805_v36, %v2241_v27  ;;  %2306 = vadd.xlane.f32.xlu0 %v8910_v14 }
 0x493   : > { %7094 = vpow2.f32 %v2286_v30 }
 0x494   : > { %v8915_v62 = vpop.eup %7084  ;;  %v2288_v40 = vmul.f32 1.442695, %v2257_v47 }
 0x495   : > { %v8917_v10 = vpop.eup %7086  ;;  %2308 = vadd.xlane.f32.xlu1 %v8915_v62 }
 0x496   : > { %7096 = vpow2.f32 %v2288_v40  ;;  %2310 = vadd.xlane.f32.xlu0 %v8917_v10 }
 0x498   : > { %v8921_v46 = vpop.eup %7088 }
 0x499   : > { %v8923_v16 = vpop.eup %7090  ;;  %2312 = vadd.xlane.f32.xlu1 %v8921_v46 }
 0x49a   : > { %2314 = vadd.xlane.f32.xlu0 %v8923_v16 }
 0x49c   : > { %v8927_v36 = vpop.eup %7092 }
 0x49d   : > { %v8929_v43 = vpop.eup %7094  ;;  %2316 = vadd.xlane.f32.xlu1 %v8927_v36 }
 0x49e   : > { %2318 = vadd.xlane.f32.xlu0 %v8929_v43 }
 0x4a0   : > { %v8933_v31 = vpop.eup %7096 }
 0x4a1   : > { %2320 = vadd.xlane.f32.xlu1 %v8933_v31 }
 0x4ee   : > { %v1809_v54 = vpop.xlane.xlu0 %1808 }
 0x4ef   : > { %7098 = vrcp.f32 %v1809_v54 }
 0x4f2   : > { %v1811_v9 = vpop.xlane.xlu1 %1810 }
 0x4f3   : > { %7100 = vrcp.f32 %v1811_v9  ;;  %v1813_v56 = vpop.xlane.xlu0 %1812 }
 0x4f4   : > { %7102 = vrcp.f32 %v1813_v56 }
 0x4f6   : > { %v1815_v33 = vpop.xlane.xlu1 %1814 }
 0x4f7   : > { %7104 = vrcp.f32 %v1815_v33  ;;  %v1817_v53 = vpop.xlane.xlu0 %1816 }
 0x4f8   : > { %7106 = vrcp.f32 %v1817_v53 }
 0x4f9   : > { %v7099_v41 = vpop.eup %7098 }
 0x4fa   : > { %v1819_v29 = vpop.xlane.xlu1 %1818  ;;  %v1856_v44 = vmul.f32 %v7099_v41, %v8815_v42 }
 0x4fb   : > { %7108 = vrcp.f32 %v1819_v29  ;;  %v1821_v18 = vpop.xlane.xlu0 %1820  ;;  %v10896_v29 = vld [vmem:[#allocation35_spill] sm:$0xff] }
 0x4fc   : > { %7110 = vrcp.f32 %v1821_v18  ;;  %5766 = vmatprep.mubr.f32.mxu1 %v1856_v44 }
 0x4fd   : > { %v7101_v37 = vpop.eup %7100 }
 0x4fe   : > { %v7103_v38 = vpop.eup %7102  ;;  %v1857_v48 = vmul.f32 %v7101_v37, %v8820_v32  ;;  %v1823_v19 = vpop.xlane.xlu1 %1822 }
 0x4ff   : > { %7112 = vrcp.f32 %v1823_v19  ;;  %v1825_v50 = vpop.xlane.xlu0 %1824  ;;  %v1858_v49 = vmul.f32 %v7103_v38, %v8822_v52  ;;  %v10897_v38 = vld [vmem:[#allocation36_spill] sm:$0xff] }
 0x500   : > { %7114 = vrcp.f32 %v1825_v50  ;;  %5767 = vmatmul.mubr.f32.vlgmr.msra.gmra.mrb[112].mxu1 %v1857_v48 }
 0x501   : > { %v7105_v11 = vpop.eup %7104  ;;  %6193 = vmatpush3.bf16.msra.mxu1 %v8489_v34  ;;  %5769 = vmatprep.mubr.f32.mxu1 %v1858_v49 }
 0x502   : > { %v7107_v42 = vpop.eup %7106  ;;  %6195 = vmatprep.subr.bf16.mxu1 %v8503_v35  ;;  %v1827_v63 = vpop.xlane.xlu1 %1826  ;;  %v1859_v1 = vmul.f32 %v7105_v11, %v8828_v4 }
 0x503   : > { %7116 = vrcp.f32 %v1827_v63  ;;  %v1829_v13 = vpop.xlane.xlu0 %1828  ;;  %v1860_v32 = vmul.f32 %v7107_v42, %v8830_v24 }
 0x504   : > { %7118 = vrcp.f32 %v1829_v13  ;;  %5770 = vmatmul.mubr.f32.gmra.mrb[114].mxu1 %v1859_v1 }
 0x505   : > { %v7109_v22 = vpop.eup %7108  ;;  %6197 = vmatpush3.bf16.msra.mxu1 %v8503_v35  ;;  %5772 = vmatprep.mubr.f32.mxu1 %v1860_v32 }
 0x506   : > { %v7111_v52 = vpop.eup %7110  ;;  %6199 = vmatprep.subr.bf16.mxu1 %v8517_v60  ;;  %v1831_v34 = vpop.xlane.xlu1 %1830  ;;  %v1861_v59 = vmul.f32 %v7109_v22, %v8836_v23 }
 0x507   : > { %7120 = vrcp.f32 %v1831_v34  ;;  %v1833_v39 = vpop.xlane.xlu0 %1832  ;;  %v1862_v4 = vmul.f32 %v7111_v52, %v8838_v15 }
 0x508   : > { %7122 = vrcp.f32 %v1833_v39  ;;  %5773 = vmatmul.mubr.f32.gmra.mrb[116].mxu1 %v1861_v59 }
 0x509   : > { %v7113_v30 = vpop.eup %7112  ;;  %6201 = vmatpush3.bf16.msra.mxu1 %v8517_v60  ;;  %5775 = vmatprep.mubr.f32.mxu1 %v1862_v4 }
 0x50a   : > { %v7115_v24 = vpop.eup %7114  ;;  %6203 = vmatprep.subr.bf16.mxu1 %v8531_v26  ;;  %v1835_v35 = vpop.xlane.xlu1 %1834  ;;  %v1863_v27 = vmul.f32 %v7113_v30, %v8844_v25 }
 0x50b   : > { %7124 = vrcp.f32 %v1835_v35  ;;  %v1837_v47 = vpop.xlane.xlu0 %1836  ;;  %v1864_v23 = vmul.f32 %v7115_v24, %v8846_v55 }
 0x50c   : > { %7126 = vrcp.f32 %v1837_v47  ;;  %5776 = vmatmul.mubr.f32.gmra.mrb[118].mxu1 %v1863_v27 }
 0x50d   : > { %v7117_v40 = vpop.eup %7116  ;;  %6205 = vmatpush3.bf16.msra.mxu1 %v8531_v26  ;;  %5778 = vmatprep.mubr.f32.mxu1 %v1864_v23 }
 0x50e   : > { %v7119_v15 = vpop.eup %7118  ;;  %6207 = vmatprep.subr.bf16.mxu1 %v8543_v2  ;;  %v1839_v60 = vpop.xlane.xlu1 %1838  ;;  %v1865_v54 = vmul.f32 %v7117_v40, %v8852_v45 }
 0x50f   : > { %7128 = vrcp.f32 %v1839_v60  ;;  %v2291_v9 = vpop.xlane.xlu0 %2290  ;;  %v1866_v25 = vmul.f32 %v7119_v15, %v8854_v57 }
 0x510   : > { %7130 = vrcp.f32 %v2291_v9  ;;  %5779 = vmatmul.mubr.f32.gmra.mrb[120].mxu1 %v1865_v54 }
 0x511   : > { %v7121_v56 = vpop.eup %7120  ;;  %6209 = vmatpush3.bf16.msra.mxu1 %v8543_v2  ;;  %5781 = vmatprep.mubr.f32.mxu1 %v1866_v25 }
 0x512   : > { %v7123_v55 = vpop.eup %7122  ;;  %6211 = vmatprep.subr.bf16.mxu1 %v8549_v20  ;;  %v2293_v26 = vpop.xlane.xlu1 %2292  ;;  %v1867_v33 = vmul.f32 %v7121_v56, %v8860_v5 }
 0x513   : > { %7132 = vrcp.f32 %v2293_v26  ;;  %v2295_v53 = vpop.xlane.xlu0 %2294  ;;  %v1868_v45 = vmul.f32 %v7123_v55, %v8862_v8 }
 0x514   : > { %7134 = vrcp.f32 %v2295_v53  ;;  %5782 = vmatmul.mubr.f32.gmra.mrb[122].mxu1 %v1867_v33 }
 0x515   : > { %v7125_v41 = vpop.eup %7124  ;;  %6213 = vmatpush3.bf16.msra.mxu1 %v8549_v20  ;;  %5784 = vmatprep.mubr.f32.mxu1 %v1868_v45 }
 0x516   : > { %v7127_v57 = vpop.eup %7126  ;;  %6215 = vmatprep.subr.bf16.mxu1 %v10896_v29  ;;  %v2297_v2 = vpop.xlane.xlu1 %2296  ;;  %v1869_v44 = vmul.f32 %v7125_v41, %v8868_v21 }
 0x517   : > { %7136 = vrcp.f32 %v2297_v2  ;;  %v2299_v18 = vpop.xlane.xlu0 %2298  ;;  %v1870_v5 = vmul.f32 %v7127_v57, %v8870_v3 }
 0x518   : > { %7138 = vrcp.f32 %v2299_v18  ;;  %5785 = vmatmul.mubr.f32.gmra.mrb[124].mxu1 %v1869_v44 }
 0x519   : > { %v7129_v37 = vpop.eup %7128  ;;  %6217 = vmatpush3.bf16.msra.mxu1 %v10896_v29  ;;  %5787 = vmatprep.mubr.f32.mxu1 %v1870_v5  ;;  %v7226_v5 = vld [vmem:[%s8100_s27 + $0x10] sm:$0xff] }
 0x51a   : > { %v7131_v8 = vpop.eup %7130  ;;  %6219 = vmatprep.subr.bf16.mxu1 %v10897_v38  ;;  %v2301_v20 = vpop.xlane.xlu1 %2300  ;;  %v1871_v48 = vmul.f32 %v7129_v37, %v8876_v12 }
 0x51b   : > { %7140 = vrcp.f32 %v2301_v20  ;;  %v2303_v19 = vpop.xlane.xlu0 %2302  ;;  %v2338_v21 = vmul.f32 %v7131_v8, %v8878_v28  ;;  %v7227_v8 = vld [vmem:[%s8100_s27 + $0x18] sm:$0xff] }
 0x51c   : > { %7142 = vrcp.f32 %v2303_v19  ;;  %5788 = vmatmul.mubr.f32.gmra.mrb[126].mxu1 %v1871_v48  ;;  %v7228_v48 = vld [vmem:[%s8100_s27] sm:$0xff] }
 0x51d   : > { %v7133_v50 = vpop.eup %7132  ;;  %6221 = vmatpush3.bf16.msra.mxu1 %v10897_v38  ;;  %5878 = vmatprep.mubr.f32.mxu1 %v2338_v21  ;;  %v7229_v21 = vld [vmem:[%s8100_s27 + $0x8] sm:$0xff] }
 0x51e   : > { %v7135_v3 = vpop.eup %7134  ;;  %v2339_v49 = vmul.f32 %v7133_v50, %v8884_v58  ;;  %v2305_v11 = vpop.xlane.xlu1 %2304 }
 0x51f   : > { %7144 = vrcp.f32 %v2305_v11  ;;  %v2307_v42 = vpop.xlane.xlu0 %2306  ;;  %v2340_v63 = vmul.f32 %v7135_v3, %v8886_v51 }
 0x520   : > { %7146 = vrcp.f32 %v2307_v42  ;;  %5879 = vmatmul.mubr.f32.vlgmr.msra.gmra.mrb[128].mxu1 %v2339_v49  ;;  %v7230_v42 = vld [vmem:[%s8100_s27 + $0x30] sm:$0xff] }
 0x521   : > { %v7137_v12 = vpop.eup %7136  ;;  %5881 = vmatprep.mubr.f32.mxu1 %v2340_v63 }
 0x522   : > { %v7139_v1 = vpop.eup %7138  ;;  %v2309_v28 = vpop.xlane.xlu1 %2308  ;;  %v2341_v13 = vmul.f32 %v7137_v12, %v8892_v7  ;;  %v7231_v12 = vld [vmem:[%s8100_s27 + $0x38] sm:$0xff] }
 0x523   : > { %7148 = vrcp.f32 %v2309_v28  ;;  %v2311_v32 = vpop.xlane.xlu0 %2310  ;;  %v2342_v22 = vmul.f32 %v7139_v1, %v8894_v6 }
 0x524   : > { %7150 = vrcp.f32 %v2311_v32  ;;  %5882 = vmatmul.mubr.f32.gmra.mrb[130].mxu1 %v2341_v13  ;;  %v7232_v13 = vld [vmem:[%s8100_s27 + $0x20] sm:$0xff] }
 0x525   : > { %v7141_v58 = vpop.eup %7140  ;;  %5884 = vmatprep.mubr.f32.mxu1 %v2342_v22  ;;  %v7233_v22 = vld [vmem:[%s8100_s27 + $0x28] sm:$0xff] }
 0x526   : > { %v7143_v52 = vpop.eup %7142  ;;  %v2313_v34 = vpop.xlane.xlu1 %2312  ;;  %v2343_v51 = vmul.f32 %v7141_v58, %v8900_v17 }
 0x527   : > { %7152 = vrcp.f32 %v2313_v34  ;;  %v2315_v59 = vpop.xlane.xlu0 %2314  ;;  %v2344_v39 = vmul.f32 %v7143_v52, %v8902_v61 }
 0x528   : > { %7154 = vrcp.f32 %v2315_v59  ;;  %5885 = vmatmul.mubr.f32.gmra.mrb[132].mxu1 %v2343_v51  ;;  %v7234_v59 = vld [vmem:[%s8100_s27 + $0x50] sm:$0xff] }
 0x529   : > { %v7145_v4 = vpop.eup %7144  ;;  %5887 = vmatprep.mubr.f32.mxu1 %v2344_v39 }
 0x52a   : > { %v7147_v7 = vpop.eup %7146  ;;  %v2317_v30 = vpop.xlane.xlu1 %2316  ;;  %v2345_v6 = vmul.f32 %v7145_v4, %v8908_v0  ;;  %v7235_v4 = vld [vmem:[%s8100_s27 + $0x58] sm:$0xff] }
 0x52b   : > { %7156 = vrcp.f32 %v2317_v30  ;;  %v2319_v24 = vpop.xlane.xlu0 %2318  ;;  %v2346_v35 = vmul.f32 %v7147_v7, %v8910_v14 }
 0x52c   : > { %7158 = vrcp.f32 %v2319_v24  ;;  %5888 = vmatmul.mubr.f32.gmra.mrb[134].mxu1 %v2345_v6  ;;  %v7236_v6 = vld [vmem:[%s8100_s27 + $0x40] sm:$0xff] }
 0x52d   : > { %v7149_v27 = vpop.eup %7148  ;;  %5890 = vmatprep.mubr.f32.mxu1 %v2346_v35  ;;  %v7237_v35 = vld [vmem:[%s8100_s27 + $0x48] sm:$0xff] }
 0x52e   : > { %v7151_v17 = vpop.eup %7150  ;;  %v2321_v47 = vpop.xlane.xlu1 %2320  ;;  %v2347_v61 = vmul.f32 %v7149_v27, %v8915_v62 }
 0x52f   : > { %7160 = vrcp.f32 %v2321_v47  ;;  %v2348_v23 = vmul.f32 %v7151_v17, %v8917_v10 }
 0x530   : > { %5891 = vmatmul.mubr.f32.gmra.mrb[136].mxu1 %v2347_v61 }
 0x531   : > { %v7153_v40 = vpop.eup %7152  ;;  %5893 = vmatprep.mubr.f32.mxu1 %v2348_v23  ;;  %v7238_v23 = vld [vmem:[%s8100_s27 + $0x70] sm:$0xff] }
 0x532   : > { %v7155_v15 = vpop.eup %7154  ;;  %v2349_v0 = vmul.f32 %v7153_v40, %v8921_v46 }
 0x533   : > { %v2350_v60 = vmul.f32 %v7155_v15, %v8923_v16  ;;  %v7239_v15 = vld [vmem:[%s8100_s27 + $0x78] sm:$0xff] }
 0x534   : > { %5894 = vmatmul.mubr.f32.gmra.mrb[138].mxu1 %v2349_v0 }
 0x535   : > { %v7157_v14 = vpop.eup %7156  ;;  %5896 = vmatprep.mubr.f32.mxu1 %v2350_v60 }
 0x536   : > { %v7159_v54 = vpop.eup %7158  ;;  %v2351_v9 = vmul.f32 %v7157_v14, %v8927_v36  ;;  %v7240_v14 = vld [vmem:[%s8100_s27 + $0x60] sm:$0xff] }
 0x537   : > { %v2352_v25 = vmul.f32 %v7159_v54, %v8929_v43 }
 0x538   : > { %5897 = vmatmul.mubr.f32.gmra.mrb[140].mxu1 %v2351_v9  ;;  %v7241_v9 = vld [vmem:[%s8100_s27 + $0x68] sm:$0xff] }
 0x539   : > { %v7161_v62 = vpop.eup %7160  ;;  %5899 = vmatprep.mubr.f32.mxu1 %v2352_v25 }
 0x53a   : > { %v2353_v10 = vmul.f32 %v7161_v62, %v8933_v31 }
 0x53c   : > { %5900 = vmatmul.mubr.f32.gmra.mrb[142].mxu1 %v2353_v10 }
 0x5d3   : > { %v5768_v56 = vpop.f32.mrb[112].mxu1 }
 0x5d4   : > { %v1938_v55 = vpop.f32.mrb[113].mxu1  ;;  %v9000_v37 = vadd.f32 %v7226_v5, %v5768_v56 }
 0x5d5   : > { %v9006_v19 = vadd.f32 %v7228_v48, %v1938_v55  ;;  %v7242_v55 = vld [vmem:[%s8100_s27 + $0x90] sm:$0xff] }
 0x5d6   : > { %v7246_v48 = vld [vmem:[%s8100_s27 + $0xb0] sm:$0xff] }
 0x5d7   : > { %v5771_v46 = vpop.f32.mrb[114].mxu1 }
 0x5d8   : > { %v1948_v26 = vpop.f32.mrb[115].mxu1  ;;  %v9016_v63 = vadd.f32 %v7230_v42, %v5771_v46 }
 0x5d9   : > { %v9022_v32 = vadd.f32 %v7232_v13, %v1948_v26  ;;  %v7243_v26 = vld [vmem:[%s8100_s27 + $0x98] sm:$0xff] }
 0x5db   : > { %v5774_v16 = vpop.f32.mrb[116].mxu1 }
 0x5dc   : > { %v1958_v33 = vpop.f32.mrb[117].mxu1  ;;  %v9032_v39 = vadd.f32 %v7234_v59, %v5774_v16 }
 0x5dd   : > { %v9038_v24 = vadd.f32 %v7236_v6, %v1958_v33  ;;  %v7253_v6 = vld [vmem:[%s8100_s27 + $0xc8] sm:$0xff] }
 0x5df   : > { %v5777_v53 = vpop.f32.mrb[118].mxu1 }
 0x5e0   : > { %v1968_v45 = vpop.f32.mrb[119].mxu1  ;;  %v9048_v40 = vadd.f32 %v7238_v23, %v5777_v53  ;;  %v7244_v53 = vld [vmem:[%s8100_s27 + $0x80] sm:$0xff] }
 0x5e1   : > { %v9054_v54 = vadd.f32 %v7240_v14, %v1968_v45  ;;  %v7256_v14 = vld [vmem:[%s8100_s27 + $0xe0] sm:$0xff] }
 0x5e3   : > { %v8983_v36 = vpop.f32.mrb[120].mxu1 }
 0x5e4   : > { %v8985_v43 = vpop.f32.mrb[121].mxu1  ;;  %v9065_v46 = vadd.f32 %v7242_v55, %v8983_v36  ;;  %v2925_v55 = vld [vmem:[#allocation9 + $0x8] sm:$0xff] }
 0x5e5   : > { %v9072_v45 = vadd.f32 %v7244_v53, %v8985_v43 }
 0x5e7   : > { %v8987_v41 = vpop.f32.mrb[122].mxu1 }
 0x5e8   : > { %v8989_v31 = vpop.f32.mrb[123].mxu1 }
 0x5eb   : > { %v8991_v57 = vpop.f32.mrb[124].mxu1 }
 0x5ec   : > { %v8993_v29 = vpop.f32.mrb[125].mxu1 }
 0x5ef   : > { %v8995_v2 = vpop.f32.mrb[126].mxu1 }
 0x5f0   : > { %v8997_v44 = vpop.f32.mrb[127].mxu1 }
 0x5f3   : > { %v5880_v18 = vpop.f32.mrb[128].mxu1 }
 0x5f4   : > { %v9003_v38 = vadd.f32 %v7227_v8, %v5880_v18  ;;  %v2420_v20 = vpop.f32.mrb[129].mxu1  ;;  %v7245_v18 = vld [vmem:[%s8100_s27 + $0x88] sm:$0xff] }
 0x5f5   : > { %v9009_v50 = vadd.f32 %v7229_v21, %v2420_v20  ;;  %v9083_v21 = vadd.f32 %v7246_v48, %v8987_v41  ;;  %v2926_v48 = vld [vmem:[#allocation9 + $0x10] sm:$0xff] }
 0x5f6   : > { %v2584_v3 = vadd.f32 %v9003_v38, %v9000_v37 }
 0x5f7   : > { %v5883_v49 = vpop.f32.mrb[130].mxu1  ;;  %v2581_v11 = vadd.f32 %v9009_v50, %v9006_v19 }
 0x5f8   : > { %v9019_v1 = vadd.f32 %v7231_v12, %v5883_v49  ;;  %2585 = vadd.xlane.f32.xlu1 %v2584_v3  ;;  %v2430_v28 = vpop.f32.mrb[131].mxu1  ;;  %v7247_v3 = vld [vmem:[%s8100_s27 + $0xb8] sm:$0xff]  ;;  %v7249_v12 = vld [vmem:[%s8100_s27 + $0xa8] sm:$0xff] }
 0x5f9   : > { %v9025_v58 = vadd.f32 %v7233_v22, %v2430_v28  ;;  %2582 = vadd.xlane.f32.xlu0 %v2581_v11  ;;  %v7248_v11 = vld [vmem:[%s8100_s27 + $0xa0] sm:$0xff] }
 0x5fa   : > { %v2590_v52 = vadd.f32 %v9019_v1, %v9016_v63  ;;  %v9090_v42 = vadd.f32 %v7248_v11, %v8989_v31 }
 0x5fb   : > { %v5886_v34 = vpop.f32.mrb[132].mxu1  ;;  %v2587_v51 = vadd.f32 %v9025_v58, %v9022_v32 }
 0x5fc   : > { %v9035_v7 = vadd.f32 %v7235_v4, %v5886_v34  ;;  %2591 = vadd.xlane.f32.xlu1 %v2590_v52  ;;  %v2440_v30 = vpop.f32.mrb[133].mxu1  ;;  %v7250_v52 = vld [vmem:[%s8100_s27 + $0xd0] sm:$0xff]  ;;  %v7252_v4 = vld [vmem:[%s8100_s27 + $0xc0] sm:$0xff] }
 0x5fd   : > { %v9041_v27 = vadd.f32 %v7237_v35, %v2440_v30  ;;  %2588 = vadd.xlane.f32.xlu0 %v2587_v51  ;;  %v9101_v34 = vadd.f32 %v7250_v52, %v8991_v57  ;;  %v7251_v51 = vld [vmem:[%s8100_s27 + $0xd8] sm:$0xff]  ;;  %v9108_v30 = vadd.f32 %v7252_v4, %v8993_v29 }
 0x5fe   : > { %v2596_v17 = vadd.f32 %v9035_v7, %v9032_v39  ;;  %v2942_v4 = vld [vmem:[#allocation9 + $0x90] sm:$0xff] }
 0x5ff   : > { %v5889_v47 = vpop.f32.mrb[134].mxu1  ;;  %v2593_v61 = vadd.f32 %v9041_v27, %v9038_v24 }
 0x600   : > { %v9051_v0 = vadd.f32 %v7239_v15, %v5889_v47  ;;  %2597 = vadd.xlane.f32.xlu1 %v2596_v17  ;;  %v2450_v60 = vpop.f32.mrb[135].mxu1  ;;  %v7255_v15 = vld [vmem:[%s8100_s27 + $0xf8] sm:$0xff] }
 0x601   : > { %v9057_v25 = vadd.f32 %v7241_v9, %v2450_v60  ;;  %2594 = vadd.xlane.f32.xlu0 %v2593_v61  ;;  %v7254_v61 = vld [vmem:[%s8100_s27 + $0xf0] sm:$0xff]  ;;  %v9126_v9 = vadd.f32 %v7256_v14, %v8997_v44  ;;  %v2932_v44 = vld [vmem:[#allocation9 + $0x40] sm:$0xff]  ;;  %v2967_v14 = vld [vmem:[#allocation9 + $0x158] sm:$0xff] }
 0x602   : > { %v2602_v62 = vadd.f32 %v9051_v0, %v9048_v40  ;;  %v9119_v23 = vadd.f32 %v7254_v61, %v8995_v2 }
 0x603   : > { %v5892_v10 = vpop.f32.mrb[136].mxu1  ;;  %v2599_v56 = vadd.f32 %v9057_v25, %v9054_v54 }
 0x604   : > { %v9068_v16 = vadd.f32 %v7243_v26, %v5892_v10  ;;  %2603 = vadd.xlane.f32.xlu1 %v2602_v62  ;;  %v2460_v33 = vpop.f32.mrb[137].mxu1  ;;  %v7257_v62 = vld [vmem:[%s8100_s27 + $0xe8] sm:$0xff]  ;;  %s7691_s27 = smov [#allocation21]  }
 0x605   : > { %v9075_v5 = vadd.f32 %v7245_v18, %v2460_v33  ;;  %2600 = vadd.xlane.f32.xlu0 %v2599_v56  ;;  %v2933_v26 = vld [vmem:[#allocation9 + $0x48] sm:$0xff]  ;;  %v2927_v33 = vld [vmem:[#allocation9 + $0x18] sm:$0xff]  ;;  %s7573_s20 = sshll.u32 %s7691_s27, 4  ;;  %s7574_s20 = int_to_ptr.vmem [resolvable:$false] %s7573_s20 }
 0x606   : > { %v2608_v8 = vadd.f32 %v9068_v16, %v9065_v46  ;;  %v6222_v53 = vpack.c.bf16 %v2933_v26, %v2925_v55  ;;  %v2935_v18 = vld [vmem:[#allocation9 + $0x58] sm:$0xff]  ;;  %v2958_v55 = vld [vmem:[#allocation9 + $0x110] sm:$0xff]  ;;  %s7575_s15 = scalar_lea.vmem %s7574_s20, 8192  ;;  %p7576_p0 = scmp.lt.s32.totalorder %s10740_s28, %s7574_s20 }
 0x607   : > { %v5895_v36 = vpop.f32.mrb[138].mxu1  ;;  %v2605_v20 = vadd.f32 %v9075_v5, %v9072_v45  ;;  %v2966_v26 = vld [vmem:[#allocation9 + $0x150] sm:$0xff]  ;;  %p7577_p7 = scmp.lt.s32.totalorder %s7575_s15, %s7569_s14 }
 0x608   : > { %v9086_v43 = vadd.f32 %v7247_v3, %v5895_v36  ;;  %2609 = vadd.xlane.f32.xlu1 %v2608_v8  ;;  %v2470_v49 = vpop.f32.mrb[139].mxu1  ;;  %v2924_v8 = vld [vmem:[#allocation9] sm:$0xff]  ;;  %v6286_v36 = vpack.c.bf16 %v2935_v18, %v2927_v33  ;;  %v2934_v3 = vld [vmem:[#allocation9 + $0x50] sm:$0xff]  ;;  %6223 = vmatprep.subr.bf16.mxu0 %v6222_v53  ;;  %v2973_v53 = vld [vmem:[#allocation9 + $0x188] sm:$0xff] }
 0x609   : > { %v9093_v28 = vadd.f32 %v7249_v12, %v2470_v49  ;;  %2606 = vadd.xlane.f32.xlu0 %v2605_v20  ;;  %v6224_v20 = vpack.c.bf16 %v2932_v44, %v2924_v8  ;;  %v2941_v49 = vld [vmem:[#allocation9 + $0x88] sm:$0xff]  ;;  %v6288_v11 = vpack.c.bf16 %v2934_v3, %v2926_v48  ;;  %v2975_v8 = vld [vmem:[#allocation9 + $0x198] sm:$0xff]  ;;  %v6296_v44 = vpack.c.bf16 %v2966_v26, %v2958_v55  ;;  %v2972_v48 = vld [vmem:[#allocation9 + $0x180] sm:$0xff]  ;;  %p7578_p5 = por %p7577_p7, %p7576_p0 }
 0x60a   : > { %v2614_v13 = vadd.f32 %v9086_v43, %v9083_v21  ;;  %v2949_v12 = vld [vmem:[#allocation9 + $0xc8] sm:$0xff]  ;;  %6287 = vmatprep.subr.bf16.mxu1 %v6286_v36  ;;  %v2980_v3 = vld [vmem:[#allocation9 + $0x1c0] sm:$0xff] }
 0x60b   : > { %v5898_v41 = vpop.f32.mrb[140].mxu1  ;;  %v2611_v22 = vadd.f32 %v9093_v28, %v9090_v42  ;;  %6225 = vmatpush1.bf16.msra.mxu0 %v6224_v20  ;;  %6289 = vmatpush1.bf16.msra.mxu1 %v6288_v11  ;;  %v2981_v18 = vld [vmem:[#allocation9 + $0x1c8] sm:$0xff]  ;;  %v2983_v20 = vld [vmem:[#allocation9 + $0x1d8] sm:$0xff]  ;;  %v2974_v11 = vld [vmem:[#allocation9 + $0x190] sm:$0xff]  ;;  %p7579_p8 = pnand %p7578_p5, %p7572_p12 }
 0x60c   : > { %v9104_v31 = vadd.f32 %v7251_v51, %v5898_v41  ;;  %2615 = vadd.xlane.f32.xlu1 %v2614_v13  ;;  %v2480_v59 = vpop.f32.mrb[141].mxu1  ;;  %v2943_v13 = vld [vmem:[#allocation9 + $0x98] sm:$0xff]  ;;  %v2940_v51 = vld [vmem:[#allocation9 + $0x80] sm:$0xff]  ;;  %v6234_v36 = vpack.c.bf16 %v2981_v18, %v2973_v53  ;;  %v3006_v53 = vld [vmem:[#allocation9 + $0x290] sm:$0xff] }
 0x60d   : > { %v9111_v35 = vadd.f32 %v7253_v6, %v2480_v59  ;;  %2612 = vadd.xlane.f32.xlu0 %v2611_v22  ;;  %v2951_v41 = vld [vmem:[#allocation9 + $0xd8] sm:$0xff]  ;;  %v6226_v22 = vpack.c.bf16 %v2949_v12, %v2941_v49  ;;  %v2948_v59 = vld [vmem:[#allocation9 + $0xc0] sm:$0xff]  ;;  %v6298_v49 = vpack.c.bf16 %v2983_v20, %v2975_v8  ;;  %v2982_v12 = vld [vmem:[#allocation9 + $0x1d0] sm:$0xff] }
 0x60e   : > { %v2620_v17 = vadd.f32 %v9104_v31, %v9101_v34  ;;  %v6290_v52 = vpack.c.bf16 %v2951_v41, %v2943_v13  ;;  %v6228_v6 = vpack.c.bf16 %v2948_v59, %v2940_v51  ;;  %v2989_v13 = vld [vmem:[#allocation9 + $0x208] sm:$0xff]  ;;  %v6236_v51 = vpack.c.bf16 %v2980_v3, %v2972_v48  ;;  %v3004_v26 = vld [vmem:[#allocation9 + $0x280] sm:$0xff]  ;;  %v3014_v8 = vld [vmem:[#allocation9 + $0x2d0] sm:$0xff] }
 0x60f   : > { %v5901_v57 = vpop.f32.mrb[142].mxu1  ;;  %v2617_v47 = vadd.f32 %v9111_v35, %v9108_v30  ;;  %6227 = vmatprep.subr.bf16.mxu0 %v6226_v22  ;;  %v2997_v41 = vld [vmem:[#allocation9 + $0x248] sm:$0xff]  ;;  %v2991_v22 = vld [vmem:[#allocation9 + $0x218] sm:$0xff]  ;;  %v6300_v59 = vpack.c.bf16 %v2982_v12, %v2974_v11  ;;  %v3020_v12 = vld [vmem:[#allocation9 + $0x300] sm:$0xff] }
 0x610   : > { %v9122_v60 = vadd.f32 %v7255_v15, %v5901_v57  ;;  %2621 = vadd.xlane.f32.xlu1 %v2620_v17  ;;  %v2490_v29 = vpop.f32.mrb[143].mxu1  ;;  %v2950_v17 = vld [vmem:[#allocation9 + $0xd0] sm:$0xff]  ;;  %v2957_v57 = vld [vmem:[#allocation9 + $0x108] sm:$0xff]  ;;  %6291 = vmatprep.subr.bf16.mxu1 %v6290_v52  ;;  %v2999_v52 = vld [vmem:[#allocation9 + $0x258] sm:$0xff] }
 0x611   : > { %v9129_v10 = vadd.f32 %v7257_v62, %v2490_v29  ;;  %2618 = vadd.xlane.f32.xlu0 %v2617_v47  ;;  %v2965_v47 = vld [vmem:[#allocation9 + $0x148] sm:$0xff]  ;;  %v6292_v61 = vpack.c.bf16 %v2950_v17, %v2942_v4  ;;  %v2959_v29 = vld [vmem:[#allocation9 + $0x118] sm:$0xff]  ;;  %v2956_v62 = vld [vmem:[#allocation9 + $0x100] sm:$0xff]  ;;  %6229 = vmatpush1.bf16.msra.mxu0 %v6228_v6  ;;  %v6238_v4 = vpack.c.bf16 %v2997_v41, %v2989_v13 }
 0x612   : > { %v2626_v56 = vadd.f32 %v9122_v60, %v9119_v23  ;;  %v6230_v15 = vpack.c.bf16 %v2965_v47, %v2957_v57  ;;  %v2988_v6 = vld [vmem:[#allocation9 + $0x200] sm:$0xff]  ;;  %v2990_v57 = vld [vmem:[#allocation9 + $0x210] sm:$0xff]  ;;  %v6302_v47 = vpack.c.bf16 %v2999_v52, %v2991_v22  ;;  %v3023_v20 = vld [vmem:[#allocation9 + $0x318] sm:$0xff] }
 0x613   : > { %v2623_v2 = vadd.f32 %v9129_v10, %v9126_v9  ;;  %6293 = vmatpush1.bf16.msra.mxu1 %v6292_v61  ;;  %v2996_v17 = vld [vmem:[#allocation9 + $0x240] sm:$0xff]  ;;  %v2998_v61 = vld [vmem:[#allocation9 + $0x250] sm:$0xff]  ;;  %v3031_v48 = vld [vmem:[#allocation9 + $0x358] sm:$0xff] }
 0x614   : > { %2627 = vadd.xlane.f32.xlu1 %v2626_v56  ;;  %v6294_v56 = vpack.c.bf16 %v2967_v14, %v2959_v29  ;;  %6231 = vmatprep.subr.bf16.mxu0 %v6230_v15  ;;  %v3005_v15 = vld [vmem:[#allocation9 + $0x288] sm:$0xff]  ;;  %v3007_v14 = vld [vmem:[#allocation9 + $0x298] sm:$0xff]  ;;  %v3028_v13 = vld [vmem:[#allocation9 + $0x340] sm:$0xff]  ;;  %v6310_v22 = vpack.c.bf16 %v3031_v48, %v3023_v20 }
 0x615   : > { %2624 = vadd.xlane.f32.xlu0 %v2623_v2  ;;  %v2964_v2 = vld [vmem:[#allocation9 + $0x140] sm:$0xff]  ;;  %v3013_v29 = vld [vmem:[#allocation9 + $0x2c8] sm:$0xff]  ;;  %v3022_v41 = vld [vmem:[#allocation9 + $0x310] sm:$0xff] }
 0x616   : > { %v6232_v33 = vpack.c.bf16 %v2964_v2, %v2956_v62  ;;  %6295 = vmatprep.subr.bf16.mxu1 %v6294_v56  ;;  %v3015_v62 = vld [vmem:[#allocation9 + $0x2d8] sm:$0xff]  ;;  %v6240_v56 = vpack.c.bf16 %v2996_v17, %v2988_v6  ;;  %v6304_v2 = vpack.c.bf16 %v2998_v61, %v2990_v57  ;;  %v6242_v55 = vpack.c.bf16 %v3013_v29, %v3005_v15  ;;  %v3030_v52 = vld [vmem:[#allocation9 + $0x350] sm:$0xff]  ;;  %v3036_v61 = vld [vmem:[#allocation9 + $0x380] sm:$0xff] }
 0x617   : > { %6297 = vmatpush1.bf16.msra.mxu1 %v6296_v44  ;;  %v6306_v18 = vpack.c.bf16 %v3015_v62, %v3007_v14  ;;  %v3021_v44 = vld [vmem:[#allocation9 + $0x308] sm:$0xff]  ;;  %v3047_v6 = vld [vmem:[#allocation9 + $0x3d8] sm:$0xff]  ;;  %v6248_v17 = vpack.c.bf16 %v3028_v13, %v3020_v12  ;;  %v6312_v57 = vpack.c.bf16 %v3030_v52, %v3022_v41  ;;  %v3044_v15 = vld [vmem:[#allocation9 + $0x3c0] sm:$0xff] }
 0x618   : > { %6233 = vmatpush1.bf16.msra.mxu0 %v6232_v33  ;;  %6299 = vmatprep.subr.bf16.mxu1 %v6298_v49  ;;  %v3012_v33 = vld [vmem:[#allocation9 + $0x2c0] sm:$0xff]  ;;  %v6308_v49 = vpack.c.bf16 %v3014_v8, %v3006_v53  ;;  %v3038_v29 = vld [vmem:[#allocation9 + $0x390] sm:$0xff]  ;;  %v3079_v12 = vld [vmem:[#allocation9 + $0x4d8] sm:$0xff] }
 0x619   : > { %6235 = vmatprep.subr.bf16.mxu0 %v6234_v36  ;;  %v3029_v36 = vld [vmem:[#allocation9 + $0x348] sm:$0xff]  ;;  %v6244_v3 = vpack.c.bf16 %v3012_v33, %v3004_v26  ;;  %v3046_v62 = vld [vmem:[#allocation9 + $0x3d0] sm:$0xff]  ;;  %v3063_v26 = vld [vmem:[#allocation9 + $0x458] sm:$0xff]  ;;  %v6252_v33 = vpack.c.bf16 %v3044_v15, %v3036_v61 }
 0x61a   : > { %v6246_v11 = vpack.c.bf16 %v3029_v36, %v3021_v44  ;;  %v6316_v53 = vpack.c.bf16 %v3046_v62, %v3038_v29  ;;  %v3052_v8 = vld [vmem:[#allocation9 + $0x400] sm:$0xff]  ;;  %v3054_v36 = vld [vmem:[#allocation9 + $0x410] sm:$0xff]  ;;  %v3095_v61 = vld [vmem:[#allocation9 + $0x558] sm:$0xff] }
 0x61b   : > { %6301 = vmatpush1.bf16.msra.mxu1 %v6300_v59  ;;  %v3045_v59 = vld [vmem:[#allocation9 + $0x3c8] sm:$0xff]  ;;  %v3060_v44 = vld [vmem:[#allocation9 + $0x440] sm:$0xff]  ;;  %v3062_v48 = vld [vmem:[#allocation9 + $0x450] sm:$0xff] }
 0x61c   : > { %6237 = vmatpush1.bf16.msra.mxu0 %v6236_v51  ;;  %6303 = vmatprep.subr.bf16.mxu1 %v6302_v47  ;;  %v3037_v51 = vld [vmem:[#allocation9 + $0x388] sm:$0xff]  ;;  %v6256_v13 = vpack.c.bf16 %v3060_v44, %v3052_v8  ;;  %v6320_v41 = vpack.c.bf16 %v3062_v48, %v3054_v36  ;;  %v3068_v52 = vld [vmem:[#allocation9 + $0x480] sm:$0xff] }
 0x61d   : > { %6239 = vmatprep.subr.bf16.mxu0 %v6238_v4  ;;  %v3039_v4 = vld [vmem:[#allocation9 + $0x398] sm:$0xff]  ;;  %v6250_v47 = vpack.c.bf16 %v3045_v59, %v3037_v51  ;;  %v3076_v51 = vld [vmem:[#allocation9 + $0x4c0] sm:$0xff]  ;;  %v3070_v59 = vld [vmem:[#allocation9 + $0x490] sm:$0xff] }
 0x61e   : > { %v6314_v14 = vpack.c.bf16 %v3047_v6, %v3039_v4  ;;  %v3078_v6 = vld [vmem:[#allocation9 + $0x4d0] sm:$0xff]  ;;  %v6260_v15 = vpack.c.bf16 %v3076_v51, %v3068_v52 }
 0x61f   : > { %6305 = vmatpush1.bf16.msra.mxu1 %v6304_v2  ;;  %v3061_v2 = vld [vmem:[#allocation9 + $0x448] sm:$0xff]  ;;  %v6324_v29 = vpack.c.bf16 %v3078_v6, %v3070_v59 }
 0x620   : > { %6241 = vmatpush1.bf16.msra.mxu0 %v6240_v56  ;;  %6307 = vmatprep.subr.bf16.mxu1 %v6306_v18  ;;  %v3053_v56 = vld [vmem:[#allocation9 + $0x408] sm:$0xff] }
 0x621   : > { %6243 = vmatprep.subr.bf16.mxu0 %v6242_v55  ;;  %v3055_v55 = vld [vmem:[#allocation9 + $0x418] sm:$0xff]  ;;  %v6254_v18 = vpack.c.bf16 %v3061_v2, %v3053_v56 }
 0x622   : > { %v6318_v20 = vpack.c.bf16 %v3063_v26, %v3055_v55 }
 0x623   : > { %6309 = vmatpush1.bf16.msra.mxu1 %v6308_v49  ;;  %v3077_v49 = vld [vmem:[#allocation9 + $0x4c8] sm:$0xff] }
 0x624   : > { %6245 = vmatpush1.bf16.msra.mxu0 %v6244_v3  ;;  %6311 = vmatprep.subr.bf16.mxu1 %v6310_v22  ;;  %v3069_v3 = vld [vmem:[#allocation9 + $0x488] sm:$0xff] }
 0x625   : > { %6247 = vmatprep.subr.bf16.mxu0 %v6246_v11  ;;  %v3071_v11 = vld [vmem:[#allocation9 + $0x498] sm:$0xff]  ;;  %v6258_v22 = vpack.c.bf16 %v3077_v49, %v3069_v3 }
 0x626   : > { %v6322_v4 = vpack.c.bf16 %v3079_v12, %v3071_v11 }
 0x627   : > { %6313 = vmatpush1.bf16.msra.mxu1 %v6312_v57  ;;  %v3093_v57 = vld [vmem:[#allocation9 + $0x548] sm:$0xff] }
 0x628   : > { %6249 = vmatpush1.bf16.msra.mxu0 %v6248_v17  ;;  %6315 = vmatprep.subr.bf16.mxu1 %v6314_v14  ;;  %v3085_v17 = vld [vmem:[#allocation9 + $0x508] sm:$0xff] }
 0x629   : > { %6251 = vmatprep.subr.bf16.mxu0 %v6250_v47  ;;  %v3087_v47 = vld [vmem:[#allocation9 + $0x518] sm:$0xff]  ;;  %v6262_v14 = vpack.c.bf16 %v3093_v57, %v3085_v17 }
 0x62a   : > { %v6326_v62 = vpack.c.bf16 %v3095_v61, %v3087_v47 }
 0x62b   : > { %6317 = vmatpush1.bf16.msra.mxu1 %v6316_v53 }
 0x62c   : > { %6253 = vmatpush1.bf16.msra.mxu0 %v6252_v33  ;;  %6319 = vmatprep.subr.bf16.mxu1 %v6318_v20 }
 0x62d   : > { %6255 = vmatprep.subr.bf16.mxu0 %v6254_v18 }
 0x62f   : > { %6321 = vmatpush1.bf16.msra.mxu1 %v6320_v41 }
 0x630   : > { %6257 = vmatpush1.bf16.msra.mxu0 %v6256_v13  ;;  %6323 = vmatprep.subr.bf16.mxu1 %v6322_v4 }
 0x631   : > { %6259 = vmatprep.subr.bf16.mxu0 %v6258_v22 }
 0x633   : > { %6325 = vmatpush1.bf16.msra.mxu1 %v6324_v29 }
 0x634   : > { %6261 = vmatpush1.bf16.msra.mxu0 %v6260_v15  ;;  %6327 = vmatprep.subr.bf16.mxu1 %v6326_v62 }
 0x635   : > { %6263 = vmatprep.subr.bf16.mxu0 %v6262_v14 }
 0x685   : > { %v2586_v56 = vpop.xlane.xlu1 %2585 }
 0x686   : > { %v2631_v2 = vmul.f32 0.00390625, %v2586_v56  ;;  %v2583_v55 = vpop.xlane.xlu0 %2582 }
 0x687   : > { %v2630_v26 = vmul.f32 0.00390625, %v2583_v55 }
 0x688   : > { %v9136_v33 = vsub.f32 %v9000_v37, %v2631_v2  ;;  %v9139_v53 = vsub.f32 %v9003_v38, %v2631_v2 }
 0x689   : > { %v9142_v18 = vsub.f32 %v9006_v19, %v2630_v26  ;;  %v9145_v8 = vsub.f32 %v9009_v50, %v2630_v26  ;;  %v2592_v44 = vpop.xlane.xlu1 %2591 }
 0x68a   : > { %v2633_v36 = vmul.f32 0.00390625, %v2592_v44  ;;  %v2589_v20 = vpop.xlane.xlu0 %2588  ;;  %v2680_v48 = vmul.f32 %v9136_v33, %v9136_v33  ;;  %v2681_v3 = vmul.f32 %v9139_v53, %v9139_v53 }
 0x68b   : > { %v2632_v37 = vmul.f32 0.00390625, %v2589_v20  ;;  %v2678_v38 = vmul.f32 %v9142_v18, %v9142_v18  ;;  %v2679_v19 = vmul.f32 %v9145_v8, %v9145_v8 }
 0x68c   : > { %v9156_v49 = vsub.f32 %v9016_v63, %v2633_v36  ;;  %v9159_v50 = vsub.f32 %v9019_v1, %v2633_v36  ;;  %v2713_v11 = vadd.f32 %v2681_v3, %v2680_v48 }
 0x68d   : > { %v9162_v12 = vsub.f32 %v9022_v32, %v2632_v37  ;;  %v9165_v13 = vsub.f32 %v9025_v58, %v2632_v37  ;;  %v2598_v41 = vpop.xlane.xlu1 %2597  ;;  %v2710_v22 = vadd.f32 %v2679_v19, %v2678_v38 }
 0x68e   : > { %v2635_v52 = vmul.f32 0.00390625, %v2598_v41  ;;  %2714 = vadd.xlane.f32.xlu1 %v2713_v11  ;;  %v2595_v51 = vpop.xlane.xlu0 %2594  ;;  %v2684_v59 = vmul.f32 %v9156_v49, %v9156_v49  ;;  %v2685_v63 = vmul.f32 %v9159_v50, %v9159_v50 }
 0x68f   : > { %v2634_v1 = vmul.f32 0.00390625, %v2595_v51  ;;  %2711 = vadd.xlane.f32.xlu0 %v2710_v22  ;;  %v2682_v32 = vmul.f32 %v9162_v12, %v9162_v12  ;;  %v2683_v58 = vmul.f32 %v9165_v13, %v9165_v13 }
 0x690   : > { %v9176_v4 = vsub.f32 %v9032_v39, %v2635_v52  ;;  %v9179_v6 = vsub.f32 %v9035_v7, %v2635_v52  ;;  %v2719_v17 = vadd.f32 %v2685_v63, %v2684_v59 }
 0x691   : > { %v9182_v57 = vsub.f32 %v9038_v24, %v2634_v1  ;;  %v9185_v47 = vsub.f32 %v9041_v27, %v2634_v1  ;;  %v2604_v61 = vpop.xlane.xlu1 %2603  ;;  %v2716_v15 = vadd.f32 %v2683_v58, %v2682_v32  ;;  %v3092_v32 = vld [vmem:[#allocation9 + $0x540] sm:$0xff]  ;;  %v3086_v58 = vld [vmem:[#allocation9 + $0x510] sm:$0xff] }
 0x692   : > { %v2637_v29 = vmul.f32 0.00390625, %v2604_v61  ;;  %2720 = vadd.xlane.f32.xlu1 %v2719_v17  ;;  %v2601_v14 = vpop.xlane.xlu0 %2600  ;;  %v2688_v62 = vmul.f32 %v9176_v4, %v9176_v4  ;;  %v2689_v39 = vmul.f32 %v9179_v6, %v9179_v6 }
 0x693   : > { %v2636_v7 = vmul.f32 0.00390625, %v2601_v14  ;;  %2717 = vadd.xlane.f32.xlu0 %v2716_v15  ;;  %v2686_v24 = vmul.f32 %v9182_v57, %v9182_v57  ;;  %v2687_v27 = vmul.f32 %v9185_v47, %v9185_v47  ;;  %v3094_v15 = vld [vmem:[#allocation9 + $0x550] sm:$0xff] }
 0x694   : > { %v9196_v56 = vsub.f32 %v9048_v40, %v2637_v29  ;;  %v9199_v2 = vsub.f32 %v9051_v0, %v2637_v29  ;;  %v2725_v55 = vadd.f32 %v2689_v39, %v2688_v62  ;;  %v6328_v39 = vpack.c.bf16 %v3094_v15, %v3086_v58  ;;  %v3125_v15 = vld [vmem:[#allocation9 + $0x648] sm:$0xff] }
 0x695   : > { %v9202_v26 = vsub.f32 %v9054_v54, %v2636_v7  ;;  %v9205_v44 = vsub.f32 %v9057_v25, %v2636_v7  ;;  %v2610_v36 = vpop.xlane.xlu1 %2609  ;;  %v2722_v20 = vadd.f32 %v2687_v27, %v2686_v24 }
 0x696   : > { %v2639_v48 = vmul.f32 0.00390625, %v2610_v36  ;;  %2726 = vadd.xlane.f32.xlu1 %v2725_v55  ;;  %v2607_v3 = vpop.xlane.xlu0 %2606  ;;  %v2692_v37 = vmul.f32 %v9196_v56, %v9196_v56  ;;  %v2693_v40 = vmul.f32 %v9199_v2, %v9199_v2  ;;  %v3101_v36 = vld [vmem:[#allocation9 + $0x588] sm:$0xff]  ;;  %6329 = vmatpush1.bf16.msra.mxu1 %v6328_v39 }
 0x697   : > { %v2638_v0 = vmul.f32 0.00390625, %v2607_v3  ;;  %2723 = vadd.xlane.f32.xlu0 %v2722_v20  ;;  %v2690_v54 = vmul.f32 %v9202_v26, %v9202_v26  ;;  %v2691_v25 = vmul.f32 %v9205_v44, %v9205_v44  ;;  %v3109_v20 = vld [vmem:[#allocation9 + $0x5c8] sm:$0xff] }
 0x698   : > { %v9216_v38 = vsub.f32 %v9065_v46, %v2639_v48  ;;  %v9219_v19 = vsub.f32 %v9068_v16, %v2639_v48  ;;  %v2731_v11 = vadd.f32 %v2693_v40, %v2692_v37  ;;  %v3084_v16 = vld [vmem:[#allocation9 + $0x500] sm:$0xff]  ;;  %v3103_v48 = vld [vmem:[#allocation9 + $0x598] sm:$0xff] }
 0x699   : > { %v9222_v41 = vsub.f32 %v9072_v45, %v2638_v0  ;;  %v9225_v22 = vsub.f32 %v9075_v5, %v2638_v0  ;;  %v2616_v52 = vpop.xlane.xlu1 %2615  ;;  %v2728_v51 = vadd.f32 %v2691_v25, %v2690_v54  ;;  %v6264_v61 = vpack.c.bf16 %v3092_v32, %v3084_v16  ;;  %v3111_v40 = vld [vmem:[#allocation9 + $0x5d8] sm:$0xff]  ;;  %v3108_v0 = vld [vmem:[#allocation9 + $0x5c0] sm:$0xff] }
 0x69a   : > { %v2641_v59 = vmul.f32 0.00390625, %v2616_v52  ;;  %2732 = vadd.xlane.f32.xlu1 %v2731_v11  ;;  %v2613_v63 = vpop.xlane.xlu0 %2612  ;;  %v2696_v1 = vmul.f32 %v9216_v38, %v9216_v38  ;;  %v2697_v46 = vmul.f32 %v9219_v19, %v9219_v19  ;;  %v6330_v52 = vpack.c.bf16 %v3111_v40, %v3103_v48 }
 0x69b   : > { %v2640_v17 = vmul.f32 0.00390625, %v2613_v63  ;;  %2729 = vadd.xlane.f32.xlu0 %v2728_v51  ;;  %v2694_v45 = vmul.f32 %v9222_v41, %v9222_v41  ;;  %v2695_v5 = vmul.f32 %v9225_v22, %v9225_v22  ;;  %6265 = vmatpush1.bf16.msra.mxu0 %v6264_v61  ;;  %v3102_v51 = vld [vmem:[#allocation9 + $0x590] sm:$0xff]  ;;  %v3117_v61 = vld [vmem:[#allocation9 + $0x608] sm:$0xff] }
 0x69c   : > { %v9236_v29 = vsub.f32 %v9083_v21, %v2641_v59  ;;  %v9239_v14 = vsub.f32 %v9086_v43, %v2641_v59  ;;  %v2737_v62 = vadd.f32 %v2697_v46, %v2696_v1  ;;  %v3110_v59 = vld [vmem:[#allocation9 + $0x5d0] sm:$0xff]  ;;  %6331 = vmatprep.subr.bf16.mxu1 %v6330_v52 }
 0x69d   : > { %v9242_v7 = vsub.f32 %v9090_v42, %v2640_v17  ;;  %v9245_v24 = vsub.f32 %v9093_v28, %v2640_v17  ;;  %v2622_v27 = vpop.xlane.xlu1 %2621  ;;  %v2734_v55 = vadd.f32 %v2695_v5, %v2694_v45  ;;  %v6266_v42 = vpack.c.bf16 %v3109_v20, %v3101_v36  ;;  %v3100_v28 = vld [vmem:[#allocation9 + $0x580] sm:$0xff] }
 0x69e   : > { %v2643_v3 = vmul.f32 0.00390625, %v2622_v27  ;;  %2738 = vadd.xlane.f32.xlu1 %v2737_v62  ;;  %v2619_v21 = vpop.xlane.xlu0 %2618  ;;  %v2700_v43 = vmul.f32 %v9236_v29, %v9236_v29  ;;  %v2701_v37 = vmul.f32 %v9239_v14, %v9239_v14  ;;  %v6268_v16 = vpack.c.bf16 %v3108_v0, %v3100_v28  ;;  %v3124_v36 = vld [vmem:[#allocation9 + $0x640] sm:$0xff] }
 0x69f   : > { %v2642_v54 = vmul.f32 0.00390625, %v2619_v21  ;;  %2735 = vadd.xlane.f32.xlu0 %v2734_v55  ;;  %v2698_v25 = vmul.f32 %v9242_v7, %v9242_v7  ;;  %v2699_v11 = vmul.f32 %v9245_v24, %v9245_v24  ;;  %6267 = vmatprep.subr.bf16.mxu0 %v6266_v42  ;;  %v6332_v5 = vpack.c.bf16 %v3110_v59, %v3102_v51  ;;  %v3116_v55 = vld [vmem:[#allocation9 + $0x600] sm:$0xff]  ;;  %v3133_v51 = vld [vmem:[#allocation9 + $0x688] sm:$0xff] }
 0x6a0   : > { %v9256_v63 = vsub.f32 %v9101_v34, %v2643_v3  ;;  %v9259_v1 = vsub.f32 %v9104_v31, %v2643_v3  ;;  %v2743_v46 = vadd.f32 %v2701_v37, %v2700_v43  ;;  %v3119_v34 = vld [vmem:[#allocation9 + $0x618] sm:$0xff]  ;;  %6269 = vmatpush1.bf16.msra.mxu0 %v6268_v16  ;;  %v6270_v27 = vpack.c.bf16 %v3125_v15, %v3117_v61  ;;  %v3118_v43 = vld [vmem:[#allocation9 + $0x610] sm:$0xff]  ;;  %v3141_v59 = vld [vmem:[#allocation9 + $0x6c8] sm:$0xff] }
 0x6a1   : > { %v9262_v32 = vsub.f32 %v9108_v30, %v2642_v54  ;;  %v9265_v58 = vsub.f32 %v9111_v35, %v2642_v54  ;;  %v2628_v17 = vpop.xlane.xlu1 %2627  ;;  %v2740_v45 = vadd.f32 %v2699_v11, %v2698_v25  ;;  %v3127_v35 = vld [vmem:[#allocation9 + $0x658] sm:$0xff]  ;;  %6333 = vmatpush1.bf16.msra.mxu1 %v6332_v5  ;;  %v3126_v37 = vld [vmem:[#allocation9 + $0x650] sm:$0xff]  ;;  %v6272_v0 = vpack.c.bf16 %v3124_v36, %v3116_v55 }
 0x6a2   : > { %v2645_v62 = vmul.f32 0.00390625, %v2628_v17  ;;  %2744 = vadd.xlane.f32.xlu1 %v2743_v46  ;;  %v2625_v31 = vpop.xlane.xlu0 %2624  ;;  %v2704_v39 = vmul.f32 %v9256_v63, %v9256_v63  ;;  %v2705_v30 = vmul.f32 %v9259_v1, %v9259_v1  ;;  %v6334_v21 = vpack.c.bf16 %v3127_v35, %v3119_v34  ;;  %6271 = vmatprep.subr.bf16.mxu0 %v6270_v27  ;;  %v3135_v46 = vld [vmem:[#allocation9 + $0x698] sm:$0xff]  ;;  %v3132_v17 = vld [vmem:[#allocation9 + $0x680] sm:$0xff]  ;;  %v3134_v15 = vld [vmem:[#allocation9 + $0x690] sm:$0xff] }
 0x6a3   : > { %v2644_v20 = vmul.f32 0.00390625, %v2625_v31  ;;  %2741 = vadd.xlane.f32.xlu0 %v2740_v45  ;;  %v2702_v48 = vmul.f32 %v9262_v32, %v9262_v32  ;;  %v2703_v3 = vmul.f32 %v9265_v58, %v9265_v58  ;;  %v6336_v52 = vpack.c.bf16 %v3126_v37, %v3118_v43  ;;  %v3140_v45 = vld [vmem:[#allocation9 + $0x6c0] sm:$0xff]  ;;  %v3142_v34 = vld [vmem:[#allocation9 + $0x6d0] sm:$0xff]  ;;  %v3149_v27 = vld [vmem:[#allocation9 + $0x708] sm:$0xff] }
 0x6a4   : > { %v9276_v42 = vsub.f32 %v9119_v23, %v2645_v62  ;;  %v9279_v40 = vsub.f32 %v9122_v60, %v2645_v62  ;;  %v2749_v28 = vadd.f32 %v2705_v30, %v2704_v39  ;;  %6335 = vmatprep.subr.bf16.mxu1 %v6334_v21  ;;  %6273 = vmatpush1.bf16.msra.mxu0 %v6272_v0  ;;  %v3157_v35 = vld [vmem:[#allocation9 + $0x748] sm:$0xff]  ;;  %v3151_v55 = vld [vmem:[#allocation9 + $0x718] sm:$0xff]  ;;  %v3150_v37 = vld [vmem:[#allocation9 + $0x710] sm:$0xff] }
 0x6a5   : > { %v9282_v54 = vsub.f32 %v9126_v9, %v2644_v20  ;;  %v9285_v25 = vsub.f32 %v9129_v10, %v2644_v20  ;;  %v2746_v11 = vadd.f32 %v2703_v3, %v2702_v48  ;;  %v6274_v16 = vpack.c.bf16 %v3141_v59, %v3133_v51  ;;  %v3143_v9 = vld [vmem:[#allocation9 + $0x6d8] sm:$0xff]  ;;  %6337 = vmatpush1.bf16.msra.mxu1 %v6336_v52  ;;  %v3148_v48 = vld [vmem:[#allocation9 + $0x700] sm:$0xff]  ;;  %v3173_v52 = vld [vmem:[#allocation9 + $0x7c8] sm:$0xff] }
 0x6a6   : > { %2750 = vadd.xlane.f32.xlu1 %v2749_v28  ;;  %v2708_v23 = vmul.f32 %v9276_v42, %v9276_v42  ;;  %v2709_v60 = vmul.f32 %v9279_v40, %v9279_v40  ;;  %v6338_v61 = vpack.c.bf16 %v3143_v9, %v3135_v46  ;;  %v6276_v31 = vpack.c.bf16 %v3140_v45, %v3132_v17  ;;  %v3159_v20 = vld [vmem:[#allocation9 + $0x758] sm:$0xff]  ;;  %v3156_v3 = vld [vmem:[#allocation9 + $0x740] sm:$0xff]  ;;  %v3158_v28 = vld [vmem:[#allocation9 + $0x750] sm:$0xff] }
 0x6a7   : > { %2747 = vadd.xlane.f32.xlu0 %v2746_v11  ;;  %v2706_v10 = vmul.f32 %v9282_v54, %v9282_v54  ;;  %v2707_v5 = vmul.f32 %v9285_v25, %v9285_v25  ;;  %6275 = vmatprep.subr.bf16.mxu0 %v6274_v16  ;;  %v6340_v39 = vpack.c.bf16 %v3142_v34, %v3134_v15  ;;  %v3165_v11 = vld [vmem:[#allocation9 + $0x788] sm:$0xff]  ;;  %v3167_v51 = vld [vmem:[#allocation9 + $0x798] sm:$0xff]  ;;  %v3166_v17 = vld [vmem:[#allocation9 + $0x790] sm:$0xff] }
 0x6a8   : > { %v2755_v62 = vadd.f32 %v2709_v60, %v2708_v23  ;;  %6339 = vmatprep.subr.bf16.mxu1 %v6338_v61  ;;  %6277 = vmatpush1.bf16.msra.mxu0 %v6276_v31  ;;  %v6278_v36 = vpack.c.bf16 %v3157_v35, %v3149_v27  ;;  %v6342_v21 = vpack.c.bf16 %v3159_v20, %v3151_v55  ;;  %v3175_v46 = vld [vmem:[#allocation9 + $0x7d8] sm:$0xff]  ;;  %v3164_v23 = vld [vmem:[#allocation9 + $0x780] sm:$0xff]  ;;  %v3174_v45 = vld [vmem:[#allocation9 + $0x7d0] sm:$0xff] }
 0x6a9   : > { %v2752_v30 = vadd.f32 %v2707_v5, %v2706_v10  ;;  %6341 = vmatpush1.bf16.msra.mxu1 %v6340_v39  ;;  %v6280_v43 = vpack.c.bf16 %v3156_v3, %v3148_v48  ;;  %v6344_v0 = vpack.c.bf16 %v3158_v28, %v3150_v37  ;;  %v6282_v59 = vpack.c.bf16 %v3173_v52, %v3165_v11  ;;  %v3172_v60 = vld [vmem:[#allocation9 + $0x7c0] sm:$0xff]  ;;  %v2929_v5 = vld [vmem:[#allocation9 + $0x28] sm:$0xff]  ;;  %v2931_v15 = vld [vmem:[#allocation9 + $0x38] sm:$0xff] }
 0x6aa   : > { %2756 = vadd.xlane.f32.xlu1 %v2755_v62  ;;  %6279 = vmatprep.subr.bf16.mxu0 %v6278_v36  ;;  %v6346_v16 = vpack.c.bf16 %v3175_v46, %v3167_v51  ;;  %v6284_v9 = vpack.c.bf16 %v3172_v60, %v3164_v23  ;;  %v6348_v10 = vpack.c.bf16 %v3174_v45, %v3166_v17  ;;  %v2937_v61 = vld [vmem:[#allocation9 + $0x68] sm:$0xff]  ;;  %v2939_v62 = vld [vmem:[#allocation9 + $0x78] sm:$0xff] }
 0x6ab   : > { %2753 = vadd.xlane.f32.xlu0 %v2752_v30  ;;  %6343 = vmatprep.subr.bf16.mxu1 %v6342_v21  ;;  %v6350_v34 = vpack.c.bf16 %v2937_v61, %v2929_v5  ;;  %v6414_v31 = vpack.c.bf16 %v2939_v62, %v2931_v15  ;;  %v2580_v17 = vld [vmem:[#allocation17] sm:$0x3]  ;;  %v10898_v45 = vld [vmem:[#allocation34_spill] sm:$0xff]  ;;  %v10899_v5 = vld [vmem:[#allocation33_spill] sm:$0xff] }
 0x6ac   : > { %6281 = vmatpush1.bf16.msra.mxu0 %v6280_v43 }
 0x6ad   : > { %6345 = vmatpush1.bf16.msra.mxu1 %v6344_v0  ;;  %6283 = vmatprep.subr.bf16.mxu0 %v6282_v59  ;;  %v2579_v59 = vld [vmem:[#allocation15] sm:$0x3] }
 0x6ae   : > { %6347 = vmatprep.subr.bf16.mxu1 %v6346_v16  ;;  %v9299_v61 = vrot.slane %v2579_v59, %v10899_v5 }
 0x6b0   : > { %6285 = vmatpush1.bf16.msra.mxu0 %v6284_v9 }
 0x6b1   : > { %6349 = vmatpush1.bf16.msra.mxu1 %v6348_v10  ;;  %6351 = vmatprep.subr.bf16.mxu0 %v6350_v34  ;;  %v9296_v10 = vrot.slane %v2579_v59, %v10898_v45 }
 0x6b2   : > { %6415 = vmatprep.subr.bf16.mxu1 %v6414_v31 }
 0x71b   : > { %v2715_v39 = vpop.xlane.xlu1 %2714 }
 0x71c   : > { %v2759_v30 = vmul.f32 0.00390625, %v2715_v39  ;;  %v2712_v27 = vpop.xlane.xlu0 %2711  ;;  %v9304_v39 = vld [vmem:[#allocation9 + $0x20] sm:$0xff] }
 0x71d   : > { %v2758_v35 = vmul.f32 0.00390625, %v2712_v27  ;;  %v9308_v27 = vld [vmem:[#allocation9 + $0x30] sm:$0xff] }
 0x71e   : > { %v2775_v55 = vadd.f32 1e-05, %v2759_v30  ;;  %v9306_v30 = vld [vmem:[#allocation9 + $0x60] sm:$0xff] }
 0x71f   : > { %v2774_v36 = vadd.f32 1e-05, %v2758_v35  ;;  %v2721_v20 = vpop.xlane.xlu1 %2720  ;;  %v6352_v59 = vpack.c.bf16 %v9306_v30, %v9304_v39 }
 0x720   : > { %7162 = vrsqrt.f32 %v2775_v55  ;;  %v2761_v48 = vmul.f32 0.00390625, %v2721_v20  ;;  %v2718_v3 = vpop.xlane.xlu0 %2717  ;;  %v9311_v55 = vrot.slane %v2580_v17, %v10898_v45  ;;  %v2938_v20 = vld [vmem:[#allocation9 + $0x70] sm:$0xff] }
 0x721   : > { %7164 = vrsqrt.f32 %v2774_v36  ;;  %v2760_v21 = vmul.f32 0.00390625, %v2718_v3  ;;  %v9314_v36 = vrot.slane %v2580_v17, %v10899_v5  ;;  %v3091_v5 = vld [vmem:[#allocation9 + $0x538] sm:$0xff] }
 0x722   : > { %v2777_v43 = vadd.f32 1e-05, %v2761_v48 }
 0x723   : > { %v2776_v37 = vadd.f32 1e-05, %v2760_v21  ;;  %v2727_v28 = vpop.xlane.xlu1 %2726 }
 0x724   : > { %v2724_v0 = vpop.xlane.xlu0 %2723  ;;  %v2763_v11 = vmul.f32 0.00390625, %v2727_v28  ;;  %v2955_v28 = vld [vmem:[#allocation9 + $0xf8] sm:$0xff] }
 0x725   : > { %7166 = vrsqrt.f32 %v2776_v37  ;;  %v2762_v52 = vmul.f32 0.00390625, %v2724_v0  ;;  %v2947_v37 = vld [vmem:[#allocation9 + $0xb8] sm:$0xff] }
 0x726   : > { %7168 = vrsqrt.f32 %v2777_v43  ;;  %v2779_v23 = vadd.f32 1e-05, %v2763_v11 }
 0x727   : > { %v2778_v51 = vadd.f32 1e-05, %v2762_v52  ;;  %v2733_v16 = vpop.xlane.xlu1 %2732 }
 0x728   : > { %v2730_v46 = vpop.xlane.xlu0 %2729  ;;  %v2765_v35 = vmul.f32 0.00390625, %v2733_v16 }
 0x729   : > { %7170 = vrsqrt.f32 %v2778_v51  ;;  %v2764_v9 = vmul.f32 0.00390625, %v2730_v46  ;;  %v6416_v46 = vpack.c.bf16 %v2938_v20, %v9308_v27  ;;  %v9348_v20 = vld [vmem:[#allocation9 + $0x168] sm:$0xff] }
 0x72a   : > { %v7163_v60 = vpop.eup %7162  ;;  %7172 = vrsqrt.f32 %v2779_v23  ;;  %v9330_v23 = vld [vmem:[#allocation9 + $0xa0] sm:$0xff]  ;;  %v2781_v39 = vadd.f32 1e-05, %v2765_v35 }
 0x72b   : > { %v7165_v15 = vpop.eup %7164  ;;  %v2809_v34 = vmul.f32 %v7163_v60, %v9139_v53  ;;  %v9316_v53 = vld [vmem:[#allocation9 + $0xa8] sm:$0xff]  ;;  %v2780_v48 = vadd.f32 1e-05, %v2764_v9  ;;  %v2739_v30 = vpop.xlane.xlu1 %2738 }
 0x72c   : > { %v2806_v62 = vmul.f32 %v7165_v15, %v9142_v18  ;;  %v2807_v31 = vmul.f32 %v7165_v15, %v9145_v8  ;;  %v9318_v18 = vld [vmem:[#allocation9 + $0xe8] sm:$0xff]  ;;  %v2808_v8 = vmul.f32 %v7163_v60, %v9136_v33  ;;  %v2736_v3 = vpop.xlane.xlu0 %2735  ;;  %v9332_v60 = vld [vmem:[#allocation9 + $0xe0] sm:$0xff]  ;;  %v9340_v15 = vld [vmem:[#allocation9 + $0xb0] sm:$0xff] }
 0x72d   : > { %v2852_v11 = vmul.f32 %v9296_v10, %v2809_v34  ;;  %v6354_v33 = vpack.c.bf16 %v9318_v18, %v9316_v53  ;;  %v2766_v16 = vmul.f32 0.00390625, %v2736_v3  ;;  %v9342_v34 = vld [vmem:[#allocation9 + $0xf0] sm:$0xff]  ;;  %7174 = vrsqrt.f32 %v2780_v48  ;;  %v9350_v53 = vld [vmem:[#allocation9 + $0x138] sm:$0xff]  ;;  %v9367_v48 = vld [vmem:[#allocation9 + $0x120] sm:$0xff] }
 0x72e   : > { %v2850_v21 = vmul.f32 %v9296_v10, %v2807_v31  ;;  %v2849_v43 = vmul.f32 %v9299_v61, %v2806_v62  ;;  %v9344_v62 = vld [vmem:[#allocation9 + $0x128] sm:$0xff]  ;;  %v2851_v27 = vmul.f32 %v9299_v61, %v2808_v8  ;;  %v9352_v18 = vld [vmem:[#allocation9 + $0x178] sm:$0xff]  ;;  %v6356_v8 = vpack.c.bf16 %v9332_v60, %v9330_v23  ;;  %v9379_v23 = vld [vmem:[#allocation9 + $0x170] sm:$0xff] }
 0x72f   : > { %v7167_v0 = vpop.eup %7166  ;;  %v9381_v60 = vld [vmem:[#allocation9 + $0x1a8] sm:$0xff]  ;;  %7176 = vrsqrt.f32 %v2781_v39 }
 0x730   : > { %v7169_v52 = vpop.eup %7168  ;;  %v2811_v51 = vmul.f32 %v7167_v0, %v9165_v13  ;;  %v9335_v9 = vadd.f32 %v9311_v55, %v2850_v21  ;;  %v9338_v17 = vadd.f32 %v9314_v36, %v2849_v43  ;;  %v6418_v13 = vpack.c.bf16 %v2955_v28, %v2947_v37  ;;  %v9369_v43 = vld [vmem:[#allocation9 + $0x160] sm:$0xff]  ;;  %v2742_v45 = vpop.xlane.xlu0 %2741 }
 0x731   : > { %v2810_v31 = vmul.f32 %v7167_v0, %v9162_v12  ;;  %v2813_v3 = vmul.f32 %v7169_v52, %v9159_v50  ;;  %v9358_v21 = vadd.f32 %v9311_v55, %v2852_v11  ;;  %v6420_v50 = vpack.c.bf16 %v9342_v34, %v9340_v15 }
 0x732   : > { %10900 = vst [vmem:[#allocation35_spill] sm:$0xff] %v9335_v9  ;;  %10901 = vst [vmem:[#allocation36_spill] sm:$0xff] %v9338_v17  ;;  %3286 = vmatprep.mubr.f32.mxu0 %v9335_v9  ;;  %3447 = vmatprep.mubr.f32.mxu1 %v9335_v9  ;;  %v2854_v12 = vmul.f32 %v9296_v10, %v2811_v51  ;;  %v2767_v37 = vmul.f32 0.00390625, %v2739_v30  ;;  %v2782_v28 = vadd.f32 1e-05, %v2766_v16  ;;  %v9377_v51 = vld [vmem:[#allocation9 + $0x130] sm:$0xff] }
 0x733   : > { %10902 = vst [vmem:[#allocation37_spill] sm:$0xff] %v9358_v21  ;;  %v7171_v35 = vpop.eup %7170  ;;  %3287 = vmatmul.mubr.f32.vlgmr.msra.gmra.mrb[16].mxu0 %v9338_v17  ;;  %3448 = vmatmul.mubr.f32.vlgmr.msra.gmra.mrb[144].mxu1 %v9338_v17  ;;  %v6358_v0 = vpack.c.bf16 %v9348_v20, %v9344_v62  ;;  %v6422_v11 = vpack.c.bf16 %v9352_v18, %v9350_v53  ;;  %v9388_v62 = vld [vmem:[#allocation9 + $0x1e8] sm:$0xff]  ;;  %v9390_v30 = vld [vmem:[#allocation9 + $0x1b8] sm:$0xff] }
 0x734   : > { %3292 = vmatprep.mubr.f32.mxu0 %v9358_v21  ;;  %3453 = vmatprep.mubr.f32.mxu1 %v9358_v21  ;;  %v2812_v15 = vmul.f32 %v7169_v52, %v9156_v49  ;;  %v9385_v16 = vadd.f32 %v9314_v36, %v2851_v27  ;;  %v2853_v34 = vmul.f32 %v9299_v61, %v2810_v31  ;;  %v9392_v20 = vld [vmem:[#allocation9 + $0x1f8] sm:$0xff]  ;;  %v7173_v53 = vpop.eup %7172  ;;  %v9405_v31 = vld [vmem:[#allocation9 + $0x1a0] sm:$0xff]  ;;  %7178 = vrsqrt.f32 %v2782_v28  ;;  %v9415_v27 = vld [vmem:[#allocation9 + $0x1b0] sm:$0xff] }
 0x735   : > { %6353 = vmatpush1.bf16.msra.mxu0 %v6352_v59  ;;  %6417 = vmatpush1.bf16.msra.mxu1 %v6416_v46  ;;  %v2815_v18 = vmul.f32 %v7171_v35, %v9185_v47  ;;  %v9396_v49 = vadd.f32 %v9311_v55, %v2854_v12  ;;  %v2856_v52 = vmul.f32 %v9296_v10, %v2813_v3  ;;  %v9407_v47 = vld [vmem:[#allocation9 + $0x1e0] sm:$0xff]  ;;  %v9417_v3 = vld [vmem:[#allocation9 + $0x1f0] sm:$0xff]  ;;  %v9419_v12 = vld [vmem:[#allocation9 + $0x228] sm:$0xff] }
 0x736   : > { %10903 = vst [vmem:[#allocation38_spill] sm:$0xff] %v9385_v16  ;;  %6355 = vmatprep.subr.bf16.mxu0 %v6354_v33  ;;  %6419 = vmatprep.subr.bf16.mxu1 %v6418_v13  ;;  %v6360_v59 = vpack.c.bf16 %v9369_v43, %v9367_v48  ;;  %v6424_v46 = vpack.c.bf16 %v9379_v23, %v9377_v51  ;;  %v2783_v33 = vadd.f32 1e-05, %v2767_v37  ;;  %v2745_v43 = vpop.xlane.xlu1 %2744  ;;  %v2768_v37 = vmul.f32 0.00390625, %v2742_v45  ;;  %v9426_v23 = vld [vmem:[#allocation9 + $0x268] sm:$0xff] }
 0x737   : > { %10904 = vst [vmem:[#allocation39_spill] sm:$0xff] %v9396_v49  ;;  %3293 = vmatmul.mubr.f32.gmra.mrb[18].mxu0 %v9385_v16  ;;  %3454 = vmatmul.mubr.f32.gmra.mrb[146].mxu1 %v9385_v16  ;;  %v6362_v13 = vpack.c.bf16 %v9388_v62, %v9381_v60  ;;  %v6426_v39 = vpack.c.bf16 %v9392_v20, %v9390_v30  ;;  %v9428_v60 = vld [vmem:[#allocation9 + $0x238] sm:$0xff]  ;;  %v9453_v20 = vld [vmem:[#allocation9 + $0x230] sm:$0xff] }
 0x738   : > { %3298 = vmatprep.mubr.f32.mxu0 %v9396_v49  ;;  %3459 = vmatprep.mubr.f32.mxu1 %v9396_v49  ;;  %v2814_v48 = vmul.f32 %v7171_v35, %v9182_v57  ;;  %v9423_v28 = vadd.f32 %v9314_v36, %v2853_v34  ;;  %v2855_v51 = vmul.f32 %v9299_v61, %v2812_v15  ;;  %v9430_v62 = vld [vmem:[#allocation9 + $0x278] sm:$0xff]  ;;  %v7175_v35 = vpop.eup %7174  ;;  %v9443_v15 = vld [vmem:[#allocation9 + $0x220] sm:$0xff]  ;;  %7180 = vrsqrt.f32 %v2783_v33  ;;  %v2748_v33 = vpop.xlane.xlu0 %2747 }
 0x739   : > { %6357 = vmatpush1.bf16.msra.mxu0 %v6356_v8  ;;  %6421 = vmatpush1.bf16.msra.mxu1 %v6420_v50  ;;  %v2817_v30 = vmul.f32 %v7173_v53, %v9179_v6  ;;  %v9434_v57 = vadd.f32 %v9311_v55, %v2856_v52  ;;  %v2858_v45 = vmul.f32 %v9296_v10, %v2815_v18  ;;  %v9445_v6 = vld [vmem:[#allocation9 + $0x260] sm:$0xff]  ;;  %v9455_v18 = vld [vmem:[#allocation9 + $0x270] sm:$0xff]  ;;  %v9457_v52 = vld [vmem:[#allocation9 + $0x2a8] sm:$0xff] }
 0x73a   : > { %10905 = vst [vmem:[#allocation40_spill] sm:$0xff] %v9423_v28  ;;  %6359 = vmatprep.subr.bf16.mxu0 %v6358_v0  ;;  %6423 = vmatprep.subr.bf16.mxu1 %v6422_v11  ;;  %v6364_v8 = vpack.c.bf16 %v9407_v47, %v9405_v31  ;;  %v6428_v50 = vpack.c.bf16 %v9417_v3, %v9415_v27  ;;  %v2769_v0 = vmul.f32 0.00390625, %v2745_v43  ;;  %v2784_v47 = vadd.f32 1e-05, %v2768_v37  ;;  %v9466_v43 = vld [vmem:[#allocation9 + $0x2b8] sm:$0xff]  ;;  %v9481_v37 = vld [vmem:[#allocation9 + $0x2a0] sm:$0xff] }
 0x73b   : > { %10906 = vst [vmem:[#allocation41_spill] sm:$0xff] %v9434_v57  ;;  %3299 = vmatmul.mubr.f32.gmra.mrb[20].mxu0 %v9423_v28  ;;  %3460 = vmatmul.mubr.f32.gmra.mrb[148].mxu1 %v9423_v28  ;;  %v6366_v11 = vpack.c.bf16 %v9426_v23, %v9419_v12  ;;  %v6430_v34 = vpack.c.bf16 %v9430_v62, %v9428_v60  ;;  %v9464_v12 = vld [vmem:[#allocation9 + $0x2e8] sm:$0xff]  ;;  %v9468_v23 = vld [vmem:[#allocation9 + $0x2f8] sm:$0xff] }
 0x73c   : > { %3304 = vmatprep.mubr.f32.mxu0 %v9434_v57  ;;  %3465 = vmatprep.mubr.f32.mxu1 %v9434_v57  ;;  %v2816_v31 = vmul.f32 %v7173_v53, %v9176_v4  ;;  %v9461_v27 = vadd.f32 %v9314_v36, %v2855_v51  ;;  %v2857_v3 = vmul.f32 %v9299_v61, %v2814_v48  ;;  %7182 = vrsqrt.f32 %v2784_v47 }
 0x73d   : > { %6361 = vmatpush1.bf16.msra.mxu0 %v6360_v59  ;;  %6425 = vmatpush1.bf16.msra.mxu1 %v6424_v46  ;;  %v2819_v60 = vmul.f32 %v7175_v35, %v9205_v44  ;;  %v9472_v4 = vadd.f32 %v9311_v55, %v2858_v45  ;;  %v2860_v53 = vmul.f32 %v9296_v10, %v2817_v30  ;;  %v7177_v59 = vpop.eup %7176  ;;  %v9483_v44 = vld [vmem:[#allocation9 + $0x2e0] sm:$0xff]  ;;  %v9491_v30 = vld [vmem:[#allocation9 + $0x2b0] sm:$0xff] }
 0x73e   : > { %10907 = vst [vmem:[#allocation42_spill] sm:$0xff] %v9461_v27  ;;  %6363 = vmatprep.subr.bf16.mxu0 %v6362_v13  ;;  %6427 = vmatprep.subr.bf16.mxu1 %v6426_v39  ;;  %v6368_v46 = vpack.c.bf16 %v9445_v6, %v9443_v15  ;;  %v6432_v48 = vpack.c.bf16 %v9455_v18, %v9453_v20  ;;  %v2785_v13 = vadd.f32 1e-05, %v2769_v0  ;;  %v2770_v39 = vmul.f32 0.00390625, %v2748_v33  ;;  %v9493_v45 = vld [vmem:[#allocation9 + $0x2f0] sm:$0xff]  ;;  %v9495_v15 = vld [vmem:[#allocation9 + $0x328] sm:$0xff]  ;;  %v2751_v0 = vpop.xlane.xlu1 %2750 }
 0x73f   : > { %10908 = vst [vmem:[#allocation43_spill] sm:$0xff] %v9472_v4  ;;  %3305 = vmatmul.mubr.f32.gmra.mrb[22].mxu0 %v9461_v27  ;;  %3466 = vmatmul.mubr.f32.gmra.mrb[150].mxu1 %v9461_v27  ;;  %v6370_v51 = vpack.c.bf16 %v9464_v12, %v9457_v52  ;;  %v6434_v62 = vpack.c.bf16 %v9468_v23, %v9466_v43  ;;  %v9502_v52 = vld [vmem:[#allocation9 + $0x368] sm:$0xff]  ;;  %v9504_v33 = vld [vmem:[#allocation9 + $0x338] sm:$0xff]  ;;  %v7179_v43 = vpop.eup %7178 }
 0x740   : > { %3310 = vmatprep.mubr.f32.mxu0 %v9472_v4  ;;  %3471 = vmatprep.mubr.f32.mxu1 %v9472_v4  ;;  %v2818_v6 = vmul.f32 %v7175_v35, %v9202_v26  ;;  %v9499_v20 = vadd.f32 %v9314_v36, %v2857_v3  ;;  %v2859_v18 = vmul.f32 %v9299_v61, %v2816_v31  ;;  %v9506_v12 = vld [vmem:[#allocation9 + $0x378] sm:$0xff]  ;;  %v9519_v31 = vld [vmem:[#allocation9 + $0x320] sm:$0xff]  ;;  %7184 = vrsqrt.f32 %v2785_v13 }
 0x741   : > { %6365 = vmatpush1.bf16.msra.mxu0 %v6364_v8  ;;  %6429 = vmatpush1.bf16.msra.mxu1 %v6428_v50  ;;  %v2821_v23 = vmul.f32 %v7177_v59, %v9199_v2  ;;  %v9510_v26 = vadd.f32 %v9311_v55, %v2860_v53  ;;  %v2862_v35 = vmul.f32 %v9296_v10, %v2819_v60  ;;  %v9521_v2 = vld [vmem:[#allocation9 + $0x360] sm:$0xff]  ;;  %v9529_v60 = vld [vmem:[#allocation9 + $0x330] sm:$0xff] }
 0x742   : > { %10909 = vst [vmem:[#allocation44_spill] sm:$0xff] %v9499_v20  ;;  %6367 = vmatprep.subr.bf16.mxu0 %v6366_v11  ;;  %6431 = vmatprep.subr.bf16.mxu1 %v6430_v34  ;;  %v6372_v8 = vpack.c.bf16 %v9483_v44, %v9481_v37  ;;  %v6436_v50 = vpack.c.bf16 %v9493_v45, %v9491_v30  ;;  %v2771_v11 = vmul.f32 0.00390625, %v2751_v0  ;;  %v2786_v34 = vadd.f32 1e-05, %v2770_v39  ;;  %v9531_v53 = vld [vmem:[#allocation9 + $0x370] sm:$0xff]  ;;  %v9533_v37 = vld [vmem:[#allocation9 + $0x3a8] sm:$0xff] }
 0x743   : > { %10910 = vst [vmem:[#allocation45_spill] sm:$0xff] %v9510_v26  ;;  %3311 = vmatmul.mubr.f32.gmra.mrb[24].mxu0 %v9499_v20  ;;  %3472 = vmatmul.mubr.f32.gmra.mrb[152].mxu1 %v9499_v20  ;;  %v6374_v47 = vpack.c.bf16 %v9502_v52, %v9495_v15  ;;  %v6438_v3 = vpack.c.bf16 %v9506_v12, %v9504_v33  ;;  %v9540_v45 = vld [vmem:[#allocation9 + $0x3e8] sm:$0xff]  ;;  %v9542_v15 = vld [vmem:[#allocation9 + $0x3b8] sm:$0xff]  ;;  %v7181_v52 = vpop.eup %7180  ;;  %v2754_v12 = vpop.xlane.xlu0 %2753  ;;  %v9557_v13 = vld [vmem:[#allocation9 + $0x3a0] sm:$0xff] }
 0x744   : > { %3316 = vmatprep.mubr.f32.mxu0 %v9510_v26  ;;  %3477 = vmatprep.mubr.f32.mxu1 %v9510_v26  ;;  %v2820_v44 = vmul.f32 %v7177_v59, %v9196_v56  ;;  %v9537_v39 = vadd.f32 %v9314_v36, %v2859_v18  ;;  %v2861_v30 = vmul.f32 %v9299_v61, %v2818_v6  ;;  %v9544_v0 = vld [vmem:[#allocation9 + $0x3f8] sm:$0xff]  ;;  %7186 = vrsqrt.f32 %v2786_v34  ;;  %v9567_v18 = vld [vmem:[#allocation9 + $0x3b0] sm:$0xff] }
 0x745   : > { %6369 = vmatpush1.bf16.msra.mxu0 %v6368_v46  ;;  %6433 = vmatpush1.bf16.msra.mxu1 %v6432_v48  ;;  %v2823_v33 = vmul.f32 %v7179_v43, %v9225_v22  ;;  %v9548_v56 = vadd.f32 %v9311_v55, %v2862_v35  ;;  %v2864_v59 = vmul.f32 %v9296_v10, %v2821_v23  ;;  %v9559_v22 = vld [vmem:[#allocation9 + $0x3e0] sm:$0xff]  ;;  %v9569_v23 = vld [vmem:[#allocation9 + $0x3f0] sm:$0xff]  ;;  %v9571_v35 = vld [vmem:[#allocation9 + $0x428] sm:$0xff] }
 0x746   : > { %10911 = vst [vmem:[#allocation46_spill] sm:$0xff] %v9537_v39  ;;  %6371 = vmatprep.subr.bf16.mxu0 %v6370_v51  ;;  %6435 = vmatprep.subr.bf16.mxu1 %v6434_v62  ;;  %v6376_v46 = vpack.c.bf16 %v9521_v2, %v9519_v31  ;;  %v6440_v48 = vpack.c.bf16 %v9531_v53, %v9529_v60  ;;  %v2787_v51 = vadd.f32 1e-05, %v2771_v11  ;;  %v2757_v2 = vpop.xlane.xlu1 %2756  ;;  %v2772_v11 = vmul.f32 0.00390625, %v2754_v12  ;;  %v9578_v53 = vld [vmem:[#allocation9 + $0x468] sm:$0xff]  ;;  %v3066_v12 = vld [vmem:[#allocation9 + $0x470] sm:$0xff] }
 0x747   : > { %10912 = vst [vmem:[#allocation47_spill] sm:$0xff] %v9548_v56  ;;  %3317 = vmatmul.mubr.f32.gmra.mrb[26].mxu0 %v9537_v39  ;;  %3478 = vmatmul.mubr.f32.gmra.mrb[154].mxu1 %v9537_v39  ;;  %v6378_v62 = vpack.c.bf16 %v9540_v45, %v9533_v37  ;;  %v6442_v6 = vpack.c.bf16 %v9544_v0, %v9542_v15  ;;  %v9580_v37 = vld [vmem:[#allocation9 + $0x438] sm:$0xff] }
 0x748   : > { %3322 = vmatprep.mubr.f32.mxu0 %v9548_v56  ;;  %3483 = vmatprep.mubr.f32.mxu1 %v9548_v56  ;;  %v2822_v31 = vmul.f32 %v7179_v43, %v9222_v41  ;;  %v9575_v34 = vadd.f32 %v9314_v36, %v2861_v30  ;;  %v2863_v60 = vmul.f32 %v9299_v61, %v2820_v44  ;;  %v9582_v45 = vld [vmem:[#allocation9 + $0x478] sm:$0xff]  ;;  %v9595_v30 = vld [vmem:[#allocation9 + $0x420] sm:$0xff]  ;;  %7188 = vrsqrt.f32 %v2787_v51 }
 0x749   : > { %6373 = vmatpush1.bf16.msra.mxu0 %v6372_v8  ;;  %6437 = vmatpush1.bf16.msra.mxu1 %v6436_v50  ;;  %v2825_v15 = vmul.f32 %v7181_v52, %v9219_v19  ;;  %v9586_v41 = vadd.f32 %v9311_v55, %v2864_v59  ;;  %v2866_v43 = vmul.f32 %v9296_v10, %v2823_v33  ;;  %v7183_v8 = vpop.eup %7182  ;;  %v9597_v19 = vld [vmem:[#allocation9 + $0x460] sm:$0xff]  ;;  %v9605_v33 = vld [vmem:[#allocation9 + $0x430] sm:$0xff]  ;;  %v9607_v59 = vld [vmem:[#allocation9 + $0x4a8] sm:$0xff] }
 0x74a   : > { %10913 = vst [vmem:[#allocation48_spill] sm:$0xff] %v9575_v34  ;;  %6375 = vmatprep.subr.bf16.mxu0 %v6374_v47  ;;  %6439 = vmatprep.subr.bf16.mxu1 %v6438_v3  ;;  %v6380_v50 = vpack.c.bf16 %v9559_v22, %v9557_v13  ;;  %v6444_v44 = vpack.c.bf16 %v9569_v23, %v9567_v18  ;;  %v2773_v47 = vmul.f32 0.00390625, %v2757_v2  ;;  %v2788_v22 = vadd.f32 1e-05, %v2772_v11  ;;  %v3081_v23 = vld [vmem:[#allocation9 + $0x4e8] sm:$0xff]  ;;  %v3083_v2 = vld [vmem:[#allocation9 + $0x4f8] sm:$0xff] }
 0x74b   : > { %10914 = vst [vmem:[#allocation49_spill] sm:$0xff] %v9586_v41  ;;  %3323 = vmatmul.mubr.f32.gmra.mrb[28].mxu0 %v9575_v34  ;;  %3484 = vmatmul.mubr.f32.gmra.mrb[156].mxu1 %v9575_v34  ;;  %v6382_v3 = vpack.c.bf16 %v9578_v53, %v9571_v35  ;;  %v6446_v0 = vpack.c.bf16 %v9582_v45, %v9580_v37  ;;  %v3075_v35 = vld [vmem:[#allocation9 + $0x4b8] sm:$0xff]  ;;  %v3082_v45 = vld [vmem:[#allocation9 + $0x4f0] sm:$0xff] }
 0x74c   : > { %3328 = vmatprep.mubr.f32.mxu0 %v9586_v41  ;;  %3489 = vmatprep.mubr.f32.mxu1 %v9586_v41  ;;  %v2824_v13 = vmul.f32 %v7181_v52, %v9216_v38  ;;  %v9611_v51 = vadd.f32 %v9314_v36, %v2863_v60  ;;  %v2865_v18 = vmul.f32 %v9299_v61, %v2822_v31  ;;  %v7185_v52 = vpop.eup %7184  ;;  %v9625_v31 = vld [vmem:[#allocation9 + $0x4e0] sm:$0xff]  ;;  %v3074_v60 = vld [vmem:[#allocation9 + $0x4b0] sm:$0xff]  ;;  %7190 = vrsqrt.f32 %v2788_v22 }
 0x74d   : > { %6377 = vmatpush1.bf16.msra.mxu0 %v6376_v46  ;;  %6441 = vmatpush1.bf16.msra.mxu1 %v6440_v48  ;;  %v2827_v53 = vmul.f32 %v7183_v8, %v9245_v24  ;;  %v9616_v37 = vadd.f32 %v9311_v55, %v2866_v43  ;;  %v2868_v38 = vmul.f32 %v9296_v10, %v2825_v15  ;;  %v9623_v48 = vld [vmem:[#allocation9 + $0x4a0] sm:$0xff]  ;;  %v2789_v24 = vadd.f32 1e-05, %v2773_v47  ;;  %v9631_v15 = vld [vmem:[#allocation9 + $0x528] sm:$0xff]  ;;  %v3098_v22 = vld [vmem:[#allocation9 + $0x570] sm:$0xff] }
 0x74e   : > { %10915 = vst [vmem:[#allocation50_spill] sm:$0xff] %v9611_v51  ;;  %6379 = vmatprep.subr.bf16.mxu0 %v6378_v62  ;;  %6443 = vmatprep.subr.bf16.mxu1 %v6442_v6  ;;  %v6384_v46 = vpack.c.bf16 %v9597_v19, %v9595_v30  ;;  %v6448_v62 = vpack.c.bf16 %v3066_v12, %v9605_v33  ;;  %v3097_v47 = vld [vmem:[#allocation9 + $0x568] sm:$0xff]  ;;  %v3099_v33 = vld [vmem:[#allocation9 + $0x578] sm:$0xff]  ;;  %v7187_v12 = vpop.eup %7186 }
 0x74f   : > { %10916 = vst [vmem:[#allocation51_spill] sm:$0xff] %v9616_v37  ;;  %3329 = vmatmul.mubr.f32.gmra.mrb[30].mxu0 %v9611_v51  ;;  %3490 = vmatmul.mubr.f32.gmra.mrb[158].mxu1 %v9611_v51  ;;  %v6386_v6 = vpack.c.bf16 %v3081_v23, %v9607_v59  ;;  %v6450_v11 = vpack.c.bf16 %v3083_v2, %v3075_v35  ;;  %7192 = vrsqrt.f32 %v2789_v24  ;;  %v3112_v24 = vld [vmem:[#allocation9 + $0x5e0] sm:$0xff] }
 0x750   : > { %3334 = vmatprep.mubr.f32.mxu0 %v9616_v37  ;;  %3495 = vmatprep.mubr.f32.mxu1 %v9616_v37  ;;  %v2826_v43 = vmul.f32 %v7183_v8, %v9242_v7  ;;  %v9635_v30 = vadd.f32 %v9314_v36, %v2865_v18  ;;  %v2867_v19 = vmul.f32 %v9299_v61, %v2824_v13  ;;  %v3090_v13 = vld [vmem:[#allocation9 + $0x530] sm:$0xff]  ;;  %v9654_v18 = vld [vmem:[#allocation9 + $0x5a8] sm:$0xff] }
 0x751   : > { %6381 = vmatpush1.bf16.msra.mxu0 %v6380_v50  ;;  %6445 = vmatpush1.bf16.msra.mxu1 %v6444_v44  ;;  %v2829_v59 = vmul.f32 %v7185_v52, %v9239_v14  ;;  %v9640_v23 = vadd.f32 %v9311_v55, %v2868_v38  ;;  %v2870_v7 = vmul.f32 %v9296_v10, %v2827_v53  ;;  %v9647_v50 = vld [vmem:[#allocation9 + $0x520] sm:$0xff]  ;;  %v3113_v38 = vld [vmem:[#allocation9 + $0x5e8] sm:$0xff] }
 0x752   : > { %10917 = vst [vmem:[#allocation52_spill] sm:$0xff] %v9635_v30  ;;  %6383 = vmatprep.subr.bf16.mxu0 %v6382_v3  ;;  %6447 = vmatprep.subr.bf16.mxu1 %v6446_v0  ;;  %v6388_v8 = vpack.c.bf16 %v9625_v31, %v9623_v48  ;;  %v9649_v44 = vld [vmem:[#allocation9 + $0x560] sm:$0xff]  ;;  %v6452_v14 = vpack.c.bf16 %v3082_v45, %v3074_v60  ;;  %v3107_v48 = vld [vmem:[#allocation9 + $0x5b8] sm:$0xff]  ;;  %v7189_v60 = vpop.eup %7188 }
 0x753   : > { %10918 = vst [vmem:[#allocation53_spill] sm:$0xff] %v9640_v23  ;;  %3335 = vmatmul.mubr.f32.gmra.mrb[32].mxu0 %v9635_v30  ;;  %3496 = vmatmul.mubr.f32.gmra.mrb[160].mxu1 %v9635_v30  ;;  %v6390_v3 = vpack.c.bf16 %v3097_v47, %v9631_v15  ;;  %v6454_v0 = vpack.c.bf16 %v3099_v33, %v3091_v5  ;;  %v3115_v31 = vld [vmem:[#allocation9 + $0x5f8] sm:$0xff]  ;;  %v3114_v15 = vld [vmem:[#allocation9 + $0x5f0] sm:$0xff] }
 0x754   : > { %3340 = vmatprep.mubr.f32.mxu0 %v9640_v23  ;;  %3501 = vmatprep.mubr.f32.mxu1 %v9640_v23  ;;  %v2828_v35 = vmul.f32 %v7185_v52, %v9236_v29  ;;  %v9658_v2 = vadd.f32 %v9314_v36, %v2867_v19  ;;  %v2869_v53 = vmul.f32 %v9299_v61, %v2826_v43  ;;  %v3121_v43 = vld [vmem:[#allocation9 + $0x628] sm:$0xff] }
 0x755   : > { %6385 = vmatpush1.bf16.msra.mxu0 %v6384_v46  ;;  %6449 = vmatpush1.bf16.msra.mxu1 %v6448_v62  ;;  %v2831_v5 = vmul.f32 %v7187_v12, %v9265_v58  ;;  %v9663_v45 = vadd.f32 %v9311_v55, %v2870_v7  ;;  %v2872_v29 = vmul.f32 %v9296_v10, %v2829_v59  ;;  %v9670_v46 = vld [vmem:[#allocation9 + $0x5a0] sm:$0xff]  ;;  %v3129_v59 = vld [vmem:[#allocation9 + $0x668] sm:$0xff]  ;;  %v3123_v7 = vld [vmem:[#allocation9 + $0x638] sm:$0xff] }
 0x756   : > { %10919 = vst [vmem:[#allocation54_spill] sm:$0xff] %v9658_v2  ;;  %6387 = vmatprep.subr.bf16.mxu0 %v6386_v6  ;;  %6451 = vmatprep.subr.bf16.mxu1 %v6450_v11  ;;  %v6392_v52 = vpack.c.bf16 %v9649_v44, %v9647_v50  ;;  %v6456_v58 = vpack.c.bf16 %v3098_v22, %v3090_v13  ;;  %v3106_v11 = vld [vmem:[#allocation9 + $0x5b0] sm:$0xff]  ;;  %v3131_v50 = vld [vmem:[#allocation9 + $0x678] sm:$0xff] }
 0x757   : > { %10920 = vst [vmem:[#allocation55_spill] sm:$0xff] %v9663_v45  ;;  %3341 = vmatmul.mubr.f32.gmra.mrb[34].mxu0 %v9658_v2  ;;  %3502 = vmatmul.mubr.f32.gmra.mrb[162].mxu1 %v9658_v2  ;;  %v6394_v62 = vpack.c.bf16 %v3113_v38, %v9654_v18  ;;  %v6458_v6 = vpack.c.bf16 %v3115_v31, %v3107_v48  ;;  %v3122_v18 = vld [vmem:[#allocation9 + $0x630] sm:$0xff] }
 0x758   : > { %3346 = vmatprep.mubr.f32.mxu0 %v9663_v45  ;;  %3507 = vmatprep.mubr.f32.mxu1 %v9663_v45  ;;  %v2830_v19 = vmul.f32 %v7187_v12, %v9262_v32  ;;  %v9677_v47 = vadd.f32 %v9314_v36, %v2869_v53  ;;  %v2871_v33 = vmul.f32 %v9299_v61, %v2828_v35  ;;  %v7191_v32 = vpop.eup %7190  ;;  %v3130_v35 = vld [vmem:[#allocation9 + $0x670] sm:$0xff]  ;;  %v3137_v53 = vld [vmem:[#allocation9 + $0x6a8] sm:$0xff] }
 0x759   : > { %6389 = vmatpush1.bf16.msra.mxu0 %v6388_v8  ;;  %6453 = vmatpush1.bf16.msra.mxu1 %v6452_v14  ;;  %v2833_v44 = vmul.f32 %v7189_v60, %v9259_v1  ;;  %v9682_v13 = vadd.f32 %v9311_v55, %v2872_v29  ;;  %v2874_v22 = vmul.f32 %v9296_v10, %v2831_v5  ;;  %v3120_v8 = vld [vmem:[#allocation9 + $0x620] sm:$0xff]  ;;  %v3145_v5 = vld [vmem:[#allocation9 + $0x6e8] sm:$0xff]  ;;  %v3139_v29 = vld [vmem:[#allocation9 + $0x6b8] sm:$0xff] }
 0x75a   : > { %10921 = vst [vmem:[#allocation56_spill] sm:$0xff] %v9677_v47  ;;  %6391 = vmatprep.subr.bf16.mxu0 %v6390_v3  ;;  %6455 = vmatprep.subr.bf16.mxu1 %v6454_v0  ;;  %v6396_v12 = vpack.c.bf16 %v3112_v24, %v9670_v46  ;;  %v3128_v14 = vld [vmem:[#allocation9 + $0x660] sm:$0xff]  ;;  %v6460_v1 = vpack.c.bf16 %v3114_v15, %v3106_v11  ;;  %v3147_v46 = vld [vmem:[#allocation9 + $0x6f8] sm:$0xff] }
 0x75b   : > { %10922 = vst [vmem:[#allocation57_spill] sm:$0xff] %v9682_v13  ;;  %3347 = vmatmul.mubr.f32.gmra.mrb[36].mxu0 %v9677_v47  ;;  %3508 = vmatmul.mubr.f32.gmra.mrb[164].mxu1 %v9677_v47  ;;  %v6398_v3 = vpack.c.bf16 %v3129_v59, %v3121_v43  ;;  %v6462_v0 = vpack.c.bf16 %v3131_v50, %v3123_v7  ;;  %v3138_v43 = vld [vmem:[#allocation9 + $0x6b0] sm:$0xff]  ;;  %v3153_v50 = vld [vmem:[#allocation9 + $0x728] sm:$0xff] }
 0x75c   : > { %3352 = vmatprep.mubr.f32.mxu0 %v9682_v13  ;;  %3513 = vmatprep.mubr.f32.mxu1 %v9682_v13  ;;  %v2832_v38 = vmul.f32 %v7189_v60, %v9256_v63  ;;  %v9692_v48 = vadd.f32 %v9314_v36, %v2871_v33  ;;  %v2873_v31 = vmul.f32 %v9299_v61, %v2830_v19  ;;  %v7193_v63 = vpop.eup %7192  ;;  %v3146_v7 = vld [vmem:[#allocation9 + $0x6f0] sm:$0xff] }
 0x75d   : > { %6393 = vmatpush1.bf16.msra.mxu0 %v6392_v52  ;;  %6457 = vmatpush1.bf16.msra.mxu1 %v6456_v58  ;;  %v2835_v24 = vmul.f32 %v7191_v32, %v9285_v25  ;;  %v9697_v11 = vadd.f32 %v9311_v55, %v2874_v22  ;;  %v2876_v15 = vmul.f32 %v9296_v10, %v2833_v44  ;;  %v3161_v44 = vld [vmem:[#allocation9 + $0x768] sm:$0xff] }
 0x75e   : > { %10923 = vst [vmem:[#allocation58_spill] sm:$0xff] %v9692_v48  ;;  %6395 = vmatprep.subr.bf16.mxu0 %v6394_v62  ;;  %6459 = vmatprep.subr.bf16.mxu1 %v6458_v6  ;;  %v6400_v60 = vpack.c.bf16 %v3128_v14, %v3120_v8  ;;  %v6464_v52 = vpack.c.bf16 %v3130_v35, %v3122_v18  ;;  %v3136_v62 = vld [vmem:[#allocation9 + $0x6a0] sm:$0xff] }
 0x75f   : > { %10924 = vst [vmem:[#allocation59_spill] sm:$0xff] %v9697_v11  ;;  %3353 = vmatmul.mubr.f32.gmra.mrb[38].mxu0 %v9692_v48  ;;  %3514 = vmatmul.mubr.f32.gmra.mrb[166].mxu1 %v9692_v48  ;;  %v6402_v58 = vpack.c.bf16 %v3145_v5, %v3137_v53  ;;  %v6466_v25 = vpack.c.bf16 %v3147_v46, %v3139_v29  ;;  %v3144_v6 = vld [vmem:[#allocation9 + $0x6e0] sm:$0xff]  ;;  %v3154_v29 = vld [vmem:[#allocation9 + $0x730] sm:$0xff] }
 0x760   : > { %3358 = vmatprep.mubr.f32.mxu0 %v9697_v11  ;;  %3519 = vmatprep.mubr.f32.mxu1 %v9697_v11  ;;  %v2834_v19 = vmul.f32 %v7191_v32, %v9282_v54  ;;  %v9706_v33 = vadd.f32 %v9314_v36, %v2873_v31  ;;  %v2875_v59 = vmul.f32 %v9299_v61, %v2832_v38  ;;  %v3155_v54 = vld [vmem:[#allocation9 + $0x738] sm:$0xff]  ;;  %v3152_v35 = vld [vmem:[#allocation9 + $0x720] sm:$0xff]  ;;  %v3162_v46 = vld [vmem:[#allocation9 + $0x770] sm:$0xff] }
 0x761   : > { %6397 = vmatpush1.bf16.msra.mxu0 %v6396_v12  ;;  %6461 = vmatpush1.bf16.msra.mxu1 %v6460_v1  ;;  %v2837_v22 = vmul.f32 %v7193_v63, %v9279_v40  ;;  %v9711_v8 = vadd.f32 %v9311_v55, %v2876_v15  ;;  %v2878_v14 = vmul.f32 %v9296_v10, %v2835_v24  ;;  %v3163_v32 = vld [vmem:[#allocation9 + $0x778] sm:$0xff]  ;;  %v3160_v53 = vld [vmem:[#allocation9 + $0x760] sm:$0xff]  ;;  %v3177_v24 = vld [vmem:[#allocation9 + $0x7e8] sm:$0xff] }
 0x762   : > { %10925 = vst [vmem:[#allocation60_spill] sm:$0xff] %v9706_v33  ;;  %6399 = vmatprep.subr.bf16.mxu0 %v6398_v3  ;;  %6463 = vmatprep.subr.bf16.mxu1 %v6462_v0  ;;  %v6404_v12 = vpack.c.bf16 %v3144_v6, %v3136_v62  ;;  %v6468_v1 = vpack.c.bf16 %v3146_v7, %v3138_v43  ;;  %v3171_v15 = vld [vmem:[#allocation9 + $0x7b8] sm:$0xff]  ;;  %v3178_v7 = vld [vmem:[#allocation9 + $0x7f0] sm:$0xff] }
 0x763   : > { %10926 = vst [vmem:[#allocation61_spill] sm:$0xff] %v9711_v8  ;;  %3359 = vmatmul.mubr.f32.gmra.mrb[40].mxu0 %v9706_v33  ;;  %3520 = vmatmul.mubr.f32.gmra.mrb[168].mxu1 %v9706_v33  ;;  %v6406_v40 = vpack.c.bf16 %v3161_v44, %v3153_v50  ;;  %v2836_v3 = vmul.f32 %v7193_v63, %v9276_v42  ;;  %v3169_v42 = vld [vmem:[#allocation9 + $0x7a8] sm:$0xff]  ;;  %v3179_v63 = vld [vmem:[#allocation9 + $0x7f8] sm:$0xff]  ;;  %v3995_v50 = vld [vmem:[#allocation12 + $0x8] sm:$0xff] }
 0x764   : > { %3364 = vmatprep.mubr.f32.mxu0 %v9711_v8  ;;  %3525 = vmatprep.mubr.f32.mxu1 %v9711_v8  ;;  %v9720_v0 = vadd.f32 %v9314_v36, %v2875_v59  ;;  %v2877_v18 = vmul.f32 %v9299_v61, %v2834_v19  ;;  %v9724_v38 = vadd.f32 %v9311_v55, %v2878_v14  ;;  %v3176_v19 = vld [vmem:[#allocation9 + $0x7e0] sm:$0xff]  ;;  %v3170_v59 = vld [vmem:[#allocation9 + $0x7b0] sm:$0xff] }
 0x765   : > { %6401 = vmatpush1.bf16.msra.mxu0 %v6400_v60  ;;  %6465 = vmatpush1.bf16.msra.mxu1 %v6464_v52  ;;  %v6470_v31 = vpack.c.bf16 %v3163_v32, %v3155_v54  ;;  %v2880_v5 = vmul.f32 %v9296_v10, %v2837_v22  ;;  %v6408_v60 = vpack.c.bf16 %v3160_v53, %v3152_v35  ;;  %v3997_v44 = vld [vmem:[#allocation12 + $0x18] sm:$0xff]  ;;  %v3994_v54 = vld [vmem:[#allocation12] sm:$0xff]  ;;  %v3996_v32 = vld [vmem:[#allocation12 + $0x10] sm:$0xff] }
 0x766   : > { %10927 = vst [vmem:[#allocation62_spill] sm:$0xff] %v9720_v0  ;;  %6403 = vmatprep.subr.bf16.mxu0 %v6402_v58  ;;  %6467 = vmatprep.subr.bf16.mxu1 %v6466_v25  ;;  %10928 = vst [vmem:[#allocation63_spill] sm:$0xff] %v9724_v38  ;;  %v9732_v52 = vadd.f32 %v9314_v36, %v2877_v18  ;;  %v6472_v10 = vpack.c.bf16 %v3162_v46, %v3154_v29  ;;  %v3168_v25 = vld [vmem:[#allocation9 + $0x7a0] sm:$0xff]  ;;  %v4000_v18 = vld [vmem:[#allocation12 + $0x30] sm:$0xff] }
 0x767   : > { %3365 = vmatmul.mubr.f32.gmra.mrb[42].mxu0 %v9720_v0  ;;  %3526 = vmatmul.mubr.f32.gmra.mrb[170].mxu1 %v9720_v0  ;;  %v2879_v58 = vmul.f32 %v9299_v61, %v2836_v3  ;;  %v9736_v62 = vadd.f32 %v9311_v55, %v2880_v5  ;;  %v6410_v6 = vpack.c.bf16 %v3177_v24, %v3169_v42  ;;  %v3998_v3 = vld [vmem:[#allocation12 + $0x20] sm:$0xff]  ;;  %v4003_v35 = vld [vmem:[#allocation12 + $0x48] sm:$0xff]  ;;  %v4005_v53 = vld [vmem:[#allocation12 + $0x58] sm:$0xff] }
 0x768   : > { %3370 = vmatprep.mubr.f32.mxu0 %v9724_v38  ;;  %3531 = vmatprep.mubr.f32.mxu1 %v9724_v38  ;;  %10929 = vst [vmem:[#allocation64_spill] sm:$0xff] %v9732_v52  ;;  %v6474_v43 = vpack.c.bf16 %v3179_v63, %v3171_v15  ;;  %v6412_v55 = vpack.c.bf16 %v3176_v19, %v3168_v25  ;;  %v4002_v29 = vld [vmem:[#allocation12 + $0x40] sm:$0xff]  ;;  %v4004_v46 = vld [vmem:[#allocation12 + $0x50] sm:$0xff]  ;;  %v4007_v42 = vld [vmem:[#allocation12 + $0x68] sm:$0xff] }
 0x769   : > { %6405 = vmatpush1.bf16.msra.mxu0 %v6404_v12  ;;  %6469 = vmatpush1.bf16.msra.mxu1 %v6468_v1  ;;  %10930 = vst [vmem:[#allocation65_spill] sm:$0xff] %v9736_v62  ;;  %v9743_v61 = vadd.f32 %v9314_v36, %v2879_v58  ;;  %v6476_v22 = vpack.c.bf16 %v3178_v7, %v3170_v59  ;;  %v3999_v12 = vld [vmem:[#allocation12 + $0x28] sm:$0xff]  ;;  %v4001_v1 = vld [vmem:[#allocation12 + $0x38] sm:$0xff]  ;;  %v4010_v19 = vld [vmem:[#allocation12 + $0x80] sm:$0xff] }
 0x76a   : > { %6407 = vmatprep.subr.bf16.mxu0 %v6406_v40  ;;  %6471 = vmatprep.subr.bf16.mxu1 %v6470_v31  ;;  %v6478_v14 = vpack.c.bf16 %v3997_v44, %v3995_v50  ;;  %v6480_v36 = vpack.c.bf16 %v3996_v32, %v3994_v54  ;;  %v6482_v40 = vpack.c.bf16 %v4001_v1, %v3999_v12  ;;  %v4009_v24 = vld [vmem:[#allocation12 + $0x78] sm:$0xff]  ;;  %v4011_v58 = vld [vmem:[#allocation12 + $0x88] sm:$0xff]  ;;  %v4012_v59 = vld [vmem:[#allocation12 + $0x90] sm:$0xff] }
 0x76b   : > { %3371 = vmatmul.mubr.f32.gmra.mrb[44].mxu0 %v9732_v52  ;;  %3532 = vmatmul.mubr.f32.gmra.mrb[172].mxu1 %v9732_v52  ;;  %10931 = vst [vmem:[#allocation66_spill] sm:$0xff] %v9743_v61  ;;  %v6484_v31 = vpack.c.bf16 %v4000_v18, %v3998_v3  ;;  %v6486_v5 = vpack.c.bf16 %v4005_v53, %v4003_v35  ;;  %v4013_v25 = vld [vmem:[#allocation12 + $0x98] sm:$0xff]  ;;  %v4015_v7 = vld [vmem:[#allocation12 + $0xa8] sm:$0xff] }
 0x76c   : > { %3376 = vmatprep.mubr.f32.mxu0 %v9736_v62  ;;  %3537 = vmatprep.mubr.f32.mxu1 %v9736_v62  ;;  %v6488_v15 = vpack.c.bf16 %v4004_v46, %v4002_v29  ;;  %v6490_v63 = vpack.c.bf16 %v4009_v24, %v4007_v42  ;;  %v4017_v50 = vld [vmem:[#allocation12 + $0xb8] sm:$0xff]  ;;  %v6496_v44 = vpack.c.bf16 %v4012_v59, %v4010_v19  ;;  %v4019_v54 = vld [vmem:[#allocation12 + $0xc8] sm:$0xff] }
 0x76d   : > { %6409 = vmatpush1.bf16.msra.mxu0 %v6408_v60  ;;  %6473 = vmatpush1.bf16.msra.mxu1 %v6472_v10  ;;  %v4006_v60 = vld [vmem:[#allocation12 + $0x60] sm:$0xff]  ;;  %v4008_v10 = vld [vmem:[#allocation12 + $0x70] sm:$0xff]  ;;  %v4021_v32 = vld [vmem:[#allocation12 + $0xd8] sm:$0xff] }
 0x76e   : > { %6411 = vmatprep.subr.bf16.mxu0 %v6410_v6  ;;  %6475 = vmatprep.subr.bf16.mxu1 %v6474_v43  ;;  %v6492_v6 = vpack.c.bf16 %v4008_v10, %v4006_v60  ;;  %v6494_v43 = vpack.c.bf16 %v4013_v25, %v4011_v58  ;;  %v6502_v1 = vpack.c.bf16 %v4021_v32, %v4019_v54  ;;  %v4023_v3 = vld [vmem:[#allocation12 + $0xe8] sm:$0xff]  ;;  %v4025_v18 = vld [vmem:[#allocation12 + $0xf8] sm:$0xff] }
 0x76f   : > { %3377 = vmatmul.mubr.f32.gmra.mrb[46].mxu0 %v9743_v61  ;;  %3538 = vmatmul.mubr.f32.gmra.mrb[174].mxu1 %v9743_v61  ;;  %v6506_v53 = vpack.c.bf16 %v4025_v18, %v4023_v3  ;;  %v4027_v29 = vld [vmem:[#allocation12 + $0x108] sm:$0xff]  ;;  %v4029_v46 = vld [vmem:[#allocation12 + $0x118] sm:$0xff] }
 0x770   : > { %3608 = vmatprep.mubr.f32.mxu0 %v9335_v9  ;;  %3769 = vmatprep.mubr.f32.mxu1 %v9335_v9  ;;  %v6510_v24 = vpack.c.bf16 %v4029_v46, %v4027_v29  ;;  %v4031_v60 = vld [vmem:[#allocation12 + $0x128] sm:$0xff]  ;;  %v4033_v10 = vld [vmem:[#allocation12 + $0x138] sm:$0xff] }
 0x771   : > { %6413 = vmatpush1.bf16.msra.mxu0 %v6412_v55  ;;  %6477 = vmatpush1.bf16.msra.mxu1 %v6476_v22  ;;  %v6498_v55 = vpack.c.bf16 %v4017_v50, %v4015_v7  ;;  %v4014_v22 = vld [vmem:[#allocation12 + $0xa0] sm:$0xff]  ;;  %v6514_v25 = vpack.c.bf16 %v4033_v10, %v4031_v60  ;;  %v4035_v19 = vld [vmem:[#allocation12 + $0x148] sm:$0xff]  ;;  %v4037_v59 = vld [vmem:[#allocation12 + $0x158] sm:$0xff] }
 0x772   : > { %6479 = vmatprep.subr.bf16.mxu0 %v6478_v14  ;;  %v4016_v14 = vld [vmem:[#allocation12 + $0xb0] sm:$0xff]  ;;  %v6518_v50 = vpack.c.bf16 %v4037_v59, %v4035_v19 }
 0x773   : > { %v6500_v12 = vpack.c.bf16 %v4016_v14, %v4014_v22  ;;  %v4039_v22 = vld [vmem:[#allocation12 + $0x168] sm:$0xff]  ;;  %v4041_v14 = vld [vmem:[#allocation12 + $0x178] sm:$0xff] }
 0x774   : > { %3609 = vmatmul.mubr.f32.vlgmr.msra.gmra.mrb[48].mxu0 %v9338_v17  ;;  %3770 = vmatmul.mubr.f32.vlgmr.msra.gmra.mrb[176].mxu1 %v9338_v17  ;;  %v6522_v32 = vpack.c.bf16 %v4041_v14, %v4039_v22 }
 0x775   : > { %3614 = vmatprep.mubr.f32.mxu0 %v9358_v21  ;;  %3775 = vmatprep.mubr.f32.mxu1 %v9358_v21 }
 0x776   : > { %6481 = vmatpush1.bf16.msra.mxu0 %v6480_v36  ;;  %v4018_v36 = vld [vmem:[#allocation12 + $0xc0] sm:$0xff] }
 0x777   : > { %6483 = vmatprep.subr.bf16.mxu0 %v6482_v40  ;;  %v4020_v40 = vld [vmem:[#allocation12 + $0xd0] sm:$0xff] }
 0x778   : > { %3615 = vmatmul.mubr.f32.gmra.mrb[50].mxu0 %v9385_v16  ;;  %3776 = vmatmul.mubr.f32.gmra.mrb[178].mxu1 %v9385_v16  ;;  %v6504_v35 = vpack.c.bf16 %v4020_v40, %v4018_v36  ;;  %v4043_v36 = vld [vmem:[#allocation12 + $0x188] sm:$0xff]  ;;  %v4045_v40 = vld [vmem:[#allocation12 + $0x198] sm:$0xff] }
 0x779   : > { %3620 = vmatprep.mubr.f32.mxu0 %v9396_v49  ;;  %3781 = vmatprep.mubr.f32.mxu1 %v9396_v49  ;;  %v6526_v18 = vpack.c.bf16 %v4045_v40, %v4043_v36 }
 0x77a   : > { %6485 = vmatpush1.bf16.msra.mxu0 %v6484_v31  ;;  %v4022_v31 = vld [vmem:[#allocation12 + $0xe0] sm:$0xff] }
 0x77b   : > { %6487 = vmatprep.subr.bf16.mxu0 %v6486_v5  ;;  %v4024_v5 = vld [vmem:[#allocation12 + $0xf0] sm:$0xff] }
 0x77c   : > { %3621 = vmatmul.mubr.f32.gmra.mrb[52].mxu0 %v9423_v28  ;;  %3782 = vmatmul.mubr.f32.gmra.mrb[180].mxu1 %v9423_v28  ;;  %v6508_v42 = vpack.c.bf16 %v4024_v5, %v4022_v31  ;;  %v4047_v31 = vld [vmem:[#allocation12 + $0x1a8] sm:$0xff]  ;;  %v4049_v5 = vld [vmem:[#allocation12 + $0x1b8] sm:$0xff] }
 0x77d   : > { %3626 = vmatprep.mubr.f32.mxu0 %v9434_v57  ;;  %3787 = vmatprep.mubr.f32.mxu1 %v9434_v57  ;;  %v6530_v46 = vpack.c.bf16 %v4049_v5, %v4047_v31  ;;  %v4058_v31 = vld [vmem:[#allocation12 + $0x200] sm:$0xff]  ;;  %v4060_v5 = vld [vmem:[#allocation12 + $0x210] sm:$0xff] }
 0x77e   : > { %6489 = vmatpush1.bf16.msra.mxu0 %v6488_v15  ;;  %v4026_v15 = vld [vmem:[#allocation12 + $0x100] sm:$0xff] }
 0x77f   : > { %6491 = vmatprep.subr.bf16.mxu0 %v6490_v63  ;;  %v4028_v63 = vld [vmem:[#allocation12 + $0x110] sm:$0xff] }
 0x780   : > { %3627 = vmatmul.mubr.f32.gmra.mrb[54].mxu0 %v9461_v27  ;;  %3788 = vmatmul.mubr.f32.gmra.mrb[182].mxu1 %v9461_v27  ;;  %v6512_v58 = vpack.c.bf16 %v4028_v63, %v4026_v15  ;;  %v4051_v15 = vld [vmem:[#allocation12 + $0x1c8] sm:$0xff]  ;;  %v4053_v63 = vld [vmem:[#allocation12 + $0x1d8] sm:$0xff] }
 0x781   : > { %3632 = vmatprep.mubr.f32.mxu0 %v9472_v4  ;;  %3793 = vmatprep.mubr.f32.mxu1 %v9472_v4  ;;  %v6534_v10 = vpack.c.bf16 %v4053_v63, %v4051_v15 }
 0x782   : > { %6493 = vmatpush1.bf16.msra.mxu0 %v6492_v6  ;;  %v4030_v6 = vld [vmem:[#allocation12 + $0x120] sm:$0xff] }
 0x783   : > { %6495 = vmatprep.subr.bf16.mxu0 %v6494_v43  ;;  %v4032_v43 = vld [vmem:[#allocation12 + $0x130] sm:$0xff] }
 0x784   : > { %3633 = vmatmul.mubr.f32.gmra.mrb[56].mxu0 %v9499_v20  ;;  %3794 = vmatmul.mubr.f32.gmra.mrb[184].mxu1 %v9499_v20  ;;  %v6516_v7 = vpack.c.bf16 %v4032_v43, %v4030_v6  ;;  %v4055_v6 = vld [vmem:[#allocation12 + $0x1e8] sm:$0xff]  ;;  %v4057_v43 = vld [vmem:[#allocation12 + $0x1f8] sm:$0xff] }
 0x785   : > { %3638 = vmatprep.mubr.f32.mxu0 %v9510_v26  ;;  %3799 = vmatprep.mubr.f32.mxu1 %v9510_v26  ;;  %v6538_v59 = vpack.c.bf16 %v4057_v43, %v4055_v6 }
 0x786   : > { %6497 = vmatpush1.bf16.msra.mxu0 %v6496_v44  ;;  %v4034_v44 = vld [vmem:[#allocation12 + $0x140] sm:$0xff] }
 0x787   : > { %6499 = vmatprep.subr.bf16.mxu0 %v6498_v55  ;;  %v4036_v55 = vld [vmem:[#allocation12 + $0x150] sm:$0xff] }
 0x788   : > { %3639 = vmatmul.mubr.f32.gmra.mrb[58].mxu0 %v9537_v39  ;;  %3800 = vmatmul.mubr.f32.gmra.mrb[186].mxu1 %v9537_v39  ;;  %v6520_v54 = vpack.c.bf16 %v4036_v55, %v4034_v44  ;;  %v4059_v44 = vld [vmem:[#allocation12 + $0x208] sm:$0xff]  ;;  %v4061_v55 = vld [vmem:[#allocation12 + $0x218] sm:$0xff] }
 0x789   : > { %3644 = vmatprep.mubr.f32.mxu0 %v9548_v56  ;;  %3805 = vmatprep.mubr.f32.mxu1 %v9548_v56  ;;  %v6542_v14 = vpack.c.bf16 %v4061_v55, %v4059_v44  ;;  %v4069_v44 = vld [vmem:[#allocation12 + $0x258] sm:$0xff] }
 0x78a   : > { %6501 = vmatpush1.bf16.msra.mxu0 %v6500_v12  ;;  %v4038_v12 = vld [vmem:[#allocation12 + $0x160] sm:$0xff] }
 0x78b   : > { %6503 = vmatprep.subr.bf16.mxu0 %v6502_v1  ;;  %v4040_v1 = vld [vmem:[#allocation12 + $0x170] sm:$0xff] }
 0x78c   : > { %3645 = vmatmul.mubr.f32.gmra.mrb[60].mxu0 %v9575_v34  ;;  %3806 = vmatmul.mubr.f32.gmra.mrb[188].mxu1 %v9575_v34  ;;  %v6524_v3 = vpack.c.bf16 %v4040_v1, %v4038_v12  ;;  %v10933_v1 = vld [vmem:[#allocation34_spill] sm:$0xff] }
 0x78d   : > { %3650 = vmatprep.mubr.f32.mxu0 %v9586_v41  ;;  %3811 = vmatprep.mubr.f32.mxu1 %v9586_v41 }
 0x78e   : > { %6505 = vmatpush1.bf16.msra.mxu0 %v6504_v35  ;;  %v4042_v35 = vld [vmem:[#allocation12 + $0x180] sm:$0xff] }
 0x78f   : > { %6507 = vmatprep.subr.bf16.mxu0 %v6506_v53  ;;  %v4044_v53 = vld [vmem:[#allocation12 + $0x190] sm:$0xff] }
 0x790   : > { %3651 = vmatmul.mubr.f32.gmra.mrb[62].mxu0 %v9611_v51  ;;  %3812 = vmatmul.mubr.f32.gmra.mrb[190].mxu1 %v9611_v51  ;;  %v6528_v29 = vpack.c.bf16 %v4044_v53, %v4042_v35 }
 0x791   : > { %3656 = vmatprep.mubr.f32.mxu0 %v9616_v37  ;;  %3817 = vmatprep.mubr.f32.mxu1 %v9616_v37 }
 0x792   : > { %6509 = vmatpush1.bf16.msra.mxu0 %v6508_v42  ;;  %v4046_v42 = vld [vmem:[#allocation12 + $0x1a0] sm:$0xff] }
 0x793   : > { %6511 = vmatprep.subr.bf16.mxu0 %v6510_v24  ;;  %v4048_v24 = vld [vmem:[#allocation12 + $0x1b0] sm:$0xff] }
 0x794   : > { %3657 = vmatmul.mubr.f32.gmra.mrb[64].mxu0 %v9635_v30  ;;  %3818 = vmatmul.mubr.f32.gmra.mrb[192].mxu1 %v9635_v30  ;;  %v6532_v60 = vpack.c.bf16 %v4048_v24, %v4046_v42  ;;  %v4065_v42 = vld [vmem:[#allocation12 + $0x238] sm:$0xff] }
 0x795   : > { %3662 = vmatprep.mubr.f32.mxu0 %v9640_v23  ;;  %3823 = vmatprep.mubr.f32.mxu1 %v9640_v23 }
 0x796   : > { %6513 = vmatpush1.bf16.msra.mxu0 %v6512_v58  ;;  %v4050_v58 = vld [vmem:[#allocation12 + $0x1c0] sm:$0xff] }
 0x797   : > { %6515 = vmatprep.subr.bf16.mxu0 %v6514_v25  ;;  %v4052_v25 = vld [vmem:[#allocation12 + $0x1d0] sm:$0xff] }
 0x798   : > { %3663 = vmatmul.mubr.f32.gmra.mrb[66].mxu0 %v9658_v2  ;;  %3824 = vmatmul.mubr.f32.gmra.mrb[194].mxu1 %v9658_v2  ;;  %v6536_v19 = vpack.c.bf16 %v4052_v25, %v4050_v58 }
 0x799   : > { %3668 = vmatprep.mubr.f32.mxu0 %v9663_v45  ;;  %3829 = vmatprep.mubr.f32.mxu1 %v9663_v45 }
 0x79a   : > { %6517 = vmatpush1.bf16.msra.mxu0 %v6516_v7  ;;  %v4054_v7 = vld [vmem:[#allocation12 + $0x1e0] sm:$0xff] }
 0x79b   : > { %6519 = vmatprep.subr.bf16.mxu0 %v6518_v50  ;;  %v4056_v50 = vld [vmem:[#allocation12 + $0x1f0] sm:$0xff] }
 0x79c   : > { %3669 = vmatmul.mubr.f32.gmra.mrb[68].mxu0 %v9677_v47  ;;  %3830 = vmatmul.mubr.f32.gmra.mrb[196].mxu1 %v9677_v47  ;;  %v6540_v22 = vpack.c.bf16 %v4056_v50, %v4054_v7  ;;  %v4067_v50 = vld [vmem:[#allocation12 + $0x248] sm:$0xff] }
 0x79d   : > { %3674 = vmatprep.mubr.f32.mxu0 %v9682_v13  ;;  %3835 = vmatprep.mubr.f32.mxu1 %v9682_v13 }
 0x79e   : > { %6521 = vmatpush1.bf16.msra.mxu0 %v6520_v54  ;;  %v9811_v54 = vld [vmem:[#allocation11] sm:$0xff] }
 0x79f   : > { %6523 = vmatprep.subr.bf16.mxu0 %v6522_v32  ;;  %v10932_v32 = vld [vmem:[#allocation33_spill] sm:$0xff]  ;;  %v9819_v36 = vrot.slane %v9811_v54, %v10933_v1 }
 0x7a0   : > { %3675 = vmatmul.mubr.f32.gmra.mrb[70].mxu0 %v9692_v48  ;;  %3836 = vmatmul.mubr.f32.gmra.mrb[198].mxu1 %v9692_v48  ;;  %v9815_v12 = vrot.slane %v9811_v54, %v10932_v32 }
 0x7a1   : > { %3680 = vmatprep.mubr.f32.mxu0 %v9697_v11  ;;  %3841 = vmatprep.mubr.f32.mxu1 %v9697_v11 }
 0x7a2   : > { %6525 = vmatpush1.bf16.msra.mxu0 %v6524_v3 }
 0x7a3   : > { %6527 = vmatprep.subr.bf16.mxu0 %v6526_v18 }
 0x7a4   : > { %3681 = vmatmul.mubr.f32.gmra.mrb[72].mxu0 %v9706_v33  ;;  %3842 = vmatmul.mubr.f32.gmra.mrb[200].mxu1 %v9706_v33 }
 0x7a5   : > { %3686 = vmatprep.mubr.f32.mxu0 %v9711_v8  ;;  %3847 = vmatprep.mubr.f32.mxu1 %v9711_v8 }
 0x7a6   : > { %6529 = vmatpush1.bf16.msra.mxu0 %v6528_v29 }
 0x7a7   : > { %6531 = vmatprep.subr.bf16.mxu0 %v6530_v46  ;;  %v4063_v46 = vld [vmem:[#allocation12 + $0x228] sm:$0xff] }
 0x7a8   : > { %3687 = vmatmul.mubr.f32.gmra.mrb[74].mxu0 %v9720_v0  ;;  %3848 = vmatmul.mubr.f32.gmra.mrb[202].mxu1 %v9720_v0  ;;  %v6546_v43 = vpack.c.bf16 %v4065_v42, %v4063_v46  ;;  %v4066_v46 = vld [vmem:[#allocation12 + $0x240] sm:$0xff]  ;;  %v4068_v42 = vld [vmem:[#allocation12 + $0x250] sm:$0xff] }
 0x7a9   : > { %3692 = vmatprep.mubr.f32.mxu0 %v9724_v38  ;;  %3853 = vmatprep.mubr.f32.mxu1 %v9724_v38 }
 0x7aa   : > { %6533 = vmatpush1.bf16.msra.mxu0 %v6532_v60  ;;  %v6544_v60 = vpack.c.bf16 %v4060_v5, %v4058_v31 }
 0x7ab   : > { %6535 = vmatprep.subr.bf16.mxu0 %v6534_v10 }
 0x7ac   : > { %3693 = vmatmul.mubr.f32.gmra.mrb[76].mxu0 %v9732_v52  ;;  %3854 = vmatmul.mubr.f32.gmra.mrb[204].mxu1 %v9732_v52 }
 0x7ad   : > { %3698 = vmatprep.mubr.f32.mxu0 %v9736_v62  ;;  %3859 = vmatprep.mubr.f32.mxu1 %v9736_v62 }
 0x7ae   : > { %6537 = vmatpush1.bf16.msra.mxu0 %v6536_v19  ;;  %v4062_v19 = vld [vmem:[#allocation12 + $0x220] sm:$0xff] }
 0x7af   : > { %6539 = vmatprep.subr.bf16.mxu0 %v6538_v59  ;;  %v4064_v59 = vld [vmem:[#allocation12 + $0x230] sm:$0xff] }
 0x7b0   : > { %3699 = vmatmul.mubr.f32.gmra.mrb[78].mxu0 %v9743_v61  ;;  %3860 = vmatmul.mubr.f32.gmra.mrb[206].mxu1 %v9743_v61 }
 0x7b2   : > { %6541 = vmatpush1.bf16.msra.mxu0 %v6540_v22 }
 0x7b3   : > { %6543 = vmatprep.subr.bf16.mxu0 %v6542_v14 }
 0x806   : > { %v3288_v40 = vpop.f32.mrb[16].mxu0  ;;  %v9821_v3 = vpop.f32.mrb[144].mxu1 }
 0x807   : > { %v3289_v18 = vadd.f32 %v3288_v40, %v9815_v12  ;;  %v3290_v35 = vpop.f32.mrb[17].mxu0  ;;  %v9824_v53 = vpop.f32.mrb[145].mxu1  ;;  %v6548_v40 = vpack.c.bf16 %v4064_v59, %v4062_v19 }
 0x808   : > { %v3291_v29 = vadd.f32 %v3290_v35, %v9819_v36 }
 0x809   : > { %v3866_v10 = vmax.f32 %v3289_v18, 0.0 }
 0x80a   : > { %v3867_v24 = vmax.f32 %v3291_v29, 0.0  ;;  %v3294_v15 = vpop.f32.mrb[18].mxu0  ;;  %v9827_v63 = vpop.f32.mrb[146].mxu1  ;;  %v6550_v29 = vpack.c.bf16 %v4069_v44, %v4067_v50  ;;  %v4070_v44 = vld [vmem:[#allocation12 + $0x260] sm:$0xff] }
 0x80b   : > { %v3295_v58 = vadd.f32 %v3294_v15, %v9815_v12  ;;  %v3296_v25 = vpop.f32.mrb[19].mxu0  ;;  %v9830_v6 = vpop.f32.mrb[147].mxu1  ;;  %v4071_v15 = vld [vmem:[#allocation12 + $0x268] sm:$0xff] }
 0x80c   : > { %v3297_v7 = vadd.f32 %v3296_v25, %v9819_v36  ;;  %4326 = vmatprep.mubr.f32.mxu0 %v3867_v24 }
 0x80d   : > { %4327 = vmatmul.mubr.f32.vlgmr.msra.gmra.mrb[80].mxu0 %v3866_v10  ;;  %v3874_v18 = vmax.f32 %v3295_v58, 0.0  ;;  %v4073_v10 = vld [vmem:[#allocation12 + $0x278] sm:$0xff]  ;;  %v6552_v58 = vpack.c.bf16 %v4068_v42, %v4066_v46 }
 0x80e   : > { %v3875_v55 = vmax.f32 %v3297_v7, 0.0  ;;  %v3300_v22 = vpop.f32.mrb[20].mxu0  ;;  %v9833_v14 = vpop.f32.mrb[148].mxu1  ;;  %6545 = vmatpush1.bf16.msra.mxu0 %v6544_v60  ;;  %v6554_v50 = vpack.c.bf16 %v4073_v10, %v4071_v15  ;;  %v4074_v10 = vld [vmem:[#allocation12 + $0x280] sm:$0xff] }
 0x80f   : > { %v3301_v35 = vadd.f32 %v3300_v22, %v9815_v12  ;;  %v3302_v31 = vpop.f32.mrb[21].mxu0  ;;  %v9836_v5 = vpop.f32.mrb[149].mxu1  ;;  %6547 = vmatprep.subr.bf16.mxu0 %v6546_v43 }
 0x810   : > { %v3303_v24 = vadd.f32 %v3302_v31, %v9819_v36  ;;  %4332 = vmatprep.mubr.f32.mxu0 %v3875_v55  ;;  %v4072_v31 = vld [vmem:[#allocation12 + $0x270] sm:$0xff] }
 0x811   : > { %4333 = vmatmul.mubr.f32.gmra.mrb[82].mxu0 %v3874_v18  ;;  %v3882_v19 = vmax.f32 %v3301_v35, 0.0  ;;  %v4075_v18 = vld [vmem:[#allocation12 + $0x288] sm:$0xff]  ;;  %v6556_v35 = vpack.c.bf16 %v4072_v31, %v4070_v44 }
 0x812   : > { %v3883_v25 = vmax.f32 %v3303_v24, 0.0  ;;  %v3306_v7 = vpop.f32.mrb[22].mxu0  ;;  %v9839_v60 = vpop.f32.mrb[150].mxu1  ;;  %6549 = vmatpush1.bf16.msra.mxu0 %v6548_v40  ;;  %v4077_v24 = vld [vmem:[#allocation12 + $0x298] sm:$0xff] }
 0x813   : > { %v3307_v59 = vadd.f32 %v3306_v7, %v9815_v12  ;;  %v3308_v22 = vpop.f32.mrb[23].mxu0  ;;  %v9842_v43 = vpop.f32.mrb[151].mxu1  ;;  %6551 = vmatprep.subr.bf16.mxu0 %v6550_v29  ;;  %v6558_v15 = vpack.c.bf16 %v4077_v24, %v4075_v18  ;;  %v4078_v24 = vld [vmem:[#allocation12 + $0x2a0] sm:$0xff] }
 0x814   : > { %v3309_v55 = vadd.f32 %v3308_v22, %v9819_v36  ;;  %4338 = vmatprep.mubr.f32.mxu0 %v3883_v25  ;;  %v4076_v22 = vld [vmem:[#allocation12 + $0x290] sm:$0xff] }
 0x815   : > { %4339 = vmatmul.mubr.f32.gmra.mrb[84].mxu0 %v3882_v19  ;;  %v3890_v46 = vmax.f32 %v3307_v59, 0.0  ;;  %v4079_v19 = vld [vmem:[#allocation12 + $0x2a8] sm:$0xff]  ;;  %v6560_v59 = vpack.c.bf16 %v4076_v22, %v4074_v10 }
 0x816   : > { %v3891_v62 = vmax.f32 %v3309_v55, 0.0  ;;  %v3312_v61 = vpop.f32.mrb[24].mxu0  ;;  %v9845_v40 = vpop.f32.mrb[152].mxu1  ;;  %6553 = vmatpush1.bf16.msra.mxu0 %v6552_v58  ;;  %v4081_v55 = vld [vmem:[#allocation12 + $0x2b8] sm:$0xff] }
 0x817   : > { %v3313_v42 = vadd.f32 %v3312_v61, %v9815_v12  ;;  %v3314_v7 = vpop.f32.mrb[25].mxu0  ;;  %v9848_v29 = vpop.f32.mrb[153].mxu1  ;;  %6555 = vmatprep.subr.bf16.mxu0 %v6554_v50  ;;  %v6562_v18 = vpack.c.bf16 %v4081_v55, %v4079_v19  ;;  %v4082_v55 = vld [vmem:[#allocation12 + $0x2c0] sm:$0xff] }
 0x818   : > { %v3315_v25 = vadd.f32 %v3314_v7, %v9819_v36  ;;  %4344 = vmatprep.mubr.f32.mxu0 %v3891_v62  ;;  %v4080_v7 = vld [vmem:[#allocation12 + $0x2b0] sm:$0xff] }
 0x819   : > { %4345 = vmatmul.mubr.f32.gmra.mrb[86].mxu0 %v3890_v46  ;;  %v3898_v61 = vmax.f32 %v3313_v42, 0.0  ;;  %v4083_v46 = vld [vmem:[#allocation12 + $0x2c8] sm:$0xff]  ;;  %v6564_v42 = vpack.c.bf16 %v4080_v7, %v4078_v24 }
 0x81a   : > { %v3899_v38 = vmax.f32 %v3315_v25, 0.0  ;;  %v3318_v52 = vpop.f32.mrb[26].mxu0  ;;  %v9851_v58 = vpop.f32.mrb[154].mxu1  ;;  %6557 = vmatpush1.bf16.msra.mxu0 %v6556_v35  ;;  %v4085_v25 = vld [vmem:[#allocation12 + $0x2d8] sm:$0xff] }
 0x81b   : > { %v3319_v44 = vadd.f32 %v3318_v52, %v9815_v12  ;;  %v3320_v31 = vpop.f32.mrb[27].mxu0  ;;  %v9854_v50 = vpop.f32.mrb[155].mxu1  ;;  %6559 = vmatprep.subr.bf16.mxu0 %v6558_v15  ;;  %v6566_v19 = vpack.c.bf16 %v4085_v25, %v4083_v46  ;;  %v4086_v25 = vld [vmem:[#allocation12 + $0x2e0] sm:$0xff] }
 0x81c   : > { %v3321_v62 = vadd.f32 %v3320_v31, %v9819_v36  ;;  %4350 = vmatprep.mubr.f32.mxu0 %v3899_v38  ;;  %v4084_v31 = vld [vmem:[#allocation12 + $0x2d0] sm:$0xff] }
 0x81d   : > { %4351 = vmatmul.mubr.f32.gmra.mrb[88].mxu0 %v3898_v61  ;;  %v3906_v52 = vmax.f32 %v3319_v44, 0.0  ;;  %v4087_v61 = vld [vmem:[#allocation12 + $0x2e8] sm:$0xff]  ;;  %v6568_v44 = vpack.c.bf16 %v4084_v31, %v4082_v55 }
 0x81e   : > { %v3907_v8 = vmax.f32 %v3321_v62, 0.0  ;;  %v3324_v0 = vpop.f32.mrb[28].mxu0  ;;  %v9857_v35 = vpop.f32.mrb[156].mxu1  ;;  %6561 = vmatpush1.bf16.msra.mxu0 %v6560_v59  ;;  %v4089_v62 = vld [vmem:[#allocation12 + $0x2f8] sm:$0xff] }
 0x81f   : > { %v3325_v10 = vadd.f32 %v3324_v0, %v9815_v12  ;;  %v3326_v22 = vpop.f32.mrb[29].mxu0  ;;  %v9860_v15 = vpop.f32.mrb[157].mxu1  ;;  %6563 = vmatprep.subr.bf16.mxu0 %v6562_v18  ;;  %v6570_v46 = vpack.c.bf16 %v4089_v62, %v4087_v61  ;;  %v4090_v62 = vld [vmem:[#allocation12 + $0x300] sm:$0xff] }
 0x820   : > { %v3327_v38 = vadd.f32 %v3326_v22, %v9819_v36  ;;  %4356 = vmatprep.mubr.f32.mxu0 %v3907_v8  ;;  %v4088_v22 = vld [vmem:[#allocation12 + $0x2f0] sm:$0xff] }
 0x821   : > { %4357 = vmatmul.mubr.f32.gmra.mrb[90].mxu0 %v3906_v52  ;;  %v3914_v0 = vmax.f32 %v3325_v10, 0.0  ;;  %v4091_v52 = vld [vmem:[#allocation12 + $0x308] sm:$0xff]  ;;  %v6572_v10 = vpack.c.bf16 %v4088_v22, %v4086_v25 }
 0x822   : > { %v3915_v11 = vmax.f32 %v3327_v38, 0.0  ;;  %v3330_v33 = vpop.f32.mrb[30].mxu0  ;;  %v9863_v59 = vpop.f32.mrb[158].mxu1  ;;  %6565 = vmatpush1.bf16.msra.mxu0 %v6564_v42  ;;  %v4093_v38 = vld [vmem:[#allocation12 + $0x318] sm:$0xff] }
 0x823   : > { %v3331_v24 = vadd.f32 %v3330_v33, %v9815_v12  ;;  %v3332_v7 = vpop.f32.mrb[31].mxu0  ;;  %v9866_v18 = vpop.f32.mrb[159].mxu1  ;;  %6567 = vmatprep.subr.bf16.mxu0 %v6566_v19  ;;  %v6574_v61 = vpack.c.bf16 %v4093_v38, %v4091_v52  ;;  %v4094_v38 = vld [vmem:[#allocation12 + $0x320] sm:$0xff] }
 0x824   : > { %v3333_v8 = vadd.f32 %v3332_v7, %v9819_v36  ;;  %4362 = vmatprep.mubr.f32.mxu0 %v3915_v11  ;;  %v4092_v7 = vld [vmem:[#allocation12 + $0x310] sm:$0xff] }
 0x825   : > { %4363 = vmatmul.mubr.f32.gmra.mrb[92].mxu0 %v3914_v0  ;;  %v3922_v33 = vmax.f32 %v3331_v24, 0.0  ;;  %v4095_v0 = vld [vmem:[#allocation12 + $0x328] sm:$0xff]  ;;  %v6576_v24 = vpack.c.bf16 %v4092_v7, %v4090_v62 }
 0x826   : > { %v3923_v13 = vmax.f32 %v3333_v8, 0.0  ;;  %v3336_v48 = vpop.f32.mrb[32].mxu0  ;;  %v9869_v42 = vpop.f32.mrb[160].mxu1  ;;  %6569 = vmatpush1.bf16.msra.mxu0 %v6568_v44  ;;  %v4097_v8 = vld [vmem:[#allocation12 + $0x338] sm:$0xff] }
 0x827   : > { %v3337_v55 = vadd.f32 %v3336_v48, %v9815_v12  ;;  %v3338_v31 = vpop.f32.mrb[33].mxu0  ;;  %v9872_v19 = vpop.f32.mrb[161].mxu1  ;;  %6571 = vmatprep.subr.bf16.mxu0 %v6570_v46  ;;  %v6578_v52 = vpack.c.bf16 %v4097_v8, %v4095_v0  ;;  %v4098_v8 = vld [vmem:[#allocation12 + $0x340] sm:$0xff] }
 0x828   : > { %v3339_v11 = vadd.f32 %v3338_v31, %v9819_v36  ;;  %4368 = vmatprep.mubr.f32.mxu0 %v3923_v13  ;;  %v4096_v31 = vld [vmem:[#allocation12 + $0x330] sm:$0xff] }
 0x829   : > { %4369 = vmatmul.mubr.f32.gmra.mrb[94].mxu0 %v3922_v33  ;;  %v3930_v48 = vmax.f32 %v3337_v55, 0.0  ;;  %v4099_v33 = vld [vmem:[#allocation12 + $0x348] sm:$0xff]  ;;  %v6580_v55 = vpack.c.bf16 %v4096_v31, %v4094_v38 }
 0x82a   : > { %v3931_v45 = vmax.f32 %v3339_v11, 0.0  ;;  %v3342_v47 = vpop.f32.mrb[34].mxu0  ;;  %v9875_v44 = vpop.f32.mrb[162].mxu1  ;;  %6573 = vmatpush1.bf16.msra.mxu0 %v6572_v10  ;;  %v4101_v11 = vld [vmem:[#allocation12 + $0x358] sm:$0xff] }
 0x82b   : > { %v3343_v25 = vadd.f32 %v3342_v47, %v9815_v12  ;;  %v3344_v22 = vpop.f32.mrb[35].mxu0  ;;  %v9878_v46 = vpop.f32.mrb[163].mxu1  ;;  %6575 = vmatprep.subr.bf16.mxu0 %v6574_v61  ;;  %v6582_v0 = vpack.c.bf16 %v4101_v11, %v4099_v33  ;;  %v4102_v11 = vld [vmem:[#allocation12 + $0x360] sm:$0xff] }
 0x82c   : > { %v3345_v13 = vadd.f32 %v3344_v22, %v9819_v36  ;;  %4374 = vmatprep.mubr.f32.mxu0 %v3931_v45  ;;  %v4100_v22 = vld [vmem:[#allocation12 + $0x350] sm:$0xff] }
 0x82d   : > { %4375 = vmatmul.mubr.f32.gmra.mrb[96].mxu0 %v3930_v48  ;;  %v3938_v47 = vmax.f32 %v3343_v25, 0.0  ;;  %v4103_v48 = vld [vmem:[#allocation12 + $0x368] sm:$0xff]  ;;  %v6584_v25 = vpack.c.bf16 %v4100_v22, %v4098_v8 }
 0x82e   : > { %v3939_v23 = vmax.f32 %v3345_v13, 0.0  ;;  %v3348_v2 = vpop.f32.mrb[36].mxu0  ;;  %v9881_v10 = vpop.f32.mrb[164].mxu1  ;;  %6577 = vmatpush1.bf16.msra.mxu0 %v6576_v24  ;;  %v4105_v13 = vld [vmem:[#allocation12 + $0x378] sm:$0xff] }
 0x82f   : > { %v3349_v62 = vadd.f32 %v3348_v2, %v9815_v12  ;;  %v3350_v7 = vpop.f32.mrb[37].mxu0  ;;  %v9884_v61 = vpop.f32.mrb[165].mxu1  ;;  %6579 = vmatprep.subr.bf16.mxu0 %v6578_v52  ;;  %v6586_v33 = vpack.c.bf16 %v4105_v13, %v4103_v48  ;;  %v4106_v13 = vld [vmem:[#allocation12 + $0x380] sm:$0xff] }
 0x830   : > { %v3351_v45 = vadd.f32 %v3350_v7, %v9819_v36  ;;  %4380 = vmatprep.mubr.f32.mxu0 %v3939_v23  ;;  %v4104_v7 = vld [vmem:[#allocation12 + $0x370] sm:$0xff] }
 0x831   : > { %4381 = vmatmul.mubr.f32.gmra.mrb[98].mxu0 %v3938_v47  ;;  %v3946_v2 = vmax.f32 %v3349_v62, 0.0  ;;  %v4107_v47 = vld [vmem:[#allocation12 + $0x388] sm:$0xff]  ;;  %v6588_v62 = vpack.c.bf16 %v4104_v7, %v4102_v11 }
 0x832   : > { %v3947_v37 = vmax.f32 %v3351_v45, 0.0  ;;  %v3354_v30 = vpop.f32.mrb[38].mxu0  ;;  %v9887_v24 = vpop.f32.mrb[166].mxu1  ;;  %6581 = vmatpush1.bf16.msra.mxu0 %v6580_v55  ;;  %v4109_v45 = vld [vmem:[#allocation12 + $0x398] sm:$0xff] }
 0x833   : > { %v3355_v38 = vadd.f32 %v3354_v30, %v9815_v12  ;;  %v3356_v31 = vpop.f32.mrb[39].mxu0  ;;  %v9890_v52 = vpop.f32.mrb[167].mxu1  ;;  %6583 = vmatprep.subr.bf16.mxu0 %v6582_v0  ;;  %v6590_v48 = vpack.c.bf16 %v4109_v45, %v4107_v47  ;;  %v4110_v45 = vld [vmem:[#allocation12 + $0x3a0] sm:$0xff] }
 0x834   : > { %v3357_v23 = vadd.f32 %v3356_v31, %v9819_v36  ;;  %4386 = vmatprep.mubr.f32.mxu0 %v3947_v37  ;;  %v4108_v31 = vld [vmem:[#allocation12 + $0x390] sm:$0xff] }
 0x835   : > { %4387 = vmatmul.mubr.f32.gmra.mrb[100].mxu0 %v3946_v2  ;;  %v3954_v30 = vmax.f32 %v3355_v38, 0.0  ;;  %v4111_v2 = vld [vmem:[#allocation12 + $0x3a8] sm:$0xff]  ;;  %v6592_v38 = vpack.c.bf16 %v4108_v31, %v4106_v13 }
 0x836   : > { %v3955_v41 = vmax.f32 %v3357_v23, 0.0  ;;  %v3360_v51 = vpop.f32.mrb[40].mxu0  ;;  %v9893_v55 = vpop.f32.mrb[168].mxu1  ;;  %6585 = vmatpush1.bf16.msra.mxu0 %v6584_v25  ;;  %v4113_v23 = vld [vmem:[#allocation12 + $0x3b8] sm:$0xff] }
 0x837   : > { %v3361_v8 = vadd.f32 %v3360_v51, %v9815_v12  ;;  %v3362_v22 = vpop.f32.mrb[41].mxu0  ;;  %v9896_v0 = vpop.f32.mrb[169].mxu1  ;;  %6587 = vmatprep.subr.bf16.mxu0 %v6586_v33  ;;  %v6594_v47 = vpack.c.bf16 %v4113_v23, %v4111_v2  ;;  %v4114_v23 = vld [vmem:[#allocation12 + $0x3c0] sm:$0xff] }
 0x838   : > { %v3363_v37 = vadd.f32 %v3362_v22, %v9819_v36  ;;  %4392 = vmatprep.mubr.f32.mxu0 %v3955_v41  ;;  %v4112_v22 = vld [vmem:[#allocation12 + $0x3b0] sm:$0xff] }
 0x839   : > { %4393 = vmatmul.mubr.f32.gmra.mrb[102].mxu0 %v3954_v30  ;;  %v3962_v51 = vmax.f32 %v3361_v8, 0.0  ;;  %v4115_v30 = vld [vmem:[#allocation12 + $0x3c8] sm:$0xff]  ;;  %v6596_v8 = vpack.c.bf16 %v4112_v22, %v4110_v45  ;;  %v4121_v45 = vld [vmem:[#allocation12 + $0x3f8] sm:$0xff] }
 0x83a   : > { %v3963_v56 = vmax.f32 %v3363_v37, 0.0  ;;  %v3366_v34 = vpop.f32.mrb[42].mxu0  ;;  %v9899_v25 = vpop.f32.mrb[170].mxu1  ;;  %6589 = vmatpush1.bf16.msra.mxu0 %v6588_v62  ;;  %v4117_v37 = vld [vmem:[#allocation12 + $0x3d8] sm:$0xff] }
 0x83b   : > { %v3367_v11 = vadd.f32 %v3366_v34, %v9815_v12  ;;  %v3368_v7 = vpop.f32.mrb[43].mxu0  ;;  %v9902_v33 = vpop.f32.mrb[171].mxu1  ;;  %6591 = vmatprep.subr.bf16.mxu0 %v6590_v48  ;;  %v6598_v2 = vpack.c.bf16 %v4117_v37, %v4115_v30 }
 0x83c   : > { %v3369_v41 = vadd.f32 %v3368_v7, %v9819_v36  ;;  %4398 = vmatprep.mubr.f32.mxu0 %v3963_v56  ;;  %v4116_v7 = vld [vmem:[#allocation12 + $0x3d0] sm:$0xff] }
 0x83d   : > { %4399 = vmatmul.mubr.f32.gmra.mrb[104].mxu0 %v3962_v51  ;;  %v3970_v34 = vmax.f32 %v3367_v11, 0.0  ;;  %v10934_v56 = vld [vmem:[#allocation32_spill] sm:$0xff] }
 0x83e   : > { %v3971_v26 = vmax.f32 %v3369_v41, 0.0  ;;  %v3372_v39 = vpop.f32.mrb[44].mxu0  ;;  %v9905_v62 = vpop.f32.mrb[172].mxu1  ;;  %6593 = vmatpush1.bf16.msra.mxu0 %v6592_v38  ;;  %v10935_v4 = vsub.s32 3, %v10934_v56  ;;  %v4119_v38 = vld [vmem:[#allocation12 + $0x3e8] sm:$0xff]  ;;  %v10936_v30 = vsub.s32 2, %v10934_v56 }
 0x83f   : > { %v3373_v13 = vadd.f32 %v3372_v39, %v9815_v12  ;;  %v3374_v31 = vpop.f32.mrb[45].mxu0  ;;  %v9908_v48 = vpop.f32.mrb[173].mxu1  ;;  %6595 = vmatprep.subr.bf16.mxu0 %v6594_v47  ;;  %v6600_v47 = vpack.c.bf16 %v4116_v7, %v4114_v23  ;;  %v4123_v23 = vld [vmem:[#allocation12 + $0x408] sm:$0xff]  ;;  %v4125_v7 = vld [vmem:[#allocation12 + $0x418] sm:$0xff] }
 0x840   : > { %v9913_v51 = vrot.slane %v9811_v54, %v10935_v4  ;;  %v3375_v41 = vadd.f32 %v3374_v31, %v9819_v36  ;;  %4404 = vmatprep.mubr.f32.mxu0 %v3971_v26  ;;  %v9921_v37 = vrot.slane %v9811_v54, %v10936_v30  ;;  %v6602_v26 = vpack.c.bf16 %v4121_v45, %v4119_v38  ;;  %v4124_v30 = vld [vmem:[#allocation12 + $0x410] sm:$0xff] }
 0x841   : > { %4405 = vmatmul.mubr.f32.gmra.mrb[106].mxu0 %v3970_v34  ;;  %v3978_v20 = vmax.f32 %v3373_v13, 0.0  ;;  %v4118_v34 = vld [vmem:[#allocation12 + $0x3e0] sm:$0xff]  ;;  %v6606_v45 = vpack.c.bf16 %v4125_v7, %v4123_v23  ;;  %v4128_v23 = vld [vmem:[#allocation12 + $0x430] sm:$0xff] }
 0x842   : > { %v3979_v11 = vmax.f32 %v3375_v41, 0.0  ;;  %v3378_v39 = vpop.f32.mrb[46].mxu0  ;;  %v9916_v22 = vpop.f32.mrb[174].mxu1  ;;  %6597 = vmatpush1.bf16.msra.mxu0 %v6596_v8  ;;  %v4120_v41 = vld [vmem:[#allocation12 + $0x3f0] sm:$0xff]  ;;  %v3452_v27 = vadd.f32 %v9824_v53, %v9913_v51  ;;  %v4122_v53 = vld [vmem:[#allocation12 + $0x400] sm:$0xff]  ;;  %v3470_v28 = vadd.f32 %v9842_v43, %v9913_v51  ;;  %v3476_v16 = vadd.f32 %v9848_v29, %v9913_v51 }
 0x843   : > { %v3379_v4 = vadd.f32 %v3378_v39, %v9815_v12  ;;  %v3380_v57 = vpop.f32.mrb[47].mxu0  ;;  %v9924_v31 = vpop.f32.mrb[175].mxu1  ;;  %6599 = vmatprep.subr.bf16.mxu0 %v6598_v2  ;;  %v6604_v13 = vpack.c.bf16 %v4120_v41, %v4118_v34  ;;  %v3450_v12 = vadd.f32 %v9821_v3, %v9921_v37  ;;  %v4129_v3 = vld [vmem:[#allocation12 + $0x438] sm:$0xff]  ;;  %v3482_v17 = vadd.f32 %v9854_v50, %v9913_v51 }
 0x844   : > { %v3381_v8 = vadd.f32 %v3380_v57, %v9819_v36  ;;  %4410 = vmatprep.mubr.f32.mxu0 %v3979_v11  ;;  %v3869_v57 = vmax.f32 %v3452_v27, 0.0  ;;  %v3458_v36 = vadd.f32 %v9830_v6, %v9913_v51  ;;  %v3893_v21 = vmax.f32 %v3470_v28, 0.0 }
 0x845   : > { %4411 = vmatmul.mubr.f32.gmra.mrb[108].mxu0 %v3978_v20  ;;  %v3986_v39 = vmax.f32 %v3379_v4, 0.0  ;;  %v6608_v4 = vpack.c.bf16 %v4124_v30, %v4122_v53  ;;  %v3868_v34 = vmax.f32 %v3450_v12, 0.0  ;;  %v4131_v12 = vld [vmem:[#allocation12 + $0x448] sm:$0xff]  ;;  %v4133_v53 = vld [vmem:[#allocation12 + $0x458] sm:$0xff]  ;;  %v3901_v9 = vmax.f32 %v3476_v16, 0.0 }
 0x846   : > { %v3987_v54 = vmax.f32 %v3381_v8, 0.0  ;;  %6601 = vmatpush1.bf16.msra.mxu0 %v6600_v47  ;;  %v4127_v47 = vld [vmem:[#allocation12 + $0x428] sm:$0xff]  ;;  %v4126_v8 = vld [vmem:[#allocation12 + $0x420] sm:$0xff]  ;;  %v3877_v7 = vmax.f32 %v3458_v36, 0.0  ;;  %v3909_v1 = vmax.f32 %v3482_v17, 0.0  ;;  %v3488_v32 = vadd.f32 %v9860_v15, %v9913_v51 }
 0x847   : > { %v9931_v2 = vpop.f32.mrb[48].mxu0  ;;  %v9933_v38 = vpop.f32.mrb[176].mxu1  ;;  %6603 = vmatprep.subr.bf16.mxu0 %v6602_v26  ;;  %v3456_v26 = vadd.f32 %v9827_v63, %v9921_v37  ;;  %v6610_v6 = vpack.c.bf16 %v4129_v3, %v4127_v47  ;;  %v6612_v63 = vpack.c.bf16 %v4128_v23, %v4126_v8  ;;  %v4130_v47 = vld [vmem:[#allocation12 + $0x440] sm:$0xff]  ;;  %v4132_v3 = vld [vmem:[#allocation12 + $0x450] sm:$0xff]  ;;  %v4137_v8 = vld [vmem:[#allocation12 + $0x478] sm:$0xff] }
 0x848   : > { %v9937_v20 = vpop.f32.mrb[49].mxu0  ;;  %v9939_v11 = vpop.f32.mrb[177].mxu1  ;;  %4416 = vmatprep.mubr.f32.mxu0 %v3987_v54  ;;  %v3464_v54 = vadd.f32 %v9836_v5, %v9913_v51  ;;  %v6614_v5 = vpack.c.bf16 %v4133_v53, %v4131_v12  ;;  %v4134_v12 = vld [vmem:[#allocation12 + $0x460] sm:$0xff]  ;;  %v4136_v53 = vld [vmem:[#allocation12 + $0x470] sm:$0xff] }
 0x849   : > { %4417 = vmatmul.mubr.f32.gmra.mrb[110].mxu0 %v3986_v39  ;;  %v3876_v30 = vmax.f32 %v3456_v26, 0.0  ;;  %v4135_v26 = vld [vmem:[#allocation12 + $0x468] sm:$0xff] }
 0x84a   : > { %6605 = vmatpush1.bf16.msra.mxu0 %v6604_v13  ;;  %4487 = vmatprep.mubr.f32.mxu0 %v3869_v57  ;;  %v3885_v49 = vmax.f32 %v3464_v54, 0.0  ;;  %v6618_v43 = vpack.c.bf16 %v4137_v8, %v4135_v26  ;;  %v4138_v26 = vld [vmem:[#allocation12 + $0x480] sm:$0xff]  ;;  %v4140_v8 = vld [vmem:[#allocation12 + $0x490] sm:$0xff] }
 0x84b   : > { %v9943_v41 = vpop.f32.mrb[50].mxu0  ;;  %v9945_v27 = vpop.f32.mrb[178].mxu1  ;;  %6607 = vmatprep.subr.bf16.mxu0 %v6606_v45  ;;  %v3462_v45 = vadd.f32 %v9833_v14, %v9921_v37  ;;  %v6616_v14 = vpack.c.bf16 %v4132_v3, %v4130_v47 }
 0x84c   : > { %v9949_v39 = vpop.f32.mrb[51].mxu0  ;;  %v9951_v13 = vpop.f32.mrb[179].mxu1 }
 0x84d   : > { %4488 = vmatmul.mubr.f32.vlgmr.msra.gmra.mrb[80].mxu0 %v3868_v34  ;;  %v3884_v23 = vmax.f32 %v3462_v45, 0.0  ;;  %v4141_v45 = vld [vmem:[#allocation12 + $0x498] sm:$0xff] }
 0x84e   : > { %4493 = vmatprep.mubr.f32.mxu0 %v3877_v7  ;;  %6609 = vmatpush1.bf16.msra.mxu0 %v6608_v4 }
 0x84f   : > { %v9955_v57 = vpop.f32.mrb[52].mxu0  ;;  %v9957_v36 = vpop.f32.mrb[180].mxu1  ;;  %6611 = vmatprep.subr.bf16.mxu0 %v6610_v6  ;;  %v3468_v6 = vadd.f32 %v9839_v60, %v9921_v37  ;;  %v6620_v60 = vpack.c.bf16 %v4136_v53, %v4134_v12 }
 0x850   : > { %v9961_v34 = vpop.f32.mrb[53].mxu0  ;;  %v9963_v4 = vpop.f32.mrb[181].mxu1 }
 0x851   : > { %4494 = vmatmul.mubr.f32.gmra.mrb[82].mxu0 %v3876_v30  ;;  %v3892_v47 = vmax.f32 %v3468_v6, 0.0  ;;  %v4145_v6 = vld [vmem:[#allocation12 + $0x4b8] sm:$0xff] }
 0x852   : > { %4499 = vmatprep.mubr.f32.mxu0 %v3885_v49  ;;  %6613 = vmatpush1.bf16.msra.mxu0 %v6612_v63  ;;  %v4139_v63 = vld [vmem:[#allocation12 + $0x488] sm:$0xff] }
 0x853   : > { %v9967_v7 = vpop.f32.mrb[54].mxu0  ;;  %v9969_v54 = vpop.f32.mrb[182].mxu1  ;;  %6615 = vmatprep.subr.bf16.mxu0 %v6614_v5  ;;  %v3474_v5 = vadd.f32 %v9845_v40, %v9921_v37  ;;  %v6622_v29 = vpack.c.bf16 %v4141_v45, %v4139_v63  ;;  %v6624_v40 = vpack.c.bf16 %v4140_v8, %v4138_v26  ;;  %v4142_v63 = vld [vmem:[#allocation12 + $0x4a0] sm:$0xff]  ;;  %v4144_v45 = vld [vmem:[#allocation12 + $0x4b0] sm:$0xff] }
 0x854   : > { %v9973_v30 = vpop.f32.mrb[55].mxu0  ;;  %v9975_v49 = vpop.f32.mrb[183].mxu1 }
 0x855   : > { %4500 = vmatmul.mubr.f32.gmra.mrb[84].mxu0 %v3884_v23  ;;  %v3900_v12 = vmax.f32 %v3474_v5, 0.0  ;;  %v4149_v5 = vld [vmem:[#allocation12 + $0x4d8] sm:$0xff] }
 0x856   : > { %4505 = vmatprep.mubr.f32.mxu0 %v3893_v21  ;;  %6617 = vmatpush1.bf16.msra.mxu0 %v6616_v14  ;;  %v4143_v14 = vld [vmem:[#allocation12 + $0x4a8] sm:$0xff] }
 0x857   : > { %v9979_v3 = vpop.f32.mrb[56].mxu0  ;;  %v9981_v28 = vpop.f32.mrb[184].mxu1  ;;  %6619 = vmatprep.subr.bf16.mxu0 %v6618_v43  ;;  %v3480_v43 = vadd.f32 %v9851_v58, %v9921_v37  ;;  %v6626_v50 = vpack.c.bf16 %v4145_v6, %v4143_v14  ;;  %v6628_v58 = vpack.c.bf16 %v4144_v45, %v4142_v63  ;;  %v4146_v14 = vld [vmem:[#allocation12 + $0x4c0] sm:$0xff]  ;;  %v4148_v6 = vld [vmem:[#allocation12 + $0x4d0] sm:$0xff] }
 0x858   : > { %10937 = vst [vmem:[#allocation32_spill] sm:$0xff] %v9981_v28  ;;  %v9985_v23 = vpop.f32.mrb[57].mxu0  ;;  %v9987_v21 = vpop.f32.mrb[185].mxu1  ;;  %v4191_v28 = vld [vmem:[#allocation12 + $0x628] sm:$0xff] }
 0x859   : > { %4506 = vmatmul.mubr.f32.gmra.mrb[86].mxu0 %v3892_v47  ;;  %v3908_v26 = vmax.f32 %v3480_v43, 0.0  ;;  %v4153_v43 = vld [vmem:[#allocation12 + $0x4f8] sm:$0xff] }
 0x85a   : > { %4511 = vmatprep.mubr.f32.mxu0 %v3901_v9  ;;  %6621 = vmatpush1.bf16.msra.mxu0 %v6620_v60  ;;  %v4147_v60 = vld [vmem:[#allocation12 + $0x4c8] sm:$0xff] }
 0x85b   : > { %v9991_v53 = vpop.f32.mrb[58].mxu0  ;;  %v9993_v16 = vpop.f32.mrb[186].mxu1  ;;  %6623 = vmatprep.subr.bf16.mxu0 %v6622_v29  ;;  %v3486_v29 = vadd.f32 %v9857_v35, %v9921_v37  ;;  %v6630_v15 = vpack.c.bf16 %v4149_v5, %v4147_v60  ;;  %v6632_v35 = vpack.c.bf16 %v4148_v6, %v4146_v14  ;;  %v4150_v60 = vld [vmem:[#allocation12 + $0x4e0] sm:$0xff]  ;;  %v4152_v5 = vld [vmem:[#allocation12 + $0x4f0] sm:$0xff] }
 0x85c   : > { %10938 = vst [vmem:[#allocation67_spill] sm:$0xff] %v9993_v16  ;;  %v9997_v47 = vpop.f32.mrb[59].mxu0  ;;  %v9999_v9 = vpop.f32.mrb[187].mxu1  ;;  %v3917_v16 = vmax.f32 %v3488_v32, 0.0 }
 0x85d   : > { %10939 = vst [vmem:[#allocation68_spill] sm:$0xff] %v9999_v9  ;;  %4512 = vmatmul.mubr.f32.gmra.mrb[88].mxu0 %v3900_v12  ;;  %v3494_v9 = vadd.f32 %v9866_v18, %v9913_v51  ;;  %v3916_v63 = vmax.f32 %v3486_v29, 0.0  ;;  %v4157_v29 = vld [vmem:[#allocation12 + $0x518] sm:$0xff] }
 0x85e   : > { %4517 = vmatprep.mubr.f32.mxu0 %v3909_v1  ;;  %6625 = vmatpush1.bf16.msra.mxu0 %v6624_v40  ;;  %v4151_v40 = vld [vmem:[#allocation12 + $0x4e8] sm:$0xff] }
 0x85f   : > { %v10003_v8 = vpop.f32.mrb[60].mxu0  ;;  %v10005_v17 = vpop.f32.mrb[188].mxu1  ;;  %6627 = vmatprep.subr.bf16.mxu0 %v6626_v50  ;;  %v3492_v50 = vadd.f32 %v9863_v59, %v9921_v37  ;;  %v6634_v18 = vpack.c.bf16 %v4153_v43, %v4151_v40  ;;  %v6636_v59 = vpack.c.bf16 %v4152_v5, %v4150_v60  ;;  %v4154_v40 = vld [vmem:[#allocation12 + $0x500] sm:$0xff]  ;;  %v4156_v43 = vld [vmem:[#allocation12 + $0x510] sm:$0xff] }
 0x860   : > { %10940 = vst [vmem:[#allocation69_spill] sm:$0xff] %v10005_v17  ;;  %v10009_v12 = vpop.f32.mrb[61].mxu0  ;;  %v10011_v1 = vpop.f32.mrb[189].mxu1  ;;  %v3925_v17 = vmax.f32 %v3494_v9, 0.0 }
 0x861   : > { %10941 = vst [vmem:[#allocation70_spill] sm:$0xff] %v10011_v1  ;;  %4518 = vmatmul.mubr.f32.gmra.mrb[90].mxu0 %v3908_v26  ;;  %v3500_v1 = vadd.f32 %v9872_v19, %v9913_v51  ;;  %v3924_v14 = vmax.f32 %v3492_v50, 0.0  ;;  %v4161_v50 = vld [vmem:[#allocation12 + $0x538] sm:$0xff] }
 0x862   : > { %4523 = vmatprep.mubr.f32.mxu0 %v3917_v16  ;;  %6629 = vmatpush1.bf16.msra.mxu0 %v6628_v58  ;;  %v4155_v58 = vld [vmem:[#allocation12 + $0x508] sm:$0xff] }
 0x863   : > { %v10015_v45 = vpop.f32.mrb[62].mxu0  ;;  %v10017_v32 = vpop.f32.mrb[190].mxu1  ;;  %6631 = vmatprep.subr.bf16.mxu0 %v6630_v15  ;;  %v3498_v15 = vadd.f32 %v9869_v42, %v9921_v37  ;;  %v6638_v19 = vpack.c.bf16 %v4157_v29, %v4155_v58  ;;  %v6640_v42 = vpack.c.bf16 %v4156_v43, %v4154_v40  ;;  %v4158_v58 = vld [vmem:[#allocation12 + $0x520] sm:$0xff]  ;;  %v4160_v29 = vld [vmem:[#allocation12 + $0x530] sm:$0xff] }
 0x864   : > { %10942 = vst [vmem:[#allocation71_spill] sm:$0xff] %v10017_v32  ;;  %v10021_v26 = vpop.f32.mrb[63].mxu0  ;;  %v10023_v16 = vpop.f32.mrb[191].mxu1  ;;  %v3933_v32 = vmax.f32 %v3500_v1, 0.0 }
 0x865   : > { %10943 = vst [vmem:[#allocation72_spill] sm:$0xff] %v10023_v16  ;;  %4524 = vmatmul.mubr.f32.gmra.mrb[92].mxu0 %v3916_v63  ;;  %v3506_v16 = vadd.f32 %v9878_v46, %v9913_v51  ;;  %v3932_v60 = vmax.f32 %v3498_v15, 0.0  ;;  %v4165_v15 = vld [vmem:[#allocation12 + $0x558] sm:$0xff] }
 0x866   : > { %4529 = vmatprep.mubr.f32.mxu0 %v3925_v17  ;;  %6633 = vmatpush1.bf16.msra.mxu0 %v6632_v35  ;;  %v4159_v35 = vld [vmem:[#allocation12 + $0x528] sm:$0xff] }
 0x867   : > { %v10027_v6 = vpop.f32.mrb[64].mxu0  ;;  %v10029_v9 = vpop.f32.mrb[192].mxu1  ;;  %6635 = vmatprep.subr.bf16.mxu0 %v6634_v18  ;;  %v3504_v18 = vadd.f32 %v9875_v44, %v9921_v37  ;;  %v6642_v46 = vpack.c.bf16 %v4161_v50, %v4159_v35  ;;  %v6644_v44 = vpack.c.bf16 %v4160_v29, %v4158_v58  ;;  %v4162_v35 = vld [vmem:[#allocation12 + $0x540] sm:$0xff]  ;;  %v4164_v50 = vld [vmem:[#allocation12 + $0x550] sm:$0xff] }
 0x868   : > { %10944 = vst [vmem:[#allocation73_spill] sm:$0xff] %v10029_v9  ;;  %v10033_v63 = vpop.f32.mrb[65].mxu0  ;;  %v10035_v17 = vpop.f32.mrb[193].mxu1  ;;  %v3941_v9 = vmax.f32 %v3506_v16, 0.0 }
 0x869   : > { %10945 = vst [vmem:[#allocation74_spill] sm:$0xff] %v10035_v17  ;;  %4530 = vmatmul.mubr.f32.gmra.mrb[94].mxu0 %v3924_v14  ;;  %v3512_v17 = vadd.f32 %v9884_v61, %v9913_v51  ;;  %v3940_v40 = vmax.f32 %v3504_v18, 0.0  ;;  %v4169_v18 = vld [vmem:[#allocation12 + $0x578] sm:$0xff] }
 0x86a   : > { %4535 = vmatprep.mubr.f32.mxu0 %v3933_v32  ;;  %6637 = vmatpush1.bf16.msra.mxu0 %v6636_v59  ;;  %v4163_v59 = vld [vmem:[#allocation12 + $0x548] sm:$0xff] }
 0x86b   : > { %v10039_v5 = vpop.f32.mrb[66].mxu0  ;;  %v10041_v1 = vpop.f32.mrb[194].mxu1  ;;  %6639 = vmatprep.subr.bf16.mxu0 %v6638_v19  ;;  %v3510_v19 = vadd.f32 %v9881_v10, %v9921_v37  ;;  %v6646_v61 = vpack.c.bf16 %v4165_v15, %v4163_v59  ;;  %v6648_v10 = vpack.c.bf16 %v4164_v50, %v4162_v35  ;;  %v4166_v59 = vld [vmem:[#allocation12 + $0x560] sm:$0xff]  ;;  %v4168_v15 = vld [vmem:[#allocation12 + $0x570] sm:$0xff] }
 0x86c   : > { %10946 = vst [vmem:[#allocation75_spill] sm:$0xff] %v10041_v1  ;;  %v10045_v14 = vpop.f32.mrb[67].mxu0  ;;  %v10047_v32 = vpop.f32.mrb[195].mxu1  ;;  %v3949_v1 = vmax.f32 %v3512_v17, 0.0 }
 0x86d   : > { %10947 = vst [vmem:[#allocation76_spill] sm:$0xff] %v10047_v32  ;;  %4536 = vmatmul.mubr.f32.gmra.mrb[96].mxu0 %v3932_v60  ;;  %v3518_v32 = vadd.f32 %v9890_v52, %v9913_v51  ;;  %v3948_v58 = vmax.f32 %v3510_v19, 0.0  ;;  %v4173_v19 = vld [vmem:[#allocation12 + $0x598] sm:$0xff] }
 0x86e   : > { %4541 = vmatprep.mubr.f32.mxu0 %v3941_v9  ;;  %6641 = vmatpush1.bf16.msra.mxu0 %v6640_v42  ;;  %v4167_v42 = vld [vmem:[#allocation12 + $0x568] sm:$0xff] }
 0x86f   : > { %v10051_v43 = vpop.f32.mrb[68].mxu0  ;;  %v10053_v16 = vpop.f32.mrb[196].mxu1  ;;  %6643 = vmatprep.subr.bf16.mxu0 %v6642_v46  ;;  %v3516_v46 = vadd.f32 %v9887_v24, %v9921_v37  ;;  %v6650_v52 = vpack.c.bf16 %v4169_v18, %v4167_v42  ;;  %v6652_v24 = vpack.c.bf16 %v4168_v15, %v4166_v59  ;;  %v4170_v42 = vld [vmem:[#allocation12 + $0x580] sm:$0xff]  ;;  %v4172_v18 = vld [vmem:[#allocation12 + $0x590] sm:$0xff] }
 0x870   : > { %10948 = vst [vmem:[#allocation77_spill] sm:$0xff] %v10053_v16  ;;  %v10057_v60 = vpop.f32.mrb[69].mxu0  ;;  %v10059_v9 = vpop.f32.mrb[197].mxu1  ;;  %v3957_v16 = vmax.f32 %v3518_v32, 0.0 }
 0x871   : > { %10949 = vst [vmem:[#allocation78_spill] sm:$0xff] %v10059_v9  ;;  %4542 = vmatmul.mubr.f32.gmra.mrb[98].mxu0 %v3940_v40  ;;  %v3524_v9 = vadd.f32 %v9896_v0, %v9913_v51  ;;  %v3956_v35 = vmax.f32 %v3516_v46, 0.0  ;;  %v4177_v46 = vld [vmem:[#allocation12 + $0x5b8] sm:$0xff] }
 0x872   : > { %4547 = vmatprep.mubr.f32.mxu0 %v3949_v1  ;;  %6645 = vmatpush1.bf16.msra.mxu0 %v6644_v44  ;;  %v4171_v44 = vld [vmem:[#allocation12 + $0x588] sm:$0xff] }
 0x873   : > { %v10063_v29 = vpop.f32.mrb[70].mxu0  ;;  %v10065_v17 = vpop.f32.mrb[198].mxu1  ;;  %6647 = vmatprep.subr.bf16.mxu0 %v6646_v61  ;;  %v3522_v61 = vadd.f32 %v9893_v55, %v9921_v37  ;;  %v6654_v0 = vpack.c.bf16 %v4173_v19, %v4171_v44  ;;  %v6656_v55 = vpack.c.bf16 %v4172_v18, %v4170_v42  ;;  %v4174_v44 = vld [vmem:[#allocation12 + $0x5a0] sm:$0xff]  ;;  %v4176_v19 = vld [vmem:[#allocation12 + $0x5b0] sm:$0xff] }
 0x874   : > { %10950 = vst [vmem:[#allocation79_spill] sm:$0xff] %v10065_v17  ;;  %v10069_v40 = vpop.f32.mrb[71].mxu0  ;;  %v10071_v1 = vpop.f32.mrb[199].mxu1  ;;  %v3965_v17 = vmax.f32 %v3524_v9, 0.0 }
 0x875   : > { %10951 = vst [vmem:[#allocation80_spill] sm:$0xff] %v10071_v1  ;;  %4548 = vmatmul.mubr.f32.gmra.mrb[100].mxu0 %v3948_v58  ;;  %v3530_v1 = vadd.f32 %v9902_v33, %v9913_v51  ;;  %v3964_v59 = vmax.f32 %v3522_v61, 0.0  ;;  %v4181_v61 = vld [vmem:[#allocation12 + $0x5d8] sm:$0xff] }
 0x876   : > { %4553 = vmatprep.mubr.f32.mxu0 %v3957_v16  ;;  %6649 = vmatpush1.bf16.msra.mxu0 %v6648_v10  ;;  %v4175_v10 = vld [vmem:[#allocation12 + $0x5a8] sm:$0xff] }
 0x877   : > { %v10075_v50 = vpop.f32.mrb[72].mxu0  ;;  %v10077_v32 = vpop.f32.mrb[200].mxu1  ;;  %6651 = vmatprep.subr.bf16.mxu0 %v6650_v52  ;;  %v3528_v52 = vadd.f32 %v9899_v25, %v9921_v37  ;;  %v6658_v33 = vpack.c.bf16 %v4177_v46, %v4175_v10  ;;  %v6660_v25 = vpack.c.bf16 %v4176_v19, %v4174_v44  ;;  %v4178_v10 = vld [vmem:[#allocation12 + $0x5c0] sm:$0xff]  ;;  %v4180_v46 = vld [vmem:[#allocation12 + $0x5d0] sm:$0xff]  ;;  %v4183_v44 = vld [vmem:[#allocation12 + $0x5e8] sm:$0xff] }
 0x878   : > { %10952 = vst [vmem:[#allocation81_spill] sm:$0xff] %v10077_v32  ;;  %v10081_v58 = vpop.f32.mrb[73].mxu0  ;;  %v10083_v16 = vpop.f32.mrb[201].mxu1  ;;  %v3973_v32 = vmax.f32 %v3530_v1, 0.0 }
 0x879   : > { %10953 = vst [vmem:[#allocation82_spill] sm:$0xff] %v10083_v16  ;;  %4554 = vmatmul.mubr.f32.gmra.mrb[102].mxu0 %v3956_v35  ;;  %v3536_v16 = vadd.f32 %v9908_v48, %v9913_v51  ;;  %v3972_v42 = vmax.f32 %v3528_v52, 0.0 }
 0x87a   : > { %4559 = vmatprep.mubr.f32.mxu0 %v3965_v17  ;;  %6653 = vmatpush1.bf16.msra.mxu0 %v6652_v24  ;;  %v4179_v24 = vld [vmem:[#allocation12 + $0x5c8] sm:$0xff] }
 0x87b   : > { %v10087_v15 = vpop.f32.mrb[74].mxu0  ;;  %v10089_v9 = vpop.f32.mrb[202].mxu1  ;;  %6655 = vmatprep.subr.bf16.mxu0 %v6654_v0  ;;  %v3534_v0 = vadd.f32 %v9905_v62, %v9921_v37  ;;  %v6662_v48 = vpack.c.bf16 %v4181_v61, %v4179_v24 }
 0x87c   : > { %10954 = vst [vmem:[#allocation83_spill] sm:$0xff] %v10089_v9  ;;  %v10093_v35 = vpop.f32.mrb[75].mxu0  ;;  %v10095_v17 = vpop.f32.mrb[203].mxu1  ;;  %v3981_v9 = vmax.f32 %v3536_v16, 0.0  ;;  %v6664_v16 = vpack.c.bf16 %v4180_v46, %v4178_v10  ;;  %v4189_v10 = vld [vmem:[#allocation12 + $0x618] sm:$0xff] }
 0x87d   : > { %10955 = vst [vmem:[#allocation84_spill] sm:$0xff] %v10095_v17  ;;  %4560 = vmatmul.mubr.f32.gmra.mrb[104].mxu0 %v3964_v59  ;;  %v3542_v17 = vadd.f32 %v9924_v31, %v9913_v51  ;;  %v10105_v59 = vld [vmem:[#allocation11] sm:$0xff]  ;;  %v3980_v19 = vmax.f32 %v3534_v0, 0.0  ;;  %v3540_v51 = vadd.f32 %v9916_v22, %v9921_v37  ;;  %v10959_v31 = vsub.s32 4, %v10934_v56  ;;  %v4187_v37 = vld [vmem:[#allocation12 + $0x608] sm:$0xff] }
 0x87e   : > { %4565 = vmatprep.mubr.f32.mxu0 %v3973_v32  ;;  %6657 = vmatpush1.bf16.msra.mxu0 %v6656_v55  ;;  %v10957_v32 = vsub.s32 5, %v10934_v56 }
 0x87f   : > { %v10099_v18 = vpop.f32.mrb[76].mxu0  ;;  %v10101_v1 = vpop.f32.mrb[204].mxu1  ;;  %6659 = vmatprep.subr.bf16.mxu0 %v6658_v33  ;;  %v4185_v33 = vld [vmem:[#allocation12 + $0x5f8] sm:$0xff]  ;;  %v10121_v24 = vrot.slane %v10105_v59, %v10959_v31  ;;  %v3988_v31 = vmax.f32 %v3540_v51, 0.0  ;;  %v4192_v51 = vld [vmem:[#allocation12 + $0x630] sm:$0xff] }
 0x880   : > { %10956 = vst [vmem:[#allocation85_spill] sm:$0xff] %v10101_v1  ;;  %v10110_v55 = vrot.slane %v10105_v59, %v10957_v32  ;;  %v10112_v62 = vpop.f32.mrb[77].mxu0  ;;  %v10114_v52 = vpop.f32.mrb[205].mxu1  ;;  %v6666_v1 = vpack.c.bf16 %v4185_v33, %v4183_v44  ;;  %v6670_v44 = vpack.c.bf16 %v4189_v10, %v4187_v37  ;;  %v4188_v33 = vld [vmem:[#allocation12 + $0x610] sm:$0xff] }
 0x881   : > { %10958 = vst [vmem:[#allocation86_spill] sm:$0xff] %v10114_v52  ;;  %4566 = vmatmul.mubr.f32.gmra.mrb[106].mxu0 %v3972_v42  ;;  %v4182_v52 = vld [vmem:[#allocation12 + $0x5e0] sm:$0xff]  ;;  %v4184_v42 = vld [vmem:[#allocation12 + $0x5f0] sm:$0xff]  ;;  %v3623_v10 = vadd.f32 %v9955_v57, %v10121_v24 }
 0x882   : > { %4571 = vmatprep.mubr.f32.mxu0 %v3981_v9  ;;  %6661 = vmatpush1.bf16.msra.mxu0 %v6660_v25  ;;  %v3989_v9 = vmax.f32 %v3542_v17, 0.0  ;;  %v3613_v25 = vadd.f32 %v9937_v20, %v10110_v55  ;;  %v6668_v46 = vpack.c.bf16 %v4184_v42, %v4182_v52  ;;  %v4186_v17 = vld [vmem:[#allocation12 + $0x600] sm:$0xff]  ;;  %v3619_v20 = vadd.f32 %v9949_v39, %v10110_v55  ;;  %v4197_v39 = vld [vmem:[#allocation12 + $0x658] sm:$0xff] }
 0x883   : > { %v10123_v61 = vpop.f32.mrb[78].mxu0  ;;  %v10125_v32 = vpop.f32.mrb[206].mxu1  ;;  %6663 = vmatprep.subr.bf16.mxu0 %v6662_v48  ;;  %v3611_v48 = vadd.f32 %v9931_v2, %v10121_v24  ;;  %v3617_v52 = vadd.f32 %v9943_v41, %v10121_v24 }
 0x884   : > { %10960 = vst [vmem:[#allocation87_spill] sm:$0xff] %v10125_v32  ;;  %v10129_v0 = vpop.f32.mrb[79].mxu0  ;;  %v10131_v22 = vpop.f32.mrb[207].mxu1  ;;  %v3871_v32 = vmax.f32 %v3613_v25, 0.0  ;;  %v3879_v42 = vmax.f32 %v3619_v20, 0.0  ;;  %v4195_v25 = vld [vmem:[#allocation12 + $0x648] sm:$0xff] }
 0x885   : > { %10961 = vst [vmem:[#allocation88_spill] sm:$0xff] %v10131_v22  ;;  %4572 = vmatmul.mubr.f32.gmra.mrb[108].mxu0 %v3980_v19  ;;  %v4193_v22 = vld [vmem:[#allocation12 + $0x638] sm:$0xff]  ;;  %v6672_v19 = vpack.c.bf16 %v4188_v33, %v4186_v17  ;;  %v6678_v41 = vpack.c.bf16 %v4197_v39, %v4195_v25  ;;  %v3886_v17 = vmax.f32 %v3623_v10, 0.0  ;;  %v3629_v33 = vadd.f32 %v9967_v7, %v10121_v24  ;;  %v4198_v20 = vld [vmem:[#allocation12 + $0x660] sm:$0xff]  ;;  %v4204_v25 = vld [vmem:[#allocation12 + $0x690] sm:$0xff] }
 0x886   : > { %4577 = vmatprep.mubr.f32.mxu0 %v3989_v9  ;;  %6665 = vmatpush1.bf16.msra.mxu0 %v6664_v16  ;;  %v3870_v16 = vmax.f32 %v3611_v48, 0.0  ;;  %v6674_v2 = vpack.c.bf16 %v4193_v22, %v4191_v28  ;;  %v3625_v9 = vadd.f32 %v9961_v34, %v10110_v55  ;;  %v4196_v28 = vld [vmem:[#allocation12 + $0x650] sm:$0xff]  ;;  %v4199_v48 = vld [vmem:[#allocation12 + $0x668] sm:$0xff]  ;;  %v4201_v34 = vld [vmem:[#allocation12 + $0x678] sm:$0xff] }
 0x887   : > { %6667 = vmatprep.subr.bf16.mxu0 %v6666_v1  ;;  %v4190_v1 = vld [vmem:[#allocation12 + $0x620] sm:$0xff]  ;;  %v6682_v57 = vpack.c.bf16 %v4201_v34, %v4199_v48  ;;  %v3649_v48 = vadd.f32 %v10009_v12, %v10110_v55  ;;  %v4211_v34 = vld [vmem:[#allocation12 + $0x6c8] sm:$0xff]  ;;  %v4217_v12 = vld [vmem:[#allocation12 + $0x6f8] sm:$0xff] }
 0x888   : > { %v6676_v37 = vpack.c.bf16 %v4192_v51, %v4190_v1  ;;  %v3887_v22 = vmax.f32 %v3625_v9, 0.0  ;;  %v3894_v51 = vmax.f32 %v3629_v33, 0.0  ;;  %v4202_v9 = vld [vmem:[#allocation12 + $0x680] sm:$0xff]  ;;  %v3647_v33 = vadd.f32 %v10003_v8, %v10121_v24 }
 0x889   : > { %4578 = vmatmul.mubr.f32.gmra.mrb[110].mxu0 %v3988_v31  ;;  %v3631_v31 = vadd.f32 %v9973_v30, %v10110_v55  ;;  %v4205_v30 = vld [vmem:[#allocation12 + $0x698] sm:$0xff]  ;;  %v6688_v10 = vpack.c.bf16 %v4204_v25, %v4202_v9  ;;  %v3661_v9 = vadd.f32 %v10033_v63, %v10110_v55  ;;  %v4219_v25 = vld [vmem:[#allocation12 + $0x708] sm:$0xff] }
 0x88a   : > { %6669 = vmatpush1.bf16.msra.mxu0 %v6668_v46  ;;  %4648 = vmatprep.mubr.f32.mxu0 %v3871_v32  ;;  %v3878_v32 = vmax.f32 %v3617_v52, 0.0  ;;  %v4194_v46 = vld [vmem:[#allocation12 + $0x640] sm:$0xff]  ;;  %v3637_v52 = vadd.f32 %v9985_v23, %v10110_v55  ;;  %v4209_v23 = vld [vmem:[#allocation12 + $0x6b8] sm:$0xff] }
 0x88b   : > { %6671 = vmatprep.subr.bf16.mxu0 %v6670_v44  ;;  %v6680_v44 = vpack.c.bf16 %v4196_v28, %v4194_v46  ;;  %v3641_v46 = vadd.f32 %v9991_v53, %v10121_v24  ;;  %v4206_v28 = vld [vmem:[#allocation12 + $0x6a0] sm:$0xff]  ;;  %v4225_v63 = vld [vmem:[#allocation12 + $0x738] sm:$0xff] }
 0x88c   : > { %v3903_v39 = vmax.f32 %v3637_v52, 0.0  ;;  %v4215_v52 = vld [vmem:[#allocation12 + $0x6e8] sm:$0xff] }
 0x88d   : > { %4649 = vmatmul.mubr.f32.vlgmr.msra.gmra.mrb[80].mxu0 %v3870_v16  ;;  %v3895_v16 = vmax.f32 %v3631_v31, 0.0  ;;  %v6698_v8 = vpack.c.bf16 %v4217_v12, %v4215_v52  ;;  %v3679_v52 = vadd.f32 %v10069_v40, %v10110_v55  ;;  %v4231_v12 = vld [vmem:[#allocation12 + $0x768] sm:$0xff]  ;;  %v4237_v40 = vld [vmem:[#allocation12 + $0x798] sm:$0xff] }
 0x88e   : > { %4654 = vmatprep.mubr.f32.mxu0 %v3879_v42  ;;  %6673 = vmatpush1.bf16.msra.mxu0 %v6672_v19  ;;  %v4200_v19 = vld [vmem:[#allocation12 + $0x670] sm:$0xff]  ;;  %v3635_v42 = vadd.f32 %v9979_v3, %v10121_v24 }
 0x88f   : > { %6675 = vmatprep.subr.bf16.mxu0 %v6674_v2  ;;  %v4203_v2 = vld [vmem:[#allocation12 + $0x688] sm:$0xff]  ;;  %v6684_v1 = vpack.c.bf16 %v4200_v19, %v4198_v20  ;;  %v4212_v20 = vld [vmem:[#allocation12 + $0x6d0] sm:$0xff]  ;;  %v3919_v19 = vmax.f32 %v3649_v48, 0.0  ;;  %v4222_v48 = vld [vmem:[#allocation12 + $0x720] sm:$0xff] }
 0x890   : > { %v6686_v7 = vpack.c.bf16 %v4205_v30, %v4203_v2  ;;  %v3918_v30 = vmax.f32 %v3647_v33, 0.0 }
 0x891   : > { %4655 = vmatmul.mubr.f32.gmra.mrb[82].mxu0 %v3878_v32  ;;  %v4207_v32 = vld [vmem:[#allocation12 + $0x6a8] sm:$0xff] }
 0x892   : > { %4660 = vmatprep.mubr.f32.mxu0 %v3887_v22  ;;  %6677 = vmatpush1.bf16.msra.mxu0 %v6676_v37  ;;  %v3643_v37 = vadd.f32 %v9997_v47, %v10110_v55  ;;  %v6690_v3 = vpack.c.bf16 %v4209_v23, %v4207_v32  ;;  %v4208_v22 = vld [vmem:[#allocation12 + $0x6b0] sm:$0xff]  ;;  %v4213_v47 = vld [vmem:[#allocation12 + $0x6d8] sm:$0xff]  ;;  %v3659_v32 = vadd.f32 %v10027_v6, %v10121_v24  ;;  %v4218_v23 = vld [vmem:[#allocation12 + $0x700] sm:$0xff] }
 0x893   : > { %6679 = vmatprep.subr.bf16.mxu0 %v6678_v41  ;;  %v3902_v41 = vmax.f32 %v3635_v42, 0.0  ;;  %v6694_v53 = vpack.c.bf16 %v4213_v47, %v4211_v34  ;;  %v4216_v42 = vld [vmem:[#allocation12 + $0x6f0] sm:$0xff] }
 0x894   : > { %v3911_v31 = vmax.f32 %v3643_v37, 0.0  ;;  %v4224_v34 = vld [vmem:[#allocation12 + $0x730] sm:$0xff] }
 0x895   : > { %4661 = vmatmul.mubr.f32.gmra.mrb[84].mxu0 %v3886_v17  ;;  %v3910_v17 = vmax.f32 %v3641_v46, 0.0  ;;  %v3667_v46 = vadd.f32 %v10045_v14, %v10110_v55  ;;  %v4229_v14 = vld [vmem:[#allocation12 + $0x758] sm:$0xff]  ;;  %v6708_v33 = vpack.c.bf16 %v4224_v34, %v4222_v48 }
 0x896   : > { %4666 = vmatprep.mubr.f32.mxu0 %v3895_v16  ;;  %6681 = vmatpush1.bf16.msra.mxu0 %v6680_v44  ;;  %v6692_v44 = vpack.c.bf16 %v4208_v22, %v4206_v28  ;;  %v3655_v16 = vadd.f32 %v10021_v26, %v10110_v55  ;;  %v4221_v26 = vld [vmem:[#allocation12 + $0x718] sm:$0xff]  ;;  %v3934_v22 = vmax.f32 %v3659_v32, 0.0  ;;  %v4236_v32 = vld [vmem:[#allocation12 + $0x790] sm:$0xff] }
 0x897   : > { %6683 = vmatprep.subr.bf16.mxu0 %v6682_v57  ;;  %v4210_v57 = vld [vmem:[#allocation12 + $0x6c0] sm:$0xff]  ;;  %v3943_v47 = vmax.f32 %v3667_v46, 0.0  ;;  %v4245_v48 = vld [vmem:[#allocation12 + $0x7d8] sm:$0xff] }
 0x898   : > { %v6696_v2 = vpack.c.bf16 %v4212_v20, %v4210_v57  ;;  %v3671_v57 = vadd.f32 %v10051_v43, %v10121_v24  ;;  %v4226_v20 = vld [vmem:[#allocation12 + $0x740] sm:$0xff] }
 0x899   : > { %4667 = vmatmul.mubr.f32.gmra.mrb[86].mxu0 %v3894_v51  ;;  %v4214_v51 = vld [vmem:[#allocation12 + $0x6e0] sm:$0xff] }
 0x89a   : > { %4672 = vmatprep.mubr.f32.mxu0 %v3903_v39  ;;  %6685 = vmatpush1.bf16.msra.mxu0 %v6684_v1  ;;  %v3653_v1 = vadd.f32 %v10015_v45, %v10121_v24  ;;  %v6700_v39 = vpack.c.bf16 %v4216_v42, %v4214_v51  ;;  %v6702_v45 = vpack.c.bf16 %v4221_v26, %v4219_v25  ;;  %v4232_v51 = vld [vmem:[#allocation12 + $0x770] sm:$0xff]  ;;  %v3959_v42 = vmax.f32 %v3679_v52, 0.0 }
 0x89b   : > { %6687 = vmatprep.subr.bf16.mxu0 %v6686_v7  ;;  %v3927_v7 = vmax.f32 %v3655_v16, 0.0 }
 0x89c   : > { %v3926_v37 = vmax.f32 %v3653_v1, 0.0  ;;  %v3677_v1 = vadd.f32 %v10063_v29, %v10121_v24 }
 0x89d   : > { %4673 = vmatmul.mubr.f32.gmra.mrb[88].mxu0 %v3902_v41  ;;  %v3935_v41 = vmax.f32 %v3661_v9, 0.0  ;;  %v4235_v9 = vld [vmem:[#allocation12 + $0x788] sm:$0xff] }
 0x89e   : > { %4678 = vmatprep.mubr.f32.mxu0 %v3911_v31  ;;  %6689 = vmatpush1.bf16.msra.mxu0 %v6688_v10  ;;  %v4220_v10 = vld [vmem:[#allocation12 + $0x710] sm:$0xff]  ;;  %v3665_v31 = vadd.f32 %v10039_v5, %v10121_v24  ;;  %v3958_v26 = vmax.f32 %v3677_v1, 0.0  ;;  %v6718_v29 = vpack.c.bf16 %v4237_v40, %v4235_v9 }
 0x89f   : > { %6691 = vmatprep.subr.bf16.mxu0 %v6690_v3  ;;  %v4223_v3 = vld [vmem:[#allocation12 + $0x728] sm:$0xff]  ;;  %v6704_v28 = vpack.c.bf16 %v4220_v10, %v4218_v23  ;;  %v3691_v23 = vadd.f32 %v10093_v35, %v10110_v55  ;;  %v3697_v35 = vadd.f32 %v10112_v62, %v10110_v55 }
 0x8a0   : > { %v6706_v6 = vpack.c.bf16 %v4225_v63, %v4223_v3  ;;  %v4239_v10 = vld [vmem:[#allocation12 + $0x7a8] sm:$0xff]  ;;  %v3689_v3 = vadd.f32 %v10087_v15, %v10121_v24  ;;  %v4238_v63 = vld [vmem:[#allocation12 + $0x7a0] sm:$0xff]  ;;  %v3695_v15 = vadd.f32 %v10099_v18, %v10121_v24 }
 0x8a1   : > { %4679 = vmatmul.mubr.f32.gmra.mrb[90].mxu0 %v3910_v17  ;;  %v4227_v17 = vld [vmem:[#allocation12 + $0x748] sm:$0xff]  ;;  %v3983_v62 = vmax.f32 %v3697_v35, 0.0 }
 0x8a2   : > { %4684 = vmatprep.mubr.f32.mxu0 %v3919_v19  ;;  %6693 = vmatpush1.bf16.msra.mxu0 %v6692_v44  ;;  %v3673_v44 = vadd.f32 %v10057_v60, %v10110_v55  ;;  %v6710_v5 = vpack.c.bf16 %v4229_v14, %v4227_v17  ;;  %v4228_v19 = vld [vmem:[#allocation12 + $0x750] sm:$0xff]  ;;  %v4233_v60 = vld [vmem:[#allocation12 + $0x778] sm:$0xff]  ;;  %v4242_v14 = vld [vmem:[#allocation12 + $0x7c0] sm:$0xff]  ;;  %v3982_v18 = vmax.f32 %v3695_v15, 0.0 }
 0x8a3   : > { %6695 = vmatprep.subr.bf16.mxu0 %v6694_v53  ;;  %v3942_v53 = vmax.f32 %v3665_v31, 0.0  ;;  %v6714_v43 = vpack.c.bf16 %v4233_v60, %v4231_v12  ;;  %v3975_v31 = vmax.f32 %v3691_v23, 0.0  ;;  %v4246_v12 = vld [vmem:[#allocation12 + $0x7e0] sm:$0xff]  ;;  %v4248_v60 = vld [vmem:[#allocation12 + $0x7f0] sm:$0xff] }
 0x8a4   : > { %v3951_v16 = vmax.f32 %v3673_v44, 0.0  ;;  %v3974_v44 = vmax.f32 %v3689_v3, 0.0 }
 0x8a5   : > { %4685 = vmatmul.mubr.f32.gmra.mrb[92].mxu0 %v3918_v30  ;;  %v3950_v30 = vmax.f32 %v3671_v57, 0.0  ;;  %v3703_v57 = vadd.f32 %v10129_v0, %v10110_v55 }
 0x8a6   : > { %4690 = vmatprep.mubr.f32.mxu0 %v3927_v7  ;;  %6697 = vmatpush1.bf16.msra.mxu0 %v6696_v2  ;;  %v6712_v2 = vpack.c.bf16 %v4228_v19, %v4226_v20  ;;  %v3685_v7 = vadd.f32 %v10081_v58, %v10110_v55  ;;  %v4241_v58 = vld [vmem:[#allocation12 + $0x7b8] sm:$0xff] }
 0x8a7   : > { %6699 = vmatprep.subr.bf16.mxu0 %v6698_v8  ;;  %v4230_v8 = vld [vmem:[#allocation12 + $0x760] sm:$0xff]  ;;  %v4249_v20 = vld [vmem:[#allocation12 + $0x7f8] sm:$0xff]  ;;  %v3991_v0 = vmax.f32 %v3703_v57, 0.0 }
 0x8a8   : > { %v6716_v25 = vpack.c.bf16 %v4232_v51, %v4230_v8  ;;  %v10973_v57 = vld [vmem:[#allocation78_spill] sm:$0xff] }
 0x8a9   : > { %4691 = vmatmul.mubr.f32.gmra.mrb[94].mxu0 %v3926_v37  ;;  %v4234_v37 = vld [vmem:[#allocation12 + $0x780] sm:$0xff] }
 0x8aa   : > { %4696 = vmatprep.mubr.f32.mxu0 %v3935_v41  ;;  %6701 = vmatpush1.bf16.msra.mxu0 %v6700_v39  ;;  %v3683_v39 = vadd.f32 %v10075_v50, %v10121_v24  ;;  %v6720_v41 = vpack.c.bf16 %v4236_v32, %v4234_v37  ;;  %v6722_v50 = vpack.c.bf16 %v4241_v58, %v4239_v10  ;;  %v10964_v37 = vld [vmem:[#allocation67_spill] sm:$0xff]  ;;  %v10966_v10 = vld [vmem:[#allocation69_spill] sm:$0xff] }
 0x8ab   : > { %6703 = vmatprep.subr.bf16.mxu0 %v6702_v45  ;;  %v3967_v45 = vmax.f32 %v3685_v7, 0.0 }
 0x8ac   : > { %v3966_v46 = vmax.f32 %v3683_v39, 0.0  ;;  %v10963_v39 = vld [vmem:[#allocation68_spill] sm:$0xff] }
 0x8ad   : > { %4697 = vmatmul.mubr.f32.gmra.mrb[96].mxu0 %v3934_v22  ;;  %v3212_v22 = vsub.s32 7, %v10934_v56 }
 0x8ae   : > { %4702 = vmatprep.mubr.f32.mxu0 %v3943_v47  ;;  %6705 = vmatpush1.bf16.msra.mxu0 %v6704_v28  ;;  %v4240_v28 = vld [vmem:[#allocation12 + $0x7b0] sm:$0xff]  ;;  %v3208_v47 = vsub.s32 6, %v10934_v56 }
 0x8af   : > { %6707 = vmatprep.subr.bf16.mxu0 %v6706_v6  ;;  %v4243_v6 = vld [vmem:[#allocation12 + $0x7c8] sm:$0xff]  ;;  %v6724_v34 = vpack.c.bf16 %v4240_v28, %v4238_v63 }
 0x8b0   : > { %v6726_v17 = vpack.c.bf16 %v4245_v48, %v4243_v6  ;;  %v10199_v19 = vrot.slane %v10105_v59, %v3208_v47  ;;  %v10968_v63 = vld [vmem:[#allocation71_spill] sm:$0xff]  ;;  %v10970_v48 = vld [vmem:[#allocation73_spill] sm:$0xff] }
 0x8b1   : > { %4703 = vmatmul.mubr.f32.gmra.mrb[98].mxu0 %v3942_v53  ;;  %v10194_v53 = vrot.slane %v10105_v59, %v3212_v22 }
 0x8b2   : > { %4708 = vmatprep.mubr.f32.mxu0 %v3951_v16  ;;  %6709 = vmatpush1.bf16.msra.mxu0 %v6708_v33  ;;  %v4244_v33 = vld [vmem:[#allocation12 + $0x7d0] sm:$0xff]  ;;  %v3701_v16 = vadd.f32 %v10123_v61, %v10121_v24  ;;  %v3772_v59 = vadd.f32 %v9933_v38, %v10199_v19  ;;  %v3784_v51 = vadd.f32 %v9957_v36, %v10199_v19 }
 0x8b3   : > { %6711 = vmatprep.subr.bf16.mxu0 %v6710_v5  ;;  %v4247_v5 = vld [vmem:[#allocation12 + $0x7e8] sm:$0xff]  ;;  %v6728_v56 = vpack.c.bf16 %v4244_v33, %v4242_v14  ;;  %v3774_v55 = vadd.f32 %v9939_v11, %v10194_v53  ;;  %v3780_v24 = vadd.f32 %v9951_v13, %v10194_v53  ;;  %v3778_v11 = vadd.f32 %v9945_v27, %v10199_v19 }
 0x8b4   : > { %v6730_v52 = vpack.c.bf16 %v4249_v20, %v4247_v5  ;;  %v3872_v61 = vmax.f32 %v3772_v59, 0.0  ;;  %v3786_v8 = vadd.f32 %v9963_v4, %v10194_v53  ;;  %v3792_v13 = vadd.f32 %v9975_v49, %v10194_v53  ;;  %v10972_v14 = vld [vmem:[#allocation75_spill] sm:$0xff]  ;;  %v10977_v59 = vld [vmem:[#allocation82_spill] sm:$0xff] }
 0x8b5   : > { %4709 = vmatmul.mubr.f32.gmra.mrb[100].mxu0 %v3950_v30  ;;  %v3990_v30 = vmax.f32 %v3701_v16, 0.0  ;;  %v3873_v1 = vmax.f32 %v3774_v55, 0.0  ;;  %v3880_v38 = vmax.f32 %v3778_v11, 0.0  ;;  %v3888_v7 = vmax.f32 %v3784_v51, 0.0  ;;  %v10976_v55 = vld [vmem:[#allocation79_spill] sm:$0xff] }
 0x8b6   : > { %4714 = vmatprep.mubr.f32.mxu0 %v3959_v42  ;;  %6713 = vmatpush1.bf16.msra.mxu0 %v6712_v2  ;;  %v6732_v2 = vpack.c.bf16 %v4248_v60, %v4246_v12  ;;  %v3889_v42 = vmax.f32 %v3786_v8, 0.0  ;;  %v3790_v27 = vadd.f32 %v9969_v54, %v10199_v19  ;;  %v3897_v9 = vmax.f32 %v3792_v13, 0.0  ;;  %v10980_v51 = vld [vmem:[#allocation83_spill] sm:$0xff] }
 0x8b7   : > { %6715 = vmatprep.subr.bf16.mxu0 %v6714_v43  ;;  %v3881_v43 = vmax.f32 %v3780_v24, 0.0  ;;  %v3798_v4 = vadd.f32 %v9987_v21, %v10194_v53  ;;  %v3804_v49 = vadd.f32 %v10963_v39, %v10194_v53  ;;  %v3802_v54 = vadd.f32 %v10964_v37, %v10199_v19  ;;  %v10978_v24 = vld [vmem:[#allocation81_spill] sm:$0xff] }
 0x8b8   : > { %v3896_v40 = vmax.f32 %v3790_v27, 0.0  ;;  %v3808_v58 = vadd.f32 %v10966_v10, %v10199_v19  ;;  %v3814_v28 = vadd.f32 %v10968_v63, %v10199_v19  ;;  %v3826_v33 = vadd.f32 %v10972_v14, %v10199_v19 }
 0x8b9   : > { %4715 = vmatmul.mubr.f32.gmra.mrb[102].mxu0 %v3958_v26  ;;  %v3905_v26 = vmax.f32 %v3798_v4, 0.0  ;;  %v3913_v32 = vmax.f32 %v3804_v49, 0.0  ;;  %v3912_v23 = vmax.f32 %v3802_v54, 0.0  ;;  %v3834_v5 = vadd.f32 %v10973_v57, %v10194_v53  ;;  %v10982_v4 = vld [vmem:[#allocation85_spill] sm:$0xff]  ;;  %v10984_v49 = vld [vmem:[#allocation87_spill] sm:$0xff]  ;;  %v10991_v57 = vld [vmem:[#allocation40_spill] sm:$0xff] }
 0x8ba   : > { %4720 = vmatprep.mubr.f32.mxu0 %v3967_v45  ;;  %6717 = vmatpush1.bf16.msra.mxu0 %v6716_v25  ;;  %v10962_v25 = vld [vmem:[#allocation32_spill] sm:$0xff]  ;;  %v10965_v45 = vld [vmem:[#allocation70_spill] sm:$0xff]  ;;  %v3928_v6 = vmax.f32 %v3814_v28, 0.0  ;;  %v3944_v20 = vmax.f32 %v3826_v33, 0.0 }
 0x8bb   : > { %6719 = vmatprep.subr.bf16.mxu0 %v6718_v29  ;;  %v3796_v36 = vadd.f32 %v10962_v25, %v10199_v19  ;;  %v3810_v21 = vadd.f32 %v10965_v45, %v10194_v53  ;;  %v3953_v16 = vmax.f32 %v3834_v5, 0.0  ;;  %v10985_v45 = vld [vmem:[#allocation33_spill] sm:$0xff] }
 0x8bd   : > { %4721 = vmatmul.mubr.f32.gmra.mrb[104].mxu0 %v3966_v46  ;;  %v3904_v29 = vmax.f32 %v3796_v36, 0.0  ;;  %v10967_v46 = vld [vmem:[#allocation72_spill] sm:$0xff] }
 0x8be   : > { %4726 = vmatprep.mubr.f32.mxu0 %v3975_v31  ;;  %6721 = vmatpush1.bf16.msra.mxu0 %v6720_v41  ;;  %v3921_v41 = vmax.f32 %v3810_v21, 0.0  ;;  %v3816_v3 = vadd.f32 %v10967_v46, %v10194_v53  ;;  %v10969_v31 = vld [vmem:[#allocation74_spill] sm:$0xff]  ;;  %v10983_v36 = vld [vmem:[#allocation88_spill] sm:$0xff] }
 0x8bf   : > { %6723 = vmatprep.subr.bf16.mxu0 %v6722_v50  ;;  %v3920_v50 = vmax.f32 %v3808_v58, 0.0  ;;  %v3822_v35 = vadd.f32 %v10969_v31, %v10194_v53 }
 0x8c0   : > { %v3929_v22 = vmax.f32 %v3816_v3, 0.0  ;;  %v10987_v3 = vld [vmem:[#allocation36_spill] sm:$0xff] }
 0x8c1   : > { %4727 = vmatmul.mubr.f32.gmra.mrb[106].mxu0 %v3974_v44  ;;  %v3937_v47 = vmax.f32 %v3822_v35, 0.0  ;;  %v10971_v44 = vld [vmem:[#allocation76_spill] sm:$0xff] }
 0x8c2   : > { %4732 = vmatprep.mubr.f32.mxu0 %v3983_v62  ;;  %6725 = vmatpush1.bf16.msra.mxu0 %v6724_v34  ;;  %v3820_v34 = vadd.f32 %v10970_v48, %v10199_v19  ;;  %v3828_v15 = vadd.f32 %v10971_v44, %v10194_v53  ;;  %v10989_v48 = vld [vmem:[#allocation38_spill] sm:$0xff] }
 0x8c3   : > { %6727 = vmatprep.subr.bf16.mxu0 %v6726_v17 }
 0x8c4   : > { %v3936_v17 = vmax.f32 %v3820_v34, 0.0  ;;  %v3945_v62 = vmax.f32 %v3828_v15, 0.0 }
 0x8c5   : > { %4733 = vmatmul.mubr.f32.gmra.mrb[108].mxu0 %v3982_v18 }
 0x8c6   : > { %4738 = vmatprep.mubr.f32.mxu0 %v3991_v0  ;;  %6729 = vmatpush1.bf16.msra.mxu0 %v6728_v56  ;;  %v10974_v56 = vld [vmem:[#allocation77_spill] sm:$0xff]  ;;  %v3838_v0 = vadd.f32 %v10976_v55, %v10199_v19  ;;  %v10993_v55 = vld [vmem:[#allocation42_spill] sm:$0xff] }
 0x8c7   : > { %6731 = vmatprep.subr.bf16.mxu0 %v6730_v52  ;;  %v3832_v18 = vadd.f32 %v10974_v56, %v10199_v19  ;;  %v10975_v52 = vld [vmem:[#allocation80_spill] sm:$0xff] }
 0x8c8   : > { %v3840_v12 = vadd.f32 %v10975_v52, %v10194_v53 }
 0x8c9   : > { %4739 = vmatmul.mubr.f32.gmra.mrb[110].mxu0 %v3990_v30  ;;  %v3952_v60 = vmax.f32 %v3832_v18, 0.0  ;;  %v3846_v30 = vadd.f32 %v10977_v59, %v10194_v53 }
 0x8ca   : > { %6733 = vmatpush1.bf16.msra.mxu0 %v6732_v2  ;;  %4809 = vmatprep.mubr.f32.mxu0 %v3873_v1  ;;  %v3961_v2 = vmax.f32 %v3840_v12, 0.0  ;;  %v3960_v1 = vmax.f32 %v3838_v0, 0.0 }
 0x8cb   : > { %v3969_v11 = vmax.f32 %v3846_v30, 0.0 }
 0x8cd   : > { %4810 = vmatmul.mubr.f32.vlgmr.msra.gmra.mrb[80].mxu0 %v3872_v61  ;;  %v3844_v61 = vadd.f32 %v10978_v24, %v10199_v19 }
 0x8ce   : > { %4815 = vmatprep.mubr.f32.mxu0 %v3881_v43  ;;  %v10979_v43 = vld [vmem:[#allocation84_spill] sm:$0xff] }
 0x8cf   : > { %v3852_v8 = vadd.f32 %v10979_v43, %v10194_v53  ;;  %v10995_v43 = vld [vmem:[#allocation44_spill] sm:$0xff] }
 0x8d1   : > { %4816 = vmatmul.mubr.f32.gmra.mrb[82].mxu0 %v3880_v38  ;;  %v3968_v38 = vmax.f32 %v3844_v61, 0.0  ;;  %v3977_v13 = vmax.f32 %v3852_v8, 0.0 }
 0x8d2   : > { %4821 = vmatprep.mubr.f32.mxu0 %v3889_v42  ;;  %v3850_v42 = vadd.f32 %v10980_v51, %v10199_v19 }
 0x8d5   : > { %4822 = vmatmul.mubr.f32.gmra.mrb[84].mxu0 %v3888_v7  ;;  %v10981_v7 = vld [vmem:[#allocation86_spill] sm:$0xff] }
 0x8d6   : > { %4827 = vmatprep.mubr.f32.mxu0 %v3897_v9  ;;  %v3858_v27 = vadd.f32 %v10981_v7, %v10194_v53  ;;  %v3976_v9 = vmax.f32 %v3850_v42, 0.0 }
 0x8d8   : > { %v3985_v25 = vmax.f32 %v3858_v27, 0.0 }
 0x8d9   : > { %4828 = vmatmul.mubr.f32.gmra.mrb[86].mxu0 %v3896_v40  ;;  %v3856_v40 = vadd.f32 %v10982_v4, %v10199_v19  ;;  %v10997_v4 = vld [vmem:[#allocation46_spill] sm:$0xff] }
 0x8da   : > { %4833 = vmatprep.mubr.f32.mxu0 %v3905_v26  ;;  %v3864_v26 = vadd.f32 %v10983_v36, %v10194_v53 }
 0x8db   : > { %v3984_v39 = vmax.f32 %v3856_v40, 0.0 }
 0x8dc   : > { %v3993_v37 = vmax.f32 %v3864_v26, 0.0 }
 0x8dd   : > { %4834 = vmatmul.mubr.f32.gmra.mrb[88].mxu0 %v3904_v29  ;;  %v3862_v29 = vadd.f32 %v10984_v49, %v10199_v19 }
 0x8de   : > { %4839 = vmatprep.mubr.f32.mxu0 %v3913_v32  ;;  %v4250_v32 = vld [vmem:[#allocation14] sm:$0x3] }
 0x8df   : > { %v3992_v54 = vmax.f32 %v3862_v29, 0.0  ;;  %v10268_v21 = vrot.slane %v4250_v32, %v10985_v45 }
 0x8e1   : > { %4840 = vmatmul.mubr.f32.gmra.mrb[90].mxu0 %v3912_v23  ;;  %v10986_v23 = vld [vmem:[#allocation34_spill] sm:$0xff] }
 0x8e2   : > { %4845 = vmatprep.mubr.f32.mxu0 %v3921_v41  ;;  %v10271_v10 = vrot.slane %v4250_v32, %v10986_v23 }
 0x8e5   : > { %4846 = vmatmul.mubr.f32.gmra.mrb[92].mxu0 %v3920_v50  ;;  %v10988_v50 = vld [vmem:[#allocation35_spill] sm:$0xff] }
 0x8e6   : > { %4851 = vmatprep.mubr.f32.mxu0 %v3929_v22 }
 0x8e9   : > { %4852 = vmatmul.mubr.f32.gmra.mrb[94].mxu0 %v3928_v6 }
 0x8ea   : > { %4857 = vmatprep.mubr.f32.mxu0 %v3937_v47  ;;  %v10990_v47 = vld [vmem:[#allocation37_spill] sm:$0xff] }
 0x8ed   : > { %4858 = vmatmul.mubr.f32.gmra.mrb[96].mxu0 %v3936_v17 }
 0x8ee   : > { %4863 = vmatprep.mubr.f32.mxu0 %v3945_v62 }
 0x8f1   : > { %4864 = vmatmul.mubr.f32.gmra.mrb[98].mxu0 %v3944_v20  ;;  %v10992_v20 = vld [vmem:[#allocation39_spill] sm:$0xff] }
 0x8f2   : > { %4869 = vmatprep.mubr.f32.mxu0 %v3953_v16 }
 0x8f5   : > { %4870 = vmatmul.mubr.f32.gmra.mrb[100].mxu0 %v3952_v60 }
 0x8f6   : > { %4875 = vmatprep.mubr.f32.mxu0 %v3961_v2  ;;  %v10994_v2 = vld [vmem:[#allocation41_spill] sm:$0xff] }
 0x8f9   : > { %4876 = vmatmul.mubr.f32.gmra.mrb[102].mxu0 %v3960_v1 }
 0x8fa   : > { %4881 = vmatprep.mubr.f32.mxu0 %v3969_v11 }
 0x8fd   : > { %4882 = vmatmul.mubr.f32.gmra.mrb[104].mxu0 %v3968_v38  ;;  %v10996_v38 = vld [vmem:[#allocation43_spill] sm:$0xff] }
 0x8fe   : > { %4887 = vmatprep.mubr.f32.mxu0 %v3977_v13 }
 0x901   : > { %4888 = vmatmul.mubr.f32.gmra.mrb[106].mxu0 %v3976_v9 }
 0x902   : > { %4893 = vmatprep.mubr.f32.mxu0 %v3985_v25  ;;  %v10998_v25 = vld [vmem:[#allocation45_spill] sm:$0xff] }
 0x905   : > { %4894 = vmatmul.mubr.f32.gmra.mrb[108].mxu0 %v3984_v39 }
 0x906   : > { %4899 = vmatprep.mubr.f32.mxu0 %v3993_v37 }
 0x909   : > { %4900 = vmatmul.mubr.f32.gmra.mrb[110].mxu0 %v3992_v54  ;;  %v10999_v54 = vld [vmem:[#allocation48_spill] sm:$0xff] }
 0x9a0   : > { %v4811_v58 = vpop.f32.mrb[80].mxu0 }
 0x9a1   : > { %v6734_v53 = vadd.f32 %v4811_v58, %v10268_v21  ;;  %v4813_v41 = vpop.f32.mrb[81].mxu0  ;;  %v11000_v58 = vld [vmem:[#allocation47_spill] sm:$0xff] }
 0x9a2   : > { %v6735_v46 = vadd.f32 %v4813_v41, %v10271_v10 }
 0x9a3   : > { %v10276_v19 = vadd.f32 %v6734_v53, %v10987_v3 }
 0x9a4   : > { %v10279_v63 = vadd.f32 %v6735_v46, %v10988_v50  ;;  %v4817_v28 = vpop.f32.mrb[82].mxu0 }
 0x9a5   : > { %v6736_v22 = vadd.f32 %v4817_v28, %v10268_v21  ;;  %v4819_v31 = vpop.f32.mrb[83].mxu0 }
 0x9a6   : > { %v6737_v35 = vadd.f32 %v4819_v31, %v10271_v10  ;;  %v4940_v6 = vadd.f32 %v10279_v63, %v10276_v19 }
 0x9a7   : > { %v10286_v34 = vadd.f32 %v6736_v22, %v10989_v48  ;;  %v11001_v22 = vld [vmem:[#allocation50_spill] sm:$0xff] }
 0x9a8   : > { %v10289_v44 = vadd.f32 %v6737_v35, %v10990_v47  ;;  %v4823_v15 = vpop.f32.mrb[84].mxu0  ;;  %4941 = vadd.xlane.f32.xlu0 %v4940_v6  ;;  %v11002_v35 = vld [vmem:[#allocation49_spill] sm:$0xff] }
 0x9a9   : > { %v6738_v17 = vadd.f32 %v4823_v15, %v10268_v21  ;;  %v4825_v14 = vpop.f32.mrb[85].mxu0 }
 0x9aa   : > { %v6739_v33 = vadd.f32 %v4825_v14, %v10271_v10  ;;  %v4943_v62 = vadd.f32 %v10289_v44, %v10286_v34 }
 0x9ab   : > { %v10296_v5 = vadd.f32 %v6738_v17, %v10991_v57  ;;  %v11004_v57 = vld [vmem:[#allocation51_spill] sm:$0xff] }
 0x9ac   : > { %v10299_v56 = vadd.f32 %v6739_v33, %v10992_v20  ;;  %v4829_v18 = vpop.f32.mrb[86].mxu0  ;;  %4944 = vadd.xlane.f32.xlu1 %v4943_v62  ;;  %v11003_v33 = vld [vmem:[#allocation52_spill] sm:$0xff] }
 0x9ad   : > { %v6740_v16 = vadd.f32 %v4829_v18, %v10268_v21  ;;  %v4831_v52 = vpop.f32.mrb[87].mxu0 }
 0x9ae   : > { %v6741_v12 = vadd.f32 %v4831_v52, %v10271_v10  ;;  %v4946_v60 = vadd.f32 %v10299_v56, %v10296_v5 }
 0x9af   : > { %v10306_v0 = vadd.f32 %v6740_v16, %v10993_v55  ;;  %v11005_v55 = vld [vmem:[#allocation54_spill] sm:$0xff] }
 0x9b0   : > { %v10309_v59 = vadd.f32 %v6741_v12, %v10994_v2  ;;  %v4835_v30 = vpop.f32.mrb[88].mxu0  ;;  %4947 = vadd.xlane.f32.xlu0 %v4946_v60 }
 0x9b1   : > { %v6742_v1 = vadd.f32 %v4835_v30, %v10268_v21  ;;  %v4837_v24 = vpop.f32.mrb[89].mxu0  ;;  %v11006_v30 = vld [vmem:[#allocation53_spill] sm:$0xff] }
 0x9b2   : > { %v6743_v61 = vadd.f32 %v4837_v24, %v10271_v10  ;;  %v4949_v11 = vadd.f32 %v10309_v59, %v10306_v0 }
 0x9b3   : > { %v10316_v8 = vadd.f32 %v6742_v1, %v10995_v43 }
 0x9b4   : > { %v10319_v51 = vadd.f32 %v6743_v61, %v10996_v38  ;;  %v4841_v42 = vpop.f32.mrb[90].mxu0  ;;  %4950 = vadd.xlane.f32.xlu1 %v4949_v11 }
 0x9b5   : > { %v6744_v13 = vadd.f32 %v4841_v42, %v10268_v21  ;;  %v4843_v7 = vpop.f32.mrb[91].mxu0  ;;  %v11007_v42 = vld [vmem:[#allocation56_spill] sm:$0xff] }
 0x9b6   : > { %v6745_v27 = vadd.f32 %v4843_v7, %v10271_v10  ;;  %v4952_v9 = vadd.f32 %v10319_v51, %v10316_v8  ;;  %v11008_v7 = vld [vmem:[#allocation55_spill] sm:$0xff] }
 0x9b7   : > { %v10326_v40 = vadd.f32 %v6744_v13, %v10997_v4 }
 0x9b8   : > { %v10329_v36 = vadd.f32 %v6745_v27, %v10998_v25  ;;  %v4847_v26 = vpop.f32.mrb[92].mxu0  ;;  %4953 = vadd.xlane.f32.xlu0 %v4952_v9 }
 0x9b9   : > { %v6746_v39 = vadd.f32 %v4847_v26, %v10268_v21  ;;  %v4849_v49 = vpop.f32.mrb[93].mxu0 }
 0x9ba   : > { %v6747_v29 = vadd.f32 %v4849_v49, %v10271_v10  ;;  %v4955_v37 = vadd.f32 %v10329_v36, %v10326_v40  ;;  %v11009_v49 = vld [vmem:[#allocation58_spill] sm:$0xff] }
 0x9bb   : > { %v10336_v32 = vadd.f32 %v6746_v39, %v10999_v54 }
 0x9bc   : > { %v10339_v53 = vadd.f32 %v6747_v29, %v11000_v58  ;;  %v4853_v41 = vpop.f32.mrb[94].mxu0  ;;  %4956 = vadd.xlane.f32.xlu1 %v4955_v37  ;;  %v11010_v37 = vld [vmem:[#allocation57_spill] sm:$0xff] }
 0x9bd   : > { %v6748_v46 = vadd.f32 %v4853_v41, %v10268_v21  ;;  %v4855_v3 = vpop.f32.mrb[95].mxu0 }
 0x9be   : > { %v6749_v50 = vadd.f32 %v4855_v3, %v10271_v10  ;;  %v4958_v28 = vadd.f32 %v10339_v53, %v10336_v32 }
 0x9bf   : > { %v10346_v31 = vadd.f32 %v6748_v46, %v11001_v22 }
 0x9c0   : > { %v10349_v6 = vadd.f32 %v6749_v50, %v11002_v35  ;;  %v4859_v48 = vpop.f32.mrb[96].mxu0  ;;  %4959 = vadd.xlane.f32.xlu0 %v4958_v28  ;;  %v11011_v28 = vld [vmem:[#allocation60_spill] sm:$0xff]  ;;  %v11012_v35 = vld [vmem:[#allocation59_spill] sm:$0xff] }
 0x9c1   : > { %v6750_v47 = vadd.f32 %v4859_v48, %v10268_v21  ;;  %v4861_v15 = vpop.f32.mrb[97].mxu0 }
 0x9c2   : > { %v6751_v17 = vadd.f32 %v4861_v15, %v10271_v10  ;;  %v4961_v14 = vadd.f32 %v10349_v6, %v10346_v31 }
 0x9c3   : > { %v10356_v62 = vadd.f32 %v6750_v47, %v11003_v33 }
 0x9c4   : > { %v10359_v20 = vadd.f32 %v6751_v17, %v11004_v57  ;;  %v4865_v18 = vpop.f32.mrb[98].mxu0  ;;  %4962 = vadd.xlane.f32.xlu1 %v4961_v14  ;;  %v11013_v57 = vld [vmem:[#allocation62_spill] sm:$0xff] }
 0x9c5   : > { %v6752_v16 = vadd.f32 %v4865_v18, %v10268_v21  ;;  %v4867_v52 = vpop.f32.mrb[99].mxu0 }
 0x9c6   : > { %v6753_v12 = vadd.f32 %v4867_v52, %v10271_v10  ;;  %v4964_v60 = vadd.f32 %v10359_v20, %v10356_v62 }
 0x9c7   : > { %v10366_v2 = vadd.f32 %v6752_v16, %v11005_v55  ;;  %v11014_v16 = vld [vmem:[#allocation61_spill] sm:$0xff] }
 0x9c8   : > { %v10369_v1 = vadd.f32 %v6753_v12, %v11006_v30  ;;  %v4871_v24 = vpop.f32.mrb[100].mxu0  ;;  %4965 = vadd.xlane.f32.xlu0 %v4964_v60 }
 0x9c9   : > { %v6754_v61 = vadd.f32 %v4871_v24, %v10268_v21  ;;  %v4873_v11 = vpop.f32.mrb[101].mxu0 }
 0x9ca   : > { %v6755_v43 = vadd.f32 %v4873_v11, %v10271_v10  ;;  %v4967_v38 = vadd.f32 %v10369_v1, %v10366_v2 }
 0x9cb   : > { %v10376_v13 = vadd.f32 %v6754_v61, %v11007_v42  ;;  %v11015_v61 = vld [vmem:[#allocation64_spill] sm:$0xff] }
 0x9cc   : > { %v10379_v27 = vadd.f32 %v6755_v43, %v11008_v7  ;;  %v4877_v9 = vpop.f32.mrb[102].mxu0  ;;  %4968 = vadd.xlane.f32.xlu1 %v4967_v38  ;;  %v11016_v43 = vld [vmem:[#allocation63_spill] sm:$0xff] }
 0x9cd   : > { %v6756_v4 = vadd.f32 %v4877_v9, %v10268_v21  ;;  %v4879_v25 = vpop.f32.mrb[103].mxu0 }
 0x9ce   : > { %v6757_v26 = vadd.f32 %v4879_v25, %v10271_v10  ;;  %v4970_v39 = vadd.f32 %v10379_v27, %v10376_v13 }
 0x9cf   : > { %v10386_v29 = vadd.f32 %v6756_v4, %v11009_v49  ;;  %v11018_v49 = vld [vmem:[#allocation65_spill] sm:$0xff] }
 0x9d0   : > { %v10389_v54 = vadd.f32 %v6757_v26, %v11010_v37  ;;  %v4883_v58 = vpop.f32.mrb[104].mxu0  ;;  %4971 = vadd.xlane.f32.xlu0 %v4970_v39  ;;  %v11017_v26 = vld [vmem:[#allocation66_spill] sm:$0xff] }
 0x9d1   : > { %v6758_v41 = vadd.f32 %v4883_v58, %v10268_v21  ;;  %v4885_v46 = vpop.f32.mrb[105].mxu0 }
 0x9d2   : > { %v6759_v3 = vadd.f32 %v4885_v46, %v10271_v10  ;;  %v4973_v50 = vadd.f32 %v10389_v54, %v10386_v29 }
 0x9d3   : > { %v10396_v22 = vadd.f32 %v6758_v41, %v11011_v28 }
 0x9d4   : > { %v10399_v48 = vadd.f32 %v6759_v3, %v11012_v35  ;;  %v4889_v47 = vpop.f32.mrb[106].mxu0  ;;  %4974 = vadd.xlane.f32.xlu1 %v4973_v50 }
 0x9d5   : > { %v6760_v15 = vadd.f32 %v4889_v47, %v10268_v21  ;;  %v4891_v17 = vpop.f32.mrb[107].mxu0 }
 0x9d6   : > { %v6761_v14 = vadd.f32 %v4891_v17, %v10271_v10  ;;  %v4976_v33 = vadd.f32 %v10399_v48, %v10396_v22 }
 0x9d7   : > { %v10406_v18 = vadd.f32 %v6760_v15, %v11013_v57 }
 0x9d8   : > { %v10409_v52 = vadd.f32 %v6761_v14, %v11014_v16  ;;  %v4895_v12 = vpop.f32.mrb[108].mxu0  ;;  %4977 = vadd.xlane.f32.xlu0 %v4976_v33 }
 0x9d9   : > { %v6762_v60 = vadd.f32 %v4895_v12, %v10268_v21  ;;  %v4897_v55 = vpop.f32.mrb[109].mxu0 }
 0x9da   : > { %v6763_v30 = vadd.f32 %v4897_v55, %v10271_v10  ;;  %v4979_v24 = vadd.f32 %v10409_v52, %v10406_v18 }
 0x9db   : > { %v10416_v11 = vadd.f32 %v6762_v60, %v11015_v61 }
 0x9dc   : > { %v10419_v38 = vadd.f32 %v6763_v30, %v11016_v43  ;;  %v4901_v42 = vpop.f32.mrb[110].mxu0  ;;  %4980 = vadd.xlane.f32.xlu1 %v4979_v24 }
 0x9dd   : > { %v6764_v7 = vadd.f32 %v4901_v42, %v10268_v21  ;;  %v4903_v9 = vpop.f32.mrb[111].mxu0 }
 0x9de   : > { %v6765_v4 = vadd.f32 %v4903_v9, %v10271_v10  ;;  %v4982_v25 = vadd.f32 %v10419_v38, %v10416_v11 }
 0x9df   : > { %v10426_v39 = vadd.f32 %v6764_v7, %v11017_v26 }
 0x9e0   : > { %v10429_v37 = vadd.f32 %v6765_v4, %v11018_v49  ;;  %4983 = vadd.xlane.f32.xlu0 %v4982_v25 }
 0x9e2   : > { %v4985_v58 = vadd.f32 %v10429_v37, %v10426_v39 }
 0x9e4   : > { %4986 = vadd.xlane.f32.xlu1 %v4985_v58 }
 0xa35   : > { %v4942_v41 = vpop.xlane.xlu0 %4941 }
 0xa36   : > { %v4988_v46 = vmul.f32 0.00390625, %v4942_v41 }
 0xa38   : > { %v10434_v21 = vsub.f32 %v10276_v19, %v4988_v46  ;;  %v10437_v10 = vsub.f32 %v10279_v63, %v4988_v46 }
 0xa39   : > { %v4945_v3 = vpop.xlane.xlu1 %4944 }
 0xa3a   : > { %v5036_v50 = vmul.f32 %v10434_v21, %v10434_v21  ;;  %v5037_v28 = vmul.f32 %v10437_v10, %v10437_v10  ;;  %v4989_v35 = vmul.f32 0.00390625, %v4945_v3 }
 0xa3c   : > { %v10444_v47 = vsub.f32 %v10286_v34, %v4989_v35  ;;  %v10447_v15 = vsub.f32 %v10289_v44, %v4989_v35  ;;  %v5068_v17 = vadd.f32 %v5037_v28, %v5036_v50 }
 0xa3d   : > { %v4948_v19 = vpop.xlane.xlu0 %4947 }
 0xa3e   : > { %v5038_v63 = vmul.f32 %v10444_v47, %v10444_v47  ;;  %v5039_v14 = vmul.f32 %v10447_v15, %v10447_v15  ;;  %v4990_v33 = vmul.f32 0.00390625, %v4948_v19  ;;  %5069 = vadd.xlane.f32.xlu0 %v5068_v17 }
 0xa40   : > { %v10454_v57 = vsub.f32 %v10296_v5, %v4990_v33  ;;  %v10457_v16 = vsub.f32 %v10299_v56, %v4990_v33  ;;  %v5071_v34 = vadd.f32 %v5039_v14, %v5038_v63 }
 0xa41   : > { %v4951_v12 = vpop.xlane.xlu1 %4950 }
 0xa42   : > { %v5040_v44 = vmul.f32 %v10454_v57, %v10454_v57  ;;  %v5041_v60 = vmul.f32 %v10457_v16, %v10457_v16  ;;  %v4991_v55 = vmul.f32 0.00390625, %v4951_v12  ;;  %5072 = vadd.xlane.f32.xlu1 %v5071_v34 }
 0xa44   : > { %v10464_v30 = vsub.f32 %v10306_v0, %v4991_v55  ;;  %v10467_v24 = vsub.f32 %v10309_v59, %v4991_v55  ;;  %v5074_v5 = vadd.f32 %v5041_v60, %v5040_v44 }
 0xa45   : > { %v4954_v61 = vpop.xlane.xlu0 %4953 }
 0xa46   : > { %v5042_v56 = vmul.f32 %v10464_v30, %v10464_v30  ;;  %v5043_v43 = vmul.f32 %v10467_v24, %v10467_v24  ;;  %v4992_v42 = vmul.f32 0.00390625, %v4954_v61  ;;  %5075 = vadd.xlane.f32.xlu0 %v5074_v5 }
 0xa48   : > { %v10474_v7 = vsub.f32 %v10316_v8, %v4992_v42  ;;  %v10477_v9 = vsub.f32 %v10319_v51, %v4992_v42  ;;  %v5077_v0 = vadd.f32 %v5043_v43, %v5042_v56 }
 0xa49   : > { %v4957_v4 = vpop.xlane.xlu1 %4956 }
 0xa4a   : > { %v5044_v59 = vmul.f32 %v10474_v7, %v10474_v7  ;;  %v5045_v25 = vmul.f32 %v10477_v9, %v10477_v9  ;;  %v4993_v26 = vmul.f32 0.00390625, %v4957_v4  ;;  %5078 = vadd.xlane.f32.xlu1 %v5077_v0 }
 0xa4c   : > { %v10484_v49 = vsub.f32 %v10326_v40, %v4993_v26  ;;  %v10487_v58 = vsub.f32 %v10329_v36, %v4993_v26  ;;  %v5080_v8 = vadd.f32 %v5045_v25, %v5044_v59 }
 0xa4d   : > { %v4960_v41 = vpop.xlane.xlu0 %4959 }
 0xa4e   : > { %v5046_v51 = vmul.f32 %v10484_v49, %v10484_v49  ;;  %v5047_v46 = vmul.f32 %v10487_v58, %v10487_v58  ;;  %v4994_v3 = vmul.f32 0.00390625, %v4960_v41  ;;  %5081 = vadd.xlane.f32.xlu0 %v5080_v8 }
 0xa50   : > { %v10494_v50 = vsub.f32 %v10336_v32, %v4994_v3  ;;  %v10497_v28 = vsub.f32 %v10339_v53, %v4994_v3  ;;  %v5083_v40 = vadd.f32 %v5047_v46, %v5046_v51 }
 0xa51   : > { %v4963_v35 = vpop.xlane.xlu1 %4962 }
 0xa52   : > { %v5048_v36 = vmul.f32 %v10494_v50, %v10494_v50  ;;  %v5049_v17 = vmul.f32 %v10497_v28, %v10497_v28  ;;  %v4995_v19 = vmul.f32 0.00390625, %v4963_v35  ;;  %5084 = vadd.xlane.f32.xlu1 %v5083_v40 }
 0xa54   : > { %v10504_v63 = vsub.f32 %v10346_v31, %v4995_v19  ;;  %v10507_v14 = vsub.f32 %v10349_v6, %v4995_v19  ;;  %v5086_v32 = vadd.f32 %v5049_v17, %v5048_v36 }
 0xa55   : > { %v4966_v33 = vpop.xlane.xlu0 %4965 }
 0xa56   : > { %v5050_v53 = vmul.f32 %v10504_v63, %v10504_v63  ;;  %v5051_v34 = vmul.f32 %v10507_v14, %v10507_v14  ;;  %v4996_v12 = vmul.f32 0.00390625, %v4966_v33  ;;  %5087 = vadd.xlane.f32.xlu0 %v5086_v32 }
 0xa58   : > { %v10514_v44 = vsub.f32 %v10356_v62, %v4996_v12  ;;  %v10517_v60 = vsub.f32 %v10359_v20, %v4996_v12  ;;  %v5089_v31 = vadd.f32 %v5051_v34, %v5050_v53 }
 0xa59   : > { %v4969_v55 = vpop.xlane.xlu1 %4968 }
 0xa5a   : > { %v5052_v6 = vmul.f32 %v10514_v44, %v10514_v44  ;;  %v5053_v5 = vmul.f32 %v10517_v60, %v10517_v60  ;;  %v4997_v61 = vmul.f32 0.00390625, %v4969_v55  ;;  %5090 = vadd.xlane.f32.xlu1 %v5089_v31 }
 0xa5c   : > { %v10524_v56 = vsub.f32 %v10366_v2, %v4997_v61  ;;  %v10527_v43 = vsub.f32 %v10369_v1, %v4997_v61  ;;  %v5092_v62 = vadd.f32 %v5053_v5, %v5052_v6 }
 0xa5d   : > { %v4972_v42 = vpop.xlane.xlu0 %4971 }
 0xa5e   : > { %v5054_v20 = vmul.f32 %v10524_v56, %v10524_v56  ;;  %v5055_v0 = vmul.f32 %v10527_v43, %v10527_v43  ;;  %v4998_v4 = vmul.f32 0.00390625, %v4972_v42  ;;  %5093 = vadd.xlane.f32.xlu0 %v5092_v62 }
 0xa60   : > { %v10534_v59 = vsub.f32 %v10376_v13, %v4998_v4  ;;  %v10537_v25 = vsub.f32 %v10379_v27, %v4998_v4  ;;  %v5095_v2 = vadd.f32 %v5055_v0, %v5054_v20 }
 0xa61   : > { %v4975_v26 = vpop.xlane.xlu1 %4974 }
 0xa62   : > { %v5056_v1 = vmul.f32 %v10534_v59, %v10534_v59  ;;  %v5057_v8 = vmul.f32 %v10537_v25, %v10537_v25  ;;  %v4999_v41 = vmul.f32 0.00390625, %v4975_v26  ;;  %5096 = vadd.xlane.f32.xlu1 %v5095_v2 }
 0xa64   : > { %v10544_v51 = vsub.f32 %v10386_v29, %v4999_v41  ;;  %v10547_v46 = vsub.f32 %v10389_v54, %v4999_v41  ;;  %v5098_v13 = vadd.f32 %v5057_v8, %v5056_v1 }
 0xa65   : > { %v4978_v3 = vpop.xlane.xlu0 %4977 }
 0xa66   : > { %v5058_v27 = vmul.f32 %v10544_v51, %v10544_v51  ;;  %v5059_v40 = vmul.f32 %v10547_v46, %v10547_v46  ;;  %v5000_v35 = vmul.f32 0.00390625, %v4978_v3  ;;  %5099 = vadd.xlane.f32.xlu0 %v5098_v13 }
 0xa68   : > { %v10554_v36 = vsub.f32 %v10396_v22, %v5000_v35  ;;  %v10557_v17 = vsub.f32 %v10399_v48, %v5000_v35  ;;  %v5101_v29 = vadd.f32 %v5059_v40, %v5058_v27  ;;  %v4938_v27 = vld [vmem:[#allocation18] sm:$0x3] }
 0xa69   : > { %v4981_v19 = vpop.xlane.xlu1 %4980 }
 0xa6a   : > { %v5060_v54 = vmul.f32 %v10554_v36, %v10554_v36  ;;  %v5061_v32 = vmul.f32 %v10557_v17, %v10557_v17  ;;  %v5001_v33 = vmul.f32 0.00390625, %v4981_v19  ;;  %5102 = vadd.xlane.f32.xlu1 %v5101_v29  ;;  %v4939_v29 = vld [vmem:[#allocation20] sm:$0x3] }
 0xa6c   : > { %v10564_v53 = vsub.f32 %v10406_v18, %v5001_v33  ;;  %v10567_v34 = vsub.f32 %v10409_v52, %v5001_v33  ;;  %v5104_v22 = vadd.f32 %v5061_v32, %v5060_v54  ;;  %v10594_v54 = vrot.slane %v4938_v27, %v10985_v45 }
 0xa6d   : > { %v4984_v12 = vpop.xlane.xlu0 %4983  ;;  %v10597_v32 = vrot.slane %v4938_v27, %v10986_v23 }
 0xa6e   : > { %v5062_v48 = vmul.f32 %v10564_v53, %v10564_v53  ;;  %v5063_v31 = vmul.f32 %v10567_v34, %v10567_v34  ;;  %v5002_v55 = vmul.f32 0.00390625, %v4984_v12  ;;  %5105 = vadd.xlane.f32.xlu0 %v5104_v22  ;;  %v10600_v12 = vrot.slane %v4939_v29, %v10985_v45 }
 0xa70   : > { %v10574_v6 = vsub.f32 %v10416_v11, %v5002_v55  ;;  %v10577_v5 = vsub.f32 %v10419_v38, %v5002_v55  ;;  %v5107_v18 = vadd.f32 %v5063_v31, %v5062_v48  ;;  %v10603_v48 = vrot.slane %v4939_v29, %v10986_v23 }
 0xa71   : > { %v4987_v61 = vpop.xlane.xlu1 %4986 }
 0xa72   : > { %v5064_v52 = vmul.f32 %v10574_v6, %v10574_v6  ;;  %v5065_v62 = vmul.f32 %v10577_v5, %v10577_v5  ;;  %v5003_v42 = vmul.f32 0.00390625, %v4987_v61  ;;  %5108 = vadd.xlane.f32.xlu1 %v5107_v18 }
 0xa74   : > { %v10584_v20 = vsub.f32 %v10426_v39, %v5003_v42  ;;  %v10587_v0 = vsub.f32 %v10429_v37, %v5003_v42  ;;  %v5110_v11 = vadd.f32 %v5065_v62, %v5064_v52 }
 0xa76   : > { %v5066_v38 = vmul.f32 %v10584_v20, %v10584_v20  ;;  %v5067_v4 = vmul.f32 %v10587_v0, %v10587_v0  ;;  %5111 = vadd.xlane.f32.xlu0 %v5110_v11 }
 0xa78   : > { %v5113_v2 = vadd.f32 %v5067_v4, %v5066_v38 }
 0xa7a   : > { %5114 = vadd.xlane.f32.xlu1 %v5113_v2 }
 0xacb   : > { %v5070_v26 = vpop.xlane.xlu0 %5069 }
 0xacc   : > { %v5116_v1 = vmul.f32 0.00390625, %v5070_v26 }
 0xace   : > { %v5132_v8 = vadd.f32 1e-05, %v5116_v1 }
 0xacf   : > { %v5073_v41 = vpop.xlane.xlu1 %5072 }
 0xad0   : > { %7194 = vrsqrt.f32 %v5132_v8  ;;  %v5117_v39 = vmul.f32 0.00390625, %v5073_v41 }
 0xad2   : > { %v5133_v13 = vadd.f32 1e-05, %v5117_v39 }
 0xad3   : > { %v5076_v3 = vpop.xlane.xlu0 %5075 }
 0xad4   : > { %7196 = vrsqrt.f32 %v5133_v13  ;;  %v5118_v37 = vmul.f32 0.00390625, %v5076_v3 }
 0xad6   : > { %v5134_v40 = vadd.f32 1e-05, %v5118_v37 }
 0xad7   : > { %v5079_v35 = vpop.xlane.xlu1 %5078 }
 0xad8   : > { %7198 = vrsqrt.f32 %v5134_v40  ;;  %v5119_v19 = vmul.f32 0.00390625, %v5079_v35 }
 0xada   : > { %v7195_v33 = vpop.eup %7194  ;;  %v5135_v22 = vadd.f32 1e-05, %v5119_v19 }
 0xadb   : > { %v5164_v31 = vmul.f32 %v7195_v33, %v10434_v21  ;;  %v5165_v55 = vmul.f32 %v7195_v33, %v10437_v10  ;;  %v5082_v18 = vpop.xlane.xlu0 %5081 }
 0xadc   : > { %7200 = vrsqrt.f32 %v5135_v22  ;;  %v5120_v61 = vmul.f32 0.00390625, %v5082_v18 }
 0xadd   : > { %v5207_v52 = vmul.f32 %v10594_v54, %v5164_v31  ;;  %v5208_v62 = vmul.f32 %v10597_v32, %v5165_v55 }
 0xade   : > { %v7197_v42 = vpop.eup %7196  ;;  %v5136_v11 = vadd.f32 1e-05, %v5120_v61 }
 0xadf   : > { %v5250_v45 = vadd.f32 %v10600_v12, %v5207_v52  ;;  %v5251_v38 = vadd.f32 %v10603_v48, %v5208_v62  ;;  %v5166_v23 = vmul.f32 %v7197_v42, %v10444_v47  ;;  %v5167_v21 = vmul.f32 %v7197_v42, %v10447_v15  ;;  %v5085_v4 = vpop.xlane.xlu1 %5084 }
 0xae0   : > { %7202 = vrsqrt.f32 %v5136_v11  ;;  %v5121_v10 = vmul.f32 0.00390625, %v5085_v4 }
 0xae1   : > { %5282 = vst [vmem:[%s10615_s0] sm:$0xff] %v5250_v45  ;;  %5283 = vst [vmem:[%s10615_s0 + $0x8] sm:$0xff] %v5251_v38  ;;  %v5209_v2 = vmul.f32 %v10594_v54, %v5166_v23  ;;  %v5210_v26 = vmul.f32 %v10597_v32, %v5167_v21 }
 0xae2   : > { %v7199_v1 = vpop.eup %7198  ;;  %v5137_v47 = vadd.f32 1e-05, %v5121_v10 }
 0xae3   : > { %v5252_v15 = vadd.f32 %v10600_v12, %v5209_v2  ;;  %v5253_v8 = vadd.f32 %v10603_v48, %v5210_v26  ;;  %v5168_v41 = vmul.f32 %v7199_v1, %v10454_v57  ;;  %v5169_v39 = vmul.f32 %v7199_v1, %v10457_v16  ;;  %v5088_v13 = vpop.xlane.xlu0 %5087 }
 0xae4   : > { %7204 = vrsqrt.f32 %v5137_v47  ;;  %v5122_v3 = vmul.f32 0.00390625, %v5088_v13 }
 0xae5   : > { %5284 = vst [vmem:[%s10615_s0 + $0x10] sm:$0xff] %v5252_v15  ;;  %5285 = vst [vmem:[%s10615_s0 + $0x18] sm:$0xff] %v5253_v8  ;;  %v5211_v37 = vmul.f32 %v10594_v54, %v5168_v41  ;;  %v5212_v27 = vmul.f32 %v10597_v32, %v5169_v39 }
 0xae6   : > { %v7201_v40 = vpop.eup %7200  ;;  %v5138_v35 = vadd.f32 1e-05, %v5122_v3 }
 0xae7   : > { %v5254_v29 = vadd.f32 %v10600_v12, %v5211_v37  ;;  %v5255_v19 = vadd.f32 %v10603_v48, %v5212_v27  ;;  %v5170_v57 = vmul.f32 %v7201_v40, %v10464_v30  ;;  %v5171_v16 = vmul.f32 %v7201_v40, %v10467_v24  ;;  %v5091_v33 = vpop.xlane.xlu1 %5090 }
 0xae8   : > { %7206 = vrsqrt.f32 %v5138_v35  ;;  %v5123_v22 = vmul.f32 0.00390625, %v5091_v33 }
 0xae9   : > { %5286 = vst [vmem:[%s10615_s0 + $0x20] sm:$0xff] %v5254_v29  ;;  %5287 = vst [vmem:[%s10615_s0 + $0x28] sm:$0xff] %v5255_v19  ;;  %v5213_v31 = vmul.f32 %v10594_v54, %v5170_v57  ;;  %v5214_v55 = vmul.f32 %v10597_v32, %v5171_v16 }
 0xaea   : > { %v7203_v18 = vpop.eup %7202  ;;  %v5139_v61 = vadd.f32 1e-05, %v5123_v22 }
 0xaeb   : > { %v5256_v52 = vadd.f32 %v10600_v12, %v5213_v31  ;;  %v5257_v62 = vadd.f32 %v10603_v48, %v5214_v55  ;;  %v5172_v30 = vmul.f32 %v7203_v18, %v10474_v7  ;;  %v5173_v24 = vmul.f32 %v7203_v18, %v10477_v9  ;;  %v5094_v42 = vpop.xlane.xlu0 %5093 }
 0xaec   : > { %7208 = vrsqrt.f32 %v5139_v61  ;;  %v5124_v11 = vmul.f32 0.00390625, %v5094_v42 }
 0xaed   : > { %5288 = vst [vmem:[%s10615_s0 + $0x30] sm:$0xff] %v5256_v52  ;;  %5289 = vst [vmem:[%s10615_s0 + $0x38] sm:$0xff] %v5257_v62  ;;  %v5215_v45 = vmul.f32 %v10594_v54, %v5172_v30  ;;  %v5216_v38 = vmul.f32 %v10597_v32, %v5173_v24 }
 0xaee   : > { %v7205_v23 = vpop.eup %7204  ;;  %v5140_v21 = vadd.f32 1e-05, %v5124_v11 }
 0xaef   : > { %v5258_v4 = vadd.f32 %v10600_v12, %v5215_v45  ;;  %v5259_v10 = vadd.f32 %v10603_v48, %v5216_v38  ;;  %v5174_v7 = vmul.f32 %v7205_v23, %v10484_v49  ;;  %v5175_v9 = vmul.f32 %v7205_v23, %v10487_v58  ;;  %v5097_v2 = vpop.xlane.xlu1 %5096 }
 0xaf0   : > { %7210 = vrsqrt.f32 %v5140_v21  ;;  %v5125_v26 = vmul.f32 0.00390625, %v5097_v2 }
 0xaf1   : > { %5290 = vst [vmem:[%s10615_s0 + $0x40] sm:$0xff] %v5258_v4  ;;  %5291 = vst [vmem:[%s10615_s0 + $0x48] sm:$0xff] %v5259_v10  ;;  %v5217_v1 = vmul.f32 %v10594_v54, %v5174_v7  ;;  %v5218_v47 = vmul.f32 %v10597_v32, %v5175_v9 }
 0xaf2   : > { %v7207_v15 = vpop.eup %7206  ;;  %v5141_v8 = vadd.f32 1e-05, %v5125_v26 }
 0xaf3   : > { %v5260_v41 = vadd.f32 %v10600_v12, %v5217_v1  ;;  %v5261_v39 = vadd.f32 %v10603_v48, %v5218_v47  ;;  %v5176_v49 = vmul.f32 %v7207_v15, %v10494_v50  ;;  %v5177_v58 = vmul.f32 %v7207_v15, %v10497_v28  ;;  %v5100_v13 = vpop.xlane.xlu0 %5099 }
 0xaf4   : > { %7212 = vrsqrt.f32 %v5141_v8  ;;  %v5126_v3 = vmul.f32 0.00390625, %v5100_v13 }
 0xaf5   : > { %5292 = vst [vmem:[%s10615_s0 + $0x50] sm:$0xff] %v5260_v41  ;;  %5293 = vst [vmem:[%s10615_s0 + $0x58] sm:$0xff] %v5261_v39  ;;  %v5219_v37 = vmul.f32 %v10594_v54, %v5176_v49  ;;  %v5220_v27 = vmul.f32 %v10597_v32, %v5177_v58 }
 0xaf6   : > { %v7209_v40 = vpop.eup %7208  ;;  %v5142_v35 = vadd.f32 1e-05, %v5126_v3 }
 0xaf7   : > { %v5262_v29 = vadd.f32 %v10600_v12, %v5219_v37  ;;  %v5263_v19 = vadd.f32 %v10603_v48, %v5220_v27  ;;  %v5178_v50 = vmul.f32 %v7209_v40, %v10504_v63  ;;  %v5179_v28 = vmul.f32 %v7209_v40, %v10507_v14  ;;  %v5103_v57 = vpop.xlane.xlu1 %5102 }
 0xaf8   : > { %7214 = vrsqrt.f32 %v5142_v35  ;;  %v5127_v16 = vmul.f32 0.00390625, %v5103_v57 }
 0xaf9   : > { %5294 = vst [vmem:[%s10615_s0 + $0x60] sm:$0xff] %v5262_v29  ;;  %5295 = vst [vmem:[%s10615_s0 + $0x68] sm:$0xff] %v5263_v19  ;;  %v5221_v33 = vmul.f32 %v10594_v54, %v5178_v50  ;;  %v5222_v22 = vmul.f32 %v10597_v32, %v5179_v28 }
 0xafa   : > { %v7211_v31 = vpop.eup %7210  ;;  %v5143_v55 = vadd.f32 1e-05, %v5127_v16 }
 0xafb   : > { %v5264_v18 = vadd.f32 %v10600_v12, %v5221_v33  ;;  %v5265_v61 = vadd.f32 %v10603_v48, %v5222_v22  ;;  %v5180_v63 = vmul.f32 %v7211_v31, %v10514_v44  ;;  %v5181_v14 = vmul.f32 %v7211_v31, %v10517_v60  ;;  %v5106_v52 = vpop.xlane.xlu0 %5105 }
 0xafc   : > { %7216 = vrsqrt.f32 %v5143_v55  ;;  %v5128_v62 = vmul.f32 0.00390625, %v5106_v52 }
 0xafd   : > { %5296 = vst [vmem:[%s10615_s0 + $0x70] sm:$0xff] %v5264_v18  ;;  %5297 = vst [vmem:[%s10615_s0 + $0x78] sm:$0xff] %v5265_v61  ;;  %v5223_v30 = vmul.f32 %v10594_v54, %v5180_v63  ;;  %v5224_v24 = vmul.f32 %v10597_v32, %v5181_v14 }
 0xafe   : > { %v7213_v42 = vpop.eup %7212  ;;  %v5144_v11 = vadd.f32 1e-05, %v5128_v62 }
 0xaff   : > { %v5266_v45 = vadd.f32 %v10600_v12, %v5223_v30  ;;  %v5267_v38 = vadd.f32 %v10603_v48, %v5224_v24  ;;  %v5182_v44 = vmul.f32 %v7213_v42, %v10524_v56  ;;  %v5183_v60 = vmul.f32 %v7213_v42, %v10527_v43  ;;  %v5109_v23 = vpop.xlane.xlu1 %5108 }
 0xb00   : > { %7218 = vrsqrt.f32 %v5144_v11  ;;  %v5129_v21 = vmul.f32 0.00390625, %v5109_v23 }
 0xb01   : > { %5298 = vst [vmem:[%s10615_s0 + $0x80] sm:$0xff] %v5266_v45  ;;  %5299 = vst [vmem:[%s10615_s0 + $0x88] sm:$0xff] %v5267_v38  ;;  %v5225_v4 = vmul.f32 %v10594_v54, %v5182_v44  ;;  %v5226_v10 = vmul.f32 %v10597_v32, %v5183_v60 }
 0xb02   : > { %v7215_v7 = vpop.eup %7214  ;;  %v5145_v9 = vadd.f32 1e-05, %v5129_v21 }
 0xb03   : > { %v5268_v2 = vadd.f32 %v10600_v12, %v5225_v4  ;;  %v5269_v26 = vadd.f32 %v10603_v48, %v5226_v10  ;;  %v5184_v56 = vmul.f32 %v7215_v7, %v10534_v59  ;;  %v5185_v43 = vmul.f32 %v7215_v7, %v10537_v25  ;;  %v5112_v1 = vpop.xlane.xlu0 %5111 }
 0xb04   : > { %7220 = vrsqrt.f32 %v5145_v9  ;;  %v5130_v47 = vmul.f32 0.00390625, %v5112_v1 }
 0xb05   : > { %5300 = vst [vmem:[%s10615_s0 + $0x90] sm:$0xff] %v5268_v2  ;;  %5301 = vst [vmem:[%s10615_s0 + $0x98] sm:$0xff] %v5269_v26  ;;  %v5227_v15 = vmul.f32 %v10594_v54, %v5184_v56  ;;  %v5228_v8 = vmul.f32 %v10597_v32, %v5185_v43 }
 0xb06   : > { %v7217_v41 = vpop.eup %7216  ;;  %v5146_v39 = vadd.f32 1e-05, %v5130_v47 }
 0xb07   : > { %v5270_v49 = vadd.f32 %v10600_v12, %v5227_v15  ;;  %v5271_v58 = vadd.f32 %v10603_v48, %v5228_v8  ;;  %v5186_v59 = vmul.f32 %v7217_v41, %v10544_v51  ;;  %v5187_v25 = vmul.f32 %v7217_v41, %v10547_v46  ;;  %v5115_v13 = vpop.xlane.xlu1 %5114 }
 0xb08   : > { %7222 = vrsqrt.f32 %v5146_v39  ;;  %v5131_v3 = vmul.f32 0.00390625, %v5115_v13 }
 0xb09   : > { %5302 = vst [vmem:[%s10615_s0 + $0xa0] sm:$0xff] %v5270_v49  ;;  %5303 = vst [vmem:[%s10615_s0 + $0xa8] sm:$0xff] %v5271_v58  ;;  %v5229_v37 = vmul.f32 %v10594_v54, %v5186_v59  ;;  %v5230_v27 = vmul.f32 %v10597_v32, %v5187_v25 }
 0xb0a   : > { %v7219_v40 = vpop.eup %7218  ;;  %v5147_v35 = vadd.f32 1e-05, %v5131_v3 }
 0xb0b   : > { %v5272_v29 = vadd.f32 %v10600_v12, %v5229_v37  ;;  %v5273_v51 = vadd.f32 %v10603_v48, %v5230_v27  ;;  %v5188_v46 = vmul.f32 %v7219_v40, %v10554_v36  ;;  %v5189_v19 = vmul.f32 %v7219_v40, %v10557_v17 }
 0xb0c   : > { %7224 = vrsqrt.f32 %v5147_v35 }
 0xb0d   : > { %5304 = vst [vmem:[%s10615_s0 + $0xb0] sm:$0xff] %v5272_v29  ;;  %5305 = vst [vmem:[%s10615_s0 + $0xb8] sm:$0xff] %v5273_v51  ;;  %v5231_v50 = vmul.f32 %v10594_v54, %v5188_v46  ;;  %v5232_v28 = vmul.f32 %v10597_v32, %v5189_v19 }
 0xb0e   : > { %v7221_v57 = vpop.eup %7220 }
 0xb0f   : > { %v5274_v16 = vadd.f32 %v10600_v12, %v5231_v50  ;;  %v5275_v33 = vadd.f32 %v10603_v48, %v5232_v28  ;;  %v5190_v22 = vmul.f32 %v7221_v57, %v10564_v53  ;;  %v5191_v36 = vmul.f32 %v7221_v57, %v10567_v34 }
 0xb11   : > { %5306 = vst [vmem:[%s10615_s0 + $0xc0] sm:$0xff] %v5274_v16  ;;  %5307 = vst [vmem:[%s10615_s0 + $0xc8] sm:$0xff] %v5275_v33  ;;  %v5233_v17 = vmul.f32 %v10594_v54, %v5190_v22  ;;  %v5234_v31 = vmul.f32 %v10597_v32, %v5191_v36 }
 0xb12   : > { %v7223_v55 = vpop.eup %7222 }
 0xb13   : > { %v5276_v18 = vadd.f32 %v10600_v12, %v5233_v17  ;;  %v5277_v61 = vadd.f32 %v10603_v48, %v5234_v31  ;;  %v5192_v63 = vmul.f32 %v7223_v55, %v10574_v6  ;;  %v5193_v53 = vmul.f32 %v7223_v55, %v10577_v5 }
 0xb15   : > { %5308 = vst [vmem:[%s10615_s0 + $0xd0] sm:$0xff] %v5276_v18  ;;  %5309 = vst [vmem:[%s10615_s0 + $0xd8] sm:$0xff] %v5277_v61  ;;  %v5235_v34 = vmul.f32 %v10594_v54, %v5192_v63  ;;  %v5236_v14 = vmul.f32 %v10597_v32, %v5193_v53 }
 0xb16   : > { %v7225_v52 = vpop.eup %7224 }
 0xb17   : > { %v5278_v62 = vadd.f32 %v10600_v12, %v5235_v34  ;;  %v5279_v30 = vadd.f32 %v10603_v48, %v5236_v14  ;;  %v5194_v24 = vmul.f32 %v7225_v52, %v10584_v20  ;;  %v5195_v6 = vmul.f32 %v7225_v52, %v10587_v0 }
 0xb19   : > { %5310 = vst [vmem:[%s10615_s0 + $0xe0] sm:$0xff] %v5278_v62  ;;  %5311 = vst [vmem:[%s10615_s0 + $0xe8] sm:$0xff] %v5279_v30  ;;  %v5237_v5 = vmul.f32 %v10594_v54, %v5194_v24  ;;  %v5238_v42 = vmul.f32 %v10597_v32, %v5195_v6 }
 0xb1b   : > { %v5280_v20 = vadd.f32 %v10600_v12, %v5237_v5  ;;  %v5281_v0 = vadd.f32 %v10603_v48, %v5238_v42 }
 0xb1d   : > { %5312 = vst [vmem:[%s10615_s0 + $0xf0] sm:$0xff] %v5280_v20  ;;  %5313 = vst [vmem:[%s10615_s0 + $0xf8] sm:$0xff] %v5281_v0 }
 0xb1e   : > { %7582 = shalt.err (!%p7579_p8)
}
 0xb1f   : > { %s7583_s0 = scalar_lea.hbm %s10738_s23, 4096  ;;  %s7587_s29 = scalar_lea.hbm %s11020_s16, 8192 }
 0xb20   : > { %p7584_p3 = scmp.ne.s32.totalorder %s10738_s23, %s7583_s0  ;;  %p7588_p13 = scmp.lt.u32.totalorder %s10738_s23, %s11020_s16 }
 0xb21   : > { %p7589_p1 = scmp.lt.u32.totalorder %s7587_s29, %s7583_s0  ;;  %p7591_p2 = scmp.lt.u32.totalorder %s7583_s0, %s10738_s23 }
 0xb22   : > { %p7585_p11 = pnand %p7584_p3, %p11021_p9 }
 0xb23   : > { %p7590_p4 = por %p7589_p1, %p7588_p13 }
 0xb24   : > { %p7586_p6 = pneg %p7585_p11 }
 0xb25   : > { %p7592_p10 = por %p7591_p2, %p7590_p4 }
 0xb27   : > { %p7593_p12 = pnand %p7592_p10, %p7586_p6 }
 0xb29   : > { %7596 = shalt.err (!%p7593_p12)
}
 0xb2a   : > { %s7692_s14 = smov 256   ;;  %s7693_s15 = smov 16  }
 0xb2b   : > { %6904 = dma.vmem_to_hbm [thread:$0]  (%p11021_p9), %s10740_s28, 4096, %s10738_s23, %s5315_s25, %s7692_s14, %s7692_s14, %s7693_s15  }
 0xb2c PF: > { %s5346_s1 = sand.u32 1, %s7651_s17   ;;  %p11022_p0 = scmp.ne.s32.totalorder %s10881_s24, 0 }
 0xb2d   : > { %p11023_p7 = scmp.ge.s32.totalorder %s7671_s22, 2  ;;  %s5347_s0 = scalar_lea.sflag [#allocation5], %s5346_s1 }
 0xb2f   : > { %p6942_p5 = pnand %p11023_p7, %p11022_p0 }
 0xb31   : > { %7646 = dma.done.wait (!%p6942_p5), %s5347_s0, 4096  }
 0xb32   : > { %7648 = vsyncadd (!%p6942_p5), %s5347_s0, 4294963200  ;;  %s32_s22 = sadd.s32 1, %s7671_s22   ;;  %s11024_s17 = smov %s7655_s18 }
 0xb33   : > { %p29_p8 = scmp.ge.s32.totalorder %s32_s22, 4   ;;  %s11025_s18 = smov %s7659_s19 }
 0xb34   : > { %s11026_s19 = smov %s8038_s11  ;;  %s11027_s20 = smov %s7667_s21 }
 0xb35   : > { %s11028_s21 = smov %s11030_s12  ;;  %31 = sbr.rel (!%p29_p8) target bundleno = 16 (0x10), region = 149 }
 0xb3c   :  { %5352 = vsyncpa [#allocation4], 1 }
 0xb3d   :  { %5354 = vsyncpa [#allocation4 + $0x1], 1 }
 0xb3e   :  { %5355 = vsyncpa [#allocation7], 1 }
 0xb3f   :  { %5356 = vsyncpa [#allocation10], 1 }
 0xb40   :  { %5357 = vsyncpa [#allocation13], 1 }
 0xb41   :  { %5358 = vsyncpa [#allocation16], 1 }
 0xb42   :  { %5359 = vsyncpa [#allocation19], 1 }
 0xb43   :  { %5360 = vsyncpa [#allocation5], 1 }
 0xb44   :  { %5362 = vsyncpa [#allocation5 + $0x1], 1 }

</bundles_post_ra>
